<compile_context>
chip_gen: v7x
topology: tpu7x:2x2x1
jax: 0.10.0
libtpu: 0.0.40
codegen_flags: <defaults>
</compile_context>

<pallas_src>
import functools

import jax
import jax.numpy as jnp
from jax import lax
from jax.experimental import pallas as pl
from jax.experimental.pallas import tpu as pltpu

# ---- hyper-params fixed by high_module.__init__ ----
D_IN = 768    # fc input dim  => channel count C must be 768
D_OUT = 512   # fc output dim


# --------------------------------------------------------------------------
# Pallas kernel: fused spatial-mean pooling + fc matmul
# --------------------------------------------------------------------------
def _mean_fc_kernel(x_ref, w_ref, b_ref, out_ref, acc_ref, *, inv_s):
    k = pl.program_id(0)

    @pl.when(k == 0)
    def _():
        acc_ref[...] = jnp.zeros_like(acc_ref)

    # partial spatial sum for this tile: (B, C, s_tile) -> (B, C)
    acc_ref[...] += jnp.sum(x_ref[...], axis=-1)

    @pl.when(k == pl.num_programs(0) - 1)
    def _():
        pooled = acc_ref[...] * inv_s                         # (B, C) mean
        # fc: pooled (B, C) contracted with native-layout w (D_OUT, C) over C
        out_ref[...] = lax.dot_general(
            pooled, w_ref[...],
            dimension_numbers=(((1,), (1,)), ((), ())),
            preferred_element_type=jnp.float32,
        ) + b_ref[...]                                        # (B, D_OUT)


def _pick_s_tile(B, C, S, budget_bytes=4 << 20):
    """Largest multiple-of-128 spatial tile dividing S within a VMEM budget."""
    if S % 128 != 0:
        return S                                  # full-extent block (legal)
    max_lanes = (budget_bytes // (B * C * 4)) // 128 * 128
    t = min(S, max(128, max_lanes))
    while t > 128 and S % t != 0:
        t -= 128
    return t if S % t == 0 else S


def high_module_forward(x_nchw, params):
    B, C, H, W = x_nchw.shape
    assert C == D_IN, f"fc requires C == {D_IN}, got {C}"
    S = H * W

    feats = x_nchw.reshape(B, C, S).astype(jnp.float32)        # (B, C, S)
    fcw = params["fc_w"].astype(jnp.float32)                   # (D_OUT, D_IN)
    fcb = params["fc_b"].reshape(1, D_OUT).astype(jnp.float32)

    s_tile = _pick_s_tile(B, C, S)
    num_k = S // s_tile

    out = pl.pallas_call(
        functools.partial(_mean_fc_kernel, inv_s=1.0 / S),
        out_shape=jax.ShapeDtypeStruct((B, D_OUT), jnp.float32),
        grid_spec=pltpu.PrefetchScalarGridSpec(
            num_scalar_prefetch=0,
            grid=(num_k,),
            in_specs=[
                pl.BlockSpec((B, C, s_tile), lambda k: (0, 0, k)),   # features
                pl.BlockSpec((D_OUT, C), lambda k: (0, 0)),          # fc weight (native)
                pl.BlockSpec((1, D_OUT), lambda k: (0, 0)),          # fc bias
            ],
            out_specs=pl.BlockSpec((B, D_OUT), lambda k: (0, 0)),
            scratch_shapes=[pltpu.VMEM((B, C), jnp.float32)],        # pooled sums
        ),
        compiler_params=pltpu.CompilerParams(
            dimension_semantics=("arbitrary",)),
    )(feats, fcw, fcb)
    return out


# --------------------------------------------------------------------------
# deterministic parameter init + pure-JAX reference
# --------------------------------------------------------------------------
def init_params(key):
    kw, kb = jax.random.split(key)
    return {
        "fc_w": jax.random.normal(kw, (D_OUT, D_IN), jnp.float32) * 0.02,
        "fc_b": jax.random.normal(kb, (D_OUT,), jnp.float32) * 0.02,
    }


def reference_forward(x_nchw, params):
    B, C, H, W = x_nchw.shape
    feats = x_nchw.reshape(B, C, H * W).astype(jnp.float32)
    pooled = feats.mean(axis=-1)                               # (B, C)
    return jnp.dot(pooled, params["fc_w"].T,
                   precision=lax.Precision.HIGHEST) + params["fc_b"]


if __name__ == "__main__":
    key = jax.random.PRNGKey(0)
    pkey, xkey1, xkey2 = jax.random.split(key, 3)
    params = init_params(pkey)

    # primary small shape consistent with the module: fc forces C = 768
    B, C, H, W = 2, 768, 16, 16
    x1 = jax.random.normal(xkey1, (B, C, H, W), jnp.float32)
    out1 = jax.block_until_ready(high_module_forward(x1, params))
    ref1 = reference_forward(x1, params)
    assert out1.shape == (B, D_OUT)
    err1 = float(jnp.max(jnp.abs(out1 - ref1)))
    assert jnp.allclose(out1, ref1, rtol=1e-4, atol=1e-3), f"max_err={err1}"

    # second shape exercising the multi-tile spatial accumulation path
    x2 = jax.random.normal(xkey2, (B, C, 32, 48), jnp.float32)   # S=1536 -> 3 tiles
    out2 = jax.block_until_ready(high_module_forward(x2, params))
    ref2 = reference_forward(x2, params)
    err2 = float(jnp.max(jnp.abs(out2 - ref2)))
    assert jnp.allclose(out2, ref2, rtol=1e-4, atol=1e-3), f"max_err={err2}"

    print("KERNEL_OK")
</pallas_src>

<mosaic_0001>
module attributes {stable_mosaic.version = 11 : i64} {
  func.func @_mean_fc_kernel(%arg0: i32, %arg1: memref<2x768x256xf32, #tpu.memory_space<vmem>>, %arg2: memref<512x768xf32, #tpu.memory_space<vmem>>, %arg3: memref<1x512xf32, #tpu.memory_space<vmem>>, %arg4: memref<2x512xf32, #tpu.memory_space<vmem>>, %arg5: memref<2x768xf32, #tpu.memory_space<vmem>>) attributes {dimension_semantics = [#tpu.dimension_semantics<arbitrary>], iteration_bounds = array<i64: 1>, scalar_prefetch = 0 : i64, scratch_operands = 1 : i64, tpu.core_type = #tpu.core_type<tc>, window_params = [{transform_indices = @transform_0, window_bounds = array<i64: 2, 768, 256>}, {pipeline_mode = #tpu.pipeline_mode<synchronous>, transform_indices = @transform_1, window_bounds = array<i64: 512, 768>}, {pipeline_mode = #tpu.pipeline_mode<synchronous>, transform_indices = @transform_2, window_bounds = array<i64: 1, 512>}, {pipeline_mode = #tpu.pipeline_mode<synchronous>, transform_indices = @transform_3, window_bounds = array<i64: 2, 512>}]} {
    %c0_i32 = arith.constant 0 : i32
    %0 = arith.cmpi eq, %arg0, %c0_i32 : i32
    %1 = arith.extui %0 : i1 to i32
    %c0_i32_0 = arith.constant 0 : i32
    %2 = arith.cmpi ne, %1, %c0_i32_0 : i32
    scf.if %2 {
      %cst_9 = arith.constant 0.000000e+00 : f32
      %11 = vector.broadcast %cst_9 : f32 to vector<2x768xf32>
      %c0_10 = arith.constant 0 : index
      %c0_11 = arith.constant 0 : index
      %12 = vector.load %arg5[%c0_10, %c0_11] : memref<2x768xf32, #tpu.memory_space<vmem>>, vector<2x768xf32>
      tpu.vector_store %arg5[%c0_10, %c0_11], %11 {strides = array<i32>} : memref<2x768xf32, #tpu.memory_space<vmem>>, vector<2x768xf32>,
    } else {
    }
    %c0 = arith.constant 0 : index
    %c0_1 = arith.constant 0 : index
    %3 = vector.load %arg5[%c0, %c0_1] : memref<2x768xf32, #tpu.memory_space<vmem>>, vector<2x768xf32>
    %c0_2 = arith.constant 0 : index
    %c0_3 = arith.constant 0 : index
    %c0_4 = arith.constant 0 : index
    %4 = vector.load %arg1[%c0_2, %c0_3, %c0_4] : memref<2x768x256xf32, #tpu.memory_space<vmem>>, vector<2x768x256xf32>
    %cst = arith.constant dense<0.000000e+00> : vector<2x768xf32>
    %5 = vector.multi_reduction <add>, %4, %cst [2] : vector<2x768x256xf32> to vector<2x768xf32>
    %6 = arith.addf %3, %5 : vector<2x768xf32>
    %c0_5 = arith.constant 0 : index
    %c0_6 = arith.constant 0 : index
    %7 = vector.load %arg5[%c0_5, %c0_6] : memref<2x768xf32, #tpu.memory_space<vmem>>, vector<2x768xf32>
    tpu.vector_store %arg5[%c0_5, %c0_6], %6 {strides = array<i32>} : memref<2x768xf32, #tpu.memory_space<vmem>>, vector<2x768xf32>,
    %c0_i32_7 = arith.constant 0 : i32
    %8 = arith.cmpi eq, %arg0, %c0_i32_7 : i32
    %9 = arith.extui %8 : i1 to i32
    %c0_i32_8 = arith.constant 0 : i32
    %10 = arith.cmpi ne, %9, %c0_i32_8 : i32
    scf.if %10 {
      %c0_9 = arith.constant 0 : index
      %c0_10 = arith.constant 0 : index
      %11 = vector.load %arg5[%c0_9, %c0_10] : memref<2x768xf32, #tpu.memory_space<vmem>>, vector<2x768xf32>
      %cst_11 = arith.constant 3.906250e-03 : f32
      %12 = vector.broadcast %cst_11 : f32 to vector<2x768xf32>
      %13 = arith.mulf %11, %12 : vector<2x768xf32>
      %c0_12 = arith.constant 0 : index
      %c0_13 = arith.constant 0 : index
      %14 = vector.load %arg2[%c0_12, %c0_13] : memref<512x768xf32, #tpu.memory_space<vmem>>, vector<512x768xf32>
      %cst_14 = arith.constant dense<0.000000e+00> : vector<2x512xf32>
      %15 = tpu.matmul %13, %14, %cst_14 {dimension_numbers = #tpu.dot_dimension_numbers<[1], [1], [0], [0], [0, 0, 1, 0], [], []>} : vector<2x768xf32>, vector<512x768xf32>, vector<2x512xf32> -> vector<2x512xf32>
      %c0_15 = arith.constant 0 : index
      %c0_16 = arith.constant 0 : index
      %16 = vector.load %arg3[%c0_15, %c0_16] : memref<1x512xf32, #tpu.memory_space<vmem>>, vector<1x512xf32>
      %17 = vector.broadcast %16 : vector<1x512xf32> to vector<2x512xf32>
      %18 = arith.addf %15, %17 : vector<2x512xf32>
      %c0_17 = arith.constant 0 : index
      %c0_18 = arith.constant 0 : index
      %19 = vector.load %arg4[%c0_17, %c0_18] : memref<2x512xf32, #tpu.memory_space<vmem>>, vector<2x512xf32>
      tpu.vector_store %arg4[%c0_17, %c0_18], %18 {strides = array<i32>} : memref<2x512xf32, #tpu.memory_space<vmem>>, vector<2x512xf32>,
    } else {
    }
    return
  }
  func.func @transform_0(%arg0: i32) -> (i32, i32, i32) {
    %c0_i32 = arith.constant 0 : i32
    %c0_i32_0 = arith.constant 0 : i32
    %c0_i32_1 = arith.constant 0 : i32
    return %c0_i32, %c0_i32_0, %arg0 : i32, i32, i32
  }
  func.func @transform_1(%arg0: i32) -> (i32, i32) {
    %c0_i32 = arith.constant 0 : i32
    %c0_i32_0 = arith.constant 0 : i32
    %c0_i32_1 = arith.constant 0 : i32
    return %c0_i32, %c0_i32_0 : i32, i32
  }
  func.func @transform_2(%arg0: i32) -> (i32, i32) {
    %c0_i32 = arith.constant 0 : i32
    %c0_i32_0 = arith.constant 0 : i32
    %c0_i32_1 = arith.constant 0 : i32
    return %c0_i32, %c0_i32_0 : i32, i32
  }
  func.func @transform_3(%arg0: i32) -> (i32, i32) {
    %c0_i32 = arith.constant 0 : i32
    %c0_i32_0 = arith.constant 0 : i32
    %c0_i32_1 = arith.constant 0 : i32
    return %c0_i32, %c0_i32_0 : i32, i32
  }
}

</mosaic_0001>

<bundles_post_ra>
// kernel: tpu_custom_call.1
= control target key start
LH: loop header
LB: loop body
LE: loop exit
PB: predicated region body
PF: predicated region fallthrough
CT: control target
= control target key end

     0   :  { %8 = vsyncpa [#allocation4], 0  ;;  %s17735_s0 = inlined_call_operand.hbm [shape: f32[2,768,256], index: 0, kind: input, shape index: {}]   ;;  %s17736_s1 = inlined_call_operand.hbm [shape: f32[512,768], index: 1, kind: input, shape index: {}]   ;;  %s17737_s2 = inlined_call_operand.hbm [shape: f32[1,512], index: 2, kind: input, shape index: {}]   ;;  %s17738_s3 = inlined_call_operand.hbm [shape: f32[2,512], index: 3, kind: output, shape index: {}]  }
   0x1   :  { %9 = vsyncpa [#allocation7], 0 }
   0x2   :  { %10 = vsyncpa [#allocation5], 0  ;;  %s12866_s12 = smov [#allocation6]   ;;  %s12772_s16 = scalar_lea.hbm %s17736_s1, 49152 }
   0x3   :  { %s28_s13 = sshll.u32 %s12866_s12, 4  ;;  %p12773_p0 = scmp.ne.s32.totalorder %s17736_s1, %s12772_s16  ;;  %s29_s13 = int_to_ptr.vmem [resolvable:$true] %s28_s13 }
   0x4   :  { %p12776_p1 = scmp.lt.u32.totalorder %s12772_s16, %s17736_s1 }
   0x6   :  { %p12778_p2 = pnand %p12776_p1, %p12773_p0 }
   0x8   :  { %12781 = shalt.err (!%p12778_p2)
}
   0x9   :  { %s12782_s21 = scalar_lea.vmem %s29_s13, 49152  ;;  %p12787_p4 = scmp.lt.s32.totalorder %s29_s13, %s29_s13 }
   0xa   :  { %p12783_p3 = scmp.ne.s32.totalorder %s29_s13, %s12782_s21  ;;  %p12788_p5 = scmp.lt.s32.totalorder %s12782_s21, %s12782_s21 }
   0xc   :  { %p12789_p6 = por %p12788_p5, %p12787_p4 }
   0xe   :  { %p12790_p7 = pnand %p12789_p6, %p12783_p3 }
  0x10   :  { %12793 = shalt.err (!%p12790_p7)
}
  0x11   :  { %s12867_s22 = smov 768   ;;  %s12868_s23 = smov 48  }
  0x12   :  { %34 = dma.hbm_to_vmem [thread:$0]  %s17736_s1, 49152, %s29_s13, [#allocation7], %s12867_s22, %s12867_s22, %s12868_s23  }
  0x13   :  { %s12869_s26 = smov [#allocation3]   ;;  %s12794_s30 = scalar_lea.hbm %s17735_s0, 49152 }
  0x14   :  { %s16_s27 = sshll.u32 %s12869_s26, 4  ;;  %p12795_p8 = scmp.ne.s32.totalorder %s17735_s0, %s12794_s30  ;;  %s17_s27 = int_to_ptr.vmem [resolvable:$true] %s16_s27 }
  0x15   :  { %p12798_p9 = scmp.lt.u32.totalorder %s12794_s30, %s17735_s0 }
  0x17   :  { %p12800_p10 = pnand %p12798_p9, %p12795_p8 }
  0x19   :  { %12803 = shalt.err (!%p12800_p10)
}
  0x1a   :  { %s12804_s8 = scalar_lea.vmem %s17_s27, 49152  ;;  %p12809_p12 = scmp.lt.s32.totalorder %s17_s27, %s17_s27 }
  0x1b   :  { %p12805_p11 = scmp.ne.s32.totalorder %s17_s27, %s12804_s8  ;;  %p12810_p13 = scmp.lt.s32.totalorder %s12804_s8, %s12804_s8 }
  0x1d   :  { %p12811_p0 = por %p12810_p13, %p12809_p12 }
  0x1f   :  { %p12812_p1 = pnand %p12811_p0, %p12805_p11 }
  0x21   :  { %12815 = shalt.err (!%p12812_p1)
}
  0x22   :  { %s12870_s1 = smov 256   ;;  %s12871_s9 = smov 16  }
  0x23   :  { %22 = dma.hbm_to_vmem [thread:$0]  %s17735_s0, 49152, %s17_s27, [#allocation4], %s12870_s1, %s12870_s1, %s12871_s9  }
  0x24   :  { %s12872_s12 = smov [#allocation8]   ;;  %s12816_s16 = scalar_lea.hbm %s17737_s2, 64 }
  0x25   :  { %s41_s13 = sshll.u32 %s12872_s12, 4  ;;  %p12817_p2 = scmp.ne.s32.totalorder %s17737_s2, %s12816_s16  ;;  %s42_s13 = int_to_ptr.vmem [resolvable:$true] %s41_s13 }
  0x26   :  { %p12820_p3 = scmp.lt.u32.totalorder %s12816_s16, %s17737_s2 }
  0x28   :  { %p12822_p4 = pnand %p12820_p3, %p12817_p2 }
  0x2a   :  { %12825 = shalt.err (!%p12822_p4)
}
  0x2b   :  { %s12826_s21 = scalar_lea.vmem %s42_s13, 64  ;;  %p12831_p6 = scmp.lt.s32.totalorder %s42_s13, %s42_s13 }
  0x2c   :  { %p12827_p5 = scmp.ne.s32.totalorder %s42_s13, %s12826_s21  ;;  %p12832_p7 = scmp.lt.s32.totalorder %s12826_s21, %s12826_s21 }
  0x2e   :  { %p12833_p8 = por %p12832_p7, %p12831_p6 }
  0x30   :  { %p12834_p9 = pnand %p12833_p8, %p12827_p5 }
  0x32   :  { %12837 = shalt.err (!%p12834_p9)
}
  0x33   :  { %44 = dma.hbm_to_vmem [thread:$0]  %s17737_s2, 64, %s42_s13, [#allocation7]  }
  0x34   :  { %12860 = dma.done.wait [#allocation4], 49152  }
  0x35   :  { %12861 = vsyncadd [#allocation4], 4294918144 }
  0x36   :  { %12862 = dma.done.wait [#allocation7], 49216  }
  0x37   :  { %12863 = vsyncadd [#allocation7], 4294918080  ;;  %v66_v0 = vld [vmem:[#allocation3 + $0x20] sm:$0xff]  ;;  %v67_v1 = vld [vmem:[#allocation3 + $0x28] sm:$0xff]  ;;  %vm10441_vm0 = vcmask 130112   ;;  %vm10448_vm1 = vcmask 195712  }
  0x38   :  { %v62_v2 = vld [vmem:[#allocation3] sm:$0xff]  ;;  %v452_v3 = vadd.f32 %v67_v1, %v66_v0  ;;  %v63_v4 = vld [vmem:[#allocation3 + $0x8] sm:$0xff]  ;;  %v68_v5 = vld [vmem:[#allocation3 + $0x30] sm:$0xff]  ;;  %vm10455_vm2 = vcmask 261312   ;;  %vm10462_vm3 = vcmask 326912   ;;  %vm10469_vm4 = vcmask 392512  }
  0x39   :  { %v69_v6 = vld [vmem:[#allocation3 + $0x38] sm:$0xff]  ;;  %v446_v7 = vadd.f32 %v63_v4, %v62_v2  ;;  %v64_v8 = vld [vmem:[#allocation3 + $0x10] sm:$0xff]  ;;  %v70_v14 = vld [vmem:[#allocation3 + $0x40] sm:$0xff]  ;;  %vm10476_vm5 = vcmask 458112   ;;  %vm10483_vm6 = vcmask 523712   ;;  %vm10490_vm7 = vcmask 589312  }
  0x3a   :  { %v65_v9 = vld [vmem:[#allocation3 + $0x18] sm:$0xff]  ;;  %453 = vadd.xlane.f32.xlu1 %v452_v3  ;;  %v455_v10 = vadd.f32 %v69_v6, %v68_v5  ;;  %v72_v12 = vld [vmem:[#allocation3 + $0x50] sm:$0xff]  ;;  %v71_v15 = vld [vmem:[#allocation3 + $0x48] sm:$0xff]  ;;  %vm10497_vm8 = vcmask 654912   ;;  %vm10504_vm9 = vcmask 720512   ;;  %vm10511_vm10 = vcmask 786112  }
  0x3b   :  { %447 = vadd.xlane.f32.xlu0 %v446_v7  ;;  %v449_v11 = vadd.f32 %v65_v9, %v64_v8  ;;  %v73_v13 = vld [vmem:[#allocation3 + $0x58] sm:$0xff]  ;;  %v458_v17 = vadd.f32 %v71_v15, %v70_v14  ;;  %v76_v18 = vld [vmem:[#allocation3 + $0x70] sm:$0xff]  ;;  %v74_v20 = vld [vmem:[#allocation3 + $0x60] sm:$0xff]  ;;  %vm10518_vm11 = vcmask 851712   ;;  %vm10525_vm12 = vcmask 917312   ;;  %s12880_s2 = smov [#allocation9]  }
  0x3c   :  { %v461_v16 = vadd.f32 %v73_v13, %v72_v12  ;;  %v77_v19 = vld [vmem:[#allocation3 + $0x78] sm:$0xff]  ;;  %v75_v21 = vld [vmem:[#allocation3 + $0x68] sm:$0xff]  ;;  %v80_v24 = vld [vmem:[#allocation3 + $0x90] sm:$0xff]  ;;  %vm10532_vm13 = vcmask 982912   ;;  %vm10539_vm14 = vcmask 1048512   ;;  %vm11410_vm15 = vcmask 1041409  }
  0x3d   :  { %v467_v22 = vadd.f32 %v77_v19, %v76_v18  ;;  %v464_v23 = vadd.f32 %v75_v21, %v74_v20  ;;  %v81_v25 = vld [vmem:[#allocation3 + $0x98] sm:$0xff]  ;;  %v78_v26 = vld [vmem:[#allocation3 + $0x80] sm:$0xff]  ;;  %v79_v27 = vld [vmem:[#allocation3 + $0x88] sm:$0xff]  ;;  %s12349_s23 = sshll.u32 %s12880_s2, 4  ;;  %s12350_s23 = int_to_ptr.vmem [resolvable:$true] %s12349_s23 }
  0x3e   :  { %456 = vadd.xlane.f32.xlu1 %v455_v10  ;;  %v473_v28 = vadd.f32 %v81_v25, %v80_v24  ;;  %v470_v29 = vadd.f32 %v79_v27, %v78_v26  ;;  %v84_v30 = vld [vmem:[#allocation3 + $0xb0] sm:$0xff]  ;;  %v85_v31 = vld [vmem:[#allocation3 + $0xb8] sm:$0xff]  ;;  %v82_v32 = vld [vmem:[#allocation3 + $0xa0] sm:$0xff]  ;;  %s12838_s24 = scalar_lea.vmem %s12350_s23, 128  ;;  %p12843_p11 = scmp.lt.s32.totalorder %s12350_s23, %s12350_s23 }
  0x3f   :  { %450 = vadd.xlane.f32.xlu0 %v449_v11  ;;  %v83_v33 = vld [vmem:[#allocation3 + $0xa8] sm:$0xff]  ;;  %v479_v34 = vadd.f32 %v85_v31, %v84_v30  ;;  %v88_v36 = vld [vmem:[#allocation3 + $0xd0] sm:$0xff]  ;;  %v89_v37 = vld [vmem:[#allocation3 + $0xd8] sm:$0xff]  ;;  %p12839_p10 = scmp.ne.s32.totalorder %s12350_s23, %s12838_s24  ;;  %p12844_p12 = scmp.lt.s32.totalorder %s12838_s24, %s12838_s24 }
  0x40   :  { %v476_v35 = vadd.f32 %v83_v33, %v82_v32  ;;  %v86_v38 = vld [vmem:[#allocation3 + $0xc0] sm:$0xff]  ;;  %v87_v39 = vld [vmem:[#allocation3 + $0xc8] sm:$0xff]  ;;  %v485_v40 = vadd.f32 %v89_v37, %v88_v36  ;;  %v92_v42 = vld [vmem:[#allocation3 + $0xf0] sm:$0xff] }
  0x41   :  { %v482_v41 = vadd.f32 %v87_v39, %v86_v38  ;;  %v93_v43 = vld [vmem:[#allocation3 + $0xf8] sm:$0xff]  ;;  %v90_v44 = vld [vmem:[#allocation3 + $0xe0] sm:$0xff]  ;;  %v91_v45 = vld [vmem:[#allocation3 + $0xe8] sm:$0xff]  ;;  %p12845_p13 = por %p12844_p12, %p12843_p11 }
  0x42   :  { %462 = vadd.xlane.f32.xlu1 %v461_v16  ;;  %v491_v46 = vadd.f32 %v93_v43, %v92_v42  ;;  %v488_v47 = vadd.f32 %v91_v45, %v90_v44  ;;  %v96_v48 = vld [vmem:[#allocation3 + $0x110] sm:$0xff]  ;;  %v97_v49 = vld [vmem:[#allocation3 + $0x118] sm:$0xff]  ;;  %v94_v50 = vld [vmem:[#allocation3 + $0x100] sm:$0xff] }
  0x43   :  { %459 = vadd.xlane.f32.xlu0 %v458_v17  ;;  %v95_v51 = vld [vmem:[#allocation3 + $0x108] sm:$0xff]  ;;  %v497_v52 = vadd.f32 %v97_v49, %v96_v48  ;;  %v100_v54 = vld [vmem:[#allocation3 + $0x130] sm:$0xff]  ;;  %v101_v55 = vld [vmem:[#allocation3 + $0x138] sm:$0xff]  ;;  %p12846_p0 = pnand %p12845_p13, %p12839_p10 }
  0x44   :  { %v494_v53 = vadd.f32 %v95_v51, %v94_v50  ;;  %v98_v56 = vld [vmem:[#allocation3 + $0x120] sm:$0xff]  ;;  %v99_v57 = vld [vmem:[#allocation3 + $0x128] sm:$0xff]  ;;  %v503_v58 = vadd.f32 %v101_v55, %v100_v54  ;;  %v104_v60 = vld [vmem:[#allocation3 + $0x150] sm:$0xff] }
  0x45   :  { %v500_v59 = vadd.f32 %v99_v57, %v98_v56  ;;  %v105_v61 = vld [vmem:[#allocation3 + $0x158] sm:$0xff]  ;;  %v102_v62 = vld [vmem:[#allocation3 + $0x140] sm:$0xff]  ;;  %v103_v63 = vld [vmem:[#allocation3 + $0x148] sm:$0xff] }
  0x46   :  { %468 = vadd.xlane.f32.xlu1 %v467_v22  ;;  %v509_v0 = vadd.f32 %v105_v61, %v104_v60  ;;  %v506_v1 = vadd.f32 %v103_v63, %v102_v62  ;;  %v108_v2 = vld [vmem:[#allocation3 + $0x170] sm:$0xff]  ;;  %v109_v3 = vld [vmem:[#allocation3 + $0x178] sm:$0xff]  ;;  %v106_v4 = vld [vmem:[#allocation3 + $0x160] sm:$0xff] }
  0x47   :  { %465 = vadd.xlane.f32.xlu0 %v464_v23  ;;  %v107_v5 = vld [vmem:[#allocation3 + $0x168] sm:$0xff]  ;;  %v515_v6 = vadd.f32 %v109_v3, %v108_v2  ;;  %v112_v8 = vld [vmem:[#allocation3 + $0x190] sm:$0xff]  ;;  %v113_v9 = vld [vmem:[#allocation3 + $0x198] sm:$0xff] }
  0x48   :  { %v512_v7 = vadd.f32 %v107_v5, %v106_v4  ;;  %v110_v10 = vld [vmem:[#allocation3 + $0x180] sm:$0xff]  ;;  %v111_v11 = vld [vmem:[#allocation3 + $0x188] sm:$0xff]  ;;  %v521_v12 = vadd.f32 %v113_v9, %v112_v8  ;;  %v116_v14 = vld [vmem:[#allocation3 + $0x1b0] sm:$0xff] }
  0x49   :  { %v518_v13 = vadd.f32 %v111_v11, %v110_v10  ;;  %v117_v15 = vld [vmem:[#allocation3 + $0x1b8] sm:$0xff]  ;;  %v114_v16 = vld [vmem:[#allocation3 + $0x1a0] sm:$0xff]  ;;  %v115_v17 = vld [vmem:[#allocation3 + $0x1a8] sm:$0xff] }
  0x4a   :  { %474 = vadd.xlane.f32.xlu1 %v473_v28  ;;  %v527_v18 = vadd.f32 %v117_v15, %v116_v14  ;;  %v524_v19 = vadd.f32 %v115_v17, %v114_v16  ;;  %v120_v20 = vld [vmem:[#allocation3 + $0x1d0] sm:$0xff]  ;;  %v121_v21 = vld [vmem:[#allocation3 + $0x1d8] sm:$0xff]  ;;  %v118_v22 = vld [vmem:[#allocation3 + $0x1c0] sm:$0xff] }
  0x4b   :  { %471 = vadd.xlane.f32.xlu0 %v470_v29  ;;  %v119_v23 = vld [vmem:[#allocation3 + $0x1c8] sm:$0xff]  ;;  %v533_v24 = vadd.f32 %v121_v21, %v120_v20  ;;  %v124_v26 = vld [vmem:[#allocation3 + $0x1f0] sm:$0xff]  ;;  %v125_v27 = vld [vmem:[#allocation3 + $0x1f8] sm:$0xff] }
  0x4c   :  { %v530_v25 = vadd.f32 %v119_v23, %v118_v22  ;;  %v122_v28 = vld [vmem:[#allocation3 + $0x1e0] sm:$0xff]  ;;  %v123_v29 = vld [vmem:[#allocation3 + $0x1e8] sm:$0xff]  ;;  %v539_v30 = vadd.f32 %v125_v27, %v124_v26  ;;  %v128_v32 = vld [vmem:[#allocation3 + $0x210] sm:$0xff] }
  0x4d   :  { %v536_v31 = vadd.f32 %v123_v29, %v122_v28  ;;  %v129_v33 = vld [vmem:[#allocation3 + $0x218] sm:$0xff]  ;;  %v132_v38 = vld [vmem:[#allocation3 + $0x230] sm:$0xff] }
  0x4e   :  { %480 = vadd.xlane.f32.xlu1 %v479_v34  ;;  %v126_v34 = vld [vmem:[#allocation3 + $0x200] sm:$0xff]  ;;  %v545_v36 = vadd.f32 %v129_v33, %v128_v32  ;;  %v133_v39 = vld [vmem:[#allocation3 + $0x238] sm:$0xff]  ;;  %v136_v44 = vld [vmem:[#allocation3 + $0x250] sm:$0xff] }
  0x4f   :  { %477 = vadd.xlane.f32.xlu0 %v476_v35  ;;  %v127_v35 = vld [vmem:[#allocation3 + $0x208] sm:$0xff]  ;;  %v551_v42 = vadd.f32 %v133_v39, %v132_v38  ;;  %v137_v45 = vld [vmem:[#allocation3 + $0x258] sm:$0xff]  ;;  %v140_v50 = vld [vmem:[#allocation3 + $0x270] sm:$0xff] }
  0x50   :  { %v542_v37 = vadd.f32 %v127_v35, %v126_v34  ;;  %v557_v48 = vadd.f32 %v137_v45, %v136_v44  ;;  %v141_v51 = vld [vmem:[#allocation3 + $0x278] sm:$0xff]  ;;  %v144_v56 = vld [vmem:[#allocation3 + $0x290] sm:$0xff] }
  0x51   :  { %v563_v54 = vadd.f32 %v141_v51, %v140_v50  ;;  %v145_v57 = vld [vmem:[#allocation3 + $0x298] sm:$0xff]  ;;  %v148_v62 = vld [vmem:[#allocation3 + $0x2b0] sm:$0xff] }
  0x52   :  { %486 = vadd.xlane.f32.xlu1 %v485_v40  ;;  %v130_v40 = vld [vmem:[#allocation3 + $0x220] sm:$0xff]  ;;  %v569_v60 = vadd.f32 %v145_v57, %v144_v56  ;;  %v149_v63 = vld [vmem:[#allocation3 + $0x2b8] sm:$0xff]  ;;  %v152_v4 = vld [vmem:[#allocation3 + $0x2d0] sm:$0xff] }
  0x53   :  { %483 = vadd.xlane.f32.xlu0 %v482_v41  ;;  %v131_v41 = vld [vmem:[#allocation3 + $0x228] sm:$0xff]  ;;  %v575_v2 = vadd.f32 %v149_v63, %v148_v62  ;;  %v153_v5 = vld [vmem:[#allocation3 + $0x2d8] sm:$0xff]  ;;  %v156_v10 = vld [vmem:[#allocation3 + $0x2f0] sm:$0xff] }
  0x54   :  { %v548_v43 = vadd.f32 %v131_v41, %v130_v40  ;;  %v581_v8 = vadd.f32 %v153_v5, %v152_v4  ;;  %v157_v11 = vld [vmem:[#allocation3 + $0x2f8] sm:$0xff]  ;;  %v160_v16 = vld [vmem:[#allocation3 + $0x310] sm:$0xff] }
  0x55   :  { %v587_v14 = vadd.f32 %v157_v11, %v156_v10  ;;  %v161_v17 = vld [vmem:[#allocation3 + $0x318] sm:$0xff]  ;;  %v164_v22 = vld [vmem:[#allocation3 + $0x330] sm:$0xff] }
  0x56   :  { %492 = vadd.xlane.f32.xlu1 %v491_v46  ;;  %v134_v46 = vld [vmem:[#allocation3 + $0x240] sm:$0xff]  ;;  %v593_v20 = vadd.f32 %v161_v17, %v160_v16  ;;  %v165_v23 = vld [vmem:[#allocation3 + $0x338] sm:$0xff]  ;;  %v168_v28 = vld [vmem:[#allocation3 + $0x350] sm:$0xff] }
  0x57   :  { %489 = vadd.xlane.f32.xlu0 %v488_v47  ;;  %v135_v47 = vld [vmem:[#allocation3 + $0x248] sm:$0xff]  ;;  %v599_v26 = vadd.f32 %v165_v23, %v164_v22  ;;  %v169_v29 = vld [vmem:[#allocation3 + $0x358] sm:$0xff]  ;;  %v172_v34 = vld [vmem:[#allocation3 + $0x370] sm:$0xff] }
  0x58   :  { %v554_v49 = vadd.f32 %v135_v47, %v134_v46  ;;  %v605_v32 = vadd.f32 %v169_v29, %v168_v28  ;;  %v173_v35 = vld [vmem:[#allocation3 + $0x378] sm:$0xff]  ;;  %v176_v40 = vld [vmem:[#allocation3 + $0x390] sm:$0xff] }
  0x59   :  { %v611_v38 = vadd.f32 %v173_v35, %v172_v34  ;;  %v177_v41 = vld [vmem:[#allocation3 + $0x398] sm:$0xff]  ;;  %v180_v46 = vld [vmem:[#allocation3 + $0x3b0] sm:$0xff]  ;;  %v210_v34 = vld [vmem:[#allocation3 + $0x4a0] sm:$0xff] }
  0x5a   :  { %498 = vadd.xlane.f32.xlu1 %v497_v52  ;;  %v138_v52 = vld [vmem:[#allocation3 + $0x260] sm:$0xff]  ;;  %v617_v44 = vadd.f32 %v177_v41, %v176_v40  ;;  %v181_v47 = vld [vmem:[#allocation3 + $0x3b8] sm:$0xff]  ;;  %v211_v35 = vld [vmem:[#allocation3 + $0x4a8] sm:$0xff] }
  0x5b   :  { %495 = vadd.xlane.f32.xlu0 %v494_v53  ;;  %v139_v53 = vld [vmem:[#allocation3 + $0x268] sm:$0xff]  ;;  %v623_v50 = vadd.f32 %v181_v47, %v180_v46  ;;  %v217_v40 = vld [vmem:[#allocation3 + $0x4d8] sm:$0xff]  ;;  %v220_v47 = vld [vmem:[#allocation3 + $0x4f0] sm:$0xff] }
  0x5c   :  { %v560_v55 = vadd.f32 %v139_v53, %v138_v52  ;;  %v184_v52 = vld [vmem:[#allocation3 + $0x3d0] sm:$0xff]  ;;  %v185_v53 = vld [vmem:[#allocation3 + $0x3d8] sm:$0xff] }
  0x5d   :  { %v629_v56 = vadd.f32 %v185_v53, %v184_v52 }
  0x5e   :  { %504 = vadd.xlane.f32.xlu1 %v503_v58  ;;  %v142_v58 = vld [vmem:[#allocation3 + $0x280] sm:$0xff] }
  0x5f   :  { %501 = vadd.xlane.f32.xlu0 %v500_v59  ;;  %v143_v59 = vld [vmem:[#allocation3 + $0x288] sm:$0xff] }
  0x60   :  { %v566_v61 = vadd.f32 %v143_v59, %v142_v58  ;;  %v188_v58 = vld [vmem:[#allocation3 + $0x3f0] sm:$0xff]  ;;  %v189_v59 = vld [vmem:[#allocation3 + $0x3f8] sm:$0xff] }
  0x61   :  { %v635_v62 = vadd.f32 %v189_v59, %v188_v58  ;;  %v222_v58 = vld [vmem:[#allocation3 + $0x500] sm:$0xff]  ;;  %v223_v59 = vld [vmem:[#allocation3 + $0x508] sm:$0xff] }
  0x62   :  { %510 = vadd.xlane.f32.xlu1 %v509_v0  ;;  %v146_v0 = vld [vmem:[#allocation3 + $0x2a0] sm:$0xff] }
  0x63   :  { %507 = vadd.xlane.f32.xlu0 %v506_v1  ;;  %v147_v1 = vld [vmem:[#allocation3 + $0x2a8] sm:$0xff] }
  0x64   :  { %v572_v3 = vadd.f32 %v147_v1, %v146_v0  ;;  %v192_v0 = vld [vmem:[#allocation3 + $0x410] sm:$0xff]  ;;  %v193_v1 = vld [vmem:[#allocation3 + $0x418] sm:$0xff] }
  0x65   :  { %v641_v4 = vadd.f32 %v193_v1, %v192_v0  ;;  %v229_v0 = vld [vmem:[#allocation3 + $0x538] sm:$0xff] }
  0x66   :  { %516 = vadd.xlane.f32.xlu1 %v515_v6  ;;  %v150_v6 = vld [vmem:[#allocation3 + $0x2c0] sm:$0xff] }
  0x67   :  { %513 = vadd.xlane.f32.xlu0 %v512_v7  ;;  %v151_v7 = vld [vmem:[#allocation3 + $0x2c8] sm:$0xff] }
  0x68   :  { %v578_v9 = vadd.f32 %v151_v7, %v150_v6  ;;  %v196_v6 = vld [vmem:[#allocation3 + $0x430] sm:$0xff]  ;;  %v197_v7 = vld [vmem:[#allocation3 + $0x438] sm:$0xff] }
  0x69   :  { %v647_v10 = vadd.f32 %v197_v7, %v196_v6  ;;  %v232_v7 = vld [vmem:[#allocation3 + $0x550] sm:$0xff] }
  0x6a   :  { %522 = vadd.xlane.f32.xlu1 %v521_v12  ;;  %v154_v12 = vld [vmem:[#allocation3 + $0x2e0] sm:$0xff] }
  0x6b   :  { %519 = vadd.xlane.f32.xlu0 %v518_v13  ;;  %v155_v13 = vld [vmem:[#allocation3 + $0x2e8] sm:$0xff] }
  0x6c   :  { %v584_v15 = vadd.f32 %v155_v13, %v154_v12  ;;  %v200_v12 = vld [vmem:[#allocation3 + $0x450] sm:$0xff]  ;;  %v201_v13 = vld [vmem:[#allocation3 + $0x458] sm:$0xff] }
  0x6d   :  { %v653_v16 = vadd.f32 %v201_v13, %v200_v12 }
  0x6e   :  { %528 = vadd.xlane.f32.xlu1 %v527_v18  ;;  %v158_v18 = vld [vmem:[#allocation3 + $0x300] sm:$0xff] }
  0x6f   :  { %525 = vadd.xlane.f32.xlu0 %v524_v19  ;;  %v159_v19 = vld [vmem:[#allocation3 + $0x308] sm:$0xff] }
  0x70   :  { %v590_v21 = vadd.f32 %v159_v19, %v158_v18  ;;  %v204_v18 = vld [vmem:[#allocation3 + $0x470] sm:$0xff]  ;;  %v205_v19 = vld [vmem:[#allocation3 + $0x478] sm:$0xff] }
  0x71   :  { %v659_v22 = vadd.f32 %v205_v19, %v204_v18  ;;  %v234_v18 = vld [vmem:[#allocation3 + $0x560] sm:$0xff]  ;;  %v235_v19 = vld [vmem:[#allocation3 + $0x568] sm:$0xff] }
  0x72   :  { %534 = vadd.xlane.f32.xlu1 %v533_v24  ;;  %v162_v24 = vld [vmem:[#allocation3 + $0x320] sm:$0xff] }
  0x73   :  { %531 = vadd.xlane.f32.xlu0 %v530_v25  ;;  %v163_v25 = vld [vmem:[#allocation3 + $0x328] sm:$0xff] }
  0x74   :  { %v596_v27 = vadd.f32 %v163_v25, %v162_v24  ;;  %v208_v24 = vld [vmem:[#allocation3 + $0x490] sm:$0xff]  ;;  %v209_v25 = vld [vmem:[#allocation3 + $0x498] sm:$0xff] }
  0x75   :  { %v665_v28 = vadd.f32 %v209_v25, %v208_v24  ;;  %v241_v24 = vld [vmem:[#allocation3 + $0x598] sm:$0xff] }
  0x76   :  { %540 = vadd.xlane.f32.xlu1 %v539_v30  ;;  %v166_v30 = vld [vmem:[#allocation3 + $0x340] sm:$0xff] }
  0x77   :  { %537 = vadd.xlane.f32.xlu0 %v536_v31  ;;  %v167_v31 = vld [vmem:[#allocation3 + $0x348] sm:$0xff] }
  0x78   :  { %v602_v33 = vadd.f32 %v167_v31, %v166_v30  ;;  %v212_v31 = vld [vmem:[#allocation3 + $0x4b0] sm:$0xff] }
  0x7a   :  { %546 = vadd.xlane.f32.xlu1 %v545_v36  ;;  %v170_v36 = vld [vmem:[#allocation3 + $0x360] sm:$0xff] }
  0x7b   :  { %543 = vadd.xlane.f32.xlu0 %v542_v37  ;;  %v171_v37 = vld [vmem:[#allocation3 + $0x368] sm:$0xff] }
  0x7c   :  { %v608_v39 = vadd.f32 %v171_v37, %v170_v36 }
  0x7e   :  { %552 = vadd.xlane.f32.xlu1 %v551_v42  ;;  %v174_v42 = vld [vmem:[#allocation3 + $0x380] sm:$0xff] }
  0x7f   :  { %549 = vadd.xlane.f32.xlu0 %v548_v43  ;;  %v175_v43 = vld [vmem:[#allocation3 + $0x388] sm:$0xff] }
  0x80   :  { %v614_v45 = vadd.f32 %v175_v43, %v174_v42  ;;  %v214_v42 = vld [vmem:[#allocation3 + $0x4c0] sm:$0xff]  ;;  %v215_v43 = vld [vmem:[#allocation3 + $0x4c8] sm:$0xff] }
  0x81   :  { %v674_v46 = vadd.f32 %v215_v43, %v214_v42  ;;  %v248_v43 = vld [vmem:[#allocation3 + $0x5d0] sm:$0xff] }
  0x82   :  { %558 = vadd.xlane.f32.xlu1 %v557_v48  ;;  %v178_v48 = vld [vmem:[#allocation3 + $0x3a0] sm:$0xff] }
  0x83   :  { %555 = vadd.xlane.f32.xlu0 %v554_v49  ;;  %v179_v49 = vld [vmem:[#allocation3 + $0x3a8] sm:$0xff] }
  0x84   :  { %v620_v51 = vadd.f32 %v179_v49, %v178_v48  ;;  %v221_v48 = vld [vmem:[#allocation3 + $0x4f8] sm:$0xff] }
  0x85   :  { %v683_v52 = vadd.f32 %v221_v48, %v220_v47  ;;  %v246_v47 = vld [vmem:[#allocation3 + $0x5c0] sm:$0xff]  ;;  %v247_v48 = vld [vmem:[#allocation3 + $0x5c8] sm:$0xff] }
  0x86   :  { %564 = vadd.xlane.f32.xlu1 %v563_v54  ;;  %v182_v54 = vld [vmem:[#allocation3 + $0x3c0] sm:$0xff] }
  0x87   :  { %561 = vadd.xlane.f32.xlu0 %v560_v55  ;;  %v183_v55 = vld [vmem:[#allocation3 + $0x3c8] sm:$0xff] }
  0x88   :  { %v626_v57 = vadd.f32 %v183_v55, %v182_v54  ;;  %v224_v55 = vld [vmem:[#allocation3 + $0x510] sm:$0xff] }
  0x8a   :  { %570 = vadd.xlane.f32.xlu1 %v569_v60  ;;  %v186_v60 = vld [vmem:[#allocation3 + $0x3e0] sm:$0xff] }
  0x8b   :  { %567 = vadd.xlane.f32.xlu0 %v566_v61  ;;  %v187_v61 = vld [vmem:[#allocation3 + $0x3e8] sm:$0xff] }
  0x8c   :  { %v632_v63 = vadd.f32 %v187_v61, %v186_v60 }
  0x8e   :  { %576 = vadd.xlane.f32.xlu1 %v575_v2  ;;  %v190_v2 = vld [vmem:[#allocation3 + $0x400] sm:$0xff] }
  0x8f   :  { %573 = vadd.xlane.f32.xlu0 %v572_v3  ;;  %v191_v3 = vld [vmem:[#allocation3 + $0x408] sm:$0xff] }
  0x90   :  { %v638_v5 = vadd.f32 %v191_v3, %v190_v2  ;;  %v226_v2 = vld [vmem:[#allocation3 + $0x520] sm:$0xff]  ;;  %v227_v3 = vld [vmem:[#allocation3 + $0x528] sm:$0xff] }
  0x91   :  { %v692_v6 = vadd.f32 %v227_v3, %v226_v2  ;;  %v257_v2 = vld [vmem:[#allocation3 + $0x618] sm:$0xff] }
  0x92   :  { %582 = vadd.xlane.f32.xlu1 %v581_v8  ;;  %v194_v8 = vld [vmem:[#allocation3 + $0x420] sm:$0xff] }
  0x93   :  { %579 = vadd.xlane.f32.xlu0 %v578_v9  ;;  %v195_v9 = vld [vmem:[#allocation3 + $0x428] sm:$0xff] }
  0x94   :  { %v644_v11 = vadd.f32 %v195_v9, %v194_v8  ;;  %v233_v8 = vld [vmem:[#allocation3 + $0x558] sm:$0xff] }
  0x95   :  { %v701_v12 = vadd.f32 %v233_v8, %v232_v7 }
  0x96   :  { %588 = vadd.xlane.f32.xlu1 %v587_v14  ;;  %v198_v14 = vld [vmem:[#allocation3 + $0x440] sm:$0xff] }
  0x97   :  { %585 = vadd.xlane.f32.xlu0 %v584_v15  ;;  %v199_v15 = vld [vmem:[#allocation3 + $0x448] sm:$0xff] }
  0x98   :  { %v650_v17 = vadd.f32 %v199_v15, %v198_v14  ;;  %v236_v15 = vld [vmem:[#allocation3 + $0x570] sm:$0xff] }
  0x9a   :  { %594 = vadd.xlane.f32.xlu1 %v593_v20  ;;  %v202_v20 = vld [vmem:[#allocation3 + $0x460] sm:$0xff] }
  0x9b   :  { %591 = vadd.xlane.f32.xlu0 %v590_v21  ;;  %v203_v21 = vld [vmem:[#allocation3 + $0x468] sm:$0xff] }
  0x9c   :  { %v656_v23 = vadd.f32 %v203_v21, %v202_v20 }
  0x9e   :  { %600 = vadd.xlane.f32.xlu1 %v599_v26  ;;  %v206_v26 = vld [vmem:[#allocation3 + $0x480] sm:$0xff] }
  0x9f   :  { %597 = vadd.xlane.f32.xlu0 %v596_v27  ;;  %v207_v27 = vld [vmem:[#allocation3 + $0x488] sm:$0xff] }
  0xa0   :  { %v662_v30 = vadd.f32 %v207_v27, %v206_v26  ;;  %v238_v26 = vld [vmem:[#allocation3 + $0x580] sm:$0xff]  ;;  %v239_v27 = vld [vmem:[#allocation3 + $0x588] sm:$0xff] }
  0xa2   :  { %606 = vadd.xlane.f32.xlu1 %v605_v32  ;;  %v213_v32 = vld [vmem:[#allocation3 + $0x4b8] sm:$0xff] }
  0xa3   :  { %603 = vadd.xlane.f32.xlu0 %v602_v33  ;;  %v671_v36 = vadd.f32 %v213_v32, %v212_v31  ;;  %v710_v31 = vadd.f32 %v239_v27, %v238_v26  ;;  %v244_v32 = vld [vmem:[#allocation3 + $0x5b0] sm:$0xff]  ;;  %v262_v26 = vld [vmem:[#allocation3 + $0x640] sm:$0xff]  ;;  %v263_v27 = vld [vmem:[#allocation3 + $0x648] sm:$0xff] }
  0xa6   :  { %612 = vadd.xlane.f32.xlu1 %v611_v38  ;;  %v668_v38 = vadd.f32 %v211_v35, %v210_v34  ;;  %v245_v34 = vld [vmem:[#allocation3 + $0x5b8] sm:$0xff] }
  0xa7   :  { %609 = vadd.xlane.f32.xlu0 %v608_v39  ;;  %v216_v39 = vld [vmem:[#allocation3 + $0x4d0] sm:$0xff] }
  0xaa   :  { %618 = vadd.xlane.f32.xlu1 %v617_v44  ;;  %v677_v44 = vadd.f32 %v217_v40, %v216_v39  ;;  %v719_v39 = vadd.f32 %v245_v34, %v244_v32  ;;  %v746_v32 = vadd.f32 %v263_v27, %v262_v26  ;;  %v268_v34 = vld [vmem:[#allocation3 + $0x670] sm:$0xff] }
  0xab   :  { %615 = vadd.xlane.f32.xlu0 %v614_v45  ;;  %v284_v27 = vld [vmem:[#allocation3 + $0x6f0] sm:$0xff] }
  0xae   :  { %624 = vadd.xlane.f32.xlu1 %v623_v50  ;;  %v218_v50 = vld [vmem:[#allocation3 + $0x4e0] sm:$0xff] }
  0xaf   :  { %621 = vadd.xlane.f32.xlu0 %v620_v51  ;;  %v219_v51 = vld [vmem:[#allocation3 + $0x4e8] sm:$0xff] }
  0xb0   :  { %v680_v54 = vadd.f32 %v219_v51, %v218_v50 }
  0xb2   :  { %630 = vadd.xlane.f32.xlu1 %v629_v56  ;;  %v225_v56 = vld [vmem:[#allocation3 + $0x518] sm:$0xff] }
  0xb3   :  { %627 = vadd.xlane.f32.xlu0 %v626_v57  ;;  %v689_v60 = vadd.f32 %v225_v56, %v224_v55  ;;  %v253_v55 = vld [vmem:[#allocation3 + $0x5f8] sm:$0xff] }
  0xb6   :  { %636 = vadd.xlane.f32.xlu1 %v635_v62  ;;  %v686_v62 = vadd.f32 %v223_v59, %v222_v58  ;;  %v250_v58 = vld [vmem:[#allocation3 + $0x5e0] sm:$0xff]  ;;  %v251_v59 = vld [vmem:[#allocation3 + $0x5e8] sm:$0xff] }
  0xb7   :  { %633 = vadd.xlane.f32.xlu0 %v632_v63  ;;  %v228_v63 = vld [vmem:[#allocation3 + $0x530] sm:$0xff] }
  0xba   :  { %642 = vadd.xlane.f32.xlu1 %v641_v4  ;;  %v695_v4 = vadd.f32 %v229_v0, %v228_v63  ;;  %v728_v63 = vadd.f32 %v251_v59, %v250_v58  ;;  %v256_v0 = vld [vmem:[#allocation3 + $0x610] sm:$0xff] }
  0xbb   :  { %639 = vadd.xlane.f32.xlu0 %v638_v5  ;;  %v737_v7 = vadd.f32 %v257_v2, %v256_v0  ;;  %v277_v0 = vld [vmem:[#allocation3 + $0x6b8] sm:$0xff] }
  0xbe   :  { %648 = vadd.xlane.f32.xlu1 %v647_v10  ;;  %v230_v10 = vld [vmem:[#allocation3 + $0x540] sm:$0xff] }
  0xbf   :  { %645 = vadd.xlane.f32.xlu0 %v644_v11  ;;  %v231_v11 = vld [vmem:[#allocation3 + $0x548] sm:$0xff] }
  0xc0   :  { %v698_v14 = vadd.f32 %v231_v11, %v230_v10  ;;  %v260_v11 = vld [vmem:[#allocation3 + $0x630] sm:$0xff] }
  0xc2   :  { %654 = vadd.xlane.f32.xlu1 %v653_v16  ;;  %v237_v16 = vld [vmem:[#allocation3 + $0x578] sm:$0xff] }
  0xc3   :  { %651 = vadd.xlane.f32.xlu0 %v650_v17  ;;  %v707_v20 = vadd.f32 %v237_v16, %v236_v15  ;;  %v258_v15 = vld [vmem:[#allocation3 + $0x620] sm:$0xff]  ;;  %v259_v16 = vld [vmem:[#allocation3 + $0x628] sm:$0xff] }
  0xc6   :  { %660 = vadd.xlane.f32.xlu1 %v659_v22  ;;  %v704_v22 = vadd.f32 %v235_v19, %v234_v18 }
  0xc7   :  { %657 = vadd.xlane.f32.xlu0 %v656_v23  ;;  %v12937_v29 = vpop.xlane.xlu1 %453  ;;  %v240_v23 = vld [vmem:[#allocation3 + $0x590] sm:$0xff] }
  0xc8   :  { %v12939_v33 = vpop.xlane.xlu0 %447 }
  0xca   :  { %666 = vadd.xlane.f32.xlu1 %v665_v28  ;;  %v713_v28 = vadd.f32 %v241_v24, %v240_v23  ;;  %v265_v23 = vld [vmem:[#allocation3 + $0x658] sm:$0xff] }
  0xcb   :  { %663 = vadd.xlane.f32.xlu0 %v662_v30  ;;  %v12941_v37 = vpop.xlane.xlu1 %456 }
  0xcc   :  { %v12943_v41 = vpop.xlane.xlu0 %450 }
  0xce   :  { %672 = vadd.xlane.f32.xlu1 %v671_v36  ;;  %v242_v36 = vld [vmem:[#allocation3 + $0x5a0] sm:$0xff] }
  0xcf   :  { %669 = vadd.xlane.f32.xlu0 %v668_v38  ;;  %v12945_v45 = vpop.xlane.xlu1 %462  ;;  %v243_v38 = vld [vmem:[#allocation3 + $0x5a8] sm:$0xff] }
  0xd0   :  { %v12947_v49 = vpop.xlane.xlu0 %459  ;;  %v716_v42 = vadd.f32 %v243_v38, %v242_v36  ;;  %v269_v36 = vld [vmem:[#allocation3 + $0x678] sm:$0xff] }
  0xd2   :  { %678 = vadd.xlane.f32.xlu1 %v677_v44  ;;  %v249_v44 = vld [vmem:[#allocation3 + $0x5d8] sm:$0xff] }
  0xd3   :  { %675 = vadd.xlane.f32.xlu0 %v674_v46  ;;  %v12949_v53 = vpop.xlane.xlu1 %468  ;;  %v725_v50 = vadd.f32 %v249_v44, %v248_v43  ;;  %v755_v43 = vadd.f32 %v269_v36, %v268_v34  ;;  %v282_v34 = vld [vmem:[#allocation3 + $0x6e0] sm:$0xff]  ;;  %v283_v36 = vld [vmem:[#allocation3 + $0x6e8] sm:$0xff] }
  0xd4   :  { %v12951_v57 = vpop.xlane.xlu0 %465 }
  0xd6   :  { %684 = vadd.xlane.f32.xlu1 %v683_v52  ;;  %v722_v52 = vadd.f32 %v247_v48, %v246_v47  ;;  %v272_v48 = vld [vmem:[#allocation3 + $0x690] sm:$0xff] }
  0xd7   :  { %681 = vadd.xlane.f32.xlu0 %v680_v54  ;;  %v12953_v61 = vpop.xlane.xlu1 %474  ;;  %v252_v54 = vld [vmem:[#allocation3 + $0x5f0] sm:$0xff] }
  0xd8   :  { %v12955_v1 = vpop.xlane.xlu0 %471 }
  0xda   :  { %690 = vadd.xlane.f32.xlu1 %v689_v60  ;;  %v731_v60 = vadd.f32 %v253_v55, %v252_v54  ;;  %v270_v54 = vld [vmem:[#allocation3 + $0x680] sm:$0xff]  ;;  %v271_v55 = vld [vmem:[#allocation3 + $0x688] sm:$0xff] }
  0xdb   :  { %687 = vadd.xlane.f32.xlu0 %v686_v62  ;;  %v12957_v5 = vpop.xlane.xlu1 %480 }
  0xdc   :  { %v12959_v9 = vpop.xlane.xlu0 %477 }
  0xde   :  { %696 = vadd.xlane.f32.xlu1 %v695_v4  ;;  %v254_v4 = vld [vmem:[#allocation3 + $0x600] sm:$0xff] }
  0xdf   :  { %693 = vadd.xlane.f32.xlu0 %v692_v6  ;;  %v12961_v13 = vpop.xlane.xlu1 %486  ;;  %v255_v6 = vld [vmem:[#allocation3 + $0x608] sm:$0xff] }
  0xe0   :  { %v12963_v17 = vpop.xlane.xlu0 %483  ;;  %v734_v10 = vadd.f32 %v255_v6, %v254_v4  ;;  %v274_v4 = vld [vmem:[#allocation3 + $0x6a0] sm:$0xff]  ;;  %v275_v6 = vld [vmem:[#allocation3 + $0x6a8] sm:$0xff] }
  0xe2   :  { %702 = vadd.xlane.f32.xlu1 %v701_v12  ;;  %v261_v12 = vld [vmem:[#allocation3 + $0x638] sm:$0xff] }
  0xe3   :  { %699 = vadd.xlane.f32.xlu0 %v698_v14  ;;  %v12965_v21 = vpop.xlane.xlu1 %492  ;;  %v743_v18 = vadd.f32 %v261_v12, %v260_v11  ;;  %v764_v11 = vadd.f32 %v275_v6, %v274_v4  ;;  %v280_v12 = vld [vmem:[#allocation3 + $0x6d0] sm:$0xff]  ;;  %v293_v4 = vld [vmem:[#allocation3 + $0x738] sm:$0xff] }
  0xe4   :  { %v12967_v25 = vpop.xlane.xlu0 %489 }
  0xe6   :  { %708 = vadd.xlane.f32.xlu1 %v707_v20  ;;  %v740_v20 = vadd.f32 %v259_v16, %v258_v15  ;;  %v281_v15 = vld [vmem:[#allocation3 + $0x6d8] sm:$0xff] }
  0xe7   :  { %705 = vadd.xlane.f32.xlu0 %v704_v22  ;;  %v12969_v30 = vpop.xlane.xlu1 %498  ;;  %v264_v22 = vld [vmem:[#allocation3 + $0x650] sm:$0xff] }
  0xe8   :  { %v12971_v35 = vpop.xlane.xlu0 %495 }
  0xea   :  { %714 = vadd.xlane.f32.xlu1 %v713_v28  ;;  %v749_v28 = vadd.f32 %v265_v23, %v264_v22  ;;  %v773_v22 = vadd.f32 %v281_v15, %v280_v12 }
  0xeb   :  { %711 = vadd.xlane.f32.xlu0 %v710_v31  ;;  %v12973_v40 = vpop.xlane.xlu1 %504 }
  0xec   :  { %v12975_v46 = vpop.xlane.xlu0 %501 }
  0xee   :  { %720 = vadd.xlane.f32.xlu1 %v719_v39  ;;  %v266_v39 = vld [vmem:[#allocation3 + $0x660] sm:$0xff] }
  0xef   :  { %717 = vadd.xlane.f32.xlu0 %v716_v42  ;;  %v12977_v51 = vpop.xlane.xlu1 %510  ;;  %v267_v42 = vld [vmem:[#allocation3 + $0x668] sm:$0xff] }
  0xf0   :  { %v12979_v56 = vpop.xlane.xlu0 %507  ;;  %v752_v47 = vadd.f32 %v267_v42, %v266_v39 }
  0xf1   :  { %17940 = vst [vmem:[#allocation13_spill] sm:$0xff] %v12979_v56 }
  0xf2   :  { %726 = vadd.xlane.f32.xlu1 %v725_v50  ;;  %v273_v50 = vld [vmem:[#allocation3 + $0x698] sm:$0xff] }
  0xf3   :  { %723 = vadd.xlane.f32.xlu0 %v722_v52  ;;  %v12981_v62 = vpop.xlane.xlu1 %516  ;;  %v761_v58 = vadd.f32 %v273_v50, %v272_v48  ;;  %v289_v48 = vld [vmem:[#allocation3 + $0x718] sm:$0xff] }
  0xf4   :  { %17941 = vst [vmem:[#allocation14_spill] sm:$0xff] %v12981_v62  ;;  %v12983_v3 = vpop.xlane.xlu0 %513  ;;  %v339_v62 = vld [vmem:[#allocation3 + $0x8a8] sm:$0xff] }
  0xf5   :  { %17942 = vst [vmem:[#allocation15_spill] sm:$0xff] %v12983_v3  ;;  %v338_v3 = vld [vmem:[#allocation3 + $0x8a0] sm:$0xff] }
  0xf6   :  { %732 = vadd.xlane.f32.xlu1 %v731_v60  ;;  %v758_v60 = vadd.f32 %v271_v55, %v270_v54  ;;  %v286_v54 = vld [vmem:[#allocation3 + $0x700] sm:$0xff]  ;;  %v287_v55 = vld [vmem:[#allocation3 + $0x708] sm:$0xff] }
  0xf7   :  { %729 = vadd.xlane.f32.xlu0 %v728_v63  ;;  %v12985_v8 = vpop.xlane.xlu1 %522  ;;  %v276_v63 = vld [vmem:[#allocation3 + $0x6b0] sm:$0xff] }
  0xf8   :  { %17943 = vst [vmem:[#allocation16_spill] sm:$0xff] %v12985_v8  ;;  %v12987_v14 = vpop.xlane.xlu0 %519  ;;  %v341_v8 = vld [vmem:[#allocation3 + $0x8b8] sm:$0xff] }
  0xf9   :  { %17944 = vst [vmem:[#allocation17_spill] sm:$0xff] %v12987_v14 }
  0xfa   :  { %738 = vadd.xlane.f32.xlu1 %v737_v7  ;;  %v767_v7 = vadd.f32 %v277_v0, %v276_v63  ;;  %v782_v63 = vadd.f32 %v287_v55, %v286_v54  ;;  %v292_v0 = vld [vmem:[#allocation3 + $0x730] sm:$0xff]  ;;  %v298_v54 = vld [vmem:[#allocation3 + $0x760] sm:$0xff]  ;;  %v299_v55 = vld [vmem:[#allocation3 + $0x768] sm:$0xff] }
  0xfb   :  { %735 = vadd.xlane.f32.xlu0 %v734_v10  ;;  %v12989_v19 = vpop.xlane.xlu1 %528  ;;  %v791_v12 = vadd.f32 %v293_v4, %v292_v0  ;;  %v800_v0 = vadd.f32 %v299_v55, %v298_v54  ;;  %v304_v4 = vld [vmem:[#allocation3 + $0x790] sm:$0xff]  ;;  %v306_v55 = vld [vmem:[#allocation3 + $0x7a0] sm:$0xff] }
  0xfc   :  { %17945 = vst [vmem:[#allocation18_spill] sm:$0xff] %v12989_v19  ;;  %v12991_v24 = vpop.xlane.xlu0 %525 }
  0xfd   :  { %17946 = vst [vmem:[#allocation19_spill] sm:$0xff] %v12991_v24 }
  0xfe   :  { %744 = vadd.xlane.f32.xlu1 %v743_v18  ;;  %v278_v18 = vld [vmem:[#allocation3 + $0x6c0] sm:$0xff] }
  0xff   :  { %741 = vadd.xlane.f32.xlu0 %v740_v20  ;;  %v12993_v31 = vpop.xlane.xlu1 %534  ;;  %v279_v20 = vld [vmem:[#allocation3 + $0x6c8] sm:$0xff] }
 0x100   :  { %17947 = vst [vmem:[#allocation20_spill] sm:$0xff] %v12993_v31  ;;  %v12995_v38 = vpop.xlane.xlu0 %531  ;;  %v770_v26 = vadd.f32 %v279_v20, %v278_v18  ;;  %v296_v20 = vld [vmem:[#allocation3 + $0x750] sm:$0xff] }
 0x101   :  { %17948 = vst [vmem:[#allocation21_spill] sm:$0xff] %v12995_v38  ;;  %v334_v38 = vld [vmem:[#allocation3 + $0x880] sm:$0xff] }
 0x102   :  { %750 = vadd.xlane.f32.xlu1 %v749_v28  ;;  %v285_v28 = vld [vmem:[#allocation3 + $0x6f8] sm:$0xff] }
 0x103   :  { %747 = vadd.xlane.f32.xlu0 %v746_v32  ;;  %v12997_v44 = vpop.xlane.xlu1 %540  ;;  %v779_v39 = vadd.f32 %v285_v28, %v284_v27  ;;  %v294_v27 = vld [vmem:[#allocation3 + $0x740] sm:$0xff]  ;;  %v295_v28 = vld [vmem:[#allocation3 + $0x748] sm:$0xff] }
 0x104   :  { %17949 = vst [vmem:[#allocation22_spill] sm:$0xff] %v12997_v44  ;;  %v12999_v52 = vpop.xlane.xlu0 %537 }
 0x105   :  { %17950 = vst [vmem:[#allocation23_spill] sm:$0xff] %v12999_v52 }
 0x106   :  { %756 = vadd.xlane.f32.xlu1 %v755_v43  ;;  %v776_v43 = vadd.f32 %v283_v36, %v282_v34 }
 0x107   :  { %753 = vadd.xlane.f32.xlu0 %v752_v47  ;;  %v13001_v59 = vpop.xlane.xlu1 %546  ;;  %v288_v47 = vld [vmem:[#allocation3 + $0x710] sm:$0xff] }
 0x108   :  { %17951 = vst [vmem:[#allocation24_spill] sm:$0xff] %v13001_v59  ;;  %v13003_v2 = vpop.xlane.xlu0 %543 }
 0x109   :  { %17952 = vst [vmem:[#allocation25_spill] sm:$0xff] %v13003_v2 }
 0x10a   :  { %762 = vadd.xlane.f32.xlu1 %v761_v58  ;;  %v785_v58 = vadd.f32 %v289_v48, %v288_v47  ;;  %v301_v47 = vld [vmem:[#allocation3 + $0x778] sm:$0xff] }
 0x10b   :  { %759 = vadd.xlane.f32.xlu0 %v758_v60  ;;  %v13005_v10 = vpop.xlane.xlu1 %552 }
 0x10c   :  { %17953 = vst [vmem:[#allocation26_spill] sm:$0xff] %v13005_v10  ;;  %v13007_v16 = vpop.xlane.xlu0 %549 }
 0x10d   :  { %17954 = vst [vmem:[#allocation27_spill] sm:$0xff] %v13007_v16 }
 0x10e   :  { %768 = vadd.xlane.f32.xlu1 %v767_v7  ;;  %v290_v7 = vld [vmem:[#allocation3 + $0x720] sm:$0xff] }
 0x10f   :  { %765 = vadd.xlane.f32.xlu0 %v764_v11  ;;  %v13009_v23 = vpop.xlane.xlu1 %558  ;;  %v291_v11 = vld [vmem:[#allocation3 + $0x728] sm:$0xff] }
 0x110   :  { %17955 = vst [vmem:[#allocation28_spill] sm:$0xff] %v13009_v23  ;;  %v13011_v32 = vpop.xlane.xlu0 %555  ;;  %v788_v18 = vadd.f32 %v291_v11, %v290_v7  ;;  %v305_v7 = vld [vmem:[#allocation3 + $0x798] sm:$0xff] }
 0x111   :  { %17956 = vst [vmem:[#allocation29_spill] sm:$0xff] %v13011_v32  ;;  %v319_v32 = vld [vmem:[#allocation3 + $0x808] sm:$0xff] }
 0x112   :  { %774 = vadd.xlane.f32.xlu1 %v773_v22  ;;  %v297_v22 = vld [vmem:[#allocation3 + $0x758] sm:$0xff] }
 0x113   :  { %771 = vadd.xlane.f32.xlu0 %v770_v26  ;;  %v13013_v42 = vpop.xlane.xlu1 %564  ;;  %v797_v34 = vadd.f32 %v297_v22, %v296_v20  ;;  %v809_v20 = vadd.f32 %v305_v7, %v304_v4  ;;  %v12877_v4 = vmov 1983009808  }
 0x114   :  { %17957 = vst [vmem:[#allocation30_spill] sm:$0xff] %v13013_v42  ;;  %v13015_v50 = vpop.xlane.xlu0 %561  ;;  %v6593_v7 = vunpack.c.l.s4 %v12877_v4  ;;  %v314_v4 = vld [vmem:[#allocation3 + $0x7e0] sm:$0xff]  ;;  %v321_v42 = vld [vmem:[#allocation3 + $0x818] sm:$0xff] }
 0x115   :  { %17958 = vst [vmem:[#allocation31_spill] sm:$0xff] %v13015_v50  ;;  %v311_v50 = vld [vmem:[#allocation3 + $0x7c8] sm:$0xff] }
 0x116   :  { %780 = vadd.xlane.f32.xlu1 %v779_v39  ;;  %v794_v39 = vadd.f32 %v295_v28, %v294_v27  ;;  %v308_v28 = vld [vmem:[#allocation3 + $0x7b0] sm:$0xff] }
 0x117   :  { %777 = vadd.xlane.f32.xlu0 %v776_v43  ;;  %v13017_v60 = vpop.xlane.xlu1 %570  ;;  %v300_v43 = vld [vmem:[#allocation3 + $0x770] sm:$0xff] }
 0x118   :  { %17959 = vst [vmem:[#allocation32_spill] sm:$0xff] %v13017_v60  ;;  %v13019_v6 = vpop.xlane.xlu0 %567 }
 0x119   :  { %17960 = vst [vmem:[#allocation33_spill] sm:$0xff] %v13019_v6 }
 0x11a   :  { %786 = vadd.xlane.f32.xlu1 %v785_v58  ;;  %v803_v58 = vadd.f32 %v301_v47, %v300_v43  ;;  %v12874_v47 = vmov 842150450  }
 0x11b   :  { %783 = vadd.xlane.f32.xlu0 %v782_v63  ;;  %v13021_v15 = vpop.xlane.xlu1 %576 }
 0x11c   :  { %17961 = vst [vmem:[#allocation34_spill] sm:$0xff] %v13021_v15  ;;  %v13023_v26 = vpop.xlane.xlu0 %573  ;;  %v12876_v15 = vmov 1987475062  }
 0x11d   :  { %17962 = vst [vmem:[#allocation35_spill] sm:$0xff] %v13023_v26 }
 0x11e   :  { %792 = vadd.xlane.f32.xlu1 %v791_v12  ;;  %v302_v12 = vld [vmem:[#allocation3 + $0x780] sm:$0xff] }
 0x11f   :  { %789 = vadd.xlane.f32.xlu0 %v788_v18  ;;  %v13025_v36 = vpop.xlane.xlu1 %582  ;;  %v303_v18 = vld [vmem:[#allocation3 + $0x788] sm:$0xff] }
 0x120   :  { %17963 = vst [vmem:[#allocation36_spill] sm:$0xff] %v13025_v36  ;;  %v13027_v48 = vpop.xlane.xlu0 %579  ;;  %v806_v27 = vadd.f32 %v303_v18, %v302_v12  ;;  %v307_v36 = vld [vmem:[#allocation3 + $0x7a8] sm:$0xff] }
 0x121   :  { %17964 = vst [vmem:[#allocation37_spill] sm:$0xff] %v13027_v48  ;;  %v309_v48 = vld [vmem:[#allocation3 + $0x7b8] sm:$0xff]  ;;  %v812_v18 = vadd.f32 %v307_v36, %v306_v55  ;;  %v320_v36 = vld [vmem:[#allocation3 + $0x810] sm:$0xff]  ;;  %v6594_v55 = vunpack.c.0.s8 %v6593_v7 }
 0x122   :  { %798 = vadd.xlane.f32.xlu1 %v797_v34  ;;  %v12873_v34 = vmov 269488144   ;;  %v833_v16 = vadd.f32 %v321_v42, %v320_v36  ;;  %v333_v36 = vld [vmem:[#allocation3 + $0x878] sm:$0xff] }
 0x123   :  { %795 = vadd.xlane.f32.xlu0 %v794_v39  ;;  %v13029_v63 = vpop.xlane.xlu1 %588  ;;  %v1215_v43 = vunpack.c.l.s4 %v12873_v34  ;;  %v312_v34 = vld [vmem:[#allocation3 + $0x7d0] sm:$0xff]  ;;  %v313_v39 = vld [vmem:[#allocation3 + $0x7d8] sm:$0xff] }
 0x124   :  { %17965 = vst [vmem:[#allocation38_spill] sm:$0xff] %v13029_v63  ;;  %v13031_v11 = vpop.xlane.xlu0 %585  ;;  %v1222_v63 = vunpack.c.l.s4 %v12874_v47  ;;  %v17970_v47 = vlaneseq }
 0x125   :  { %17966 = vst [vmem:[#allocation39_spill] sm:$0xff] %v13031_v11  ;;  %v12875_v11 = vmov 1414812756  }
 0x126   :  { %804 = vadd.xlane.f32.xlu1 %v803_v58  ;;  %v1229_v26 = vunpack.c.l.s4 %v12875_v11  ;;  %v1236_v58 = vunpack.c.l.s4 %v12876_v15  ;;  %v13040_v6 = vshrl.u32 %v17970_v47, 7  ;;  %v310_v11 = vld [vmem:[#allocation3 + $0x7c0] sm:$0xff] }
 0x127   :  { %801 = vadd.xlane.f32.xlu0 %v800_v0  ;;  %v13033_v22 = vpop.xlane.xlu1 %594  ;;  %v815_v0 = vadd.f32 %v309_v48, %v308_v28  ;;  %v316_v48 = vld [vmem:[#allocation3 + $0x7f0] sm:$0xff]  ;;  %v317_v28 = vld [vmem:[#allocation3 + $0x7f8] sm:$0xff]  ;;  %v818_v47 = vadd.f32 %v311_v50, %v310_v11  ;;  %v323_v50 = vld [vmem:[#allocation3 + $0x828] sm:$0xff] }
 0x128   :  { %17967 = vst [vmem:[#allocation40_spill] sm:$0xff] %v13033_v22  ;;  %v13035_v54 = vpop.xlane.xlu0 %591  ;;  %v1216_v22 = vunpack.c.0.s8 %v1215_v43  ;;  %17971 = vst [vmem:[#allocation43_spill] sm:$0xff] %v13040_v6  ;;  %v1230_v15 = vunpack.c.0.s8 %v1229_v26  ;;  %v328_v11 = vld [vmem:[#allocation3 + $0x850] sm:$0xff]  ;;  %v13061_v23 = vsub.s32 %v6594_v55, %v13040_v6 }
 0x129   :  { %17968 = vst [vmem:[#allocation41_spill] sm:$0xff] %v13035_v54  ;;  %v1223_v54 = vunpack.c.0.s8 %v1222_v63  ;;  %v318_v63 = vld [vmem:[#allocation3 + $0x800] sm:$0xff]  ;;  %v332_v55 = vld [vmem:[#allocation3 + $0x870] sm:$0xff] }
 0x12a   :  { %810 = vadd.xlane.f32.xlu1 %v809_v20  ;;  %v1237_v20 = vunpack.c.0.s8 %v1236_v58  ;;  %v13055_v7 = vsub.s32 %v1230_v15, %v13040_v6  ;;  %v830_v10 = vadd.f32 %v319_v32, %v318_v63  ;;  %v330_v63 = vld [vmem:[#allocation3 + $0x860] sm:$0xff]  ;;  %v13109_v14 = vadd.f32 %v333_v36, %v332_v55 }
 0x12b   :  { %807 = vadd.xlane.f32.xlu0 %v806_v27  ;;  %v13037_v12 = vpop.xlane.xlu1 %600  ;;  %v821_v27 = vadd.f32 %v313_v39, %v312_v34  ;;  %v13050_v26 = vsub.s32 %v1223_v54, %v13040_v6  ;;  %v324_v39 = vld [vmem:[#allocation3 + $0x830] sm:$0xff]  ;;  %v322_v34 = vld [vmem:[#allocation3 + $0x820] sm:$0xff] }
 0x12c   :  { %17969 = vst [vmem:[#allocation42_spill] sm:$0xff] %v13037_v12  ;;  %v13042_v60 = vpop.xlane.xlu0 %597  ;;  %v315_v12 = vld [vmem:[#allocation3 + $0x7e8] sm:$0xff]  ;;  %v1290_v32 = vrot.slane %v12937_v29, %v13055_v7 }
 0x12d   :  { %17972 = vst [vmem:[#allocation44_spill] sm:$0xff] %v13042_v60  ;;  %v13047_v60 = vsub.s32 %v1216_v22, %v13040_v6  ;;  %v827_v22 = vadd.f32 %v317_v28, %v316_v48  ;;  %v13073_v48 = vadd.f32 %v323_v50, %v322_v34  ;;  %v1234_v34 = vrot.slane %v12939_v33, %v13055_v7  ;;  %v336_v50 = vld [vmem:[#allocation3 + $0x890] sm:$0xff] }
 0x12e   :  { %816 = vadd.xlane.f32.xlu1 %v815_v0  ;;  %v325_v0 = vld [vmem:[#allocation3 + $0x838] sm:$0xff]  ;;  %v1255_v52 = vrot.slane %v12943_v41, %v13050_v26 }
 0x12f   :  { %813 = vadd.xlane.f32.xlu0 %v812_v18  ;;  %v13044_v43 = vpop.xlane.xlu1 %606  ;;  %v13058_v18 = vsub.s32 %v1237_v20, %v13040_v6  ;;  %v13065_v2 = vadd.f32 %v325_v0, %v324_v39  ;;  %v1276_v15 = vrot.slane %v12937_v29, %v13047_v60  ;;  %v1283_v20 = vrot.slane %v12937_v29, %v13050_v26  ;;  %v331_v39 = vld [vmem:[#allocation3 + $0x868] sm:$0xff] }
 0x130   :  { %17973 = vst [vmem:[#allocation45_spill] sm:$0xff] %v13044_v43  ;;  %v13052_v58 = vpop.xlane.xlu0 %603  ;;  %v329_v43 = vld [vmem:[#allocation3 + $0x858] sm:$0xff]  ;;  %v1311_v0 = vrot.slane %v12941_v37, %v13050_v26  ;;  %v1318_v6 = vrot.slane %v12941_v37, %v13055_v7 }
 0x131   :  { %17974 = vst [vmem:[#allocation46_spill] sm:$0xff] %v13052_v58  ;;  %v824_v58 = vadd.f32 %v315_v12, %v314_v4  ;;  %v13075_v28 = vadd.f32 %v329_v43, %v328_v11  ;;  %v1297_v42 = vrot.slane %v12937_v29, %v13058_v18  ;;  %v1220_v12 = vrot.slane %v12939_v33, %v13047_v60  ;;  %v337_v11 = vld [vmem:[#allocation3 + $0x898] sm:$0xff] }
 0x132   :  { %822 = vadd.xlane.f32.xlu1 %v821_v27  ;;  %v327_v27 = vld [vmem:[#allocation3 + $0x848] sm:$0xff]  ;;  %v1227_v4 = vrot.slane %v12939_v33, %v13050_v26  ;;  %v1304_v43 = vrot.slane %v12941_v37, %v13047_v60  ;;  %v1241_v29 = vrot.slane %v12939_v33, %v13058_v18  ;;  %v13103_v31 = vcombine.low %v1276_v15, %v1283_v20 }
 0x133   :  { %819 = vadd.xlane.f32.xlu0 %v818_v47  ;;  %v13063_v54 = vpop.xlane.xlu1 %612  ;;  %v326_v47 = vld [vmem:[#allocation3 + $0x840] sm:$0xff]  ;;  %v335_v33 = vld [vmem:[#allocation3 + $0x888] sm:$0xff]  ;;  %v13113_v56 = vcombine.low %v1290_v32, %v1297_v42  ;;  %v1269_v15 = vrot.slane %v12943_v41, %v13058_v18  ;;  %v13119_v20 = vadd.f32 %v337_v11, %v336_v50  ;;  %v1395_v50 = vrot.slane %v12951_v57, %v13050_v26 }
 0x134   :  { %17975 = vst [vmem:[#allocation47_spill] sm:$0xff] %v13063_v54  ;;  %v13071_v59 = vpop.xlane.xlu0 %609  ;;  %v1248_v54 = vrot.slane %v12943_v41, %v13047_v60  ;;  %v13107_v19 = vadd.f32 %v327_v27, %v326_v47  ;;  %v13123_v47 = vcombine.low %v1220_v12, %v1227_v4  ;;  %v13125_v27 = vcombine.low %v1234_v34, %v1241_v29 }
 0x135   :  { %17976 = vst [vmem:[#allocation48_spill] sm:$0xff] %v13071_v59  ;;  %v1325_v59 = vrot.slane %v12941_v37, %v13058_v18  ;;  %v13111_v37 = vadd.f32 %v331_v39, %v330_v63  ;;  %v13127_v55 = vadd.f32 %v335_v33, %v334_v38  ;;  %v1360_v12 = vrot.slane %v12945_v45, %v13047_v60  ;;  %v342_v33 = vld [vmem:[#allocation3 + $0x8c0] sm:$0xff] }
 0x136   :  { %828 = vadd.xlane.f32.xlu1 %v827_v22  ;;  %v340_v22 = vld [vmem:[#allocation3 + $0x8b0] sm:$0xff]  ;;  %v13131_v32 = vcombine.low %v1248_v54, %v1255_v52  ;;  %v1367_v4 = vrot.slane %v12945_v45, %v13050_v26  ;;  %v1374_v38 = vrot.slane %v12945_v45, %v13055_v7  ;;  %v1381_v52 = vrot.slane %v12945_v45, %v13058_v18 }
 0x137   :  { %825 = vadd.xlane.f32.xlu0 %v824_v58  ;;  %v13101_v44 = vpop.xlane.xlu1 %618  ;;  %v1262_v58 = vrot.slane %v12943_v41, %v13055_v7  ;;  %v13129_v36 = vcombine.low %v1318_v6, %v1325_v59  ;;  %v13135_v63 = vadd.f32 %v341_v8, %v340_v22  ;;  %v13137_v41 = vadd.f32 %v339_v62, %v338_v3  ;;  %v344_v3 = vld [vmem:[#allocation3 + $0x8d0] sm:$0xff]  ;;  %v349_v6 = vld [vmem:[#allocation3 + $0x8f8] sm:$0xff] }
 0x138   :  { %17977 = vst [vmem:[#allocation49_spill] sm:$0xff] %v13101_v44  ;;  %v13105_v24 = vpop.xlane.xlu0 %615  ;;  %v1332_v8 = vrot.slane %v12947_v49, %v13047_v60  ;;  %v1339_v62 = vrot.slane %v12947_v49, %v13050_v26  ;;  %v1416_v54 = vrot.slane %v12949_v53, %v13047_v60  ;;  %v1423_v45 = vrot.slane %v12949_v53, %v13050_v26  ;;  %v348_v22 = vld [vmem:[#allocation3 + $0x8f0] sm:$0xff] }
 0x139   :  { %17978 = vst [vmem:[#allocation50_spill] sm:$0xff] %v13105_v24  ;;  %v13121_v24 = vcombine.low %v1304_v43, %v1311_v0  ;;  %v1346_v39 = vrot.slane %v12947_v49, %v13055_v7  ;;  %v1353_v43 = vrot.slane %v12947_v49, %v13058_v18  ;;  %v1430_v0 = vrot.slane %v12949_v53, %v13055_v7  ;;  %v343_v49 = vld [vmem:[#allocation3 + $0x8c8] sm:$0xff] }
 0x13a   :  { %834 = vadd.xlane.f32.xlu1 %v833_v16  ;;  %v345_v16 = vld [vmem:[#allocation3 + $0x8d8] sm:$0xff]  ;;  %v1437_v34 = vrot.slane %v12949_v53, %v13058_v18  ;;  %v1388_v29 = vrot.slane %v12951_v57, %v13047_v60  ;;  %v6639_v44 = vrot.slane %v13113_v56, %v13061_v23  ;;  %v13199_v56 = vadd.f32 %v343_v49, %v342_v33 }
 0x13b   :  { %831 = vadd.xlane.f32.xlu0 %v830_v10  ;;  %v13133_v42 = vpop.xlane.xlu1 %624  ;;  %v6608_v10 = vcombine.low %v1262_v58, %v1269_v15  ;;  %v13177_v58 = vcombine.low %v1374_v38, %v1381_v52  ;;  %v13181_v53 = vadd.f32 %v345_v16, %v344_v3  ;;  %v13192_v38 = vcombine.low %v1416_v54, %v1423_v45 }
 0x13c   :  { %17979 = vst [vmem:[#allocation51_spill] sm:$0xff] %v13133_v42  ;;  %v13147_v59 = vpop.xlane.xlu0 %621  ;;  %v347_v42 = vld [vmem:[#allocation3 + $0x8e8] sm:$0xff]  ;;  %v13194_v52 = vcombine.low %v1332_v8, %v1339_v62  ;;  %v13196_v3 = vcombine.low %v1346_v39, %v1353_v43  ;;  %v13201_v16 = vcombine.low %v1430_v0, %v1437_v34  ;;  %v1472_v8 = vrot.slane %v12953_v61, %v13047_v60  ;;  %v353_v39 = vld [vmem:[#allocation3 + $0x918] sm:$0xff] }
 0x13d   :  { %17980 = vst [vmem:[#allocation52_spill] sm:$0xff] %v13147_v59  ;;  %v346_v59 = vld [vmem:[#allocation3 + $0x8e0] sm:$0xff]  ;;  %v1486_v62 = vrot.slane %v12953_v61, %v13055_v7  ;;  %v1493_v54 = vrot.slane %v12953_v61, %v13058_v18  ;;  %v1528_v0 = vrot.slane %v12957_v5, %v13047_v60  ;;  %v1465_v34 = vrot.slane %v12955_v1, %v13058_v18 }
 0x13e   :  { %840 = vadd.xlane.f32.xlu1 %v13065_v2  ;;  %v13175_v2 = vcombine.low %v1360_v12, %v1367_v4  ;;  %v6615_v12 = vrot.slane %v13131_v32, %v13061_v23  ;;  %v6622_v4 = vrot.slane %v6608_v10, %v13061_v23  ;;  %v13208_v32 = vadd.f32 %v349_v6, %v348_v22  ;;  %v352_v6 = vld [vmem:[#allocation3 + $0x910] sm:$0xff] }
 0x13f   :  { %837 = vadd.xlane.f32.xlu0 %v13073_v48  ;;  %v13173_v11 = vpop.xlane.xlu1 %630  ;;  %v1402_v48 = vrot.slane %v12951_v57, %v13055_v7  ;;  %v13210_v10 = vadd.f32 %v347_v42, %v346_v59  ;;  %v1444_v42 = vrot.slane %v12955_v1, %v13047_v60  ;;  %v1451_v59 = vrot.slane %v12955_v1, %v13050_v26 }
 0x140   :  { %17981 = vst [vmem:[#allocation53_spill] sm:$0xff] %v13173_v11  ;;  %v13179_v15 = vpop.xlane.xlu0 %627  ;;  %v1409_v11 = vrot.slane %v12951_v57, %v13058_v18  ;;  %v13228_v43 = vcombine.low %v6615_v12, %v6622_v4  ;;  %v1542_v33 = vrot.slane %v12957_v5, %v13055_v7  ;;  %v1549_v49 = vrot.slane %v12957_v5, %v13058_v18 }
 0x141   :  { %17982 = vst [vmem:[#allocation54_spill] sm:$0xff] %v13179_v15  ;;  %v13203_v15 = vcombine.low %v1388_v29, %v1395_v50  ;;  %v350_v29 = vld [vmem:[#allocation3 + $0x900] sm:$0xff]  ;;  %v351_v50 = vld [vmem:[#allocation3 + $0x908] sm:$0xff]  ;;  %v13252_v4 = vadd.f32 %v353_v39, %v352_v6 }
 0x142   :  { %846 = vadd.xlane.f32.xlu1 %v13075_v28  ;;  %v1479_v28 = vrot.slane %v12953_v61, %v13050_v26  ;;  %17985 = vst [vmem:[#allocation57_spill] sm:$0xff] %v13228_v43  ;;  %v1458_v61 = vrot.slane %v12955_v1, %v13055_v7  ;;  %v356_v43 = vld [vmem:[#allocation3 + $0x930] sm:$0xff]  ;;  %v354_v39 = vld [vmem:[#allocation3 + $0x920] sm:$0xff] }
 0x143   :  { %843 = vadd.xlane.f32.xlu0 %v13107_v19  ;;  %v13206_v57 = vpop.xlane.xlu1 %636  ;;  %v13222_v19 = vcombine.low %v1402_v48, %v1409_v11  ;;  %v1535_v11 = vrot.slane %v12957_v5, %v13050_v26  ;;  %v12878_v48 = vmov 0   ;;  %v17988_v5 = vrot.slane %v13103_v31, %v13061_v23 }
 0x144   :  { %17983 = vst [vmem:[#allocation55_spill] sm:$0xff] %v13206_v57  ;;  %v13220_v45 = vpop.xlane.xlu0 %633  ;;  %12771 = vset.pattern.permute.xlu1 %v12878_v48  ;;  %v13246_v1 = vcombine.low %v1472_v8, %v1479_v28  ;;  %12770 = vset.pattern.permute.xlu0 %v12878_v48  ;;  %v6598_v8 = vrot.slane %v13123_v47, %v13061_v23 }
 0x145   :  { %17984 = vst [vmem:[#allocation56_spill] sm:$0xff] %v13220_v45  ;;  %v357_v45 = vld [vmem:[#allocation3 + $0x938] sm:$0xff]  ;;  %v13257_v57 = vcombine.low %v17988_v5, %v6639_v44  ;;  %v6605_v28 = vrot.slane %v13125_v27, %v13061_v23  ;;  %v1514_v31 = vrot.slane %v12959_v9, %v13055_v7  ;;  %v1521_v44 = vrot.slane %v12959_v9, %v13058_v18  ;;  %v358_v5 = vld [vmem:[#allocation3 + $0x940] sm:$0xff] }
 0x146   :  { %852 = vadd.xlane.f32.xlu1 %v13109_v14  ;;  %v13248_v14 = vcombine.low %v1486_v62, %v1493_v54  ;;  %v1500_v62 = vrot.slane %v12959_v9, %v13047_v60  ;;  %v1507_v54 = vrot.slane %v12959_v9, %v13050_v26  ;;  %v13278_v47 = vcombine.low %v1542_v33, %v1549_v49  ;;  %v361_v33 = vld [vmem:[#allocation3 + $0x958] sm:$0xff] }
 0x147   :  { %849 = vadd.xlane.f32.xlu0 %v13111_v37  ;;  %v13244_v22 = vpop.xlane.xlu1 %642  ;;  %17989 = vst [vmem:[#allocation60_spill] sm:$0xff] %v13257_v57  ;;  %v13259_v37 = vcombine.low %v1444_v42, %v1451_v59  ;;  %v13276_v42 = vcombine.low %v1528_v0, %v1535_v11  ;;  %v13280_v59 = vcombine.low %v1458_v61, %v1465_v34  ;;  %v360_v11 = vld [vmem:[#allocation3 + $0x950] sm:$0xff]  ;;  %v359_v57 = vld [vmem:[#allocation3 + $0x948] sm:$0xff] }
 0x148   :  { %17986 = vst [vmem:[#allocation58_spill] sm:$0xff] %v13244_v22  ;;  %v13250_v12 = vpop.xlane.xlu0 %639  ;;  %v13261_v22 = vadd.f32 %v351_v50, %v350_v29  ;;  %v13285_v6 = vadd.f32 %v357_v45, %v356_v43  ;;  %v355_v29 = vld [vmem:[#allocation3 + $0x928] sm:$0xff]  ;;  %v1584_v50 = vrot.slane %v12961_v13, %v13047_v60  ;;  %v1591_v9 = vrot.slane %v12961_v13, %v13050_v26 }
 0x149   :  { %17987 = vst [vmem:[#allocation59_spill] sm:$0xff] %v13250_v12  ;;  %v1605_v0 = vrot.slane %v12961_v13, %v13058_v18  ;;  %v1563_v45 = vrot.slane %v12963_v17, %v13050_v26  ;;  %v1570_v43 = vrot.slane %v12963_v17, %v13055_v7  ;;  %v1577_v34 = vrot.slane %v12963_v17, %v13058_v18  ;;  %v366_v12 = vld [vmem:[#allocation3 + $0x980] sm:$0xff] }
 0x14a   :  { %858 = vadd.xlane.f32.xlu1 %v13119_v20  ;;  %v1598_v20 = vrot.slane %v12961_v13, %v13055_v7  ;;  %v13305_v49 = vcombine.low %v1500_v62, %v1507_v54  ;;  %v13307_v48 = vcombine.low %v1514_v31, %v1521_v44  ;;  %v13310_v13 = vadd.f32 %v355_v29, %v354_v39 }
 0x14b   :  { %855 = vadd.xlane.f32.xlu0 %v13127_v55  ;;  %v13283_v27 = vpop.xlane.xlu1 %648  ;;  %v1556_v55 = vrot.slane %v12963_v17, %v13047_v60  ;;  %v1647_v17 = vrot.slane %v12965_v21, %v13050_v26  ;;  %v1654_v62 = vrot.slane %v12965_v21, %v13055_v7  ;;  %v1661_v54 = vrot.slane %v12965_v21, %v13058_v18 }
 0x14c   :  { %17990 = vst [vmem:[#allocation61_spill] sm:$0xff] %v13283_v27  ;;  %v13295_v61 = vpop.xlane.xlu0 %645  ;;  %17992 = vst [vmem:[#allocation63_spill] sm:$0xff] %v13307_v48  ;;  %v1640_v27 = vrot.slane %v12965_v21, %v13047_v60  ;;  %v13325_v31 = vcombine.low %v1584_v50, %v1591_v9  ;;  %v13331_v44 = vadd.f32 %v361_v33, %v360_v11 }
 0x14d   :  { %17991 = vst [vmem:[#allocation62_spill] sm:$0xff] %v13295_v61  ;;  %v13312_v61 = vcombine.low %v6598_v8, %v6605_v28  ;;  %v13327_v8 = vcombine.low %v1598_v20, %v1605_v0  ;;  %v6649_v39 = vrot.slane %v13121_v24, %v13061_v23  ;;  %v13335_v29 = vcombine.low %v1556_v55, %v1563_v45  ;;  %v364_v0 = vld [vmem:[#allocation3 + $0x970] sm:$0xff]  ;;  %v365_v45 = vld [vmem:[#allocation3 + $0x978] sm:$0xff] }
 0x14e   :  { %864 = vadd.xlane.f32.xlu1 %v13135_v63  ;;  %v13339_v21 = vadd.f32 %v359_v57, %v358_v5  ;;  %v1612_v50 = vrot.slane %v12967_v25, %v13047_v60  ;;  %v1619_v9 = vrot.slane %v12967_v25, %v13050_v26  ;;  %v1626_v20 = vrot.slane %v12967_v25, %v13055_v7 }
 0x14f   :  { %17993 = vst [vmem:[#allocation64_spill] sm:$0xff] %v13312_v61  ;;  %861 = vadd.xlane.f32.xlu0 %v13137_v41  ;;  %v13323_v63 = vpop.xlane.xlu1 %654  ;;  %17996 = vst [vmem:[#allocation67_spill] sm:$0xff] %v13335_v29  ;;  %v13337_v61 = vcombine.low %v1570_v43, %v1577_v34  ;;  %v6656_v41 = vrot.slane %v13129_v36, %v13061_v23  ;;  %v1633_v24 = vrot.slane %v12967_v25, %v13058_v18  ;;  %v362_v43 = vld [vmem:[#allocation3 + $0x960] sm:$0xff]  ;;  %v363_v34 = vld [vmem:[#allocation3 + $0x968] sm:$0xff] }
 0x150   :  { %17994 = vst [vmem:[#allocation65_spill] sm:$0xff] %v13323_v63  ;;  %v13329_v28 = vpop.xlane.xlu0 %651  ;;  %v13352_v57 = vcombine.low %v1640_v27, %v1647_v17  ;;  %v13354_v55 = vcombine.low %v1654_v62, %v1661_v54  ;;  %v6751_v11 = vrot.slane %v13246_v1, %v13061_v23  ;;  %v6758_v25 = vrot.slane %v13248_v14, %v13061_v23  ;;  %v368_v54 = vld [vmem:[#allocation3 + $0x990] sm:$0xff] }
 0x151   :  { %17995 = vst [vmem:[#allocation66_spill] sm:$0xff] %v13329_v28  ;;  %17997 = vst [vmem:[#allocation68_spill] sm:$0xff] %v13337_v61  ;;  %v1703_v27 = vrot.slane %v12969_v30, %v13050_v26  ;;  %v1717_v33 = vrot.slane %v12969_v30, %v13058_v18  ;;  %v1668_v1 = vrot.slane %v12971_v35, %v13047_v60  ;;  %v367_v61 = vld [vmem:[#allocation3 + $0x988] sm:$0xff] }
 0x152   :  { %870 = vadd.xlane.f32.xlu1 %v13181_v53  ;;  %v1696_v53 = vrot.slane %v12969_v30, %v13047_v60  ;;  %v1675_v14 = vrot.slane %v12971_v35, %v13050_v26  ;;  %v1682_v17 = vrot.slane %v12971_v35, %v13055_v7  ;;  %v1689_v62 = vrot.slane %v12971_v35, %v13058_v18 }
 0x153   :  { %867 = vadd.xlane.f32.xlu0 %v13199_v56  ;;  %v13357_v36 = vpop.xlane.xlu1 %660  ;;  %v1710_v56 = vrot.slane %v12969_v30, %v13055_v7  ;;  %v13381_v28 = vcombine.low %v1612_v50, %v1619_v9  ;;  %v13383_v63 = vcombine.low %v1626_v20, %v1633_v24  ;;  %v13386_v30 = vadd.f32 %v365_v45, %v364_v0 }
 0x154   :  { %17998 = vst [vmem:[#allocation69_spill] sm:$0xff] %v13357_v36  ;;  %v13371_v5 = vpop.xlane.xlu0 %657  ;;  %v369_v36 = vld [vmem:[#allocation3 + $0x998] sm:$0xff]  ;;  %v1752_v29 = vrot.slane %v12973_v40, %v13047_v60  ;;  %v1759_v35 = vrot.slane %v12973_v40, %v13050_v26  ;;  %v1766_v50 = vrot.slane %v12973_v40, %v13055_v7  ;;  %v1773_v9 = vrot.slane %v12973_v40, %v13058_v18 }
 0x155   :  { %17999 = vst [vmem:[#allocation70_spill] sm:$0xff] %v13371_v5  ;;  %18000 = vst [vmem:[#allocation71_spill] sm:$0xff] %v13381_v28  ;;  %v13388_v5 = vadd.f32 %v363_v34, %v362_v43  ;;  %v13401_v20 = vcombine.low %v1696_v53, %v1703_v27  ;;  %v13403_v24 = vcombine.low %v1710_v56, %v1717_v33  ;;  %v372_v43 = vld [vmem:[#allocation3 + $0x9b0] sm:$0xff]  ;;  %v373_v34 = vld [vmem:[#allocation3 + $0x9b8] sm:$0xff] }
 0x156   :  { %18001 = vst [vmem:[#allocation72_spill] sm:$0xff] %v13383_v63  ;;  %876 = vadd.xlane.f32.xlu1 %v13208_v32  ;;  %v13407_v45 = vadd.f32 %v369_v36, %v368_v54  ;;  %v13409_v63 = vcombine.low %v6649_v39, %v6656_v41  ;;  %v13411_v28 = vcombine.low %v1668_v1, %v1675_v14  ;;  %v371_v56 = vld [vmem:[#allocation3 + $0x9a8] sm:$0xff] }
 0x157   :  { %873 = vadd.xlane.f32.xlu0 %v13210_v10  ;;  %v13399_v32 = vpop.xlane.xlu1 %666  ;;  %v13413_v48 = vcombine.low %v1682_v17, %v1689_v62  ;;  %v13415_v40 = vadd.f32 %v367_v61, %v366_v12  ;;  %v13417_v10 = vcombine.low %v6751_v11, %v6758_v25  ;;  %v1724_v53 = vrot.slane %v12975_v46, %v13047_v60  ;;  %v370_v25 = vld [vmem:[#allocation3 + $0x9a0] sm:$0xff]  ;;  %v18010_v14 = vld [vmem:[#allocation13_spill] sm:$0xff] }
 0x158   :  { %18002 = vst [vmem:[#allocation73_spill] sm:$0xff] %v13399_v32  ;;  %v13405_v0 = vpop.xlane.xlu0 %663  ;;  %18004 = vst [vmem:[#allocation75_spill] sm:$0xff] %v13409_v63  ;;  %v1731_v27 = vrot.slane %v12975_v46, %v13050_v26  ;;  %v1738_v36 = vrot.slane %v12975_v46, %v13055_v7  ;;  %v1745_v39 = vrot.slane %v12975_v46, %v13058_v18 }
 0x159   :  { %18003 = vst [vmem:[#allocation74_spill] sm:$0xff] %v13405_v0  ;;  %18005 = vst [vmem:[#allocation76_spill] sm:$0xff] %v13411_v28  ;;  %v13428_v41 = vcombine.low %v1752_v29, %v1759_v35  ;;  %v13430_v12 = vcombine.low %v1766_v50, %v1773_v9  ;;  %v13435_v11 = vadd.f32 %v373_v34, %v372_v43  ;;  %v376_v35 = vld [vmem:[#allocation3 + $0x9d0] sm:$0xff]  ;;  %v377_v50 = vld [vmem:[#allocation3 + $0x9d8] sm:$0xff] }
 0x15a   :  { %18006 = vst [vmem:[#allocation77_spill] sm:$0xff] %v13413_v48  ;;  %18007 = vst [vmem:[#allocation78_spill] sm:$0xff] %v13417_v10  ;;  %882 = vadd.xlane.f32.xlu1 %v13252_v4  ;;  %v6666_v33 = vrot.slane %v13194_v52, %v13061_v23  ;;  %v1808_v46 = vrot.slane %v12977_v51, %v13047_v60  ;;  %v1815_v4 = vrot.slane %v12977_v51, %v13050_v26  ;;  %v374_v34 = vld [vmem:[#allocation3 + $0x9c0] sm:$0xff]  ;;  %v375_v10 = vld [vmem:[#allocation3 + $0x9c8] sm:$0xff] }
 0x15b   :  { %879 = vadd.xlane.f32.xlu0 %v13261_v22  ;;  %v13433_v61 = vpop.xlane.xlu1 %672  ;;  %v1822_v29 = vrot.slane %v12977_v51, %v13055_v7  ;;  %v1829_v22 = vrot.slane %v12977_v51, %v13058_v18  ;;  %v1780_v17 = vrot.slane %v18010_v14, %v13047_v60  ;;  %v1787_v52 = vrot.slane %v18010_v14, %v13050_v26  ;;  %v381_v0 = vld [vmem:[#allocation3 + $0x9f8] sm:$0xff] }
 0x15c   :  { %18008 = vst [vmem:[#allocation79_spill] sm:$0xff] %v13433_v61  ;;  %v13447_v1 = vpop.xlane.xlu0 %669  ;;  %v1794_v62 = vrot.slane %v18010_v14, %v13055_v7  ;;  %v1801_v54 = vrot.slane %v18010_v14, %v13058_v18  ;;  %v13457_v9 = vcombine.low %v1724_v53, %v1731_v27  ;;  %v13459_v43 = vcombine.low %v1738_v36, %v1745_v39 }
 0x15d   :  { %18009 = vst [vmem:[#allocation80_spill] sm:$0xff] %v13447_v1  ;;  %v13462_v51 = vadd.f32 %v371_v56, %v370_v25  ;;  %v6673_v63 = vrot.slane %v13196_v3, %v13061_v23  ;;  %v18013_v1 = vld [vmem:[#allocation14_spill] sm:$0xff]  ;;  %v13477_v36 = vcombine.low %v1808_v46, %v1815_v4  ;;  %v13479_v39 = vcombine.low %v1822_v29, %v1829_v22  ;;  %v18018_v4 = vld [vmem:[#allocation15_spill] sm:$0xff] }
 0x15e   :  { %18011 = vst [vmem:[#allocation13_spill] sm:$0xff] %v13457_v9  ;;  %18012 = vst [vmem:[#allocation81_spill] sm:$0xff] %v13459_v43  ;;  %888 = vadd.xlane.f32.xlu1 %v13285_v6  ;;  %v1864_v61 = vrot.slane %v18013_v1, %v13047_v60  ;;  %v1871_v14 = vrot.slane %v18013_v1, %v13050_v26  ;;  %v1878_v53 = vrot.slane %v18013_v1, %v13055_v7  ;;  %v380_v56 = vld [vmem:[#allocation3 + $0x9f0] sm:$0xff] }
 0x15f   :  { %v1885_v27 = vrot.slane %v18013_v1, %v13058_v18  ;;  %885 = vadd.xlane.f32.xlu0 %v13310_v13  ;;  %v13475_v6 = vpop.xlane.xlu1 %678  ;;  %v13483_v25 = vadd.f32 %v377_v50, %v376_v35  ;;  %v6785_v32 = vrot.slane %v13276_v42, %v13061_v23  ;;  %v13487_v43 = vcombine.low %v1780_v17, %v1787_v52 }
 0x160   :  { %18014 = vst [vmem:[#allocation14_spill] sm:$0xff] %v13475_v6  ;;  %v13481_v3 = vpop.xlane.xlu0 %675  ;;  %v13489_v1 = vcombine.low %v1794_v62, %v1801_v54  ;;  %v13491_v13 = vadd.f32 %v375_v10, %v374_v34  ;;  %v6792_v46 = vrot.slane %v13278_v47, %v13061_v23  ;;  %v1836_v29 = vrot.slane %v18018_v4, %v13047_v60  ;;  %v378_v62 = vld [vmem:[#allocation3 + $0x9e0] sm:$0xff]  ;;  %v379_v54 = vld [vmem:[#allocation3 + $0x9e8] sm:$0xff] }
 0x161   :  { %18015 = vst [vmem:[#allocation82_spill] sm:$0xff] %v13481_v3  ;;  %18016 = vst [vmem:[#allocation83_spill] sm:$0xff] %v13487_v43  ;;  %v1843_v22 = vrot.slane %v18018_v4, %v13050_v26  ;;  %v1850_v35 = vrot.slane %v18018_v4, %v13055_v7  ;;  %v1857_v42 = vrot.slane %v18018_v4, %v13058_v18  ;;  %v18021_v34 = vld [vmem:[#allocation16_spill] sm:$0xff]  ;;  %v385_v4 = vld [vmem:[#allocation3 + $0xa18] sm:$0xff] }
 0x162   :  { %18017 = vst [vmem:[#allocation84_spill] sm:$0xff] %v13489_v1  ;;  %894 = vadd.xlane.f32.xlu1 %v13331_v44  ;;  %v13504_v17 = vcombine.low %v1864_v61, %v1871_v14  ;;  %v13506_v10 = vcombine.low %v1878_v53, %v1885_v27  ;;  %v13511_v52 = vadd.f32 %v381_v0, %v380_v56  ;;  %v18023_v0 = vld [vmem:[#allocation17_spill] sm:$0xff]  ;;  %v18027_v43 = vld [vmem:[#allocation18_spill] sm:$0xff] }
 0x163   :  { %891 = vadd.xlane.f32.xlu0 %v13339_v21  ;;  %v13509_v47 = vpop.xlane.xlu1 %684  ;;  %v13513_v50 = vcombine.low %v6666_v33, %v6673_v63  ;;  %v1920_v3 = vrot.slane %v18021_v34, %v13047_v60  ;;  %v1927_v44 = vrot.slane %v18021_v34, %v13050_v26  ;;  %v1934_v61 = vrot.slane %v18021_v34, %v13055_v7  ;;  %v384_v56 = vld [vmem:[#allocation3 + $0xa10] sm:$0xff]  ;;  %v383_v6 = vld [vmem:[#allocation3 + $0xa08] sm:$0xff] }
 0x164   :  { %18019 = vst [vmem:[#allocation15_spill] sm:$0xff] %v13509_v47  ;;  %v1941_v21 = vrot.slane %v18021_v34, %v13058_v18  ;;  %v13523_v14 = vpop.xlane.xlu0 %681  ;;  %v1892_v53 = vrot.slane %v18023_v0, %v13047_v60  ;;  %v1899_v63 = vrot.slane %v18023_v0, %v13050_v26  ;;  %v1906_v33 = vrot.slane %v18023_v0, %v13055_v7 }
 0x165   :  { %18020 = vst [vmem:[#allocation85_spill] sm:$0xff] %v13513_v50  ;;  %18022 = vst [vmem:[#allocation16_spill] sm:$0xff] %v13523_v14  ;;  %v1913_v27 = vrot.slane %v18023_v0, %v13058_v18  ;;  %v13533_v50 = vcombine.low %v1836_v29, %v1843_v22  ;;  %v13535_v47 = vcombine.low %v1850_v35, %v1857_v42  ;;  %v382_v14 = vld [vmem:[#allocation3 + $0xa00] sm:$0xff] }
 0x166   :  { %900 = vadd.xlane.f32.xlu1 %v13386_v30  ;;  %v13538_v34 = vadd.f32 %v379_v54, %v378_v62  ;;  %v13540_v1 = vcombine.low %v6785_v32, %v6792_v46  ;;  %v1976_v9 = vrot.slane %v18027_v43, %v13047_v60  ;;  %v1983_v0 = vrot.slane %v18027_v43, %v13050_v26 }
 0x167   :  { %18024 = vst [vmem:[#allocation17_spill] sm:$0xff] %v13533_v50  ;;  %18025 = vst [vmem:[#allocation86_spill] sm:$0xff] %v13535_v47  ;;  %v1990_v29 = vrot.slane %v18027_v43, %v13055_v7  ;;  %v1997_v22 = vrot.slane %v18027_v43, %v13058_v18  ;;  %897 = vadd.xlane.f32.xlu0 %v13388_v5  ;;  %v13551_v30 = vpop.xlane.xlu1 %690  ;;  %v13553_v35 = vcombine.low %v1920_v3, %v1927_v44  ;;  %v18032_v3 = vld [vmem:[#allocation19_spill] sm:$0xff] }
 0x168   :  { %18026 = vst [vmem:[#allocation87_spill] sm:$0xff] %v13540_v1  ;;  %18028 = vst [vmem:[#allocation18_spill] sm:$0xff] %v13551_v30  ;;  %v13555_v32 = vcombine.low %v1934_v61, %v1941_v21  ;;  %v13557_v46 = vpop.xlane.xlu0 %687  ;;  %v13559_v42 = vadd.f32 %v385_v4, %v384_v56  ;;  %v6683_v62 = vrot.slane %v13175_v2, %v13061_v23  ;;  %v392_v30 = vld [vmem:[#allocation3 + $0xa50] sm:$0xff]  ;;  %v390_v50 = vld [vmem:[#allocation3 + $0xa40] sm:$0xff] }
 0x169   :  { %18029 = vst [vmem:[#allocation88_spill] sm:$0xff] %v13557_v46  ;;  %v13563_v54 = vcombine.low %v1892_v53, %v1899_v63  ;;  %v13565_v1 = vcombine.low %v1906_v33, %v1913_v27  ;;  %v13567_v43 = vadd.f32 %v383_v6, %v382_v14  ;;  %v6690_v5 = vrot.slane %v13177_v58, %v13061_v23  ;;  %v388_v53 = vld [vmem:[#allocation3 + $0xa30] sm:$0xff]  ;;  %v389_v63 = vld [vmem:[#allocation3 + $0xa38] sm:$0xff]  ;;  %v386_v33 = vld [vmem:[#allocation3 + $0xa20] sm:$0xff] }
 0x16a   :  { %v1948_v44 = vrot.slane %v18032_v3, %v13047_v60  ;;  %v1955_v61 = vrot.slane %v18032_v3, %v13050_v26  ;;  %v1962_v21 = vrot.slane %v18032_v3, %v13055_v7  ;;  %v1969_v2 = vrot.slane %v18032_v3, %v13058_v18  ;;  %906 = vadd.xlane.f32.xlu1 %v13407_v45  ;;  %v387_v27 = vld [vmem:[#allocation3 + $0xa28] sm:$0xff] }
 0x16b   :  { %18030 = vst [vmem:[#allocation89_spill] sm:$0xff] %v13563_v54  ;;  %18031 = vst [vmem:[#allocation90_spill] sm:$0xff] %v13565_v1  ;;  %v13580_v6 = vcombine.low %v1976_v9, %v1983_v0  ;;  %v13582_v14 = vcombine.low %v1990_v29, %v1997_v22  ;;  %903 = vadd.xlane.f32.xlu0 %v13415_v40  ;;  %v13585_v58 = vpop.xlane.xlu1 %696  ;;  %v6819_v56 = vrot.slane %v13325_v31, %v13061_v23  ;;  %v18036_v45 = vld [vmem:[#allocation20_spill] sm:$0xff]  ;;  %v18038_v22 = vld [vmem:[#allocation21_spill] sm:$0xff] }
 0x16c   :  { %18035 = vst [vmem:[#allocation92_spill] sm:$0xff] %v13585_v58  ;;  %v6826_v4 = vrot.slane %v13327_v8, %v13061_v23  ;;  %v2032_v3 = vrot.slane %v18036_v45, %v13047_v60  ;;  %v2039_v9 = vrot.slane %v18036_v45, %v13050_v26  ;;  %v2046_v40 = vrot.slane %v18036_v45, %v13055_v7  ;;  %v13599_v29 = vpop.xlane.xlu0 %693  ;;  %v393_v1 = vld [vmem:[#allocation3 + $0xa58] sm:$0xff] }
 0x16d   :  { %18033 = vst [vmem:[#allocation19_spill] sm:$0xff] %v13580_v6  ;;  %18034 = vst [vmem:[#allocation91_spill] sm:$0xff] %v13582_v14  ;;  %v2053_v0 = vrot.slane %v18036_v45, %v13058_v18  ;;  %v2004_v31 = vrot.slane %v18038_v22, %v13047_v60  ;;  %v2011_v8 = vrot.slane %v18038_v22, %v13050_v26  ;;  %v391_v14 = vld [vmem:[#allocation3 + $0xa48] sm:$0xff]  ;;  %v18041_v6 = vld [vmem:[#allocation22_spill] sm:$0xff] }
 0x16e   :  { %18037 = vst [vmem:[#allocation20_spill] sm:$0xff] %v13599_v29  ;;  %v2018_v58 = vrot.slane %v18038_v22, %v13055_v7  ;;  %v2025_v46 = vrot.slane %v18038_v22, %v13058_v18  ;;  %v13609_v54 = vcombine.low %v1948_v44, %v1955_v61  ;;  %v13611_v47 = vcombine.low %v1962_v21, %v1969_v2 }
 0x16f   :  { %912 = vadd.xlane.f32.xlu1 %v13435_v11  ;;  %v13614_v45 = vadd.f32 %v389_v63, %v388_v53  ;;  %v13616_v29 = vadd.f32 %v387_v27, %v386_v33  ;;  %v2088_v48 = vrot.slane %v18041_v6, %v13047_v60  ;;  %v2095_v22 = vrot.slane %v18041_v6, %v13050_v26  ;;  %v13627_v11 = vpop.xlane.xlu1 %702  ;;  %v396_v33 = vld [vmem:[#allocation3 + $0xa70] sm:$0xff]  ;;  %v397_v27 = vld [vmem:[#allocation3 + $0xa78] sm:$0xff] }
 0x170   :  { %18039 = vst [vmem:[#allocation21_spill] sm:$0xff] %v13609_v54  ;;  %18040 = vst [vmem:[#allocation93_spill] sm:$0xff] %v13611_v47  ;;  %v2102_v44 = vrot.slane %v18041_v6, %v13055_v7  ;;  %v2109_v61 = vrot.slane %v18041_v6, %v13058_v18  ;;  %909 = vadd.xlane.f32.xlu0 %v13462_v51  ;;  %v13629_v21 = vcombine.low %v2032_v3, %v2039_v9  ;;  %v13633_v53 = vpop.xlane.xlu0 %699  ;;  %v18048_v3 = vld [vmem:[#allocation23_spill] sm:$0xff] }
 0x171   :  { %18042 = vst [vmem:[#allocation22_spill] sm:$0xff] %v13627_v11  ;;  %v13631_v2 = vcombine.low %v2046_v40, %v2053_v0  ;;  %18043 = vst [vmem:[#allocation94_spill] sm:$0xff] %v13633_v53  ;;  %v13635_v63 = vadd.f32 %v393_v1, %v392_v30  ;;  %v13637_v47 = vcombine.low %v6683_v62, %v6690_v5  ;;  %v399_v53 = vld [vmem:[#allocation3 + $0xa88] sm:$0xff] }
 0x172   :  { %v13639_v54 = vcombine.low %v2004_v31, %v2011_v8  ;;  %v13641_v28 = vcombine.low %v2018_v58, %v2025_v46  ;;  %v13643_v6 = vadd.f32 %v391_v14, %v390_v50  ;;  %v13645_v51 = vcombine.low %v6819_v56, %v6826_v4  ;;  %v394_v14 = vld [vmem:[#allocation3 + $0xa60] sm:$0xff]  ;;  %v395_v58 = vld [vmem:[#allocation3 + $0xa68] sm:$0xff] }
 0x173   :  { %18044 = vst [vmem:[#allocation95_spill] sm:$0xff] %v13637_v47  ;;  %v2060_v9 = vrot.slane %v18048_v3, %v13047_v60  ;;  %v2067_v40 = vrot.slane %v18048_v3, %v13050_v26  ;;  %v2074_v1 = vrot.slane %v18048_v3, %v13055_v7  ;;  %v2081_v30 = vrot.slane %v18048_v3, %v13058_v18  ;;  %v13661_v62 = vpop.xlane.xlu1 %708  ;;  %v18050_v4 = vld [vmem:[#allocation24_spill] sm:$0xff]  ;;  %v18052_v8 = vld [vmem:[#allocation25_spill] sm:$0xff] }
 0x174   :  { %18045 = vst [vmem:[#allocation96_spill] sm:$0xff] %v13639_v54  ;;  %18046 = vst [vmem:[#allocation97_spill] sm:$0xff] %v13641_v28  ;;  %918 = vadd.xlane.f32.xlu1 %v13483_v25  ;;  %v13656_v46 = vcombine.low %v2088_v48, %v2095_v22  ;;  %v13658_v50 = vcombine.low %v2102_v44, %v2109_v61  ;;  %915 = vadd.xlane.f32.xlu0 %v13491_v13  ;;  %v13675_v31 = vpop.xlane.xlu0 %705 }
 0x175   :  { %18047 = vst [vmem:[#allocation98_spill] sm:$0xff] %v13645_v51  ;;  %18049 = vst [vmem:[#allocation23_spill] sm:$0xff] %v13661_v62  ;;  %v13663_v5 = vadd.f32 %v397_v27, %v396_v33  ;;  %v6700_v56 = vrot.slane %v13203_v15, %v13061_v23  ;;  %v2144_v0 = vrot.slane %v18050_v4, %v13047_v60  ;;  %v400_v33 = vld [vmem:[#allocation3 + $0xa90] sm:$0xff]  ;;  %v401_v27 = vld [vmem:[#allocation3 + $0xa98] sm:$0xff] }
 0x176   :  { %v2151_v48 = vrot.slane %v18050_v4, %v13050_v26  ;;  %v2158_v25 = vrot.slane %v18050_v4, %v13055_v7  ;;  %v2165_v13 = vrot.slane %v18050_v4, %v13058_v18  ;;  %18051 = vst [vmem:[#allocation24_spill] sm:$0xff] %v13675_v31  ;;  %v2116_v22 = vrot.slane %v18052_v8, %v13047_v60  ;;  %v398_v31 = vld [vmem:[#allocation3 + $0xa80] sm:$0xff]  ;;  %v18055_v51 = vld [vmem:[#allocation26_spill] sm:$0xff] }
 0x177   :  { %v2123_v15 = vrot.slane %v18052_v8, %v13050_v26  ;;  %v2130_v44 = vrot.slane %v18052_v8, %v13055_v7  ;;  %v2137_v61 = vrot.slane %v18052_v8, %v13058_v18  ;;  %v13685_v3 = vcombine.low %v2060_v9, %v2067_v40 }
 0x178   :  { %v13687_v62 = vcombine.low %v2074_v1, %v2081_v30  ;;  %924 = vadd.xlane.f32.xlu1 %v13511_v52  ;;  %v13690_v4 = vadd.f32 %v395_v58, %v394_v14  ;;  %v6707_v11 = vrot.slane %v13222_v19, %v13061_v23  ;;  %v2200_v47 = vrot.slane %v18055_v51, %v13047_v60  ;;  %v13703_v52 = vpop.xlane.xlu1 %714  ;;  %v13709_v19 = vpop.xlane.xlu0 %711  ;;  %v404_v58 = vld [vmem:[#allocation3 + $0xab0] sm:$0xff] }
 0x179   :  { %18053 = vst [vmem:[#allocation25_spill] sm:$0xff] %v13685_v3  ;;  %v2207_v8 = vrot.slane %v18055_v51, %v13050_v26  ;;  %v2214_v9 = vrot.slane %v18055_v51, %v13055_v7  ;;  %v2221_v40 = vrot.slane %v18055_v51, %v13058_v18  ;;  %921 = vadd.xlane.f32.xlu0 %v13538_v34  ;;  %18056 = vst [vmem:[#allocation26_spill] sm:$0xff] %v13703_v52 }
 0x17a   :  { %18054 = vst [vmem:[#allocation99_spill] sm:$0xff] %v13687_v62  ;;  %v13705_v1 = vcombine.low %v2144_v0, %v2151_v48  ;;  %v13707_v30 = vcombine.low %v2158_v25, %v2165_v13  ;;  %18057 = vst [vmem:[#allocation100_spill] sm:$0xff] %v13709_v19  ;;  %v13711_v14 = vadd.f32 %v401_v27, %v400_v33  ;;  %v405_v62 = vld [vmem:[#allocation3 + $0xab8] sm:$0xff]  ;;  %v18063_v27 = vld [vmem:[#allocation28_spill] sm:$0xff] }
 0x17b   :  { %v6853_v3 = vrot.slane %v13352_v57, %v13061_v23  ;;  %v13715_v28 = vcombine.low %v2116_v22, %v2123_v15  ;;  %v13717_v51 = vcombine.low %v2130_v44, %v2137_v61  ;;  %v13719_v34 = vadd.f32 %v399_v53, %v398_v31  ;;  %v18060_v48 = vld [vmem:[#allocation27_spill] sm:$0xff]  ;;  %v403_v44 = vld [vmem:[#allocation3 + $0xaa8] sm:$0xff] }
 0x17c   :  { %v6860_v0 = vrot.slane %v13354_v55, %v13061_v23  ;;  %v2172_v25 = vrot.slane %v18060_v48, %v13047_v60  ;;  %v2179_v13 = vrot.slane %v18060_v48, %v13050_v26  ;;  %v2186_v33 = vrot.slane %v18060_v48, %v13055_v7  ;;  %930 = vadd.xlane.f32.xlu1 %v13559_v42  ;;  %v13737_v55 = vpop.xlane.xlu1 %720  ;;  %v402_v15 = vld [vmem:[#allocation3 + $0xaa0] sm:$0xff] }
 0x17d   :  { %18058 = vst [vmem:[#allocation101_spill] sm:$0xff] %v13715_v28  ;;  %18059 = vst [vmem:[#allocation102_spill] sm:$0xff] %v13717_v51  ;;  %v2193_v57 = vrot.slane %v18060_v48, %v13058_v18  ;;  %v13732_v22 = vcombine.low %v2200_v47, %v2207_v8  ;;  %v13734_v53 = vcombine.low %v2214_v9, %v2221_v40  ;;  %927 = vadd.xlane.f32.xlu0 %v13567_v43  ;;  %v13751_v8 = vpop.xlane.xlu0 %717  ;;  %v409_v48 = vld [vmem:[#allocation3 + $0xad8] sm:$0xff]  ;;  %v407_v51 = vld [vmem:[#allocation3 + $0xac8] sm:$0xff] }
 0x17e   :  { %18061 = vst [vmem:[#allocation27_spill] sm:$0xff] %v13737_v55  ;;  %v13739_v31 = vadd.f32 %v405_v62, %v404_v58  ;;  %v13741_v61 = vcombine.low %v6700_v56, %v6707_v11  ;;  %v2256_v19 = vrot.slane %v18063_v27, %v13047_v60  ;;  %v2263_v42 = vrot.slane %v18063_v27, %v13050_v26  ;;  %v18065_v62 = vld [vmem:[#allocation29_spill] sm:$0xff] }
 0x17f   :  { %v2270_v47 = vrot.slane %v18063_v27, %v13055_v7  ;;  %v2277_v43 = vrot.slane %v18063_v27, %v13058_v18  ;;  %18064 = vst [vmem:[#allocation28_spill] sm:$0xff] %v13751_v8  ;;  %v2228_v9 = vrot.slane %v18065_v62, %v13047_v60  ;;  %v2235_v11 = vrot.slane %v18065_v62, %v13050_v26  ;;  %v408_v58 = vld [vmem:[#allocation3 + $0xad0] sm:$0xff]  ;;  %v406_v8 = vld [vmem:[#allocation3 + $0xac0] sm:$0xff] }
 0x180   :  { %18062 = vst [vmem:[#allocation103_spill] sm:$0xff] %v13741_v61  ;;  %v2242_v56 = vrot.slane %v18065_v62, %v13055_v7  ;;  %v2249_v40 = vrot.slane %v18065_v62, %v13058_v18  ;;  %v13761_v55 = vcombine.low %v2172_v25, %v2179_v13  ;;  %v13763_v52 = vcombine.low %v2186_v33, %v2193_v57  ;;  %v18069_v61 = vld [vmem:[#allocation30_spill] sm:$0xff] }
 0x181   :  { %936 = vadd.xlane.f32.xlu1 %v13614_v45  ;;  %v13766_v27 = vadd.f32 %v403_v44, %v402_v15  ;;  %v13768_v28 = vcombine.low %v6853_v3, %v6860_v0  ;;  %v2312_v54 = vrot.slane %v18069_v61, %v13047_v60  ;;  %v2319_v62 = vrot.slane %v18069_v61, %v13050_v26  ;;  %v13779_v45 = vpop.xlane.xlu1 %726  ;;  %v13785_v0 = vpop.xlane.xlu0 %723 }
 0x182   :  { %18066 = vst [vmem:[#allocation29_spill] sm:$0xff] %v13761_v55  ;;  %18067 = vst [vmem:[#allocation104_spill] sm:$0xff] %v13763_v52  ;;  %v2326_v25 = vrot.slane %v18069_v61, %v13055_v7  ;;  %v2333_v13 = vrot.slane %v18069_v61, %v13058_v18  ;;  %933 = vadd.xlane.f32.xlu0 %v13616_v29  ;;  %v13781_v33 = vcombine.low %v2256_v19, %v2263_v42  ;;  %v18076_v19 = vld [vmem:[#allocation31_spill] sm:$0xff] }
 0x183   :  { %18068 = vst [vmem:[#allocation105_spill] sm:$0xff] %v13768_v28  ;;  %18070 = vst [vmem:[#allocation30_spill] sm:$0xff] %v13779_v45  ;;  %v13783_v3 = vcombine.low %v2270_v47, %v2277_v43  ;;  %v13787_v57 = vadd.f32 %v409_v48, %v408_v58  ;;  %v6717_v15 = vrot.slane %v13192_v38, %v13061_v23  ;;  %v414_v28 = vld [vmem:[#allocation3 + $0xb00] sm:$0xff] }
 0x184   :  { %18071 = vst [vmem:[#allocation106_spill] sm:$0xff] %v13781_v33  ;;  %18073 = vst [vmem:[#allocation108_spill] sm:$0xff] %v13785_v0  ;;  %v13791_v44 = vcombine.low %v2228_v9, %v2235_v11  ;;  %v13793_v52 = vcombine.low %v2242_v56, %v2249_v40  ;;  %v13795_v61 = vadd.f32 %v407_v51, %v406_v8  ;;  %v412_v9 = vld [vmem:[#allocation3 + $0xaf0] sm:$0xff]  ;;  %v413_v11 = vld [vmem:[#allocation3 + $0xaf8] sm:$0xff] }
 0x185   :  { %18072 = vst [vmem:[#allocation107_spill] sm:$0xff] %v13783_v3  ;;  %v6724_v29 = vrot.slane %v13201_v16, %v13061_v23  ;;  %v2284_v42 = vrot.slane %v18076_v19, %v13047_v60  ;;  %v2291_v47 = vrot.slane %v18076_v19, %v13050_v26  ;;  %v2298_v43 = vrot.slane %v18076_v19, %v13055_v7  ;;  %v13813_v16 = vpop.xlane.xlu1 %732  ;;  %v410_v56 = vld [vmem:[#allocation3 + $0xae0] sm:$0xff]  ;;  %v411_v40 = vld [vmem:[#allocation3 + $0xae8] sm:$0xff] }
 0x186   :  { %18074 = vst [vmem:[#allocation109_spill] sm:$0xff] %v13791_v44  ;;  %18075 = vst [vmem:[#allocation110_spill] sm:$0xff] %v13793_v52  ;;  %v2305_v38 = vrot.slane %v18076_v19, %v13058_v18  ;;  %942 = vadd.xlane.f32.xlu1 %v13635_v63  ;;  %v13808_v51 = vcombine.low %v2312_v54, %v2319_v62  ;;  %v13810_v8 = vcombine.low %v2326_v25, %v2333_v13  ;;  %v18080_v63 = vld [vmem:[#allocation32_spill] sm:$0xff]  ;;  %v13827_v25 = vpop.xlane.xlu0 %729  ;;  %v18082_v13 = vld [vmem:[#allocation33_spill] sm:$0xff] }
 0x187   :  { %939 = vadd.xlane.f32.xlu0 %v13643_v6  ;;  %18079 = vst [vmem:[#allocation112_spill] sm:$0xff] %v13813_v16  ;;  %v6887_v58 = vrot.slane %v13401_v20, %v13061_v23  ;;  %v6894_v48 = vrot.slane %v13403_v24, %v13061_v23  ;;  %v2368_v19 = vrot.slane %v18080_v63, %v13047_v60  ;;  %18081 = vst [vmem:[#allocation32_spill] sm:$0xff] %v13827_v25  ;;  %v416_v52 = vld [vmem:[#allocation3 + $0xb10] sm:$0xff]  ;;  %v417_v44 = vld [vmem:[#allocation3 + $0xb18] sm:$0xff] }
 0x188   :  { %18077 = vst [vmem:[#allocation31_spill] sm:$0xff] %v13808_v51  ;;  %18078 = vst [vmem:[#allocation111_spill] sm:$0xff] %v13810_v8  ;;  %v2375_v54 = vrot.slane %v18080_v63, %v13050_v26  ;;  %v2382_v6 = vrot.slane %v18080_v63, %v13055_v7  ;;  %v2389_v62 = vrot.slane %v18080_v63, %v13058_v18  ;;  %v415_v8 = vld [vmem:[#allocation3 + $0xb08] sm:$0xff]  ;;  %v18085_v51 = vld [vmem:[#allocation34_spill] sm:$0xff] }
 0x189   :  { %v2340_v20 = vrot.slane %v18082_v13, %v13047_v60  ;;  %v2347_v24 = vrot.slane %v18082_v13, %v13050_v26  ;;  %v2354_v16 = vrot.slane %v18082_v13, %v13055_v7  ;;  %v2361_v0 = vrot.slane %v18082_v13, %v13058_v18 }
 0x18a   :  { %v13837_v45 = vcombine.low %v2284_v42, %v2291_v47  ;;  %v13839_v55 = vcombine.low %v2298_v43, %v2305_v38  ;;  %948 = vadd.xlane.f32.xlu1 %v13663_v5  ;;  %v13842_v63 = vadd.f32 %v413_v11, %v412_v9  ;;  %v13844_v25 = vadd.f32 %v411_v40, %v410_v56  ;;  %v13855_v5 = vpop.xlane.xlu1 %738  ;;  %v13861_v9 = vpop.xlane.xlu0 %735  ;;  %v420_v56 = vld [vmem:[#allocation3 + $0xb30] sm:$0xff]  ;;  %v421_v40 = vld [vmem:[#allocation3 + $0xb38] sm:$0xff] }
 0x18b   :  { %v2424_v3 = vrot.slane %v18085_v51, %v13047_v60  ;;  %v2431_v13 = vrot.slane %v18085_v51, %v13050_v26  ;;  %v2438_v42 = vrot.slane %v18085_v51, %v13055_v7  ;;  %v2445_v47 = vrot.slane %v18085_v51, %v13058_v18  ;;  %945 = vadd.xlane.f32.xlu0 %v13690_v4 }
 0x18c   :  { %18083 = vst [vmem:[#allocation33_spill] sm:$0xff] %v13837_v45  ;;  %18084 = vst [vmem:[#allocation113_spill] sm:$0xff] %v13839_v55  ;;  %v13857_v43 = vcombine.low %v2368_v19, %v2375_v54  ;;  %v13859_v38 = vcombine.low %v2382_v6, %v2389_v62  ;;  %v13863_v11 = vadd.f32 %v417_v44, %v416_v52  ;;  %v18090_v19 = vld [vmem:[#allocation35_spill] sm:$0xff] }
 0x18d   :  { %18086 = vst [vmem:[#allocation34_spill] sm:$0xff] %v13855_v5  ;;  %18087 = vst [vmem:[#allocation114_spill] sm:$0xff] %v13861_v9  ;;  %v13865_v55 = vcombine.low %v6717_v15, %v6724_v29  ;;  %v13867_v45 = vcombine.low %v2340_v20, %v2347_v24  ;;  %v13869_v33 = vcombine.low %v2354_v16, %v2361_v0  ;;  %v419_v16 = vld [vmem:[#allocation3 + $0xb28] sm:$0xff]  ;;  %v18098_v5 = vld [vmem:[#allocation38_spill] sm:$0xff] }
 0x18e   :  { %v13871_v51 = vadd.f32 %v415_v8, %v414_v28  ;;  %v13873_v4 = vcombine.low %v6887_v58, %v6894_v48  ;;  %v2396_v54 = vrot.slane %v18090_v19, %v13047_v60  ;;  %v2403_v6 = vrot.slane %v18090_v19, %v13050_v26  ;;  %954 = vadd.xlane.f32.xlu1 %v13711_v14  ;;  %v13889_v44 = vpop.xlane.xlu1 %744  ;;  %v418_v8 = vld [vmem:[#allocation3 + $0xb20] sm:$0xff]  ;;  %v13903_v20 = vpop.xlane.xlu0 %741  ;;  %v18095_v24 = vld [vmem:[#allocation37_spill] sm:$0xff] }
 0x18f   :  { %18088 = vst [vmem:[#allocation115_spill] sm:$0xff] %v13867_v45  ;;  %18089 = vst [vmem:[#allocation116_spill] sm:$0xff] %v13869_v33  ;;  %v2410_v52 = vrot.slane %v18090_v19, %v13055_v7  ;;  %v2417_v15 = vrot.slane %v18090_v19, %v13058_v18  ;;  %v13884_v0 = vcombine.low %v2424_v3, %v2431_v13  ;;  %951 = vadd.xlane.f32.xlu0 %v13719_v34  ;;  %v18093_v48 = vld [vmem:[#allocation36_spill] sm:$0xff] }
 0x190   :  { %v13886_v28 = vcombine.low %v2438_v42, %v2445_v47  ;;  %18092 = vst [vmem:[#allocation117_spill] sm:$0xff] %v13889_v44  ;;  %v13891_v29 = vadd.f32 %v421_v40, %v420_v56  ;;  %v6734_v58 = vrot.slane %v13259_v37, %v13061_v23  ;;  %v2480_v62 = vrot.slane %v18093_v48, %v13047_v60  ;;  %v424_v56 = vld [vmem:[#allocation3 + $0xb50] sm:$0xff]  ;;  %v425_v40 = vld [vmem:[#allocation3 + $0xb58] sm:$0xff]  ;;  %v423_v33 = vld [vmem:[#allocation3 + $0xb48] sm:$0xff] }
 0x191   :  { %v2487_v14 = vrot.slane %v18093_v48, %v13050_v26  ;;  %v2494_v3 = vrot.slane %v18093_v48, %v13055_v7  ;;  %v2501_v34 = vrot.slane %v18093_v48, %v13058_v18  ;;  %18094 = vst [vmem:[#allocation36_spill] sm:$0xff] %v13903_v20  ;;  %v2452_v13 = vrot.slane %v18095_v24, %v13047_v60  ;;  %v422_v20 = vld [vmem:[#allocation3 + $0xb40] sm:$0xff] }
 0x192   :  { %18091 = vst [vmem:[#allocation35_spill] sm:$0xff] %v13886_v28  ;;  %v2459_v37 = vrot.slane %v18095_v24, %v13050_v26  ;;  %v2466_v42 = vrot.slane %v18095_v24, %v13055_v7  ;;  %v2473_v47 = vrot.slane %v18095_v24, %v13058_v18  ;;  %v13913_v19 = vcombine.low %v2396_v54, %v2403_v6 }
 0x193   :  { %v13915_v44 = vcombine.low %v2410_v52, %v2417_v15  ;;  %960 = vadd.xlane.f32.xlu1 %v13739_v31  ;;  %v13918_v48 = vadd.f32 %v419_v16, %v418_v8  ;;  %v6741_v45 = vrot.slane %v13280_v59, %v13061_v23  ;;  %v2536_v9 = vrot.slane %v18098_v5, %v13047_v60  ;;  %v13931_v31 = vpop.xlane.xlu1 %750  ;;  %v13937_v59 = vpop.xlane.xlu0 %747  ;;  %v428_v16 = vld [vmem:[#allocation3 + $0xb70] sm:$0xff] }
 0x194   :  { %18096 = vst [vmem:[#allocation37_spill] sm:$0xff] %v13913_v19  ;;  %v2543_v24 = vrot.slane %v18098_v5, %v13050_v26  ;;  %v2550_v54 = vrot.slane %v18098_v5, %v13055_v7  ;;  %v2557_v6 = vrot.slane %v18098_v5, %v13058_v18  ;;  %957 = vadd.xlane.f32.xlu0 %v13766_v27  ;;  %18099 = vst [vmem:[#allocation38_spill] sm:$0xff] %v13931_v31 }
 0x195   :  { %18097 = vst [vmem:[#allocation118_spill] sm:$0xff] %v13915_v44  ;;  %v13933_v52 = vcombine.low %v2480_v62, %v2487_v14  ;;  %v13935_v15 = vcombine.low %v2494_v3, %v2501_v34  ;;  %18102 = vst [vmem:[#allocation121_spill] sm:$0xff] %v13937_v59  ;;  %v13939_v8 = vadd.f32 %v425_v40, %v424_v56  ;;  %v429_v44 = vld [vmem:[#allocation3 + $0xb78] sm:$0xff]  ;;  %v18109_v40 = vld [vmem:[#allocation40_spill] sm:$0xff] }
 0x196   :  { %v6921_v19 = vrot.slane %v13428_v41, %v13061_v23  ;;  %v13943_v28 = vcombine.low %v2452_v13, %v2459_v37  ;;  %v13945_v5 = vcombine.low %v2466_v42, %v2473_v47  ;;  %v13947_v27 = vadd.f32 %v423_v33, %v422_v20  ;;  %v18105_v14 = vld [vmem:[#allocation39_spill] sm:$0xff]  ;;  %v427_v42 = vld [vmem:[#allocation3 + $0xb68] sm:$0xff]  ;;  %v18114_v59 = vld [vmem:[#allocation42_spill] sm:$0xff] }
 0x197   :  { %18100 = vst [vmem:[#allocation119_spill] sm:$0xff] %v13933_v52  ;;  %18101 = vst [vmem:[#allocation120_spill] sm:$0xff] %v13935_v15  ;;  %v6928_v62 = vrot.slane %v13430_v12, %v13061_v23  ;;  %v2508_v3 = vrot.slane %v18105_v14, %v13047_v60  ;;  %v2515_v34 = vrot.slane %v18105_v14, %v13050_v26  ;;  %966 = vadd.xlane.f32.xlu1 %v13787_v57  ;;  %v13965_v12 = vpop.xlane.xlu1 %756  ;;  %v426_v37 = vld [vmem:[#allocation3 + $0xb60] sm:$0xff] }
 0x198   :  { %18103 = vst [vmem:[#allocation122_spill] sm:$0xff] %v13943_v28  ;;  %18104 = vst [vmem:[#allocation123_spill] sm:$0xff] %v13945_v5  ;;  %v2522_v56 = vrot.slane %v18105_v14, %v13055_v7  ;;  %v2529_v41 = vrot.slane %v18105_v14, %v13058_v18  ;;  %v13960_v13 = vcombine.low %v2536_v9, %v2543_v24  ;;  %963 = vadd.xlane.f32.xlu0 %v13795_v61  ;;  %v13979_v24 = vpop.xlane.xlu0 %753  ;;  %v433_v14 = vld [vmem:[#allocation3 + $0xb98] sm:$0xff]  ;;  %v431_v28 = vld [vmem:[#allocation3 + $0xb88] sm:$0xff] }
 0x199   :  { %v13962_v33 = vcombine.low %v2550_v54, %v2557_v6  ;;  %18108 = vst [vmem:[#allocation125_spill] sm:$0xff] %v13965_v12  ;;  %v13967_v20 = vadd.f32 %v429_v44, %v428_v16  ;;  %v13969_v47 = vcombine.low %v6734_v58, %v6741_v45  ;;  %v2592_v5 = vrot.slane %v18109_v40, %v13047_v60  ;;  %v18111_v44 = vld [vmem:[#allocation41_spill] sm:$0xff] }
 0x19a   :  { %18106 = vst [vmem:[#allocation39_spill] sm:$0xff] %v13960_v13  ;;  %v2599_v57 = vrot.slane %v18109_v40, %v13050_v26  ;;  %v2606_v9 = vrot.slane %v18109_v40, %v13055_v7  ;;  %v2613_v61 = vrot.slane %v18109_v40, %v13058_v18  ;;  %18110 = vst [vmem:[#allocation40_spill] sm:$0xff] %v13979_v24  ;;  %v432_v16 = vld [vmem:[#allocation3 + $0xb90] sm:$0xff]  ;;  %v430_v24 = vld [vmem:[#allocation3 + $0xb80] sm:$0xff] }
 0x19b   :  { %18107 = vst [vmem:[#allocation124_spill] sm:$0xff] %v13962_v33  ;;  %v2564_v54 = vrot.slane %v18111_v44, %v13047_v60  ;;  %v2571_v45 = vrot.slane %v18111_v44, %v13050_v26  ;;  %v2578_v58 = vrot.slane %v18111_v44, %v13055_v7  ;;  %v2585_v6 = vrot.slane %v18111_v44, %v13058_v18 }
 0x19c   :  { %v13989_v33 = vcombine.low %v2508_v3, %v2515_v34  ;;  %v13991_v13 = vcombine.low %v2522_v56, %v2529_v41  ;;  %972 = vadd.xlane.f32.xlu1 %v13842_v63  ;;  %v13994_v40 = vadd.f32 %v427_v42, %v426_v37  ;;  %v13996_v12 = vcombine.low %v6921_v19, %v6928_v62  ;;  %v14007_v63 = vpop.xlane.xlu1 %762  ;;  %v14013_v62 = vpop.xlane.xlu0 %759 }
 0x19d   :  { %v2648_v31 = vrot.slane %v18114_v59, %v13047_v60  ;;  %v2655_v44 = vrot.slane %v18114_v59, %v13050_v26  ;;  %v2662_v3 = vrot.slane %v18114_v59, %v13055_v7  ;;  %v2669_v34 = vrot.slane %v18114_v59, %v13058_v18  ;;  %969 = vadd.xlane.f32.xlu0 %v13844_v25  ;;  %v18121_v25 = vld [vmem:[#allocation63_spill] sm:$0xff] }
 0x19e   :  { %18112 = vst [vmem:[#allocation41_spill] sm:$0xff] %v13989_v33  ;;  %18113 = vst [vmem:[#allocation126_spill] sm:$0xff] %v13991_v13  ;;  %v14009_v56 = vcombine.low %v2592_v5, %v2599_v57  ;;  %v14011_v19 = vcombine.low %v2606_v9, %v2613_v61  ;;  %v14015_v41 = vadd.f32 %v433_v14, %v432_v16  ;;  %v18122_v5 = vld [vmem:[#allocation44_spill] sm:$0xff] }
 0x19f   :  { %18115 = vst [vmem:[#allocation42_spill] sm:$0xff] %v14007_v63  ;;  %18118 = vst [vmem:[#allocation129_spill] sm:$0xff] %v14013_v62  ;;  %v6768_v37 = vrot.slane %v13305_v49, %v13061_v23  ;;  %v14019_v42 = vcombine.low %v2564_v54, %v2571_v45  ;;  %v14021_v13 = vcombine.low %v2578_v58, %v2585_v6  ;;  %v436_v54 = vld [vmem:[#allocation3 + $0xbb0] sm:$0xff]  ;;  %v437_v58 = vld [vmem:[#allocation3 + $0xbb8] sm:$0xff] }
 0x1a0   :  { %18116 = vst [vmem:[#allocation127_spill] sm:$0xff] %v14009_v56  ;;  %18117 = vst [vmem:[#allocation128_spill] sm:$0xff] %v14011_v19  ;;  %v14023_v59 = vadd.f32 %v431_v28, %v430_v24  ;;  %v6775_v33 = vrot.slane %v18121_v25, %v13061_v23  ;;  %v2620_v57 = vrot.slane %v18122_v5, %v13047_v60  ;;  %978 = vadd.xlane.f32.xlu1 %v13863_v11  ;;  %v14041_v45 = vpop.xlane.xlu1 %768  ;;  %v434_v6 = vld [vmem:[#allocation3 + $0xba0] sm:$0xff]  ;;  %v435_v16 = vld [vmem:[#allocation3 + $0xba8] sm:$0xff] }
 0x1a1   :  { %18119 = vst [vmem:[#allocation130_spill] sm:$0xff] %v14019_v42  ;;  %18120 = vst [vmem:[#allocation131_spill] sm:$0xff] %v14021_v13  ;;  %v2627_v9 = vrot.slane %v18122_v5, %v13050_v26  ;;  %v2634_v61 = vrot.slane %v18122_v5, %v13055_v7  ;;  %v2641_v49 = vrot.slane %v18122_v5, %v13058_v18  ;;  %975 = vadd.xlane.f32.xlu0 %v13871_v51  ;;  %v18126_v11 = vld [vmem:[#allocation45_spill] sm:$0xff]  ;;  %v441_v19 = vld [vmem:[#allocation3 + $0xbd8] sm:$0xff] }
 0x1a2   :  { %v14036_v28 = vcombine.low %v2648_v31, %v2655_v44  ;;  %v14038_v24 = vcombine.low %v2662_v3, %v2669_v34  ;;  %18125 = vst [vmem:[#allocation132_spill] sm:$0xff] %v14041_v45  ;;  %v6955_v14 = vrot.slane %v13477_v36, %v13061_v23  ;;  %v6962_v25 = vrot.slane %v13479_v39, %v13061_v23  ;;  %v14055_v3 = vpop.xlane.xlu0 %765  ;;  %v18128_v34 = vld [vmem:[#allocation46_spill] sm:$0xff]  ;;  %v438_v63 = vld [vmem:[#allocation3 + $0xbc0] sm:$0xff]  ;;  %v439_v13 = vld [vmem:[#allocation3 + $0xbc8] sm:$0xff] }
 0x1a3   :  { %v2704_v5 = vrot.slane %v18126_v11, %v13047_v60  ;;  %v2711_v31 = vrot.slane %v18126_v11, %v13050_v26  ;;  %v2718_v51 = vrot.slane %v18126_v11, %v13055_v7  ;;  %v2725_v44 = vrot.slane %v18126_v11, %v13058_v18  ;;  %18127 = vst [vmem:[#allocation45_spill] sm:$0xff] %v14055_v3  ;;  %v440_v45 = vld [vmem:[#allocation3 + $0xbd0] sm:$0xff]  ;;  %v18131_v42 = vld [vmem:[#allocation47_spill] sm:$0xff] }
 0x1a4   :  { %18123 = vst [vmem:[#allocation63_spill] sm:$0xff] %v14036_v28  ;;  %18124 = vst [vmem:[#allocation44_spill] sm:$0xff] %v14038_v24  ;;  %v2676_v36 = vrot.slane %v18128_v34, %v13047_v60  ;;  %v2683_v39 = vrot.slane %v18128_v34, %v13050_v26  ;;  %v2690_v24 = vrot.slane %v18128_v34, %v13055_v7  ;;  %984 = vadd.xlane.f32.xlu1 %v13891_v29  ;;  %v14083_v29 = vpop.xlane.xlu1 %774 }
 0x1a5   :  { %v2697_v28 = vrot.slane %v18128_v34, %v13058_v18  ;;  %v14065_v56 = vcombine.low %v2620_v57, %v2627_v9  ;;  %v14067_v62 = vcombine.low %v2634_v61, %v2641_v49  ;;  %v14070_v11 = vadd.f32 %v437_v58, %v436_v54  ;;  %981 = vadd.xlane.f32.xlu0 %v13918_v48  ;;  %v442_v48 = vld [vmem:[#allocation3 + $0xbe0] sm:$0xff] }
 0x1a6   :  { %v14072_v3 = vadd.f32 %v435_v16, %v434_v6  ;;  %v2760_v15 = vrot.slane %v18131_v42, %v13047_v60  ;;  %v2767_v34 = vrot.slane %v18131_v42, %v13050_v26  ;;  %v2774_v57 = vrot.slane %v18131_v42, %v13055_v7  ;;  %18132 = vst [vmem:[#allocation47_spill] sm:$0xff] %v14083_v29  ;;  %v14089_v54 = vpop.xlane.xlu0 %771  ;;  %v444_v6 = vld [vmem:[#allocation3 + $0xbf0] sm:$0xff]  ;;  %v445_v16 = vld [vmem:[#allocation3 + $0xbf8] sm:$0xff]  ;;  %v443_v29 = vld [vmem:[#allocation3 + $0xbe8] sm:$0xff] }
 0x1a7   :  { %18129 = vst [vmem:[#allocation46_spill] sm:$0xff] %v14065_v56  ;;  %18130 = vst [vmem:[#allocation133_spill] sm:$0xff] %v14067_v62  ;;  %v2781_v9 = vrot.slane %v18131_v42, %v13058_v18  ;;  %v14085_v61 = vcombine.low %v2704_v5, %v2711_v31  ;;  %v14087_v49 = vcombine.low %v2718_v51, %v2725_v44  ;;  %v18140_v31 = vld [vmem:[#allocation48_spill] sm:$0xff] }
 0x1a8   :  { %18135 = vst [vmem:[#allocation136_spill] sm:$0xff] %v14089_v54  ;;  %v14091_v58 = vadd.f32 %v441_v19, %v440_v45  ;;  %v14093_v62 = vcombine.low %v6768_v37, %v6775_v33  ;;  %v14095_v56 = vcombine.low %v2676_v36, %v2683_v39  ;;  %v14097_v52 = vcombine.low %v2690_v24, %v2697_v28  ;;  %v18141_v37 = vld [vmem:[#allocation67_spill] sm:$0xff]  ;;  %v14119_v45 = vpop.xlane.xlu1 %780 }
 0x1a9   :  { %18133 = vst [vmem:[#allocation134_spill] sm:$0xff] %v14085_v61  ;;  %18134 = vst [vmem:[#allocation135_spill] sm:$0xff] %v14087_v49  ;;  %v14099_v42 = vadd.f32 %v439_v13, %v438_v63  ;;  %v14101_v5 = vcombine.low %v6955_v14, %v6962_v25  ;;  %v2732_v51 = vrot.slane %v18140_v31, %v13047_v60  ;;  %990 = vadd.xlane.f32.xlu1 %v13939_v8  ;;  %v18145_v25 = vld [vmem:[#allocation49_spill] sm:$0xff] }
 0x1aa   :  { %18136 = vst [vmem:[#allocation137_spill] sm:$0xff] %v14093_v62  ;;  %18137 = vst [vmem:[#allocation138_spill] sm:$0xff] %v14095_v56  ;;  %v2739_v19 = vrot.slane %v18140_v31, %v13050_v26  ;;  %v2746_v33 = vrot.slane %v18140_v31, %v13055_v7  ;;  %v6802_v28 = vrot.slane %v18141_v37, %v13061_v23  ;;  %987 = vadd.xlane.f32.xlu0 %v13947_v27  ;;  %v14125_v8 = vpop.xlane.xlu0 %777  ;;  %v18149_v37 = vld [vmem:[#allocation51_spill] sm:$0xff] }
 0x1ab   :  { %18138 = vst [vmem:[#allocation139_spill] sm:$0xff] %v14097_v52  ;;  %18139 = vst [vmem:[#allocation140_spill] sm:$0xff] %v14101_v5  ;;  %v14112_v13 = vcombine.low %v2760_v15, %v2767_v34  ;;  %v14114_v63 = vcombine.low %v2774_v57, %v2781_v9  ;;  %v2753_v24 = vrot.slane %v18140_v31, %v13058_v18  ;;  %v18147_v15 = vld [vmem:[#allocation68_spill] sm:$0xff] }
 0x1ac   :  { %18144 = vst [vmem:[#allocation141_spill] sm:$0xff] %v14119_v45  ;;  %v14121_v14 = vadd.f32 %v445_v16, %v444_v6  ;;  %v2816_v44 = vrot.slane %v18145_v25, %v13047_v60  ;;  %18146 = vst [vmem:[#allocation49_spill] sm:$0xff] %v14125_v8  ;;  %v14127_v36 = vadd.f32 %v443_v29, %v442_v48  ;;  %v18148_v6 = vld [vmem:[#allocation50_spill] sm:$0xff]  ;;  %v18153_v52 = vld [vmem:[#allocation52_spill] sm:$0xff] }
 0x1ad   :  { %18142 = vst [vmem:[#allocation48_spill] sm:$0xff] %v14112_v13  ;;  %18143 = vst [vmem:[#allocation67_spill] sm:$0xff] %v14114_v63  ;;  %v6809_v39 = vrot.slane %v18147_v15, %v13061_v23  ;;  %v6989_v34 = vrot.slane %v13504_v17, %v13061_v23  ;;  %v2823_v27 = vrot.slane %v18145_v25, %v13050_v26  ;;  %996 = vadd.xlane.f32.xlu1 %v13967_v20  ;;  %v14155_v63 = vpop.xlane.xlu1 %786  ;;  %v18151_v13 = vld [vmem:[#allocation71_spill] sm:$0xff] }
 0x1ae   :  { %v2830_v57 = vrot.slane %v18145_v25, %v13055_v7  ;;  %v2837_v9 = vrot.slane %v18145_v25, %v13058_v18  ;;  %v2788_v16 = vrot.slane %v18148_v6, %v13047_v60  ;;  %v2795_v29 = vrot.slane %v18148_v6, %v13050_v26  ;;  %993 = vadd.xlane.f32.xlu0 %v13994_v40  ;;  %v14169_v8 = vpop.xlane.xlu0 %783 }
 0x1af   :  { %v2802_v48 = vrot.slane %v18148_v6, %v13055_v7  ;;  %v2809_v17 = vrot.slane %v18148_v6, %v13058_v18  ;;  %v6996_v31 = vrot.slane %v13506_v10, %v13061_v23  ;;  %v2872_v25 = vrot.slane %v18149_v37, %v13047_v60  ;;  %18150 = vst [vmem:[#allocation68_spill] sm:$0xff] %v14155_v63  ;;  %v18152_v6 = vld [vmem:[#allocation72_spill] sm:$0xff] }
 0x1b0   :  { %v2879_v15 = vrot.slane %v18149_v37, %v13050_v26  ;;  %v6836_v49 = vrot.slane %v18151_v13, %v13061_v23  ;;  %v6843_v61 = vrot.slane %v18152_v6, %v13061_v23  ;;  %v2886_v20 = vrot.slane %v18149_v37, %v13055_v7 }
 0x1b1   :  { %v2893_v10 = vrot.slane %v18149_v37, %v13058_v18  ;;  %v2844_v56 = vrot.slane %v18153_v52, %v13047_v60  ;;  %v2851_v40 = vrot.slane %v18153_v52, %v13050_v26  ;;  %v14171_v63 = vcombine.low %v2732_v51, %v2739_v19  ;;  %1002 = vadd.xlane.f32.xlu1 %v14015_v41 }
 0x1b2   :  { %v14173_v13 = vcombine.low %v2746_v33, %v2753_v24  ;;  %v2858_v6 = vrot.slane %v18153_v52, %v13055_v7  ;;  %v2865_v45 = vrot.slane %v18153_v52, %v13058_v18  ;;  %v14179_v54 = vcombine.low %v2816_v44, %v2823_v27  ;;  %v18161_v33 = vld [vmem:[#allocation53_spill] sm:$0xff]  ;;  %999 = vadd.xlane.f32.xlu0 %v14023_v59  ;;  %v14197_v44 = vpop.xlane.xlu1 %792  ;;  %v14203_v41 = vpop.xlane.xlu0 %789 }
 0x1b3   :  { %18154 = vst [vmem:[#allocation50_spill] sm:$0xff] %v14171_v63  ;;  %v14181_v37 = vcombine.low %v2830_v57, %v2837_v9  ;;  %v14183_v5 = vcombine.low %v2788_v16, %v2795_v29  ;;  %v14186_v62 = vcombine.low %v6802_v28, %v6809_v39  ;;  %v14188_v51 = vcombine.low %v2872_v25, %v2879_v15  ;;  %v18171_v25 = vld [vmem:[#allocation77_spill] sm:$0xff] }
 0x1b4   :  { %18155 = vst [vmem:[#allocation51_spill] sm:$0xff] %v14173_v13  ;;  %18156 = vst [vmem:[#allocation71_spill] sm:$0xff] %v14179_v54  ;;  %v14190_v19 = vcombine.low %v2802_v48, %v2809_v17  ;;  %v2928_v24 = vrot.slane %v18161_v33, %v13047_v60  ;;  %v2935_v52 = vrot.slane %v18161_v33, %v13050_v26  ;;  %v18167_v48 = vld [vmem:[#allocation54_spill] sm:$0xff]  ;;  %v18170_v17 = vld [vmem:[#allocation76_spill] sm:$0xff] }
 0x1b5   :  { %18157 = vst [vmem:[#allocation72_spill] sm:$0xff] %v14181_v37  ;;  %18158 = vst [vmem:[#allocation52_spill] sm:$0xff] %v14183_v5  ;;  %v14199_v27 = vcombine.low %v2886_v20, %v2893_v10  ;;  %v14201_v57 = vcombine.low %v2844_v56, %v2851_v40  ;;  %v14205_v28 = vcombine.low %v6989_v34, %v6996_v31  ;;  %1008 = vadd.xlane.f32.xlu1 %v14070_v11  ;;  %v18172_v20 = vld [vmem:[#allocation55_spill] sm:$0xff] }
 0x1b6   :  { %18159 = vst [vmem:[#allocation142_spill] sm:$0xff] %v14188_v51  ;;  %18160 = vst [vmem:[#allocation143_spill] sm:$0xff] %v14190_v19  ;;  %v14207_v39 = vcombine.low %v6836_v49, %v6843_v61  ;;  %v2942_v9 = vrot.slane %v18161_v33, %v13055_v7  ;;  %v14211_v16 = vcombine.low %v2858_v6, %v2865_v45  ;;  %1005 = vadd.xlane.f32.xlu0 %v14072_v3  ;;  %v14245_v6 = vpop.xlane.xlu0 %795  ;;  %v18187_v5 = vld [vmem:[#allocation59_spill] sm:$0xff] }
 0x1b7   :  { %18162 = vst [vmem:[#allocation53_spill] sm:$0xff] %v14197_v44  ;;  %18163 = vst [vmem:[#allocation144_spill] sm:$0xff] %v14199_v27  ;;  %v7023_v59 = vrot.slane %v13553_v35, %v13061_v23  ;;  %v7030_v29 = vrot.slane %v13555_v32, %v13061_v23  ;;  %v2949_v56 = vrot.slane %v18161_v33, %v13058_v18  ;;  %v14231_v32 = vpop.xlane.xlu1 %798  ;;  %v18174_v33 = vld [vmem:[#allocation56_spill] sm:$0xff] }
 0x1b8   :  { %18164 = vst [vmem:[#allocation145_spill] sm:$0xff] %v14201_v57  ;;  %18165 = vst [vmem:[#allocation146_spill] sm:$0xff] %v14203_v41  ;;  %v2900_v34 = vrot.slane %v18167_v48, %v13047_v60  ;;  %v2907_v61 = vrot.slane %v18167_v48, %v13050_v26  ;;  %v2914_v49 = vrot.slane %v18167_v48, %v13055_v7 }
 0x1b9   :  { %18166 = vst [vmem:[#allocation147_spill] sm:$0xff] %v14211_v16  ;;  %v14226_v45 = vcombine.low %v2928_v24, %v2935_v52  ;;  %v2921_v35 = vrot.slane %v18167_v48, %v13058_v18  ;;  %18169 = vst [vmem:[#allocation148_spill] sm:$0xff] %v14231_v32  ;;  %v6870_v31 = vrot.slane %v18170_v17, %v13061_v23  ;;  %1014 = vadd.xlane.f32.xlu1 %v14091_v58 }
 0x1ba   :  { %v6877_v15 = vrot.slane %v18171_v25, %v13061_v23  ;;  %v2984_v10 = vrot.slane %v18172_v20, %v13047_v60  ;;  %v2991_v11 = vrot.slane %v18172_v20, %v13050_v26  ;;  %v2998_v40 = vrot.slane %v18172_v20, %v13055_v7  ;;  %18173 = vst [vmem:[#allocation76_spill] sm:$0xff] %v14245_v6  ;;  %v14283_v19 = vpop.xlane.xlu0 %801 }
 0x1bb   :  { %18168 = vst [vmem:[#allocation54_spill] sm:$0xff] %v14226_v45  ;;  %v3005_v3 = vrot.slane %v18172_v20, %v13058_v18  ;;  %v2956_v24 = vrot.slane %v18174_v33, %v13047_v60  ;;  %v2963_v52 = vrot.slane %v18174_v33, %v13050_v26  ;;  %v2970_v48 = vrot.slane %v18174_v33, %v13055_v7  ;;  %v18176_v45 = vld [vmem:[#allocation58_spill] sm:$0xff] }
 0x1bc   :  { %v2977_v17 = vrot.slane %v18174_v33, %v13058_v18  ;;  %v14255_v25 = vcombine.low %v2942_v9, %v2949_v56  ;;  %v3040_v27 = vrot.slane %v18176_v45, %v13047_v60  ;;  %v3047_v20 = vrot.slane %v18176_v45, %v13050_v26  ;;  %1011 = vadd.xlane.f32.xlu0 %v14099_v42  ;;  %v14269_v9 = vpop.xlane.xlu1 %804  ;;  %v18178_v56 = vld [vmem:[#allocation19_spill] sm:$0xff] }
 0x1bd   :  { %v14262_v51 = vcombine.low %v7023_v59, %v7030_v29  ;;  %v3054_v37 = vrot.slane %v18176_v45, %v13055_v7  ;;  %v3061_v54 = vrot.slane %v18176_v45, %v13058_v18  ;;  %18177 = vst [vmem:[#allocation55_spill] sm:$0xff] %v14269_v9  ;;  %v7057_v33 = vrot.slane %v18178_v56, %v13061_v23 }
 0x1be   :  { %18175 = vst [vmem:[#allocation77_spill] sm:$0xff] %v14255_v25  ;;  %v18179_v25 = vld [vmem:[#allocation91_spill] sm:$0xff]  ;;  %v14275_v57 = vcombine.low %v2984_v10, %v2991_v11  ;;  %v14277_v58 = vcombine.low %v2998_v40, %v3005_v3  ;;  %v14279_v59 = vcombine.low %v2900_v34, %v2907_v61  ;;  %v14281_v29 = vcombine.low %v2914_v49, %v2921_v35  ;;  %v18192_v11 = vld [vmem:[#allocation81_spill] sm:$0xff] }
 0x1bf   :  { %v7064_v16 = vrot.slane %v18179_v25, %v13061_v23  ;;  %18184 = vst [vmem:[#allocation149_spill] sm:$0xff] %v14283_v19  ;;  %v14285_v45 = vcombine.low %v2956_v24, %v2963_v52  ;;  %v14287_v42 = vcombine.low %v2970_v48, %v2977_v17  ;;  %v3012_v56 = vrot.slane %v18187_v5, %v13047_v60  ;;  %v18193_v3 = vld [vmem:[#allocation61_spill] sm:$0xff] }
 0x1c0   :  { %18180 = vst [vmem:[#allocation56_spill] sm:$0xff] %v14275_v57  ;;  %18181 = vst [vmem:[#allocation58_spill] sm:$0xff] %v14277_v58  ;;  %v14291_v13 = vcombine.low %v6870_v31, %v6877_v15  ;;  %v14293_v25 = vcombine.low %v3040_v27, %v3047_v20  ;;  %v3019_v10 = vrot.slane %v18187_v5, %v13050_v26  ;;  %1020 = vadd.xlane.f32.xlu1 %v14121_v14  ;;  %v14305_v35 = vpop.xlane.xlu1 %810  ;;  %v18191_v27 = vld [vmem:[#allocation13_spill] sm:$0xff]  ;;  %v14319_v14 = vpop.xlane.xlu0 %807 }
 0x1c1   :  { %18182 = vst [vmem:[#allocation19_spill] sm:$0xff] %v14279_v59  ;;  %18183 = vst [vmem:[#allocation91_spill] sm:$0xff] %v14281_v29  ;;  %v3026_v34 = vrot.slane %v18187_v5, %v13055_v7  ;;  %v3033_v61 = vrot.slane %v18187_v5, %v13058_v18  ;;  %v14302_v49 = vcombine.low %v3054_v37, %v3061_v54  ;;  %1017 = vadd.xlane.f32.xlu0 %v14127_v36  ;;  %v18207_v19 = vld [vmem:[#allocation69_spill] sm:$0xff] }
 0x1c2   :  { %18185 = vst [vmem:[#allocation150_spill] sm:$0xff] %v14285_v45  ;;  %18186 = vst [vmem:[#allocation151_spill] sm:$0xff] %v14287_v42  ;;  %v14307_v31 = vcombine.low %v7057_v33, %v7064_v16  ;;  %v6904_v15 = vrot.slane %v18191_v27, %v13061_v23  ;;  %v6911_v40 = vrot.slane %v18192_v11, %v13061_v23  ;;  %v18195_v16 = vld [vmem:[#allocation62_spill] sm:$0xff]  ;;  %v18197_v11 = vld [vmem:[#allocation84_spill] sm:$0xff] }
 0x1c3   :  { %18188 = vst [vmem:[#allocation59_spill] sm:$0xff] %v14293_v25  ;;  %18189 = vst [vmem:[#allocation152_spill] sm:$0xff] %v14302_v49  ;;  %v3096_v24 = vrot.slane %v18193_v3, %v13047_v60  ;;  %v3103_v5 = vrot.slane %v18193_v3, %v13050_v26  ;;  %v3110_v54 = vrot.slane %v18193_v3, %v13055_v7  ;;  %v18198_v49 = vld [vmem:[#allocation65_spill] sm:$0xff] }
 0x1c4   :  { %18190 = vst [vmem:[#allocation153_spill] sm:$0xff] %v14305_v35  ;;  %18194 = vst [vmem:[#allocation13_spill] sm:$0xff] %v14319_v14  ;;  %v7091_v36 = vrot.slane %v13629_v21, %v13061_v23  ;;  %v3117_v37 = vrot.slane %v18193_v3, %v13058_v18  ;;  %v3068_v52 = vrot.slane %v18195_v16, %v13047_v60  ;;  %v18196_v21 = vld [vmem:[#allocation83_spill] sm:$0xff]  ;;  %v14347_v42 = vpop.xlane.xlu1 %816  ;;  %v14357_v59 = vpop.xlane.xlu0 %813 }
 0x1c5   :  { %v3075_v48 = vrot.slane %v18195_v16, %v13050_v26  ;;  %v3082_v17 = vrot.slane %v18195_v16, %v13055_v7  ;;  %v3089_v20 = vrot.slane %v18195_v16, %v13058_v18  ;;  %v7098_v33 = vrot.slane %v13631_v2, %v13061_v23  ;;  %18199 = vst [vmem:[#allocation81_spill] sm:$0xff] %v14347_v42  ;;  %v18200_v2 = vld [vmem:[#allocation66_spill] sm:$0xff] }
 0x1c6   :  { %v6938_v27 = vrot.slane %v18196_v21, %v13061_v23  ;;  %v6945_v3 = vrot.slane %v18197_v11, %v13061_v23  ;;  %v3152_v25 = vrot.slane %v18198_v49, %v13047_v60  ;;  %v3159_v58 = vrot.slane %v18198_v49, %v13050_v26  ;;  %18201 = vst [vmem:[#allocation61_spill] sm:$0xff] %v14357_v59 }
 0x1c7   :  { %v3166_v57 = vrot.slane %v18198_v49, %v13055_v7  ;;  %v3173_v16 = vrot.slane %v18198_v49, %v13058_v18  ;;  %v3124_v21 = vrot.slane %v18200_v2, %v13047_v60  ;;  %v3131_v11 = vrot.slane %v18200_v2, %v13050_v26 }
 0x1c8   :  { %v3138_v45 = vrot.slane %v18200_v2, %v13055_v7  ;;  %v3145_v29 = vrot.slane %v18200_v2, %v13058_v18  ;;  %v14359_v63 = vcombine.low %v3096_v24, %v3103_v5  ;;  %v14361_v14 = vcombine.low %v3110_v54, %v3117_v37  ;;  %v14389_v54 = vpop.xlane.xlu0 %819 }
 0x1c9   :  { %v14363_v49 = vcombine.low %v3012_v56, %v3019_v10  ;;  %v14365_v42 = vcombine.low %v3026_v34, %v3033_v61  ;;  %v14367_v35 = vcombine.low %v3068_v52, %v3075_v48  ;;  %v3208_v9 = vrot.slane %v18207_v19, %v13047_v60  ;;  %v14381_v56 = vpop.xlane.xlu1 %822  ;;  %18214 = vst [vmem:[#allocation159_spill] sm:$0xff] %v14389_v54  ;;  %v18217_v48 = vld [vmem:[#allocation73_spill] sm:$0xff] }
 0x1ca   :  { %18202 = vst [vmem:[#allocation62_spill] sm:$0xff] %v14359_v63  ;;  %18203 = vst [vmem:[#allocation83_spill] sm:$0xff] %v14361_v14  ;;  %v3215_v6 = vrot.slane %v18207_v19, %v13050_v26  ;;  %v14373_v32 = vcombine.low %v6904_v15, %v6911_v40  ;;  %v14375_v2 = vcombine.low %v3152_v25, %v3159_v58  ;;  %v18215_v15 = vld [vmem:[#allocation70_spill] sm:$0xff] }
 0x1cb   :  { %18204 = vst [vmem:[#allocation84_spill] sm:$0xff] %v14363_v49  ;;  %18205 = vst [vmem:[#allocation65_spill] sm:$0xff] %v14365_v42  ;;  %v14377_v24 = vcombine.low %v3166_v57, %v3173_v16  ;;  %v14379_v5 = vcombine.low %v3082_v17, %v3089_v20  ;;  %v14383_v10 = vcombine.low %v7091_v36, %v7098_v33  ;;  %v18219_v20 = vld [vmem:[#allocation17_spill] sm:$0xff]  ;;  %v18225_v14 = vld [vmem:[#allocation90_spill] sm:$0xff] }
 0x1cc   :  { %18206 = vst [vmem:[#allocation66_spill] sm:$0xff] %v14367_v35  ;;  %18208 = vst [vmem:[#allocation69_spill] sm:$0xff] %v14375_v2  ;;  %v14385_v34 = vcombine.low %v3124_v21, %v3131_v11  ;;  %v14387_v61 = vcombine.low %v3138_v45, %v3145_v29  ;;  %v14391_v37 = vcombine.low %v6938_v27, %v6945_v3  ;;  %v18221_v21 = vld [vmem:[#allocation74_spill] sm:$0xff] }
 0x1cd   :  { %18209 = vst [vmem:[#allocation154_spill] sm:$0xff] %v14377_v24  ;;  %18210 = vst [vmem:[#allocation155_spill] sm:$0xff] %v14379_v5  ;;  %v7125_v58 = vrot.slane %v13656_v46, %v13061_v23  ;;  %v3222_v57 = vrot.slane %v18207_v19, %v13055_v7  ;;  %v3229_v25 = vrot.slane %v18207_v19, %v13058_v18  ;;  %v14413_v17 = vpop.xlane.xlu1 %828  ;;  %v18223_v24 = vld [vmem:[#allocation79_spill] sm:$0xff] }
 0x1ce   :  { %18211 = vst [vmem:[#allocation156_spill] sm:$0xff] %v14381_v56  ;;  %18212 = vst [vmem:[#allocation157_spill] sm:$0xff] %v14385_v34  ;;  %v3180_v40 = vrot.slane %v18215_v15, %v13047_v60  ;;  %v7132_v29 = vrot.slane %v13658_v50, %v13061_v23  ;;  %v14403_v45 = vcombine.low %v3208_v9, %v3215_v6  ;;  %v18220_v50 = vld [vmem:[#allocation86_spill] sm:$0xff] }
 0x1cf   :  { %18213 = vst [vmem:[#allocation158_spill] sm:$0xff] %v14387_v61  ;;  %v3187_v36 = vrot.slane %v18215_v15, %v13050_v26  ;;  %v3194_v46 = vrot.slane %v18215_v15, %v13055_v7  ;;  %v3201_v52 = vrot.slane %v18215_v15, %v13058_v18  ;;  %v3264_v19 = vrot.slane %v18217_v48, %v13047_v60  ;;  %v14429_v15 = vpop.xlane.xlu0 %825  ;;  %v18224_v61 = vld [vmem:[#allocation89_spill] sm:$0xff] }
 0x1d0   :  { %18216 = vst [vmem:[#allocation70_spill] sm:$0xff] %v14403_v45  ;;  %18218 = vst [vmem:[#allocation73_spill] sm:$0xff] %v14413_v17  ;;  %v6972_v33 = vrot.slane %v18219_v20, %v13061_v23  ;;  %v6979_v6 = vrot.slane %v18220_v50, %v13061_v23  ;;  %v7159_v9 = vrot.slane %v13705_v1, %v13061_v23 }
 0x1d1   :  { %v3271_v27 = vrot.slane %v18217_v48, %v13050_v26  ;;  %v3278_v3 = vrot.slane %v18217_v48, %v13055_v7  ;;  %v3285_v16 = vrot.slane %v18217_v48, %v13058_v18  ;;  %v3236_v11 = vrot.slane %v18221_v21, %v13047_v60  ;;  %18222 = vst [vmem:[#allocation17_spill] sm:$0xff] %v14429_v15  ;;  %v14455_v49 = vpop.xlane.xlu1 %834  ;;  %v18228_v15 = vld [vmem:[#allocation57_spill] sm:$0xff] }
 0x1d2   :  { %v3243_v20 = vrot.slane %v18221_v21, %v13050_v26  ;;  %v3250_v1 = vrot.slane %v18221_v21, %v13055_v7  ;;  %v3257_v50 = vrot.slane %v18221_v21, %v13058_v18  ;;  %v7166_v45 = vrot.slane %v13707_v30, %v13061_v23  ;;  %v18226_v30 = vld [vmem:[#allocation80_spill] sm:$0xff]  ;;  %18227 = vst [vmem:[#allocation86_spill] sm:$0xff] %v14455_v49 }
 0x1d3   :  { %v3320_v48 = vrot.slane %v18223_v24, %v13047_v60  ;;  %v3327_v2 = vrot.slane %v18223_v24, %v13050_v26  ;;  %v7006_v34 = vrot.slane %v18224_v61, %v13061_v23  ;;  %v7013_v63 = vrot.slane %v18225_v14, %v13061_v23  ;;  %9858 = vperm.xlu1 %12771, %v18228_v15   ;;  %v14464_v54 = vpop.xlane.xlu0 %831  ;;  %v18246_v15 = vld [vmem:[#allocation93_spill] sm:$0xff] }
 0x1d4   :  { %v3334_v5 = vrot.slane %v18223_v24, %v13055_v7  ;;  %v3341_v21 = vrot.slane %v18223_v24, %v13058_v18  ;;  %v3292_v35 = vrot.slane %v18226_v30, %v13047_v60  ;;  %v3299_v42 = vrot.slane %v18226_v30, %v13050_v26 }
 0x1d5   :  { %v14458_v61 = vcombine.low %v3222_v57, %v3229_v25  ;;  %v14460_v17 = vcombine.low %v3180_v40, %v3187_v36  ;;  %v14462_v14 = vcombine.low %v3194_v46, %v3201_v52  ;;  %v14466_v56 = vcombine.low %v7125_v58, %v7132_v29  ;;  %v14488_v36 = vpop.xlane.xlu1 %840  ;;  %v18240_v46 = vld [vmem:[#allocation60_spill] sm:$0xff] }
 0x1d6   :  { %v14468_v24 = vcombine.low %v3264_v19, %v3271_v27  ;;  %v14470_v59 = vcombine.low %v3278_v3, %v3285_v16  ;;  %v14472_v41 = vcombine.low %v3236_v11, %v3243_v20  ;;  %v14474_v44 = vcombine.low %v6972_v33, %v6979_v6  ;;  %18239 = vst [vmem:[#allocation164_spill] sm:$0xff] %v14488_v36  ;;  %v18241_v19 = vld [vmem:[#allocation14_spill] sm:$0xff]  ;;  %v18244_v3 = vld [vmem:[#allocation64_spill] sm:$0xff]  ;;  %v18245_v16 = vld [vmem:[#allocation21_spill] sm:$0xff] }
 0x1d7   :  { %18229 = vst [vmem:[#allocation74_spill] sm:$0xff] %v14458_v61  ;;  %18230 = vst [vmem:[#allocation79_spill] sm:$0xff] %v14460_v17  ;;  %v14476_v49 = vcombine.low %v3320_v48, %v3327_v2  ;;  %v14478_v57 = vcombine.low %v3250_v1, %v3257_v50  ;;  %v3306_v25 = vrot.slane %v18226_v30, %v13055_v7  ;;  %9861 = vperm.xlu1 %12771, %v18240_v46   ;;  %v14499_v27 = vpop.xlane.xlu0 %837  ;;  %v18247_v1 = vld [vmem:[#allocation15_spill] sm:$0xff]  ;;  %v18258_v61 = vld [vmem:[#allocation18_spill] sm:$0xff] }
 0x1d8   :  { %18231 = vst [vmem:[#allocation89_spill] sm:$0xff] %v14462_v14  ;;  %18232 = vst [vmem:[#allocation90_spill] sm:$0xff] %v14468_v24  ;;  %v3313_v40 = vrot.slane %v18226_v30, %v13058_v18  ;;  %v14484_v58 = vcombine.low %v3334_v5, %v3341_v21  ;;  %v14486_v29 = vcombine.low %v3292_v35, %v3299_v42  ;;  %9855 = vperm.xlu0 %12770, %v18244_v3   ;;  %v18283_v17 = vld [vmem:[#allocation22_spill] sm:$0xff] }
 0x1d9   :  { %18233 = vst [vmem:[#allocation80_spill] sm:$0xff] %v14470_v59  ;;  %18234 = vst [vmem:[#allocation57_spill] sm:$0xff] %v14472_v41  ;;  %v14491_v52 = vcombine.low %v7159_v9, %v7166_v45  ;;  %v14493_v2 = vcombine.low %v7006_v34, %v7013_v63  ;;  %v3376_v33 = vrot.slane %v18241_v19, %v13047_v60  ;;  %v18243_v34 = vld [vmem:[#allocation82_spill] sm:$0xff]  ;;  %v14530_v46 = vpop.xlane.xlu1 %846 }
 0x1da   :  { %18235 = vst [vmem:[#allocation160_spill] sm:$0xff] %v14476_v49  ;;  %18236 = vst [vmem:[#allocation161_spill] sm:$0xff] %v14478_v57  ;;  %v3383_v6 = vrot.slane %v18241_v19, %v13050_v26  ;;  %v7193_v42 = vrot.slane %v13732_v22, %v13061_v23  ;;  %v7200_v35 = vrot.slane %v13734_v53, %v13061_v23 }
 0x1db   :  { %18237 = vst [vmem:[#allocation162_spill] sm:$0xff] %v14484_v58  ;;  %18238 = vst [vmem:[#allocation163_spill] sm:$0xff] %v14486_v29  ;;  %v3390_v5 = vrot.slane %v18241_v19, %v13055_v7  ;;  %v3397_v63 = vrot.slane %v18241_v19, %v13058_v18  ;;  %v3348_v45 = vrot.slane %v18243_v34, %v13047_v60  ;;  %v18249_v19 = vld [vmem:[#allocation75_spill] sm:$0xff]  ;;  %v14541_v49 = vpop.xlane.xlu0 %843 }
 0x1dc   :  { %18242 = vst [vmem:[#allocation60_spill] sm:$0xff] %v14499_v27  ;;  %v3355_v9 = vrot.slane %v18243_v34, %v13050_v26  ;;  %v3362_v22 = vrot.slane %v18243_v34, %v13055_v7  ;;  %v3369_v53 = vrot.slane %v18243_v34, %v13058_v18  ;;  %v7040_v11 = vrot.slane %v18245_v16, %v13061_v23  ;;  %v18250_v34 = vld [vmem:[#allocation16_spill] sm:$0xff] }
 0x1dd   :  { %v7047_v20 = vrot.slane %v18246_v15, %v13061_v23  ;;  %v3432_v50 = vrot.slane %v18247_v1, %v13047_v60  ;;  %v3439_v48 = vrot.slane %v18247_v1, %v13050_v26  ;;  %v3446_v21 = vrot.slane %v18247_v1, %v13055_v7  ;;  %18248 = vst [vmem:[#allocation14_spill] sm:$0xff] %v14530_v46 }
 0x1de   :  { %v3453_v30 = vrot.slane %v18247_v1, %v13058_v18  ;;  %9864 = vperm.xlu1 %12771, %v18249_v19   ;;  %v3404_v3 = vrot.slane %v18250_v34, %v13047_v60  ;;  %v3411_v16 = vrot.slane %v18250_v34, %v13050_v26  ;;  %v3418_v15 = vrot.slane %v18250_v34, %v13055_v7  ;;  %v18255_v19 = vld [vmem:[#allocation78_spill] sm:$0xff] }
 0x1df   :  { %v3425_v58 = vrot.slane %v18250_v34, %v13058_v18  ;;  %18251 = vst [vmem:[#allocation82_spill] sm:$0xff] %v14541_v49  ;;  %v14543_v29 = vcombine.low %v3376_v33, %v3383_v6  ;;  %v14545_v1 = vcombine.low %v3390_v5, %v3397_v63  ;;  %v14547_v59 = vcombine.low %v3306_v25, %v3313_v40  ;;  %v14564_v25 = vpop.xlane.xlu1 %852  ;;  %v18262_v40 = vld [vmem:[#allocation85_spill] sm:$0xff] }
 0x1e0   :  { %9882 = vperm.xlu0 %12770, %v18255_v19   ;;  %v14550_v24 = vcombine.low %v7193_v42, %v7200_v35  ;;  %v14552_v57 = vcombine.low %v3348_v45, %v3355_v9  ;;  %v14554_v41 = vcombine.low %v3362_v22, %v3369_v53  ;;  %v3488_v14 = vrot.slane %v18258_v61, %v13047_v60  ;;  %v18263_v35 = vld [vmem:[#allocation106_spill] sm:$0xff]  ;;  %v14575_v9 = vpop.xlane.xlu0 %849  ;;  %v18267_v22 = vld [vmem:[#allocation107_spill] sm:$0xff] }
 0x1e1   :  { %18252 = vst [vmem:[#allocation64_spill] sm:$0xff] %v14543_v29  ;;  %18253 = vst [vmem:[#allocation21_spill] sm:$0xff] %v14545_v1  ;;  %v3495_v34 = vrot.slane %v18258_v61, %v13050_v26  ;;  %v14560_v33 = vcombine.low %v3432_v50, %v3439_v48  ;;  %v14562_v6 = vcombine.low %v3446_v21, %v3453_v30  ;;  %v18268_v50 = vld [vmem:[#allocation96_spill] sm:$0xff] }
 0x1e2   :  { %18254 = vst [vmem:[#allocation93_spill] sm:$0xff] %v14547_v59  ;;  %18256 = vst [vmem:[#allocation15_spill] sm:$0xff] %v14552_v57  ;;  %9867 = vperm.xlu1 %12771, %v18262_v40   ;;  %v14567_v42 = vcombine.low %v7040_v11, %v7047_v20  ;;  %v7227_v5 = vrot.slane %v18263_v35, %v13061_v23  ;;  %v14571_v63 = vcombine.low %v3404_v3, %v3411_v16  ;;  %v18269_v20 = vld [vmem:[#allocation88_spill] sm:$0xff]  ;;  %v18270_v3 = vld [vmem:[#allocation87_spill] sm:$0xff] }
 0x1e3   :  { %18257 = vst [vmem:[#allocation75_spill] sm:$0xff] %v14554_v41  ;;  %18259 = vst [vmem:[#allocation16_spill] sm:$0xff] %v14560_v33  ;;  %v14573_v45 = vcombine.low %v3418_v15, %v3425_v58  ;;  %v7234_v53 = vrot.slane %v18267_v22, %v13061_v23  ;;  %v7074_v48 = vrot.slane %v18268_v50, %v13061_v23  ;;  %v18271_v58 = vld [vmem:[#allocation97_spill] sm:$0xff]  ;;  %v18281_v57 = vld [vmem:[#allocation98_spill] sm:$0xff] }
 0x1e4   :  { %18260 = vst [vmem:[#allocation78_spill] sm:$0xff] %v14562_v6  ;;  %18261 = vst [vmem:[#allocation18_spill] sm:$0xff] %v14564_v25  ;;  %v3502_v21 = vrot.slane %v18258_v61, %v13055_v7  ;;  %v3509_v11 = vrot.slane %v18258_v61, %v13058_v18  ;;  %v3460_v30 = vrot.slane %v18269_v20, %v13047_v60  ;;  %9888 = vperm.xlu0 %12770, %v18270_v3   ;;  %v18273_v61 = vld [vmem:[#allocation92_spill] sm:$0xff]  ;;  %v14602_v3 = vpop.xlane.xlu1 %858  ;;  %v18277_v6 = vld [vmem:[#allocation111_spill] sm:$0xff]  ;;  %v14617_v41 = vpop.xlane.xlu0 %855 }
 0x1e5   :  { %18264 = vst [vmem:[#allocation85_spill] sm:$0xff] %v14571_v63  ;;  %18265 = vst [vmem:[#allocation106_spill] sm:$0xff] %v14573_v45  ;;  %v7081_v16 = vrot.slane %v18271_v58, %v13061_v23  ;;  %v14590_v15 = vcombine.low %v3488_v14, %v3495_v34  ;;  %v3467_v19 = vrot.slane %v18269_v20, %v13050_v26  ;;  %v18275_v58 = vld [vmem:[#allocation95_spill] sm:$0xff]  ;;  %v18278_v63 = vld [vmem:[#allocation20_spill] sm:$0xff] }
 0x1e6   :  { %18266 = vst [vmem:[#allocation165_spill] sm:$0xff] %v14575_v9  ;;  %v3474_v40 = vrot.slane %v18269_v20, %v13055_v7  ;;  %v3481_v35 = vrot.slane %v18269_v20, %v13058_v18  ;;  %v3544_v22 = vrot.slane %v18273_v61, %v13047_v60  ;;  %v3551_v50 = vrot.slane %v18273_v61, %v13050_v26  ;;  %v18276_v14 = vld [vmem:[#allocation31_spill] sm:$0xff] }
 0x1e7   :  { %18272 = vst [vmem:[#allocation107_spill] sm:$0xff] %v14590_v15  ;;  %18274 = vst [vmem:[#allocation96_spill] sm:$0xff] %v14602_v3  ;;  %9870 = vperm.xlu1 %12771, %v18275_v58   ;;  %v7261_v34 = vrot.slane %v18276_v14, %v13061_v23  ;;  %v7268_v33 = vrot.slane %v18277_v6, %v13061_v23  ;;  %v3558_v45 = vrot.slane %v18273_v61, %v13055_v7 }
 0x1e8   :  { %v3565_v20 = vrot.slane %v18273_v61, %v13058_v18  ;;  %v3516_v1 = vrot.slane %v18278_v63, %v13047_v60  ;;  %v3523_v29 = vrot.slane %v18278_v63, %v13050_v26  ;;  %18279 = vst [vmem:[#allocation88_spill] sm:$0xff] %v14617_v41  ;;  %v14619_v58 = vcombine.low %v3502_v21, %v3509_v11 }
 0x1e9   :  { %v3530_v14 = vrot.slane %v18278_v63, %v13055_v7  ;;  %v3537_v6 = vrot.slane %v18278_v63, %v13058_v18  ;;  %9894 = vperm.xlu0 %12770, %v18281_v57   ;;  %v14626_v59 = vcombine.low %v7227_v5, %v7234_v53  ;;  %v14628_v61 = vcombine.low %v3460_v30, %v3467_v19  ;;  %v14644_v5 = vpop.xlane.xlu1 %864  ;;  %v18287_v53 = vld [vmem:[#allocation103_spill] sm:$0xff] }
 0x1ea   :  { %18280 = vst [vmem:[#allocation87_spill] sm:$0xff] %v14619_v58  ;;  %v3600_v15 = vrot.slane %v18283_v17, %v13047_v60  ;;  %v3607_v41 = vrot.slane %v18283_v17, %v13050_v26  ;;  %v14634_v21 = vcombine.low %v7074_v48, %v7081_v16  ;;  %v14636_v11 = vcombine.low %v3544_v22, %v3551_v50  ;;  %v14651_v48 = vpop.xlane.xlu0 %861  ;;  %v18293_v50 = vld [vmem:[#allocation94_spill] sm:$0xff] }
 0x1eb   :  { %18282 = vst [vmem:[#allocation97_spill] sm:$0xff] %v14628_v61  ;;  %v14638_v58 = vcombine.low %v3474_v40, %v3481_v35  ;;  %v3614_v63 = vrot.slane %v18283_v17, %v13055_v7  ;;  %v3621_v57 = vrot.slane %v18283_v17, %v13058_v18  ;;  %18286 = vst [vmem:[#allocation31_spill] sm:$0xff] %v14644_v5  ;;  %9873 = vperm.xlu1 %12771, %v18287_v53   ;;  %v18291_v40 = vld [vmem:[#allocation25_spill] sm:$0xff]  ;;  %v18295_v53 = vld [vmem:[#allocation99_spill] sm:$0xff] }
 0x1ec   :  { %18284 = vst [vmem:[#allocation92_spill] sm:$0xff] %v14636_v11  ;;  %v14647_v30 = vcombine.low %v3558_v45, %v3565_v20  ;;  %v14649_v19 = vcombine.low %v3516_v1, %v3523_v29  ;;  %18290 = vst [vmem:[#allocation98_spill] sm:$0xff] %v14651_v48  ;;  %v14653_v16 = vcombine.low %v7261_v34, %v7268_v33  ;;  %v18294_v11 = vld [vmem:[#allocation105_spill] sm:$0xff] }
 0x1ed   :  { %18285 = vst [vmem:[#allocation95_spill] sm:$0xff] %v14638_v58  ;;  %v7108_v35 = vrot.slane %v18291_v40, %v13061_v23  ;;  %v14657_v22 = vcombine.low %v3530_v14, %v3537_v6  ;;  %v3572_v17 = vrot.slane %v18293_v50, %v13047_v60  ;;  %9900 = vperm.xlu0 %12770, %v18294_v11   ;;  %v14676_v6 = vpop.xlane.xlu1 %870  ;;  %v18300_v11 = vld [vmem:[#allocation102_spill] sm:$0xff] }
 0x1ee   :  { %18288 = vst [vmem:[#allocation111_spill] sm:$0xff] %v14647_v30  ;;  %18289 = vst [vmem:[#allocation20_spill] sm:$0xff] %v14649_v19  ;;  %v7115_v45 = vrot.slane %v18295_v53, %v13061_v23  ;;  %v7295_v29 = vrot.slane %v13857_v43, %v13061_v23  ;;  %v14666_v1 = vcombine.low %v3600_v15, %v3607_v41  ;;  %v18299_v41 = vld [vmem:[#allocation101_spill] sm:$0xff]  ;;  %v18301_v53 = vld [vmem:[#allocation23_spill] sm:$0xff] }
 0x1ef   :  { %18292 = vst [vmem:[#allocation22_spill] sm:$0xff] %v14657_v22  ;;  %v3579_v33 = vrot.slane %v18293_v50, %v13050_v26  ;;  %v3586_v34 = vrot.slane %v18293_v50, %v13055_v7  ;;  %v3593_v20 = vrot.slane %v18293_v50, %v13058_v18  ;;  %v14674_v14 = vcombine.low %v3614_v63, %v3621_v57  ;;  %v14693_v50 = vpop.xlane.xlu0 %867  ;;  %v18304_v58 = vld [vmem:[#allocation26_spill] sm:$0xff]  ;;  %v18305_v19 = vld [vmem:[#allocation35_spill] sm:$0xff] }
 0x1f0   :  { %18296 = vst [vmem:[#allocation103_spill] sm:$0xff] %v14666_v1  ;;  %18298 = vst [vmem:[#allocation94_spill] sm:$0xff] %v14676_v6  ;;  %9876 = vperm.xlu1 %12771, %v13865_v55   ;;  %v7302_v43 = vrot.slane %v13859_v38, %v13061_v23  ;;  %v7142_v15 = vrot.slane %v18299_v41, %v13061_v23  ;;  %v7149_v40 = vrot.slane %v18300_v11, %v13061_v23  ;;  %v18303_v38 = vld [vmem:[#allocation24_spill] sm:$0xff] }
 0x1f1   :  { %18297 = vst [vmem:[#allocation25_spill] sm:$0xff] %v14674_v14  ;;  %v3656_v1 = vrot.slane %v18301_v53, %v13047_v60  ;;  %v3663_v63 = vrot.slane %v18301_v53, %v13050_v26  ;;  %v3670_v57 = vrot.slane %v18301_v53, %v13055_v7  ;;  %v3677_v55 = vrot.slane %v18301_v53, %v13058_v18  ;;  %v14720_v3 = vpop.xlane.xlu1 %876 }
 0x1f2   :  { %18302 = vst [vmem:[#allocation105_spill] sm:$0xff] %v14693_v50  ;;  %v3628_v41 = vrot.slane %v18303_v38, %v13047_v60  ;;  %v3635_v11 = vrot.slane %v18303_v38, %v13050_v26  ;;  %v3642_v14 = vrot.slane %v18303_v38, %v13055_v7  ;;  %v3649_v30 = vrot.slane %v18303_v38, %v13058_v18 }
 0x1f3   :  { %9906 = vperm.xlu0 %12770, %v13873_v4   ;;  %v3712_v61 = vrot.slane %v18304_v58, %v13047_v60  ;;  %v3719_v53 = vrot.slane %v18304_v58, %v13050_v26  ;;  %v7329_v22 = vrot.slane %v13884_v0, %v13061_v23  ;;  %v7336_v50 = vrot.slane %v18305_v19, %v13061_v23  ;;  %v18306_v4 = vld [vmem:[#allocation100_spill] sm:$0xff]  ;;  %v14729_v25 = vpop.xlane.xlu0 %873 }
 0x1f4   :  { %v3726_v6 = vrot.slane %v18304_v58, %v13055_v7  ;;  %v3733_v38 = vrot.slane %v18304_v58, %v13058_v18  ;;  %v3684_v48 = vrot.slane %v18306_v4, %v13047_v60  ;;  %v3691_v5 = vrot.slane %v18306_v4, %v13050_v26  ;;  %18307 = vst [vmem:[#allocation99_spill] sm:$0xff] %v14720_v3 }
 0x1f5   :  { %9879 = vperm.xlu1 %12771, %v13969_v47   ;;  %v14723_v0 = vcombine.low %v3656_v1, %v3663_v63  ;;  %v14725_v9 = vcombine.low %v3572_v17, %v3579_v33  ;;  %v14727_v19 = vcombine.low %v3586_v34, %v3593_v20  ;;  %18311 = vst [vmem:[#allocation24_spill] sm:$0xff] %v14729_v25  ;;  %v14754_v20 = vpop.xlane.xlu1 %882  ;;  %v18319_v63 = vld [vmem:[#allocation137_spill] sm:$0xff]  ;;  %v18364_v25 = vld [vmem:[#allocation118_spill] sm:$0xff] }
 0x1f6   :  { %v14731_v49 = vcombine.low %v7108_v35, %v7115_v45  ;;  %v14733_v58 = vcombine.low %v3670_v57, %v3677_v55  ;;  %v3698_v46 = vrot.slane %v18306_v4, %v13055_v7  ;;  %v3705_v3 = vrot.slane %v18306_v4, %v13058_v18  ;;  %18318 = vst [vmem:[#allocation169_spill] sm:$0xff] %v14754_v20  ;;  %v18324_v55 = vld [vmem:[#allocation140_spill] sm:$0xff] }
 0x1f7   :  { %18308 = vst [vmem:[#allocation101_spill] sm:$0xff] %v14723_v0  ;;  %18309 = vst [vmem:[#allocation102_spill] sm:$0xff] %v14725_v9  ;;  %9912 = vperm.xlu0 %12770, %v13996_v12   ;;  %v14740_v47 = vcombine.low %v7295_v29, %v7302_v43  ;;  %v14742_v17 = vcombine.low %v3712_v61, %v3719_v53  ;;  %v14744_v1 = vcombine.low %v3628_v41, %v3635_v11  ;;  %v18320_v12 = vld [vmem:[#allocation29_spill] sm:$0xff]  ;;  %v18321_v29 = vld [vmem:[#allocation27_spill] sm:$0xff] }
 0x1f8   :  { %18310 = vst [vmem:[#allocation23_spill] sm:$0xff] %v14727_v19  ;;  %18312 = vst [vmem:[#allocation26_spill] sm:$0xff] %v14733_v58  ;;  %v14746_v33 = vcombine.low %v3642_v14, %v3649_v30  ;;  %v14748_v35 = vcombine.low %v7142_v15, %v7149_v40  ;;  %v14750_v45 = vcombine.low %v3726_v6, %v3733_v38  ;;  %v18326_v11 = vld [vmem:[#allocation30_spill] sm:$0xff] }
 0x1f9   :  { %18313 = vst [vmem:[#allocation35_spill] sm:$0xff] %v14742_v17  ;;  %18314 = vst [vmem:[#allocation100_spill] sm:$0xff] %v14744_v1  ;;  %v14752_v34 = vcombine.low %v3684_v48, %v3691_v5  ;;  %9885 = vperm.xlu1 %12771, %v18319_v63   ;;  %v14757_v57 = vcombine.low %v7329_v22, %v7336_v50  ;;  %v7176_v61 = vrot.slane %v18320_v12, %v13061_v23  ;;  %v14769_v48 = vpop.xlane.xlu0 %879  ;;  %v18323_v22 = vld [vmem:[#allocation28_spill] sm:$0xff]  ;;  %v14792_v12 = vpop.xlane.xlu1 %888 }
 0x1fa   :  { %18315 = vst [vmem:[#allocation166_spill] sm:$0xff] %v14746_v33  ;;  %18316 = vst [vmem:[#allocation167_spill] sm:$0xff] %v14750_v45  ;;  %v3768_v43 = vrot.slane %v18321_v29, %v13047_v60  ;;  %v3775_v30 = vrot.slane %v18321_v29, %v13050_v26  ;;  %v3782_v14 = vrot.slane %v18321_v29, %v13055_v7  ;;  %v18325_v50 = vld [vmem:[#allocation104_spill] sm:$0xff] }
 0x1fb   :  { %18317 = vst [vmem:[#allocation168_spill] sm:$0xff] %v14752_v34  ;;  %v3789_v5 = vrot.slane %v18321_v29, %v13058_v18  ;;  %v14771_v6 = vcombine.low %v3698_v46, %v3705_v3  ;;  %v3740_v15 = vrot.slane %v18323_v22, %v13047_v60  ;;  %v3747_v40 = vrot.slane %v18323_v22, %v13050_v26  ;;  %v18328_v29 = vld [vmem:[#allocation119_spill] sm:$0xff]  ;;  %v18332_v34 = vld [vmem:[#allocation109_spill] sm:$0xff] }
 0x1fc   :  { %9918 = vperm.xlu0 %12770, %v18324_v55   ;;  %v7183_v41 = vrot.slane %v18325_v50, %v13061_v23  ;;  %v3824_v53 = vrot.slane %v18326_v11, %v13047_v60  ;;  %v3831_v38 = vrot.slane %v18326_v11, %v13050_v26  ;;  %v3754_v46 = vrot.slane %v18323_v22, %v13055_v7  ;;  %v18329_v50 = vld [vmem:[#allocation120_spill] sm:$0xff] }
 0x1fd   :  { %18322 = vst [vmem:[#allocation137_spill] sm:$0xff] %v14771_v6  ;;  %v3761_v3 = vrot.slane %v18323_v22, %v13058_v18  ;;  %v3838_v4 = vrot.slane %v18326_v11, %v13055_v7  ;;  %v3845_v63 = vrot.slane %v18326_v11, %v13058_v18  ;;  %18327 = vst [vmem:[#allocation29_spill] sm:$0xff] %v14792_v12  ;;  %9891 = vperm.xlu1 %12771, %v14186_v62   ;;  %v14803_v22 = vpop.xlane.xlu0 %885  ;;  %v18333_v11 = vld [vmem:[#allocation110_spill] sm:$0xff]  ;;  %v18334_v62 = vld [vmem:[#allocation108_spill] sm:$0xff]  ;;  %v14832_v19 = vpop.xlane.xlu1 %894 }
 0x1fe   :  { %v7363_v55 = vrot.slane %v18328_v29, %v13061_v23  ;;  %v7370_v45 = vrot.slane %v18329_v50, %v13061_v23  ;;  %v14799_v17 = vcombine.low %v3768_v43, %v3775_v30  ;;  %v14801_v6 = vcombine.low %v3782_v14, %v3789_v5  ;;  %18340 = vst [vmem:[#allocation120_spill] sm:$0xff] %v14832_v19 }
 0x1ff   :  { %v7210_v58 = vrot.slane %v18332_v34, %v13061_v23  ;;  %v7217_v0 = vrot.slane %v18333_v11, %v13061_v23  ;;  %v3796_v33 = vrot.slane %v18334_v62, %v13047_v60  ;;  %v3803_v29 = vrot.slane %v18334_v62, %v13050_v26 }
 0x200   :  { %18330 = vst [vmem:[#allocation27_spill] sm:$0xff] %v14799_v17  ;;  %18331 = vst [vmem:[#allocation28_spill] sm:$0xff] %v14801_v6  ;;  %v3810_v43 = vrot.slane %v18334_v62, %v13055_v7  ;;  %v3817_v30 = vrot.slane %v18334_v62, %v13058_v18  ;;  %9924 = vperm.xlu0 %12770, %v14205_v28   ;;  %v14818_v14 = vcombine.low %v3824_v53, %v3831_v38  ;;  %v18339_v6 = vld [vmem:[#allocation112_spill] sm:$0xff]  ;;  %v18343_v38 = vld [vmem:[#allocation131_spill] sm:$0xff] }
 0x201   :  { %v14820_v34 = vcombine.low %v3740_v15, %v3747_v40  ;;  %v14822_v5 = vcombine.low %v3754_v46, %v3761_v3  ;;  %v14824_v50 = vcombine.low %v7176_v61, %v7183_v41  ;;  %v14826_v11 = vcombine.low %v3838_v4, %v3845_v63  ;;  %9897 = vperm.xlu1 %12771, %v14207_v39   ;;  %v14841_v40 = vpop.xlane.xlu0 %891  ;;  %v18342_v41 = vld [vmem:[#allocation130_spill] sm:$0xff]  ;;  %v18346_v39 = vld [vmem:[#allocation32_spill] sm:$0xff] }
 0x202   :  { %18335 = vst [vmem:[#allocation140_spill] sm:$0xff] %v14818_v14  ;;  %v3880_v17 = vrot.slane %v18339_v6, %v13047_v60  ;;  %v3887_v1 = vrot.slane %v18339_v6, %v13050_v26  ;;  %v14835_v28 = vcombine.low %v7363_v55, %v7370_v45  ;;  %v3894_v15 = vrot.slane %v18339_v6, %v13055_v7  ;;  %v18354_v14 = vld [vmem:[#allocation34_spill] sm:$0xff] }
 0x203   :  { %18336 = vst [vmem:[#allocation104_spill] sm:$0xff] %v14820_v34  ;;  %18337 = vst [vmem:[#allocation30_spill] sm:$0xff] %v14822_v5  ;;  %v3901_v61 = vrot.slane %v18339_v6, %v13058_v18  ;;  %v7414_v53 = vrot.slane %v18342_v41, %v13061_v23  ;;  %v7421_v46 = vrot.slane %v18343_v38, %v13061_v23  ;;  %v18347_v6 = vld [vmem:[#allocation114_spill] sm:$0xff] }
 0x204   :  { %18338 = vst [vmem:[#allocation119_spill] sm:$0xff] %v14826_v11  ;;  %18341 = vst [vmem:[#allocation109_spill] sm:$0xff] %v14841_v40  ;;  %v14847_v3 = vcombine.low %v3796_v33, %v3803_v29  ;;  %v14849_v4 = vcombine.low %v3810_v43, %v3817_v30  ;;  %v3852_v45 = vrot.slane %v18346_v39, %v13047_v60  ;;  %9930 = vperm.xlu0 %12770, %v14262_v51  }
 0x205   :  { %v14854_v63 = vcombine.low %v7210_v58, %v7217_v0  ;;  %v3908_v55 = vrot.slane %v18347_v6, %v13047_v60  ;;  %v3915_v62 = vrot.slane %v18347_v6, %v13050_v26  ;;  %v3922_v41 = vrot.slane %v18347_v6, %v13055_v7  ;;  %v14872_v58 = vpop.xlane.xlu1 %900  ;;  %9903 = vperm.xlu1 %12771, %v14291_v13   ;;  %v14877_v38 = vpop.xlane.xlu0 %897 }
 0x206   :  { %18344 = vst [vmem:[#allocation110_spill] sm:$0xff] %v14847_v3  ;;  %18345 = vst [vmem:[#allocation108_spill] sm:$0xff] %v14849_v4  ;;  %v3929_v33 = vrot.slane %v18347_v6, %v13058_v18  ;;  %v14864_v29 = vcombine.low %v3880_v17, %v3887_v1  ;;  %v3859_v43 = vrot.slane %v18346_v39, %v13050_v26  ;;  %v18352_v17 = vld [vmem:[#allocation33_spill] sm:$0xff] }
 0x207   :  { %v3866_v51 = vrot.slane %v18346_v39, %v13055_v7  ;;  %v3873_v0 = vrot.slane %v18346_v39, %v13058_v18  ;;  %18349 = vst [vmem:[#allocation130_spill] sm:$0xff] %v14872_v58  ;;  %v14875_v30 = vcombine.low %v3894_v15, %v3901_v61  ;;  %18351 = vst [vmem:[#allocation32_spill] sm:$0xff] %v14877_v38  ;;  %v18355_v15 = vld [vmem:[#allocation115_spill] sm:$0xff]  ;;  %v18357_v3 = vld [vmem:[#allocation117_spill] sm:$0xff] }
 0x208   :  { %18348 = vst [vmem:[#allocation112_spill] sm:$0xff] %v14864_v29  ;;  %v14879_v6 = vcombine.low %v7414_v53, %v7421_v46  ;;  %v7244_v1 = vrot.slane %v18352_v17, %v13061_v23  ;;  %v18353_v29 = vld [vmem:[#allocation113_spill] sm:$0xff]  ;;  %v3936_v4 = vrot.slane %v18354_v14, %v13047_v60  ;;  %v3943_v39 = vrot.slane %v18354_v14, %v13050_v26 }
 0x209   :  { %18350 = vst [vmem:[#allocation131_spill] sm:$0xff] %v14875_v30  ;;  %v7251_v11 = vrot.slane %v18353_v29, %v13061_v23  ;;  %v3950_v13 = vrot.slane %v18354_v14, %v13055_v7  ;;  %9936 = vperm.xlu0 %12770, %v14307_v31   ;;  %v7278_v61 = vrot.slane %v18355_v15, %v13061_v23  ;;  %v18356_v29 = vld [vmem:[#allocation116_spill] sm:$0xff]  ;;  %v14906_v9 = vpop.xlane.xlu1 %906 }
 0x20a   :  { %v3957_v53 = vrot.slane %v18354_v14, %v13058_v18  ;;  %v8222_v46 = vcombine.low %v3908_v55, %v3915_v62  ;;  %v8223_v17 = vcombine.low %v3922_v41, %v3929_v33  ;;  %v7285_v30 = vrot.slane %v18356_v29, %v13061_v23  ;;  %18358 = vst [vmem:[#allocation114_spill] sm:$0xff] %v14906_v9  ;;  %v18359_v14 = vld [vmem:[#allocation36_spill] sm:$0xff]  ;;  %v14917_v29 = vpop.xlane.xlu0 %903 }
 0x20b   :  { %v3992_v5 = vrot.slane %v18357_v3, %v13047_v60  ;;  %v3999_v34 = vrot.slane %v18357_v3, %v13050_v26  ;;  %v4006_v31 = vrot.slane %v18357_v3, %v13055_v7  ;;  %v4013_v15 = vrot.slane %v18357_v3, %v13058_v18  ;;  %9909 = vperm.xlu1 %12771, %v14373_v32   ;;  %v18363_v32 = vld [vmem:[#allocation37_spill] sm:$0xff] }
 0x20c   :  { %v3964_v55 = vrot.slane %v18359_v14, %v13047_v60  ;;  %v3971_v62 = vrot.slane %v18359_v14, %v13050_v26  ;;  %v3978_v41 = vrot.slane %v18359_v14, %v13055_v7  ;;  %v3985_v33 = vrot.slane %v18359_v14, %v13058_v18  ;;  %18360 = vst [vmem:[#allocation33_spill] sm:$0xff] %v14917_v29  ;;  %v18365_v14 = vld [vmem:[#allocation38_spill] sm:$0xff] }
 0x20d   :  { %v14919_v58 = vcombine.low %v3852_v45, %v3859_v43  ;;  %v14921_v3 = vcombine.low %v3866_v51, %v3873_v0  ;;  %9942 = vperm.xlu0 %12770, %v14383_v10   ;;  %v7312_v9 = vrot.slane %v18363_v32, %v13061_v23  ;;  %v7319_v19 = vrot.slane %v18364_v25, %v13061_v23  ;;  %v14940_v10 = vpop.xlane.xlu1 %912 }
 0x20e   :  { %v14928_v38 = vcombine.low %v3936_v4, %v3943_v39  ;;  %v14930_v12 = vcombine.low %v3950_v13, %v3957_v53  ;;  %v4048_v40 = vrot.slane %v18365_v14, %v13047_v60  ;;  %v4055_v45 = vrot.slane %v18365_v14, %v13050_v26  ;;  %18366 = vst [vmem:[#allocation115_spill] sm:$0xff] %v14940_v10  ;;  %v14950_v13 = vpop.xlane.xlu0 %909 }
 0x20f   :  { %18361 = vst [vmem:[#allocation113_spill] sm:$0xff] %v14919_v58  ;;  %18362 = vst [vmem:[#allocation34_spill] sm:$0xff] %v14921_v3  ;;  %v14936_v43 = vcombine.low %v3992_v5, %v3999_v34  ;;  %v14938_v51 = vcombine.low %v4006_v31, %v4013_v15  ;;  %9915 = vperm.xlu1 %12771, %v14391_v37   ;;  %v14943_v0 = vcombine.low %v7244_v1, %v7251_v11  ;;  %v18368_v11 = vld [vmem:[#allocation121_spill] sm:$0xff] }
 0x210   :  { %v8230_v25 = vrot.slane %v8222_v46, %v13061_v23  ;;  %v14946_v4 = vcombine.low %v3964_v55, %v3971_v62  ;;  %v14948_v39 = vcombine.low %v3978_v41, %v3985_v33  ;;  %18367 = vst [vmem:[#allocation116_spill] sm:$0xff] %v14950_v13  ;;  %v8237_v53 = vrot.slane %v8223_v17, %v13061_v23  ;;  %v18369_v15 = vld [vmem:[#allocation125_spill] sm:$0xff]  ;;  %v18377_v13 = vld [vmem:[#allocation42_spill] sm:$0xff] }
 0x211   :  { %v14953_v34 = vcombine.low %v7278_v61, %v7285_v30  ;;  %v4062_v5 = vrot.slane %v18365_v14, %v13055_v7  ;;  %v4069_v37 = vrot.slane %v18365_v14, %v13058_v18  ;;  %v4020_v1 = vrot.slane %v18368_v11, %v13047_v60  ;;  %9948 = vperm.xlu0 %12770, %v14466_v56   ;;  %v14976_v56 = vpop.xlane.xlu1 %918  ;;  %v18373_v14 = vld [vmem:[#allocation40_spill] sm:$0xff] }
 0x212   :  { %v14962_v46 = vcombine.low %v7312_v9, %v7319_v19  ;;  %v14964_v31 = vcombine.low %v4048_v40, %v4055_v45  ;;  %v4027_v17 = vrot.slane %v18368_v11, %v13050_v26  ;;  %v4034_v30 = vrot.slane %v18368_v11, %v13055_v7  ;;  %18370 = vst [vmem:[#allocation117_spill] sm:$0xff] %v14976_v56  ;;  %v18371_v9 = vld [vmem:[#allocation122_spill] sm:$0xff]  ;;  %v18372_v40 = vld [vmem:[#allocation123_spill] sm:$0xff]  ;;  %v14991_v3 = vpop.xlane.xlu0 %915 }
 0x213   :  { %v4041_v61 = vrot.slane %v18368_v11, %v13058_v18  ;;  %v4104_v55 = vrot.slane %v18369_v15, %v13047_v60  ;;  %v4111_v62 = vrot.slane %v18369_v15, %v13050_v26  ;;  %9921 = vperm.xlu1 %12771, %v14474_v44   ;;  %v7346_v19 = vrot.slane %v18371_v9, %v13061_v23 }
 0x214   :  { %v7353_v41 = vrot.slane %v18372_v40, %v13061_v23  ;;  %v4118_v33 = vrot.slane %v18369_v15, %v13055_v7  ;;  %v4125_v32 = vrot.slane %v18369_v15, %v13058_v18  ;;  %v4076_v45 = vrot.slane %v18373_v14, %v13047_v60  ;;  %18374 = vst [vmem:[#allocation36_spill] sm:$0xff] %v14991_v3 }
 0x215   :  { %v4083_v11 = vrot.slane %v18373_v14, %v13050_v26  ;;  %v14993_v44 = vcombine.low %v4062_v5, %v4069_v37  ;;  %v4090_v9 = vrot.slane %v18373_v14, %v13055_v7  ;;  %v4097_v40 = vrot.slane %v18373_v14, %v13058_v18  ;;  %9954 = vperm.xlu0 %12770, %v14491_v52   ;;  %v15014_v3 = vpop.xlane.xlu1 %924  ;;  %v18379_v52 = vld [vmem:[#allocation41_spill] sm:$0xff] }
 0x216   :  { %v15000_v58 = vcombine.low %v8230_v25, %v8237_v53  ;;  %v15002_v15 = vcombine.low %v4020_v1, %v4027_v17  ;;  %v15004_v56 = vcombine.low %v4034_v30, %v4041_v61  ;;  %v4160_v10 = vrot.slane %v18377_v13, %v13047_v60  ;;  %18378 = vst [vmem:[#allocation38_spill] sm:$0xff] %v15014_v3  ;;  %v18380_v53 = vld [vmem:[#allocation126_spill] sm:$0xff]  ;;  %v15027_v29 = vpop.xlane.xlu0 %921 }
 0x217   :  { %v4167_v5 = vrot.slane %v18377_v13, %v13050_v26  ;;  %v4174_v37 = vrot.slane %v18377_v13, %v13055_v7  ;;  %v4181_v14 = vrot.slane %v18377_v13, %v13058_v18  ;;  %9927 = vperm.xlu1 %12771, %v14493_v2   ;;  %v7380_v25 = vrot.slane %v18379_v52, %v13061_v23  ;;  %v18386_v2 = vld [vmem:[#allocation129_spill] sm:$0xff]  ;;  %v18387_v52 = vld [vmem:[#allocation46_spill] sm:$0xff] }
 0x218   :  { %18375 = vst [vmem:[#allocation37_spill] sm:$0xff] %v15002_v15  ;;  %18376 = vst [vmem:[#allocation118_spill] sm:$0xff] %v15004_v56  ;;  %v7387_v1 = vrot.slane %v18380_v53, %v13061_v23  ;;  %v15021_v17 = vcombine.low %v4104_v55, %v4111_v62  ;;  %v15023_v30 = vcombine.low %v4118_v33, %v4125_v32  ;;  %v18388_v55 = vld [vmem:[#allocation133_spill] sm:$0xff] }
 0x219   :  { %v15025_v61 = vcombine.low %v4076_v45, %v4083_v11  ;;  %18384 = vst [vmem:[#allocation123_spill] sm:$0xff] %v15027_v29  ;;  %v15029_v27 = vcombine.low %v7346_v19, %v7353_v41  ;;  %v15031_v13 = vcombine.low %v4090_v9, %v4097_v40  ;;  %v4132_v3 = vrot.slane %v18386_v2, %v13047_v60  ;;  %v18394_v40 = vld [vmem:[#allocation128_spill] sm:$0xff]  ;;  %v18398_v29 = vld [vmem:[#allocation47_spill] sm:$0xff] }
 0x21a   :  { %18381 = vst [vmem:[#allocation121_spill] sm:$0xff] %v15021_v17  ;;  %18382 = vst [vmem:[#allocation125_spill] sm:$0xff] %v15023_v30  ;;  %9960 = vperm.xlu0 %12770, %v14550_v24   ;;  %v7448_v53 = vrot.slane %v18387_v52, %v13061_v23  ;;  %v7455_v62 = vrot.slane %v18388_v55, %v13061_v23  ;;  %v15040_v33 = vcombine.low %v4160_v10, %v4167_v5  ;;  %v15050_v24 = vpop.xlane.xlu1 %930  ;;  %v18393_v10 = vld [vmem:[#allocation127_spill] sm:$0xff]  ;;  %v18395_v52 = vld [vmem:[#allocation132_spill] sm:$0xff] }
 0x21b   :  { %18383 = vst [vmem:[#allocation122_spill] sm:$0xff] %v15025_v61  ;;  %18385 = vst [vmem:[#allocation40_spill] sm:$0xff] %v15031_v13  ;;  %v4139_v32 = vrot.slane %v18386_v2, %v13050_v26  ;;  %v4146_v19 = vrot.slane %v18386_v2, %v13055_v7  ;;  %v4153_v41 = vrot.slane %v18386_v2, %v13058_v18  ;;  %9933 = vperm.xlu1 %12771, %v14567_v42  }
 0x21c   :  { %18389 = vst [vmem:[#allocation42_spill] sm:$0xff] %v15040_v33  ;;  %v15048_v45 = vcombine.low %v4174_v37, %v4181_v14  ;;  %18391 = vst [vmem:[#allocation126_spill] sm:$0xff] %v15050_v24  ;;  %v15053_v11 = vcombine.low %v7380_v25, %v7387_v1  ;;  %v7431_v9 = vrot.slane %v18393_v10, %v13061_v23  ;;  %v15067_v14 = vpop.xlane.xlu0 %927  ;;  %v18397_v25 = vld [vmem:[#allocation45_spill] sm:$0xff] }
 0x21d   :  { %v7438_v5 = vrot.slane %v18394_v40, %v13061_v23  ;;  %v4216_v55 = vrot.slane %v18395_v52, %v13047_v60  ;;  %v4223_v2 = vrot.slane %v18395_v52, %v13050_v26  ;;  %v4230_v37 = vrot.slane %v18395_v52, %v13055_v7  ;;  %18396 = vst [vmem:[#allocation46_spill] sm:$0xff] %v15067_v14 }
 0x21e   :  { %18390 = vst [vmem:[#allocation41_spill] sm:$0xff] %v15048_v45  ;;  %18392 = vst [vmem:[#allocation129_spill] sm:$0xff] %v15053_v11  ;;  %v4237_v42 = vrot.slane %v18395_v52, %v13058_v18  ;;  %v4188_v1 = vrot.slane %v18397_v25, %v13047_v60  ;;  %v4195_v10 = vrot.slane %v18397_v25, %v13050_v26  ;;  %9966 = vperm.xlu0 %12770, %v14626_v59   ;;  %v18399_v59 = vld [vmem:[#allocation136_spill] sm:$0xff]  ;;  %v15094_v17 = vpop.xlane.xlu1 %936 }
 0x21f   :  { %v4202_v40 = vrot.slane %v18397_v25, %v13055_v7  ;;  %v4209_v24 = vrot.slane %v18397_v25, %v13058_v18  ;;  %v4272_v45 = vrot.slane %v18398_v29, %v13047_v60  ;;  %v4279_v52 = vrot.slane %v18398_v29, %v13050_v26  ;;  %18400 = vst [vmem:[#allocation133_spill] sm:$0xff] %v15094_v17 }
 0x220   :  { %v8247_v14 = vrot.slane %v14928_v38, %v13061_v23  ;;  %v8254_v33 = vrot.slane %v14930_v12, %v13061_v23  ;;  %v4286_v13 = vrot.slane %v18398_v29, %v13055_v7  ;;  %v4293_v25 = vrot.slane %v18398_v29, %v13058_v18  ;;  %9939 = vperm.xlu1 %12771, %v14634_v21   ;;  %v15103_v15 = vpop.xlane.xlu0 %933 }
 0x221   :  { %v4244_v61 = vrot.slane %v18399_v59, %v13047_v60  ;;  %v4251_v30 = vrot.slane %v18399_v59, %v13050_v26  ;;  %v15097_v38 = vcombine.low %v4216_v55, %v4223_v2  ;;  %v15099_v56 = vcombine.low %v4132_v3, %v4139_v32  ;;  %18401 = vst [vmem:[#allocation127_spill] sm:$0xff] %v15103_v15  ;;  %v18412_v2 = vld [vmem:[#allocation139_spill] sm:$0xff] }
 0x222   :  { %v15101_v12 = vcombine.low %v4146_v19, %v4153_v41  ;;  %v15105_v20 = vcombine.low %v7448_v53, %v7455_v62  ;;  %v15107_v29 = vcombine.low %v4230_v37, %v4237_v42  ;;  %v15109_v36 = vcombine.low %v4188_v1, %v4195_v10  ;;  %9972 = vperm.xlu0 %12770, %v14653_v16   ;;  %v15128_v41 = vpop.xlane.xlu1 %942  ;;  %v18413_v42 = vld [vmem:[#allocation68_spill] sm:$0xff] }
 0x223   :  { %v15111_v11 = vcombine.low %v4202_v40, %v4209_v24  ;;  %v15114_v17 = vcombine.low %v7431_v9, %v7438_v5  ;;  %v15116_v21 = vcombine.low %v4272_v45, %v4279_v52  ;;  %v4258_v3 = vrot.slane %v18399_v59, %v13055_v7  ;;  %18407 = vst [vmem:[#allocation170_spill] sm:$0xff] %v15128_v41  ;;  %v18408_v24 = vld [vmem:[#allocation141_spill] sm:$0xff] }
 0x224   :  { %18402 = vst [vmem:[#allocation128_spill] sm:$0xff] %v15109_v36  ;;  %v4265_v32 = vrot.slane %v18399_v59, %v13058_v18  ;;  %v8281_v53 = vrot.slane %v14936_v43, %v13061_v23  ;;  %v15124_v62 = vcombine.low %v4286_v13, %v4293_v25  ;;  %v15126_v19 = vcombine.low %v4244_v61, %v4251_v30  ;;  %v15143_v61 = vpop.xlane.xlu0 %939 }
 0x225   :  { %18403 = vst [vmem:[#allocation132_spill] sm:$0xff] %v15111_v11  ;;  %18404 = vst [vmem:[#allocation45_spill] sm:$0xff] %v15116_v21  ;;  %9945 = vperm.xlu1 %12771, %v14731_v49   ;;  %v15131_v16 = vcombine.low %v8247_v14, %v8254_v33  ;;  %v8288_v45 = vrot.slane %v14938_v51, %v13061_v23  ;;  %v4328_v9 = vrot.slane %v18408_v24, %v13047_v60  ;;  %v18410_v49 = vld [vmem:[#allocation49_spill] sm:$0xff]  ;;  %v18411_v33 = vld [vmem:[#allocation138_spill] sm:$0xff] }
 0x226   :  { %18405 = vst [vmem:[#allocation47_spill] sm:$0xff] %v15124_v62  ;;  %18406 = vst [vmem:[#allocation136_spill] sm:$0xff] %v15126_v19  ;;  %v4335_v5 = vrot.slane %v18408_v24, %v13050_v26  ;;  %v4342_v43 = vrot.slane %v18408_v24, %v13055_v7  ;;  %v4349_v30 = vrot.slane %v18408_v24, %v13058_v18  ;;  %9978 = vperm.xlu0 %12770, %v14740_v47   ;;  %v15170_v24 = vpop.xlane.xlu1 %948 }
 0x227   :  { %18409 = vst [vmem:[#allocation141_spill] sm:$0xff] %v15143_v61  ;;  %v4300_v13 = vrot.slane %v18410_v49, %v13047_v60  ;;  %v4307_v51 = vrot.slane %v18410_v49, %v13050_v26  ;;  %v7482_v55 = vrot.slane %v18411_v33, %v13061_v23  ;;  %v7489_v37 = vrot.slane %v18412_v2, %v13061_v23 }
 0x228   :  { %v4384_v14 = vrot.slane %v18413_v42, %v13047_v60  ;;  %v4391_v1 = vrot.slane %v18413_v42, %v13050_v26  ;;  %v4314_v10 = vrot.slane %v18410_v49, %v13055_v7  ;;  %v4321_v40 = vrot.slane %v18410_v49, %v13058_v18  ;;  %18414 = vst [vmem:[#allocation49_spill] sm:$0xff] %v15170_v24  ;;  %v15179_v19 = vpop.xlane.xlu0 %945 }
 0x229   :  { %v4356_v47 = vrot.slane %v14169_v8, %v13047_v60  ;;  %v4363_v52 = vrot.slane %v14169_v8, %v13050_v26  ;;  %v4370_v25 = vrot.slane %v14169_v8, %v13055_v7  ;;  %v4377_v59 = vrot.slane %v14169_v8, %v13058_v18  ;;  %9951 = vperm.xlu1 %12771, %v14748_v35  }
 0x22a   :  { %v15173_v33 = vcombine.low %v4328_v9, %v4335_v5  ;;  %v15175_v2 = vcombine.low %v4342_v43, %v4349_v30  ;;  %v15177_v49 = vcombine.low %v4258_v3, %v4265_v32  ;;  %18418 = vst [vmem:[#allocation171_spill] sm:$0xff] %v15179_v19  ;;  %v15181_v62 = vcombine.low %v8281_v53, %v8288_v45  ;;  %v18421_v5 = vld [vmem:[#allocation53_spill] sm:$0xff] }
 0x22b   :  { %v4398_v21 = vrot.slane %v18413_v42, %v13055_v7  ;;  %v4405_v8 = vrot.slane %v18413_v42, %v13058_v18  ;;  %9984 = vperm.xlu0 %12770, %v14757_v57   ;;  %v8264_v35 = vrot.slane %v14946_v4, %v13061_v23  ;;  %v8271_v9 = vrot.slane %v14948_v39, %v13061_v23  ;;  %v15204_v4 = vpop.xlane.xlu1 %954 }
 0x22c   :  { %18415 = vst [vmem:[#allocation138_spill] sm:$0xff] %v15173_v33  ;;  %18416 = vst [vmem:[#allocation139_spill] sm:$0xff] %v15175_v2  ;;  %v15192_v3 = vcombine.low %v4384_v14, %v4391_v1  ;;  %v15194_v32 = vcombine.low %v4300_v13, %v4307_v51  ;;  %v15196_v53 = vcombine.low %v4314_v10, %v4321_v40  ;;  %v18423_v51 = vld [vmem:[#allocation146_spill] sm:$0xff]  ;;  %v15215_v14 = vpop.xlane.xlu0 %951  ;;  %v18429_v33 = vld [vmem:[#allocation148_spill] sm:$0xff] }
 0x22d   :  { %18417 = vst [vmem:[#allocation68_spill] sm:$0xff] %v15177_v49  ;;  %v15198_v45 = vcombine.low %v7482_v55, %v7489_v37  ;;  %v4440_v43 = vrot.slane %v18421_v5, %v13047_v60  ;;  %v4447_v57 = vrot.slane %v18421_v5, %v13050_v26  ;;  %v8494_v30 = vcombine.low %v4356_v47, %v4363_v52  ;;  %v18426_v47 = vld [vmem:[#allocation44_spill] sm:$0xff] }
 0x22e   :  { %18419 = vst [vmem:[#allocation172_spill] sm:$0xff] %v15194_v32  ;;  %18420 = vst [vmem:[#allocation173_spill] sm:$0xff] %v15196_v53  ;;  %v8495_v42 = vcombine.low %v4370_v25, %v4377_v59  ;;  %9957 = vperm.xlu1 %12771, %v14824_v50   ;;  %v4454_v39 = vrot.slane %v18421_v5, %v13055_v7  ;;  %v4461_v13 = vrot.slane %v18421_v5, %v13058_v18  ;;  %v18425_v50 = vld [vmem:[#allocation63_spill] sm:$0xff] }
 0x22f   :  { %18422 = vst [vmem:[#allocation53_spill] sm:$0xff] %v15204_v4  ;;  %v4412_v55 = vrot.slane %v18423_v51, %v13047_v60  ;;  %v4419_v37 = vrot.slane %v18423_v51, %v13050_v26  ;;  %18424 = vst [vmem:[#allocation146_spill] sm:$0xff] %v15215_v14  ;;  %v8512_v1 = vcombine.low %v4398_v21, %v4405_v8  ;;  %9990 = vperm.xlu0 %12770, %v14835_v28  }
 0x230   :  { %v15218_v10 = vcombine.low %v8264_v35, %v8271_v9  ;;  %v7465_v40 = vrot.slane %v18425_v50, %v13061_v23  ;;  %v7472_v52 = vrot.slane %v18426_v47, %v13061_v23  ;;  %v4804_v25 = vrot.slane %v14464_v54, %v13047_v60  ;;  %v15238_v9 = vpop.xlane.xlu1 %960 }
 0x231   :  { %v4811_v59 = vrot.slane %v14464_v54, %v13050_v26  ;;  %v4818_v5 = vrot.slane %v14464_v54, %v13055_v7  ;;  %v4825_v28 = vrot.slane %v14464_v54, %v13058_v18  ;;  %v15232_v21 = vcombine.low %v4440_v43, %v4447_v57  ;;  %18427 = vst [vmem:[#allocation63_spill] sm:$0xff] %v15238_v9  ;;  %v15247_v54 = vpop.xlane.xlu0 %957  ;;  %v18433_v9 = vld [vmem:[#allocation55_spill] sm:$0xff] }
 0x232   :  { %v4426_v8 = vrot.slane %v18423_v51, %v13055_v7  ;;  %v4433_v35 = vrot.slane %v18423_v51, %v13058_v18  ;;  %9963 = vperm.xlu1 %12771, %v14854_v63   ;;  %v15243_v47 = vcombine.low %v4454_v39, %v4461_v13  ;;  %v15245_v2 = vcombine.low %v4412_v55, %v4419_v37 }
 0x233   :  { %18428 = vst [vmem:[#allocation44_spill] sm:$0xff] %v15247_v54  ;;  %v8502_v43 = vrot.slane %v8494_v30, %v13061_v23  ;;  %v8509_v57 = vrot.slane %v8495_v42, %v13061_v23  ;;  %v4496_v51 = vrot.slane %v18429_v33, %v13047_v60  ;;  %v4503_v53 = vrot.slane %v18429_v33, %v13050_v26 }
 0x234   :  { %v4510_v63 = vrot.slane %v18429_v33, %v13055_v7  ;;  %v4517_v39 = vrot.slane %v18429_v33, %v13058_v18  ;;  %9999 = vperm.xlu0 %12770, %v14879_v6   ;;  %v8766_v13 = vcombine.low %v4804_v25, %v4811_v59  ;;  %v8767_v55 = vcombine.low %v4818_v5, %v4825_v28  ;;  %v15271_v6 = vpop.xlane.xlu1 %966 }
 0x235   :  { %v8519_v30 = vrot.slane %v15192_v3, %v13061_v23  ;;  %v8526_v42 = vrot.slane %v8512_v1, %v13061_v23  ;;  %v5252_v37 = vrot.slane %v14769_v48, %v13047_v60  ;;  %v5259_v50 = vrot.slane %v14769_v48, %v13050_v26  ;;  %18430 = vst [vmem:[#allocation148_spill] sm:$0xff] %v15271_v6  ;;  %v18431_v3 = vld [vmem:[#allocation76_spill] sm:$0xff]  ;;  %v15282_v28 = vpop.xlane.xlu0 %963 }
 0x236   :  { %v5266_v32 = vrot.slane %v14769_v48, %v13055_v7  ;;  %v5273_v33 = vrot.slane %v14769_v48, %v13058_v18  ;;  %9969 = vperm.xlu1 %12771, %v14943_v0   ;;  %v4468_v25 = vrot.slane %v18431_v3, %v13047_v60  ;;  %v4475_v1 = vrot.slane %v18431_v3, %v13050_v26 }
 0x237   :  { %v4482_v59 = vrot.slane %v18431_v3, %v13055_v7  ;;  %v4489_v5 = vrot.slane %v18431_v3, %v13058_v18  ;;  %18432 = vst [vmem:[#allocation76_spill] sm:$0xff] %v15282_v28  ;;  %v15284_v54 = vcombine.low %v4496_v51, %v4503_v53  ;;  %v15286_v48 = vcombine.low %v4510_v63, %v4517_v39 }
 0x238   :  { %v8529_v6 = vcombine.low %v4426_v8, %v4433_v35  ;;  %10143 = vperm.xlu0 %12770, %v15000_v58   ;;  %v8510_v0 = vcombine.low %v8502_v43, %v8509_v57  ;;  %v4552_v49 = vrot.slane %v18433_v9, %v13047_v60  ;;  %v4559_v14 = vrot.slane %v18433_v9, %v13050_v26  ;;  %v15297_v63 = vpop.xlane.xlu1 %972 }
 0x239   :  { %v4566_v4 = vrot.slane %v18433_v9, %v13055_v7  ;;  %v4573_v3 = vrot.slane %v18433_v9, %v13058_v18  ;;  %v9038_v53 = vcombine.low %v5252_v37, %v5259_v50  ;;  %v9039_v51 = vcombine.low %v5266_v32, %v5273_v33  ;;  %18434 = vst [vmem:[#allocation55_spill] sm:$0xff] %v15297_v63  ;;  %v15306_v57 = vpop.xlane.xlu0 %969  ;;  %v18436_v32 = vld [vmem:[#allocation149_spill] sm:$0xff] }
 0x23a   :  { %9975 = vperm.xlu1 %12771, %v14953_v34   ;;  %v8774_v58 = vrot.slane %v8766_v13, %v13061_v23  ;;  %v8781_v8 = vrot.slane %v8767_v55, %v13061_v23  ;;  %v15302_v35 = vcombine.low %v4468_v25, %v4475_v1  ;;  %v15304_v43 = vcombine.low %v4482_v59, %v4489_v5 }
 0x23b   :  { %18435 = vst [vmem:[#allocation174_spill] sm:$0xff] %v15306_v57  ;;  %v15308_v39 = vcombine.low %v8519_v30, %v8526_v42  ;;  %v15310_v28 = vcombine.low %v7465_v40, %v7472_v52  ;;  %v4524_v9 = vrot.slane %v18436_v32, %v13047_v60  ;;  %v4531_v34 = vrot.slane %v18436_v32, %v13050_v26 }
 0x23c   :  { %v4538_v50 = vrot.slane %v18436_v32, %v13055_v7  ;;  %v4545_v13 = vrot.slane %v18436_v32, %v13058_v18  ;;  %10191 = vperm.xlu0 %12770, %v8510_v0   ;;  %v15320_v55 = vcombine.low %v4552_v49, %v4559_v14  ;;  %v15322_v37 = vcombine.low %v4566_v4, %v4573_v3  ;;  %v15328_v30 = vpop.xlane.xlu1 %978  ;;  %v18438_v4 = vld [vmem:[#allocation153_spill] sm:$0xff] }
 0x23d   :  { %v8536_v40 = vrot.slane %v15245_v2, %v13061_v23  ;;  %v8322_v52 = vrot.slane %v14993_v44, %v13061_v23  ;;  %18437 = vst [vmem:[#allocation149_spill] sm:$0xff] %v15328_v30  ;;  %v8782_v42 = vcombine.low %v8774_v58, %v8781_v8  ;;  %v9046_v33 = vrot.slane %v9038_v53, %v13061_v23 }
 0x23e   :  { %9981 = vperm.xlu1 %12771, %v14962_v46   ;;  %v9053_v25 = vrot.slane %v9039_v51, %v13061_v23  ;;  %v8543_v49 = vrot.slane %v8529_v6, %v13061_v23  ;;  %v4608_v14 = vrot.slane %v18438_v4, %v13047_v60  ;;  %v4615_v2 = vrot.slane %v18438_v4, %v13050_v26  ;;  %v15342_v46 = vpop.xlane.xlu0 %975  ;;  %v18440_v6 = vld [vmem:[#allocation13_spill] sm:$0xff] }
 0x23f   :  { %v4622_v44 = vrot.slane %v18438_v4, %v13055_v7  ;;  %v4629_v1 = vrot.slane %v18438_v4, %v13058_v18  ;;  %18439 = vst [vmem:[#allocation153_spill] sm:$0xff] %v15342_v46  ;;  %v15344_v59 = vcombine.low %v4524_v9, %v4531_v34  ;;  %v15346_v5 = vcombine.low %v4538_v50, %v4545_v13  ;;  %v18444_v46 = vld [vmem:[#allocation81_spill] sm:$0xff] }
 0x240   :  { %v4580_v0 = vrot.slane %v18440_v6, %v13047_v60  ;;  %v4587_v3 = vrot.slane %v18440_v6, %v13050_v26  ;;  %10239 = vperm.xlu0 %12770, %v8782_v42   ;;  %v4594_v53 = vrot.slane %v18440_v6, %v13055_v7  ;;  %v5308_v51 = vrot.slane %v14803_v22, %v13047_v60  ;;  %v15369_v13 = vpop.xlane.xlu1 %984 }
 0x241   :  { %v18441_v58 = vrot.slane %v14964_v31, %v13061_v23  ;;  %v8553_v32 = vrot.slane %v15232_v21, %v13061_v23  ;;  %v5315_v9 = vrot.slane %v14803_v22, %v13050_v26  ;;  %v5322_v34 = vrot.slane %v14803_v22, %v13055_v7  ;;  %18442 = vst [vmem:[#allocation13_spill] sm:$0xff] %v15369_v13 }
 0x242   :  { %v5329_v50 = vrot.slane %v14803_v22, %v13058_v18  ;;  %9987 = vperm.xlu1 %12771, %v15029_v27   ;;  %v9054_v42 = vcombine.low %v9046_v33, %v9053_v25  ;;  %v15372_v31 = vcombine.low %v4608_v14, %v4615_v2  ;;  %v4601_v21 = vrot.slane %v18440_v6, %v13058_v18  ;;  %v15378_v4 = vpop.xlane.xlu0 %981  ;;  %v18445_v14 = vld [vmem:[#allocation61_spill] sm:$0xff] }
 0x243   :  { %v15359_v8 = vcombine.low %v18441_v58, %v8322_v52  ;;  %v15374_v52 = vcombine.low %v4622_v44, %v4629_v1  ;;  %18443 = vst [vmem:[#allocation175_spill] sm:$0xff] %v15378_v4  ;;  %v8544_v58 = vcombine.low %v8536_v40, %v8543_v49  ;;  %v4664_v30 = vrot.slane %v18444_v46, %v13047_v60 }
 0x244   :  { %v4671_v22 = vrot.slane %v18444_v46, %v13050_v26  ;;  %v15384_v13 = vcombine.low %v4580_v0, %v4587_v3  ;;  %10287 = vperm.xlu0 %12770, %v9054_v42   ;;  %v8570_v27 = vrot.slane %v15302_v35, %v13061_v23  ;;  %v4678_v33 = vrot.slane %v18444_v46, %v13055_v7  ;;  %v15400_v6 = vpop.xlane.xlu1 %990  ;;  %v18447_v0 = vld [vmem:[#allocation129_spill] sm:$0xff] }
 0x245   :  { %v4685_v25 = vrot.slane %v18444_v46, %v13058_v18  ;;  %v8577_v40 = vrot.slane %v15304_v43, %v13061_v23  ;;  %v8560_v49 = vrot.slane %v15243_v47, %v13061_v23  ;;  %v4636_v2 = vrot.slane %v18445_v14, %v13047_v60  ;;  %18446 = vst [vmem:[#allocation81_spill] sm:$0xff] %v15400_v6  ;;  %v18448_v46 = vld [vmem:[#allocation86_spill] sm:$0xff] }
 0x246   :  { %v4643_v44 = vrot.slane %v18445_v14, %v13050_v26  ;;  %v9072_v1 = vcombine.low %v5308_v51, %v5315_v9  ;;  %v9073_v35 = vcombine.low %v5322_v34, %v5329_v50  ;;  %9993 = vperm.xlu1 %12771, %v18447_v0   ;;  %v4832_v3 = vrot.slane %v18448_v46, %v13047_v60  ;;  %v15411_v4 = vpop.xlane.xlu0 %987  ;;  %v18451_v0 = vld [vmem:[#allocation164_spill] sm:$0xff] }
 0x247   :  { %v4839_v43 = vrot.slane %v18448_v46, %v13050_v26  ;;  %v4846_v47 = vrot.slane %v18448_v46, %v13055_v7  ;;  %v4853_v42 = vrot.slane %v18448_v46, %v13058_v18  ;;  %18449 = vst [vmem:[#allocation61_spill] sm:$0xff] %v15411_v4  ;;  %v15413_v51 = vcombine.low %v4664_v30, %v4671_v22 }
 0x248   :  { %v15415_v9 = vcombine.low %v4594_v53, %v4601_v21  ;;  %v4650_v34 = vrot.slane %v18445_v14, %v13055_v7  ;;  %v4657_v50 = vrot.slane %v18445_v14, %v13058_v18  ;;  %10005 = vperm.xlu0 %12770, %v15105_v20   ;;  %v4888_v6 = vrot.slane %v18451_v0, %v13047_v60  ;;  %v15432_v22 = vpop.xlane.xlu1 %996 }
 0x249   :  { %18450 = vst [vmem:[#allocation129_spill] sm:$0xff] %v15413_v51  ;;  %v4895_v46 = vrot.slane %v18451_v0, %v13050_v26  ;;  %v4902_v30 = vrot.slane %v18451_v0, %v13055_v7  ;;  %v4909_v53 = vrot.slane %v18451_v0, %v13058_v18  ;;  %v15430_v21 = vcombine.low %v4678_v33, %v4685_v25  ;;  %v18455_v33 = vld [vmem:[#allocation169_spill] sm:$0xff]  ;;  %v18460_v0 = vld [vmem:[#allocation50_spill] sm:$0xff] }
 0x24a   :  { %18453 = vst [vmem:[#allocation164_spill] sm:$0xff] %v15432_v22  ;;  %10002 = vperm.xlu1 %12771, %v15114_v17   ;;  %v9080_v20 = vrot.slane %v9072_v1, %v13061_v23  ;;  %v9087_v14 = vrot.slane %v9073_v35, %v13061_v23  ;;  %v15437_v4 = vcombine.low %v8570_v27, %v8577_v40  ;;  %v15441_v19 = vpop.xlane.xlu0 %993  ;;  %v18456_v40 = vld [vmem:[#allocation156_spill] sm:$0xff]  ;;  %v18470_v22 = vld [vmem:[#allocation109_spill] sm:$0xff] }
 0x24b   :  { %18452 = vst [vmem:[#allocation86_spill] sm:$0xff] %v15430_v21  ;;  %v15439_v57 = vcombine.low %v4636_v2, %v4643_v44  ;;  %v8783_v63 = vcombine.low %v4832_v3, %v4839_v43  ;;  %v8784_v51 = vcombine.low %v4846_v47, %v4853_v42  ;;  %18454 = vst [vmem:[#allocation176_spill] sm:$0xff] %v15441_v19  ;;  %v18458_v42 = vld [vmem:[#allocation159_spill] sm:$0xff] }
 0x24c   :  { %v15443_v24 = vcombine.low %v8553_v32, %v8560_v49  ;;  %v5280_v25 = vrot.slane %v18455_v33, %v13047_v60  ;;  %v5287_v17 = vrot.slane %v18455_v33, %v13050_v26  ;;  %v5294_v1 = vrot.slane %v18455_v33, %v13055_v7  ;;  %10197 = vperm.xlu0 %12770, %v8544_v58   ;;  %v15463_v47 = vpop.xlane.xlu1 %1002 }
 0x24d   :  { %v5301_v27 = vrot.slane %v18455_v33, %v13058_v18  ;;  %v4720_v2 = vrot.slane %v18456_v40, %v13047_v60  ;;  %v15455_v44 = vcombine.low %v4650_v34, %v4657_v50  ;;  %v8817_v32 = vcombine.low %v4888_v6, %v4895_v46  ;;  %18457 = vst [vmem:[#allocation169_spill] sm:$0xff] %v15463_v47 }
 0x24e   :  { %v8818_v49 = vcombine.low %v4902_v30, %v4909_v53  ;;  %v4727_v35 = vrot.slane %v18456_v40, %v13050_v26  ;;  %v4734_v3 = vrot.slane %v18456_v40, %v13055_v7  ;;  %v4741_v43 = vrot.slane %v18456_v40, %v13058_v18  ;;  %10146 = vperm.xlu1 %12771, %v15131_v16   ;;  %v15470_v50 = vpop.xlane.xlu0 %999  ;;  %v18461_v30 = vld [vmem:[#allocation51_spill] sm:$0xff] }
 0x24f   :  { %v9088_v58 = vcombine.low %v9080_v20, %v9087_v14  ;;  %v4692_v34 = vrot.slane %v18458_v42, %v13047_v60  ;;  %v4699_v6 = vrot.slane %v18458_v42, %v13050_v26  ;;  %18459 = vst [vmem:[#allocation156_spill] sm:$0xff] %v15470_v50  ;;  %v7516_v46 = vrot.slane %v18460_v0, %v13061_v23 }
 0x250   :  { %v7523_v53 = vrot.slane %v18461_v30, %v13061_v23  ;;  %v9055_v33 = vcombine.low %v5280_v25, %v5287_v17  ;;  %v9056_v40 = vcombine.low %v5294_v1, %v5301_v27  ;;  %v8791_v16 = vrot.slane %v8783_v63, %v13061_v23  ;;  %v15488_v25 = vpop.xlane.xlu1 %1008  ;;  %v18465_v63 = vld [vmem:[#allocation37_spill] sm:$0xff]  ;;  %v18466_v17 = vld [vmem:[#allocation118_spill] sm:$0xff]  ;;  %v18467_v27 = vld [vmem:[#allocation60_spill] sm:$0xff] }
 0x251   :  { %10293 = vperm.xlu0 %12770, %v9088_v58   ;;  %v8798_v20 = vrot.slane %v8784_v51, %v13061_v23  ;;  %v4706_v14 = vrot.slane %v18458_v42, %v13055_v7  ;;  %v4713_v47 = vrot.slane %v18458_v42, %v13058_v18  ;;  %v8825_v50 = vrot.slane %v8817_v32, %v13061_v23 }
 0x252   :  { %v8832_v0 = vrot.slane %v8818_v49, %v13061_v23  ;;  %v15484_v19 = vcombine.low %v4720_v2, %v4727_v35  ;;  %v15486_v30 = vcombine.low %v4734_v3, %v4741_v43  ;;  %18464 = vst [vmem:[#allocation51_spill] sm:$0xff] %v15488_v25  ;;  %10194 = vperm.xlu1 %12771, %v15308_v39   ;;  %v15503_v35 = vpop.xlane.xlu0 %1005  ;;  %v18469_v39 = vld [vmem:[#allocation73_spill] sm:$0xff] }
 0x253   :  { %v8298_v51 = vrot.slane %v18465_v63, %v13061_v23  ;;  %v8305_v1 = vrot.slane %v18466_v17, %v13061_v23  ;;  %v4860_v58 = vrot.slane %v18467_v27, %v13047_v60  ;;  %v4867_v32 = vrot.slane %v18467_v27, %v13050_v26  ;;  %18468 = vst [vmem:[#allocation37_spill] sm:$0xff] %v15503_v35 }
 0x254   :  { %18462 = vst [vmem:[#allocation159_spill] sm:$0xff] %v15484_v19  ;;  %18463 = vst [vmem:[#allocation50_spill] sm:$0xff] %v15486_v30  ;;  %v4874_v2 = vrot.slane %v18467_v27, %v13055_v7  ;;  %v4881_v49 = vrot.slane %v18467_v27, %v13058_v18  ;;  %v4776_v3 = vrot.slane %v18469_v39, %v13047_v60 }
 0x255   :  { %10152 = vperm.xlu0 %12770, %v15181_v62   ;;  %v8799_v43 = vcombine.low %v8791_v16, %v8798_v20  ;;  %v9063_v42 = vrot.slane %v9055_v33, %v13061_v23  ;;  %v9070_v63 = vrot.slane %v9056_v40, %v13061_v23  ;;  %v4783_v17 = vrot.slane %v18469_v39, %v13050_v26  ;;  %v15524_v16 = vpop.xlane.xlu1 %1014  ;;  %v18472_v20 = vld [vmem:[#allocation17_spill] sm:$0xff] }
 0x256   :  { %v4790_v25 = vrot.slane %v18469_v39, %v13055_v7  ;;  %v4797_v27 = vrot.slane %v18469_v39, %v13058_v18  ;;  %v8833_v35 = vcombine.low %v8825_v50, %v8832_v0  ;;  %v5364_v30 = vrot.slane %v18470_v22, %v13047_v60  ;;  %18471 = vst [vmem:[#allocation118_spill] sm:$0xff] %v15524_v16  ;;  %v15530_v21 = vpop.xlane.xlu0 %1011 }
 0x257   :  { %v5371_v62 = vrot.slane %v18470_v22, %v13050_v26  ;;  %v5378_v33 = vrot.slane %v18470_v22, %v13055_v7  ;;  %v5385_v40 = vrot.slane %v18470_v22, %v13058_v18  ;;  %10242 = vperm.xlu1 %12771, %v8799_v43   ;;  %v4748_v19 = vrot.slane %v18472_v20, %v13047_v60 }
 0x258   :  { %v4755_v50 = vrot.slane %v18472_v20, %v13050_v26  ;;  %v8800_v0 = vcombine.low %v4860_v58, %v4867_v32  ;;  %v8801_v39 = vcombine.low %v4874_v2, %v4881_v49  ;;  %18473 = vst [vmem:[#allocation60_spill] sm:$0xff] %v15530_v21  ;;  %v4762_v61 = vrot.slane %v18472_v20, %v13055_v7  ;;  %v18477_v58 = vld [vmem:[#allocation134_spill] sm:$0xff] }
 0x259   :  { %v4769_v41 = vrot.slane %v18472_v20, %v13058_v18  ;;  %10248 = vperm.xlu0 %12770, %v8833_v35   ;;  %v9071_v22 = vcombine.low %v9063_v42, %v9070_v63  ;;  %v18474_v16 = vlaneseq  ;;  %v15539_v11 = vcombine.low %v4692_v34, %v4699_v6  ;;  %v15551_v35 = vpop.xlane.xlu1 %1020 }
 0x25a   :  { %v15541_v36 = vcombine.low %v4706_v14, %v4713_v47  ;;  %v15543_v15 = vcombine.low %v7516_v46, %v7523_v53  ;;  %v7499_v32 = vrot.slane %v18477_v58, %v13061_v23  ;;  %v15547_v2 = vcombine.low %v4776_v3, %v4783_v17  ;;  %18480 = vst [vmem:[#allocation177_spill] sm:$0xff] %v15551_v35  ;;  %v18483_v14 = vld [vmem:[#allocation135_spill] sm:$0xff]  ;;  %v18490_v3 = vld [vmem:[#allocation18_spill] sm:$0xff] }
 0x25b   :  { %v15537_v43 = vand.u32 127, %v18474_v16  ;;  %18475 = vst [vmem:[#allocation73_spill] sm:$0xff] %v15539_v11  ;;  %v15549_v49 = vcombine.low %v4790_v25, %v4797_v27  ;;  %v9106_v21 = vcombine.low %v5364_v30, %v5371_v62  ;;  %v9107_v20 = vcombine.low %v5378_v33, %v5385_v40  ;;  %10290 = vperm.xlu1 %12771, %v9071_v22   ;;  %v18484_v25 = vld [vmem:[#allocation121_spill] sm:$0xff] }
 0x25c   :  { %18476 = vst [vmem:[#allocation109_spill] sm:$0xff] %v15541_v36  ;;  %18478 = vst [vmem:[#allocation17_spill] sm:$0xff] %v15547_v2  ;;  %v15553_v42 = vcombine.low %v4748_v19, %v4755_v50  ;;  %v8808_v34 = vrot.slane %v8800_v0, %v13061_v23  ;;  %v8815_v47 = vrot.slane %v8801_v39, %v13061_v23  ;;  %v18485_v19 = vld [vmem:[#allocation14_spill] sm:$0xff]  ;;  %v18489_v22 = vld [vmem:[#allocation29_spill] sm:$0xff] }
 0x25d   :  { %18479 = vst [vmem:[#allocation134_spill] sm:$0xff] %v15549_v49  ;;  %v15557_v6 = vcombine.low %v8298_v51, %v8305_v1  ;;  %v15559_v46 = vcombine.low %v4762_v61, %v4769_v41  ;;  %10011 = vperm.xlu0 %12770, %v15198_v45   ;;  %v10436_v53 = vadd.s32 4294967288, %v15537_v43  ;;  %v7506_v30 = vrot.slane %v18483_v14, %v13061_v23  ;;  %v15575_v45 = vpop.xlane.xlu0 %1017  ;;  %v18487_v51 = vld [vmem:[#allocation82_spill] sm:$0xff]  ;;  %v15579_v27 = vpop.permute.xlu1 %9858  ;;  %v18494_v49 = vld [vmem:[#allocation125_spill] sm:$0xff]  ;;  %v18514_v36 = vld [vmem:[#allocation120_spill] sm:$0xff] }
 0x25e   :  { %18481 = vst [vmem:[#allocation178_spill] sm:$0xff] %v15553_v42  ;;  %v4944_v63 = vrot.slane %v18485_v19, %v13047_v60  ;;  %v4951_v17 = vrot.slane %v18485_v19, %v13050_v26  ;;  %v4958_v41 = vrot.slane %v18485_v19, %v13055_v7  ;;  %v4965_v61 = vrot.slane %v18485_v19, %v13058_v18 }
 0x25f   :  { %18482 = vst [vmem:[#allocation179_spill] sm:$0xff] %v15559_v46  ;;  %18486 = vst [vmem:[#allocation135_spill] sm:$0xff] %v15575_v45  ;;  %v4916_v1 = vrot.slane %v18487_v51, %v13047_v60  ;;  %10149 = vperm.xlu1 %12771, %v15218_v10   ;;  %v10443_v62 = vadd.s32 4294967280, %v15537_v43  ;;  %v9114_v33 = vrot.slane %v9106_v21, %v13061_v23 }
 0x260   :  { %18488 = vst [vmem:[#allocation121_spill] sm:$0xff] %v15579_v27  ;;  %v9121_v40 = vrot.slane %v9107_v20, %v13061_v23  ;;  %v4923_v16 = vrot.slane %v18487_v51, %v13050_v26  ;;  %v4930_v50 = vrot.slane %v18487_v51, %v13055_v7  ;;  %v4937_v0 = vrot.slane %v18487_v51, %v13058_v18 }
 0x261   :  { %v8816_v39 = vcombine.low %v8808_v34, %v8815_v47  ;;  %v5336_v58 = vrot.slane %v18489_v22, %v13047_v60  ;;  %v5343_v10 = vrot.slane %v18489_v22, %v13050_v26  ;;  %v5350_v21 = vrot.slane %v18489_v22, %v13055_v7  ;;  %10203 = vperm.xlu0 %12770, %v15437_v4   ;;  %v15608_v35 = vpop.permute.xlu1 %9861 }
 0x262   :  { %v5357_v20 = vrot.slane %v18489_v22, %v13058_v18  ;;  %v8851_v14 = vcombine.low %v4944_v63, %v4951_v17  ;;  %v8852_v19 = vcombine.low %v4958_v41, %v4965_v61  ;;  %v5000_v51 = vrot.slane %v18490_v3, %v13047_v60  ;;  %18491 = vst [vmem:[#allocation14_spill] sm:$0xff] %v15608_v35  ;;  %v18492_v17 = vld [vmem:[#allocation165_spill] sm:$0xff]  ;;  %v15618_v61 = vpop.permute.xlu0 %9855 }
 0x263   :  { %v5007_v34 = vrot.slane %v18490_v3, %v13050_v26  ;;  %v5014_v47 = vrot.slane %v18490_v3, %v13055_v7  ;;  %v5021_v45 = vrot.slane %v18490_v3, %v13058_v18  ;;  %10245 = vperm.xlu1 %12771, %v8816_v39   ;;  %v9122_v22 = vcombine.low %v9114_v33, %v9121_v40  ;;  %v18495_v39 = vld [vmem:[#allocation96_spill] sm:$0xff] }
 0x264   :  { %v15610_v27 = vcombine.low %v7499_v32, %v7506_v30  ;;  %v15612_v4 = vcombine.low %v4916_v1, %v4923_v16  ;;  %v15614_v63 = vcombine.low %v4930_v50, %v4937_v0  ;;  %v4972_v41 = vrot.slane %v18492_v17, %v13047_v60  ;;  %18493 = vst [vmem:[#allocation82_spill] sm:$0xff] %v15618_v61 }
 0x265   :  { %v4979_v3 = vrot.slane %v18492_v17, %v13050_v26  ;;  %v4986_v33 = vrot.slane %v18492_v17, %v13055_v7  ;;  %v9089_v32 = vcombine.low %v5336_v58, %v5343_v10  ;;  %v9090_v30 = vcombine.low %v5350_v21, %v5357_v20  ;;  %10299 = vperm.xlu0 %12770, %v9122_v22   ;;  %v18496_v58 = vld [vmem:[#allocation43_spill] sm:$0xff]  ;;  %v15641_v21 = vpop.permute.xlu1 %9864 }
 0x266   :  { %v15626_v1 = vcombine.low %v5000_v51, %v5007_v34  ;;  %v4993_v40 = vrot.slane %v18492_v17, %v13058_v18  ;;  %v8859_v16 = vrot.slane %v8851_v14, %v13061_v23  ;;  %v8866_v50 = vrot.slane %v8852_v19, %v13061_v23  ;;  %18498 = vst [vmem:[#allocation18_spill] sm:$0xff] %v15641_v21  ;;  %v18499_v14 = vld [vmem:[#allocation88_spill] sm:$0xff]  ;;  %v15652_v34 = vpop.permute.xlu0 %9882 }
 0x267   :  { %v15632_v0 = vcombine.low %v5014_v47, %v5021_v45  ;;  %v5056_v2 = vrot.slane %v18495_v39, %v13047_v60  ;;  %v5063_v35 = vrot.slane %v18495_v39, %v13050_v26  ;;  %v15639_v10 = vsub.s32 %v10436_v53, %v18496_v58  ;;  %10008 = vperm.xlu1 %12771, %v15310_v28  }
 0x268   :  { %v5070_v20 = vrot.slane %v18495_v39, %v13055_v7  ;;  %v5077_v45 = vrot.slane %v18495_v39, %v13058_v18  ;;  %v5028_v19 = vrot.slane %v18499_v14, %v13047_v60  ;;  %v5035_v51 = vrot.slane %v18499_v14, %v13050_v26  ;;  %18500 = vst [vmem:[#allocation165_spill] sm:$0xff] %v15652_v34 }
 0x269   :  { %18497 = vst [vmem:[#allocation29_spill] sm:$0xff] %v15639_v10  ;;  %v5042_v53 = vrot.slane %v18499_v14, %v13055_v7  ;;  %v5049_v28 = vrot.slane %v18499_v14, %v13058_v18  ;;  %10158 = vperm.xlu0 %12770, %v15359_v8   ;;  %v9097_v47 = vrot.slane %v9089_v32, %v13061_v23  ;;  %v18502_v10 = vld [vmem:[#allocation32_spill] sm:$0xff] }
 0x26a   :  { %v9104_v22 = vrot.slane %v9090_v30, %v13061_v23  ;;  %v15661_v17 = vcombine.low %v4972_v41, %v4979_v3  ;;  %v15663_v39 = vcombine.low %v4986_v33, %v4993_v40  ;;  %v15666_v21 = vsub.s32 %v10443_v62, %v18496_v58  ;;  %v15676_v41 = vpop.permute.xlu1 %9867  ;;  %v18504_v33 = vld [vmem:[#allocation31_spill] sm:$0xff] }
 0x26b   :  { %v8867_v34 = vcombine.low %v8859_v16, %v8866_v50  ;;  %v5420_v61 = vrot.slane %v18502_v10, %v13047_v60  ;;  %v5427_v14 = vrot.slane %v18502_v10, %v13050_v26  ;;  %v5434_v8 = vrot.slane %v18502_v10, %v13055_v7  ;;  %18503 = vst [vmem:[#allocation96_spill] sm:$0xff] %v15676_v41  ;;  %v15687_v16 = vpop.permute.xlu0 %9888 }
 0x26c   :  { %18501 = vst [vmem:[#allocation125_spill] sm:$0xff] %v15666_v21  ;;  %v5441_v32 = vrot.slane %v18502_v10, %v13058_v18  ;;  %10200 = vperm.xlu1 %12771, %v15443_v24   ;;  %v15679_v3 = vcombine.low %v5056_v2, %v5063_v35  ;;  %v15681_v62 = vcombine.low %v5070_v20, %v5077_v45  ;;  %18505 = vst [vmem:[#allocation88_spill] sm:$0xff] %v15687_v16  ;;  %v18507_v20 = vld [vmem:[#allocation98_spill] sm:$0xff] }
 0x26d   :  { %v5112_v30 = vrot.slane %v18504_v33, %v13047_v60  ;;  %v5119_v40 = vrot.slane %v18504_v33, %v13050_v26  ;;  %v15689_v50 = vcombine.low %v5028_v19, %v5035_v51  ;;  %v15691_v21 = vcombine.low %v5042_v53, %v5049_v28  ;;  %10254 = vperm.xlu0 %12770, %v8867_v34  }
 0x26e   :  { %v15695_v10 = vsub.s32 %v15537_v43, %v18496_v58  ;;  %v9105_v24 = vcombine.low %v9097_v47, %v9104_v22  ;;  %v5126_v2 = vrot.slane %v18504_v33, %v13055_v7  ;;  %v5133_v35 = vrot.slane %v18504_v33, %v13058_v18  ;;  %v15705_v28 = vpop.permute.xlu1 %9870 }
 0x26f   :  { %v5084_v45 = vrot.slane %v18507_v20, %v13047_v60  ;;  %v5091_v19 = vrot.slane %v18507_v20, %v13050_v26  ;;  %v9140_v51 = vcombine.low %v5420_v61, %v5427_v14  ;;  %v9141_v53 = vcombine.low %v5434_v8, %v5441_v32  ;;  %18508 = vst [vmem:[#allocation31_spill] sm:$0xff] %v15705_v28  ;;  %v15718_v14 = vpop.permute.xlu0 %9894  ;;  %v18511_v8 = vld [vmem:[#allocation94_spill] sm:$0xff] }
 0x270   :  { %18506 = vst [vmem:[#allocation32_spill] sm:$0xff] %v15695_v10  ;;  %10296 = vperm.xlu1 %12771, %v9105_v24   ;;  %v8604_v34 = vrot.slane %v15344_v59, %v13061_v23  ;;  %v8611_v47 = vrot.slane %v15346_v5, %v13061_v23  ;;  %v15711_v22 = vcombine.low %v5112_v30, %v5119_v40  ;;  %v10450_v61 = vadd.s32 4294967272, %v15537_v43 }
 0x271   :  { %v5098_v33 = vrot.slane %v18507_v20, %v13055_v7  ;;  %v5105_v16 = vrot.slane %v18507_v20, %v13058_v18  ;;  %18510 = vst [vmem:[#allocation180_spill] sm:$0xff] %v15718_v14  ;;  %v5168_v32 = vrot.slane %v18511_v8, %v13047_v60  ;;  %v10492_v59 = vadd.s32 4294967224, %v15537_v43  ;;  %10017 = vperm.xlu0 %12770, %v15543_v15   ;;  %v18512_v14 = vld [vmem:[#allocation105_spill] sm:$0xff] }
 0x272   :  { %18509 = vst [vmem:[#allocation98_spill] sm:$0xff] %v15711_v22  ;;  %v8842_v5 = vrot.slane %v15612_v4, %v13061_v23  ;;  %v8849_v30 = vrot.slane %v15614_v63, %v13061_v23  ;;  %v5175_v40 = vrot.slane %v18511_v8, %v13050_v26  ;;  %v5182_v24 = vrot.slane %v18511_v8, %v13055_v7  ;;  %v15738_v41 = vpop.permute.xlu1 %9873 }
 0x273   :  { %v5189_v20 = vrot.slane %v18511_v8, %v13058_v18  ;;  %v5140_v28 = vrot.slane %v18512_v14, %v13047_v60  ;;  %v5147_v15 = vrot.slane %v18512_v14, %v13050_v26  ;;  %18513 = vst [vmem:[#allocation94_spill] sm:$0xff] %v15738_v41  ;;  %v8612_v4 = vcombine.low %v8604_v34, %v8611_v47  ;;  %v15751_v22 = vpop.permute.xlu0 %9900 }
 0x274   :  { %10155 = vperm.xlu1 %12771, %v15557_v6   ;;  %v9148_v63 = vrot.slane %v9140_v51, %v13061_v23  ;;  %v9155_v10 = vrot.slane %v9141_v53, %v13061_v23  ;;  %v15743_v46 = vcombine.low %v5126_v2, %v5133_v35  ;;  %v15745_v42 = vcombine.low %v5084_v45, %v5091_v19 }
 0x275   :  { %v15747_v8 = vcombine.low %v5098_v33, %v5105_v16  ;;  %v5392_v11 = vrot.slane %v18514_v36, %v13047_v60  ;;  %18515 = vst [vmem:[#allocation105_spill] sm:$0xff] %v15751_v22  ;;  %v5399_v41 = vrot.slane %v18514_v36, %v13050_v26  ;;  %v5406_v6 = vrot.slane %v18514_v36, %v13055_v7  ;;  %v18532_v22 = vld [vmem:[#allocation143_spill] sm:$0xff] }
 0x276   :  { %v5413_v51 = vrot.slane %v18514_v36, %v13058_v18  ;;  %10209 = vperm.xlu0 %12770, %v8612_v4   ;;  %v8850_v2 = vcombine.low %v8842_v5, %v8849_v30  ;;  %v15759_v35 = vcombine.low %v5168_v32, %v5175_v40  ;;  %v15761_v16 = vcombine.low %v5182_v24, %v5189_v20  ;;  %v15775_v36 = vpop.permute.xlu1 %9876  ;;  %v18519_v32 = vld [vmem:[#allocation99_spill] sm:$0xff] }
 0x277   :  { %v5154_v45 = vrot.slane %v18512_v14, %v13055_v7  ;;  %v5161_v19 = vrot.slane %v18512_v14, %v13058_v18  ;;  %v15767_v53 = vcombine.low %v5140_v28, %v5147_v15  ;;  %v15770_v34 = vsub.s32 %v10450_v61, %v18496_v58  ;;  %18518 = vst [vmem:[#allocation182_spill] sm:$0xff] %v15775_v36  ;;  %v15785_v14 = vpop.permute.xlu0 %9906  ;;  %v18521_v15 = vld [vmem:[#allocation24_spill] sm:$0xff] }
 0x278   :  { %v15773_v47 = vsub.s32 %v10492_v59, %v18496_v58  ;;  %10251 = vperm.xlu1 %12771, %v8850_v2   ;;  %v9156_v33 = vcombine.low %v9148_v63, %v9155_v10  ;;  %v5224_v5 = vrot.slane %v18519_v32, %v13047_v60  ;;  %v5231_v30 = vrot.slane %v18519_v32, %v13050_v26 }
 0x279   :  { %18516 = vst [vmem:[#allocation120_spill] sm:$0xff] %v15770_v34  ;;  %v5238_v28 = vrot.slane %v18519_v32, %v13055_v7  ;;  %v5245_v61 = vrot.slane %v18519_v32, %v13058_v18  ;;  %18520 = vst [vmem:[#allocation99_spill] sm:$0xff] %v15785_v14  ;;  %v9123_v59 = vcombine.low %v5392_v11, %v5399_v41  ;;  %v10457_v2 = vadd.s32 4294967264, %v15537_v43 }
 0x27a   :  { %18517 = vst [vmem:[#allocation181_spill] sm:$0xff] %v15773_v47  ;;  %v9124_v40 = vcombine.low %v5406_v6, %v5413_v51  ;;  %10305 = vperm.xlu0 %12770, %v9156_v33   ;;  %v8587_v10 = vrot.slane %v15284_v54, %v13061_v23  ;;  %v8594_v24 = vrot.slane %v15286_v48, %v13061_v23  ;;  %v15800_v41 = vpop.permute.xlu1 %9879  ;;  %v10506_v32 = vadd.s32 4294967208, %v15537_v43 }
 0x27b   :  { %v15791_v20 = vcombine.low %v5154_v45, %v5161_v19  ;;  %v5196_v4 = vrot.slane %v18521_v15, %v13047_v60  ;;  %v5203_v63 = vrot.slane %v18521_v15, %v13050_v26  ;;  %v5210_v11 = vrot.slane %v18521_v15, %v13055_v7  ;;  %18522 = vst [vmem:[#allocation24_spill] sm:$0xff] %v15800_v41 }
 0x27c   :  { %10014 = vperm.xlu1 %12771, %v15610_v27   ;;  %v18523_v54 = vrot.slane %v18494_v49, %v13061_v23  ;;  %v18524_v48 = vrot.slane %v18484_v25, %v13061_v23  ;;  %v8893_v51 = vrot.slane %v15626_v1, %v13061_v23  ;;  %v8900_v45 = vrot.slane %v15632_v0, %v13061_v23  ;;  %v15820_v49 = vpop.permute.xlu0 %9912  ;;  %v18528_v25 = vld [vmem:[#allocation130_spill] sm:$0xff] }
 0x27d   :  { %v15813_v19 = vcombine.low %v5224_v5, %v5231_v30  ;;  %v15815_v33 = vcombine.low %v5238_v28, %v5245_v61  ;;  %v5217_v27 = vrot.slane %v18521_v15, %v13058_v18  ;;  %18527 = vst [vmem:[#allocation185_spill] sm:$0xff] %v15820_v49  ;;  %v9131_v1 = vrot.slane %v9123_v59, %v13061_v23  ;;  %v18529_v30 = vld [vmem:[#allocation33_spill] sm:$0xff] }
 0x27e   :  { %v8357_v6 = vcombine.low %v18524_v48, %v18523_v54  ;;  %v5448_v54 = vrot.slane %v18528_v25, %v13047_v60  ;;  %v8595_v48 = vcombine.low %v8587_v10, %v8594_v24  ;;  %v9138_v0 = vrot.slane %v9124_v40, %v13061_v23  ;;  %v15836_v10 = vpop.permute.xlu1 %9885  ;;  %v18531_v40 = vld [vmem:[#allocation52_spill] sm:$0xff] }
 0x27f   :  { %18525 = vst [vmem:[#allocation183_spill] sm:$0xff] %v15813_v19  ;;  %18526 = vst [vmem:[#allocation184_spill] sm:$0xff] %v15815_v33  ;;  %v5455_v5 = vrot.slane %v18528_v25, %v13050_v26  ;;  %v5476_v28 = vrot.slane %v18529_v30, %v13047_v60  ;;  %v5483_v61 = vrot.slane %v18529_v30, %v13050_v26 }
 0x280   :  { %10164 = vperm.xlu0 %12770, %v8357_v6   ;;  %v5490_v15 = vrot.slane %v18529_v30, %v13055_v7  ;;  %v5497_v6 = vrot.slane %v18529_v30, %v13058_v18  ;;  %18530 = vst [vmem:[#allocation130_spill] sm:$0xff] %v15836_v10  ;;  %10206 = vperm.xlu1 %12771, %v8595_v48   ;;  %v15851_v30 = vpop.permute.xlu0 %9918  ;;  %v18537_v48 = vld [vmem:[#allocation122_spill] sm:$0xff] }
 0x281   :  { %v8901_v59 = vcombine.low %v8893_v51, %v8900_v45  ;;  %v7550_v24 = vrot.slane %v18531_v40, %v13061_v23  ;;  %v7557_v49 = vrot.slane %v18532_v22, %v13061_v23  ;;  %v15842_v47 = vcombine.low %v5196_v4, %v5203_v63  ;;  %18536 = vst [vmem:[#allocation186_spill] sm:$0xff] %v15851_v30  ;;  %v18538_v4 = vld [vmem:[#allocation40_spill] sm:$0xff] }
 0x282   :  { %v15844_v14 = vcombine.low %v5210_v11, %v5217_v27  ;;  %v5462_v41 = vrot.slane %v18528_v25, %v13055_v7  ;;  %v15849_v36 = vsub.s32 %v10457_v2, %v18496_v58  ;;  %v5469_v51 = vrot.slane %v18528_v25, %v13058_v18  ;;  %v15865_v10 = vpop.permute.xlu1 %9891 }
 0x283   :  { %18533 = vst [vmem:[#allocation33_spill] sm:$0xff] %v15842_v47  ;;  %v9139_v45 = vcombine.low %v9131_v1, %v9138_v0  ;;  %v8332_v22 = vrot.slane %v18537_v48, %v13061_v23  ;;  %v8339_v63 = vrot.slane %v18538_v4, %v13061_v23  ;;  %v15859_v11 = vcombine.low %v5448_v54, %v5455_v5  ;;  %v18541_v54 = vld [vmem:[#allocation114_spill] sm:$0xff] }
 0x284   :  { %18534 = vst [vmem:[#allocation52_spill] sm:$0xff] %v15844_v14  ;;  %18535 = vst [vmem:[#allocation143_spill] sm:$0xff] %v15849_v36  ;;  %10260 = vperm.xlu0 %12770, %v8901_v59   ;;  %v9174_v27 = vcombine.low %v5476_v28, %v5483_v61  ;;  %v15862_v40 = vsub.s32 %v10506_v32, %v18496_v58  ;;  %v10464_v2 = vadd.s32 4294967256, %v15537_v43  ;;  %v18543_v59 = vld [vmem:[#allocation115_spill] sm:$0xff] }
 0x285   :  { %v9175_v30 = vcombine.low %v5490_v15, %v5497_v6  ;;  %18540 = vst [vmem:[#allocation40_spill] sm:$0xff] %v15865_v10  ;;  %10302 = vperm.xlu1 %12771, %v9139_v45   ;;  %v7558_v25 = vcombine.low %v7550_v24, %v7557_v49  ;;  %v8638_v1 = vrot.slane %v15384_v13, %v13061_v23  ;;  %v15879_v15 = vpop.permute.xlu0 %9924 }
 0x286   :  { %18539 = vst [vmem:[#allocation122_spill] sm:$0xff] %v15862_v40  ;;  %v8645_v0 = vrot.slane %v15415_v9, %v13061_v23  ;;  %v5504_v5 = vrot.slane %v18541_v54, %v13047_v60  ;;  %v5511_v32 = vrot.slane %v18541_v54, %v13050_v26  ;;  %v5518_v28 = vrot.slane %v18541_v54, %v13055_v7 }
 0x287   :  { %v5525_v61 = vrot.slane %v18541_v54, %v13058_v18  ;;  %18542 = vst [vmem:[#allocation114_spill] sm:$0xff] %v15879_v15  ;;  %v15881_v49 = vcombine.low %v5462_v41, %v5469_v51  ;;  %v8340_v13 = vcombine.low %v8332_v22, %v8339_v63  ;;  %v8876_v9 = vrot.slane %v15661_v17, %v13061_v23  ;;  %v15896_v22 = vpop.permute.xlu1 %9897  ;;  %v18545_v54 = vld [vmem:[#allocation116_spill] sm:$0xff] }
 0x288   :  { %10023 = vperm.xlu0 %12770, %v7558_v25   ;;  %v8883_v6 = vrot.slane %v15663_v39, %v13061_v23  ;;  %v5560_v24 = vrot.slane %v18543_v59, %v13047_v60  ;;  %v5567_v45 = vrot.slane %v18543_v59, %v13050_v26  ;;  %v5574_v48 = vrot.slane %v18543_v59, %v13055_v7 }
 0x289   :  { %v5581_v41 = vrot.slane %v18543_v59, %v13058_v18  ;;  %v10520_v51 = vadd.s32 4294967192, %v15537_v43  ;;  %18544 = vst [vmem:[#allocation115_spill] sm:$0xff] %v15896_v22  ;;  %10161 = vperm.xlu1 %12771, %v8340_v13   ;;  %v8646_v17 = vcombine.low %v8638_v1, %v8645_v0  ;;  %v9182_v39 = vrot.slane %v9174_v27, %v13061_v23  ;;  %v15909_v59 = vpop.permute.xlu0 %9930  ;;  %v18548_v27 = vld [vmem:[#allocation48_spill] sm:$0xff]  ;;  %v18549_v0 = vld [vmem:[#allocation67_spill] sm:$0xff] }
 0x28a   :  { %v9189_v4 = vrot.slane %v9175_v30, %v13061_v23  ;;  %v15900_v63 = vcombine.low %v5504_v5, %v5511_v32  ;;  %v15902_v25 = vcombine.low %v5518_v28, %v5525_v61  ;;  %v5532_v15 = vrot.slane %v18545_v54, %v13047_v60  ;;  %18547 = vst [vmem:[#allocation187_spill] sm:$0xff] %v15909_v59  ;;  %v11456_v22 = vld [vmem:[#allocation6 + $0x8] sm:$0xff] }
 0x28b   :  { %v15907_v10 = vsub.s32 %v10464_v2, %v18496_v58  ;;  %v5539_v13 = vrot.slane %v18545_v54, %v13050_v26  ;;  %v8884_v1 = vcombine.low %v8876_v9, %v8883_v6  ;;  %v7533_v30 = vrot.slane %v18548_v27, %v13061_v23  ;;  %v15928_v9 = vpop.permute.xlu1 %9903 }
 0x28c   :  { %10215 = vperm.xlu0 %12770, %v8646_v17   ;;  %v7540_v5 = vrot.slane %v18549_v0, %v13061_v23  ;;  %v15917_v32 = vcombine.low %v5560_v24, %v5567_v45  ;;  %v15919_v28 = vcombine.low %v5574_v48, %v5581_v41  ;;  %v5546_v2 = vrot.slane %v18545_v54, %v13055_v7  ;;  %v18552_v17 = vld [vmem:[#allocation42_spill] sm:$0xff]  ;;  %v18553_v24 = vld [vmem:[#allocation41_spill] sm:$0xff] }
 0x28d   :  { %18546 = vst [vmem:[#allocation116_spill] sm:$0xff] %v15907_v10  ;;  %v5553_v61 = vrot.slane %v18545_v54, %v13058_v18  ;;  %v15926_v59 = vsub.s32 %v10520_v51, %v18496_v58  ;;  %18551 = vst [vmem:[#allocation67_spill] sm:$0xff] %v15928_v9  ;;  %10257 = vperm.xlu1 %12771, %v8884_v1   ;;  %v9190_v6 = vcombine.low %v9182_v39, %v9189_v4  ;;  %v18554_v48 = vld [vmem:[#allocation117_spill] sm:$0xff]  ;;  %v15942_v1 = vpop.permute.xlu0 %9936  ;;  %v18556_v9 = vld [vmem:[#allocation36_spill] sm:$0xff] }
 0x28e   :  { %v8383_v27 = vrot.slane %v18552_v17, %v13061_v23  ;;  %v8390_v45 = vrot.slane %v18553_v24, %v13061_v23  ;;  %v5616_v41 = vrot.slane %v18554_v48, %v13047_v60  ;;  %v5623_v0 = vrot.slane %v18554_v48, %v13050_v26  ;;  %18555 = vst [vmem:[#allocation42_spill] sm:$0xff] %v15942_v1  ;;  %v11461_v10 = vld [vmem:[#allocation6 + $0x30] sm:$0xff] }
 0x28f   :  { %18550 = vst [vmem:[#allocation48_spill] sm:$0xff] %v15926_v59  ;;  %v5630_v51 = vrot.slane %v18554_v48, %v13055_v7  ;;  %v5637_v54 = vrot.slane %v18554_v48, %v13058_v18  ;;  %v15944_v39 = vcombine.low %v5532_v15, %v5539_v13  ;;  %v7541_v4 = vcombine.low %v7533_v30, %v7540_v5  ;;  %v11462_v59 = vld [vmem:[#allocation6 + $0x38] sm:$0xff]  ;;  %v11648_v13 = vld [vmem:[#allocation6 + $0x608] sm:$0xff]  ;;  %v11455_v5 = vld [vmem:[#allocation6] sm:$0xff] }
 0x290   :  { %10311 = vperm.xlu0 %12770, %v9190_v6   ;;  %v8621_v17 = vrot.slane %v15320_v55, %v13061_v23  ;;  %v8628_v24 = vrot.slane %v15322_v37, %v13061_v23  ;;  %v15950_v40 = vcombine.low %v5546_v2, %v5553_v61  ;;  %v10471_v15 = vadd.s32 4294967248, %v15537_v43  ;;  %v11654_v30 = vld [vmem:[#allocation6 + $0x638] sm:$0xff]  ;;  %v15959_v6 = vpop.permute.xlu1 %9909  ;;  %v11647_v48 = vld [vmem:[#allocation6 + $0x600] sm:$0xff]  ;;  %v11653_v1 = vld [vmem:[#allocation6 + $0x630] sm:$0xff] }
 0x291   :  { %v5602_v55 = vrot.slane %v18556_v9, %v13055_v7  ;;  %18557 = vst [vmem:[#allocation41_spill] sm:$0xff] %v15959_v6  ;;  %10020 = vperm.xlu1 %12771, %v7541_v4   ;;  %v8391_v37 = vcombine.low %v8383_v27, %v8390_v45  ;;  %v8927_v2 = vrot.slane %v15679_v3, %v13061_v23  ;;  %v15971_v19 = vpop.permute.xlu0 %9942 }
 0x292   :  { %v8934_v61 = vrot.slane %v15681_v62, %v13061_v23  ;;  %v15965_v36 = vcombine.low %v5616_v41, %v5623_v0  ;;  %v15967_v34 = vcombine.low %v5630_v51, %v5637_v54  ;;  %v5609_v33 = vrot.slane %v18556_v9, %v13058_v18  ;;  %18559 = vst [vmem:[#allocation36_spill] sm:$0xff] %v15971_v19  ;;  %v18560_v41 = vld [vmem:[#allocation145_spill] sm:$0xff]  ;;  %v18561_v51 = vld [vmem:[#allocation147_spill] sm:$0xff] }
 0x293   :  { %v12359_v4 = vpack.c.bf16 %v11462_v59, %v11456_v22  ;;  %v8629_v27 = vcombine.low %v8621_v17, %v8628_v24  ;;  %v9165_v3 = vrot.slane %v15859_v11, %v13061_v23  ;;  %v9172_v62 = vrot.slane %v15881_v49, %v13061_v23  ;;  %v18562_v22 = vld [vmem:[#allocation38_spill] sm:$0xff]  ;;  %v11468_v24 = vld [vmem:[#allocation6 + $0x68] sm:$0xff] }
 0x294   :  { %18558 = vst [vmem:[#allocation117_spill] sm:$0xff] %v15967_v34  ;;  %10170 = vperm.xlu0 %12770, %v8391_v37   ;;  %v12551_v45 = vpack.c.bf16 %v11654_v30, %v11648_v13  ;;  %v7584_v0 = vrot.slane %v18560_v41, %v13061_v23  ;;  %v7591_v54 = vrot.slane %v18561_v51, %v13061_v23  ;;  %v15986_v11 = vpop.permute.xlu1 %9915  ;;  %v11474_v13 = vld [vmem:[#allocation6 + $0x98] sm:$0xff]  ;;  %v11473_v51 = vld [vmem:[#allocation6 + $0x90] sm:$0xff] }
 0x295   :  { %12360 = vmatprep.subr.bf16.mxu0 %v12359_v4  ;;  %v12361_v6 = vpack.c.bf16 %v11461_v10, %v11455_v5  ;;  %v12553_v14 = vpack.c.bf16 %v11653_v1, %v11647_v48  ;;  %v5672_v59 = vrot.slane %v18562_v22, %v13047_v60  ;;  %v15984_v17 = vsub.s32 %v10471_v15, %v18496_v58  ;;  %v15995_v15 = vpop.permute.xlu0 %9948  ;;  %v11660_v5 = vld [vmem:[#allocation6 + $0x668] sm:$0xff]  ;;  %v11666_v37 = vld [vmem:[#allocation6 + $0x698] sm:$0xff]  ;;  %v11665_v19 = vld [vmem:[#allocation6 + $0x690] sm:$0xff] }
 0x296   :  { %18564 = vst [vmem:[#allocation147_spill] sm:$0xff] %v15986_v11  ;;  %10212 = vperm.xlu1 %12771, %v8629_v27   ;;  %v8935_v49 = vcombine.low %v8927_v2, %v8934_v61  ;;  %12552 = vmatprep.subr.bf16.mxu1 %v12551_v45  ;;  %v5679_v30 = vrot.slane %v18562_v22, %v13050_v26  ;;  %v10534_v48 = vadd.s32 4294967176, %v15537_v43  ;;  %18565 = vst [vmem:[#allocation38_spill] sm:$0xff] %v15995_v15  ;;  %v11467_v2 = vld [vmem:[#allocation6 + $0x60] sm:$0xff] }
 0x297   :  { %18563 = vst [vmem:[#allocation145_spill] sm:$0xff] %v15984_v17  ;;  %v5686_v10 = vrot.slane %v18562_v22, %v13055_v7  ;;  %v5693_v1 = vrot.slane %v18562_v22, %v13058_v18  ;;  %12362 = vmatpush1.bf16.xpose.msra.mxu0 %v12361_v6  ;;  %12554 = vmatpush1.bf16.xpose.msra.mxu1 %v12553_v14  ;;  %v18566_v61 = vld [vmem:[#allocation123_spill] sm:$0xff] }
 0x298   :  { %v5644_v4 = vrot.slane %v18566_v61, %v13047_v60  ;;  %10266 = vperm.xlu0 %12770, %v8935_v49   ;;  %v9173_v27 = vcombine.low %v9165_v3, %v9172_v62  ;;  %v8366_v45 = vrot.slane %v15099_v56, %v13061_v23  ;;  %v8373_v41 = vrot.slane %v15101_v12, %v13061_v23  ;;  %v11659_v22 = vld [vmem:[#allocation6 + $0x660] sm:$0xff]  ;;  %v16009_v3 = vpop.permute.xlu1 %9921 }
 0x299   :  { %v5651_v14 = vrot.slane %v18566_v61, %v13050_v26  ;;  %v5658_v6 = vrot.slane %v18566_v61, %v13055_v7  ;;  %v5665_v15 = vrot.slane %v18566_v61, %v13058_v18  ;;  %v7592_v49 = vcombine.low %v7584_v0, %v7591_v54  ;;  %18567 = vst [vmem:[#allocation123_spill] sm:$0xff] %v16009_v3  ;;  %v16025_v54 = vpop.permute.xlu0 %9954 }
 0x29a   :  { %10308 = vperm.xlu1 %12771, %v9173_v27   ;;  %v8672_v56 = vrot.slane %v15439_v57, %v13061_v23  ;;  %v8679_v12 = vrot.slane %v15455_v44, %v13061_v23  ;;  %v12363_v62 = vpack.c.bf16 %v11474_v13, %v11468_v24  ;;  %v12555_v11 = vpack.c.bf16 %v11666_v37, %v11660_v5  ;;  %v11480_v13 = vld [vmem:[#allocation6 + $0xc8] sm:$0xff] }
 0x29b   :  { %v18568_v17 = vrot.slane %v18556_v9, %v13050_v26  ;;  %v18569_v47 = vrot.slane %v18556_v9, %v13047_v60  ;;  %v16023_v0 = vcombine.low %v5602_v55, %v5609_v33  ;;  %18570 = vst [vmem:[#allocation188_spill] sm:$0xff] %v16025_v54  ;;  %v12365_v61 = vpack.c.bf16 %v11473_v51, %v11467_v2  ;;  %v11672_v55 = vld [vmem:[#allocation6 + $0x6c8] sm:$0xff]  ;;  %v18575_v2 = vld [vmem:[#allocation71_spill] sm:$0xff]  ;;  %v11725_v54 = vld [vmem:[#allocation6 + $0x870] sm:$0xff] }
 0x29c   :  { %v12557_v27 = vpack.c.bf16 %v11665_v19, %v11659_v22  ;;  %10029 = vperm.xlu0 %12770, %v7592_v49   ;;  %v8374_v57 = vcombine.low %v8366_v45, %v8373_v41  ;;  %v8910_v44 = vrot.slane %v15689_v50, %v13061_v23  ;;  %v8917_v24 = vrot.slane %v15691_v21, %v13061_v23  ;;  %v11486_v19 = vld [vmem:[#allocation6 + $0xf8] sm:$0xff]  ;;  %v16042_v50 = vpop.permute.xlu1 %9927  ;;  %v11479_v45 = vld [vmem:[#allocation6 + $0xc0] sm:$0xff]  ;;  %v11677_v49 = vld [vmem:[#allocation6 + $0x6f0] sm:$0xff] }
 0x29d   :  { %v16021_v34 = vcombine.low %v18569_v47, %v18568_v17  ;;  %12364 = vmatprep.subr.bf16.mxu0 %v12363_v62  ;;  %v16031_v5 = vcombine.low %v5672_v59, %v5679_v30  ;;  %v16033_v47 = vcombine.low %v5686_v10, %v5693_v1  ;;  %v16035_v33 = vcombine.low %v5644_v4, %v5651_v14  ;;  %v11678_v17 = vld [vmem:[#allocation6 + $0x6f8] sm:$0xff]  ;;  %v11485_v14 = vld [vmem:[#allocation6 + $0xf0] sm:$0xff] }
 0x29e   :  { %v16038_v9 = vsub.s32 %v10534_v48, %v18496_v58  ;;  %12556 = vmatprep.subr.bf16.mxu1 %v12555_v11  ;;  %v16040_v37 = vcombine.low %v5658_v6, %v5665_v15  ;;  %18572 = vst [vmem:[#allocation190_spill] sm:$0xff] %v16042_v50  ;;  %10167 = vperm.xlu1 %12771, %v8374_v57   ;;  %v18573_v10 = vld [vmem:[#allocation126_spill] sm:$0xff]  ;;  %v10478_v48 = vadd.s32 4294967240, %v15537_v43  ;;  %v16053_v15 = vpop.permute.xlu0 %9960  ;;  %v11671_v6 = vld [vmem:[#allocation6 + $0x6c0] sm:$0xff] }
 0x29f   :  { %v8680_v21 = vcombine.low %v8672_v56, %v8679_v12  ;;  %v9216_v59 = vrot.slane %v15944_v39, %v13061_v23  ;;  %v9223_v30 = vrot.slane %v15950_v40, %v13061_v23  ;;  %v5728_v1 = vrot.slane %v18573_v10, %v13047_v60  ;;  %18574 = vst [vmem:[#allocation126_spill] sm:$0xff] %v16053_v15  ;;  %v18576_v40 = vld [vmem:[#allocation72_spill] sm:$0xff]  ;;  %v18577_v62 = vld [vmem:[#allocation46_spill] sm:$0xff] }
 0x2a0   :  { %18571 = vst [vmem:[#allocation189_spill] sm:$0xff] %v16038_v9  ;;  %v5735_v11 = vrot.slane %v18573_v10, %v13050_v26  ;;  %v7567_v4 = vrot.slane %v18575_v2, %v13061_v23  ;;  %12366 = vmatpush1.bf16.xpose.msra.mxu0 %v12365_v61  ;;  %12558 = vmatpush1.bf16.xpose.msra.mxu1 %v12557_v27  ;;  %v16067_v57 = vpop.permute.xlu1 %9933 }
 0x2a1   :  { %10221 = vperm.xlu0 %12770, %v8680_v21   ;;  %v8918_v39 = vcombine.low %v8910_v44, %v8917_v24  ;;  %v7574_v41 = vrot.slane %v18576_v40, %v13061_v23  ;;  %v12367_v51 = vpack.c.bf16 %v11486_v19, %v11480_v13  ;;  %v12559_v22 = vpack.c.bf16 %v11678_v17, %v11672_v55  ;;  %v11492_v19 = vld [vmem:[#allocation6 + $0x128] sm:$0xff]  ;;  %v11498_v55 = vld [vmem:[#allocation6 + $0x158] sm:$0xff] }
 0x2a2   :  { %v5742_v56 = vrot.slane %v18573_v10, %v13055_v7  ;;  %v5749_v12 = vrot.slane %v18573_v10, %v13058_v18  ;;  %v5700_v61 = vrot.slane %v18577_v62, %v13047_v60  ;;  %v5707_v27 = vrot.slane %v18577_v62, %v13050_v26  ;;  %18578 = vst [vmem:[#allocation71_spill] sm:$0xff] %v16067_v57  ;;  %v16077_v10 = vpop.permute.xlu0 %9966 }
 0x2a3   :  { %10263 = vperm.xlu1 %12771, %v8918_v39   ;;  %v9224_v44 = vcombine.low %v9216_v59, %v9223_v30  ;;  %v8417_v24 = vrot.slane %v15097_v38, %v13061_v23  ;;  %v8424_v13 = vrot.slane %v15107_v29, %v13061_v23  ;;  %12368 = vmatprep.subr.bf16.mxu0 %v12367_v51  ;;  %v11684_v30 = vld [vmem:[#allocation6 + $0x728] sm:$0xff]  ;;  %v11690_v39 = vld [vmem:[#allocation6 + $0x758] sm:$0xff] }
 0x2a4   :  { %v5714_v17 = vrot.slane %v18577_v62, %v13055_v7  ;;  %v5721_v21 = vrot.slane %v18577_v62, %v13058_v18  ;;  %18579 = vst [vmem:[#allocation72_spill] sm:$0xff] %v16077_v10  ;;  %12560 = vmatprep.subr.bf16.mxu1 %v12559_v22  ;;  %v12369_v2 = vpack.c.bf16 %v11485_v14, %v11479_v45  ;;  %v16092_v14 = vpop.permute.xlu1 %9939 }
 0x2a5   :  { %v12561_v59 = vpack.c.bf16 %v11677_v49, %v11671_v6  ;;  %v16079_v38 = vcombine.low %v5728_v1, %v5735_v11  ;;  %10317 = vperm.xlu0 %12770, %v9224_v44   ;;  %v7575_v29 = vcombine.low %v7567_v4, %v7574_v41  ;;  %v8655_v40 = vrot.slane %v15372_v31, %v13061_v23  ;;  %v18581_v11 = vld [vmem:[#allocation98_spill] sm:$0xff] }
 0x2a6   :  { %v8662_v51 = vrot.slane %v15374_v52, %v13061_v23  ;;  %v16085_v9 = vcombine.low %v5742_v56, %v5749_v12  ;;  %v16087_v62 = vcombine.low %v5700_v61, %v5707_v27  ;;  %v16090_v22 = vsub.s32 %v10478_v48, %v18496_v58  ;;  %18580 = vst [vmem:[#allocation46_spill] sm:$0xff] %v16092_v14  ;;  %v18582_v52 = vld [vmem:[#allocation133_spill] sm:$0xff]  ;;  %v16104_v56 = vpop.permute.xlu0 %9972  ;;  %v11491_v12 = vld [vmem:[#allocation6 + $0x120] sm:$0xff] }
 0x2a7   :  { %v12371_v45 = vpack.c.bf16 %v11498_v55, %v11492_v19  ;;  %10026 = vperm.xlu1 %12771, %v7575_v29   ;;  %v8425_v1 = vcombine.low %v8417_v24, %v8424_v13  ;;  %v8961_v4 = vrot.slane %v18581_v11, %v13061_v23  ;;  %v8968_v31 = vrot.slane %v15743_v46, %v13061_v23  ;;  %v11497_v44 = vld [vmem:[#allocation6 + $0x150] sm:$0xff]  ;;  %v11683_v24 = vld [vmem:[#allocation6 + $0x720] sm:$0xff]  ;;  %v11702_v11 = vld [vmem:[#allocation6 + $0x7b8] sm:$0xff] }
 0x2a8   :  { %v12563_v41 = vpack.c.bf16 %v11690_v39, %v11684_v30  ;;  %v5784_v6 = vrot.slane %v18582_v52, %v13047_v60  ;;  %v5791_v49 = vrot.slane %v18582_v52, %v13050_v26  ;;  %v16102_v48 = vcombine.low %v5714_v17, %v5721_v21  ;;  %18583 = vst [vmem:[#allocation98_spill] sm:$0xff] %v16104_v56  ;;  %v11689_v13 = vld [vmem:[#allocation6 + $0x750] sm:$0xff]  ;;  %v18584_v17 = vld [vmem:[#allocation127_spill] sm:$0xff]  ;;  %v16120_v30 = vpop.permute.xlu1 %9945 }
 0x2a9   :  { %12370 = vmatpush1.bf16.xpose.msra.mxu0 %v12369_v2  ;;  %12562 = vmatpush1.bf16.xpose.msra.mxu1 %v12561_v59  ;;  %v8663_v61 = vcombine.low %v8655_v40, %v8662_v51  ;;  %v9199_v27 = vrot.slane %v15900_v63, %v13061_v23  ;;  %v9206_v46 = vrot.slane %v15902_v25, %v13061_v23  ;;  %v11504_v63 = vld [vmem:[#allocation6 + $0x188] sm:$0xff]  ;;  %v11510_v59 = vld [vmem:[#allocation6 + $0x1b8] sm:$0xff] }
 0x2aa   :  { %10176 = vperm.xlu0 %12770, %v8425_v1   ;;  %12372 = vmatprep.subr.bf16.mxu0 %v12371_v45  ;;  %v5798_v19 = vrot.slane %v18582_v52, %v13055_v7  ;;  %v5805_v55 = vrot.slane %v18582_v52, %v13058_v18  ;;  %v5756_v21 = vrot.slane %v18584_v17, %v13047_v60  ;;  %v18586_v29 = vld [vmem:[#allocation19_spill] sm:$0xff]  ;;  %v11696_v1 = vld [vmem:[#allocation6 + $0x788] sm:$0xff]  ;;  %v16130_v56 = vpop.permute.xlu0 %9978 }
 0x2ab   :  { %v5763_v2 = vrot.slane %v18584_v17, %v13050_v26  ;;  %12564 = vmatprep.subr.bf16.mxu1 %v12563_v41  ;;  %v5770_v25 = vrot.slane %v18584_v17, %v13055_v7  ;;  %18585 = vst [vmem:[#allocation133_spill] sm:$0xff] %v16120_v30  ;;  %10218 = vperm.xlu1 %12771, %v8663_v61   ;;  %v18587_v51 = vld [vmem:[#allocation91_spill] sm:$0xff]  ;;  %18588 = vst [vmem:[#allocation127_spill] sm:$0xff] %v16130_v56 }
 0x2ac   :  { %v8969_v39 = vcombine.low %v8961_v4, %v8968_v31  ;;  %v7618_v40 = vrot.slane %v18586_v29, %v13061_v23  ;;  %v7625_v45 = vrot.slane %v18587_v51, %v13061_v23  ;;  %v16126_v52 = vcombine.low %v5784_v6, %v5791_v49  ;;  %v18589_v4 = vld [vmem:[#allocation128_spill] sm:$0xff]  ;;  %v18591_v6 = vld [vmem:[#allocation170_spill] sm:$0xff] }
 0x2ad   :  { %v5777_v41 = vrot.slane %v18584_v17, %v13058_v18  ;;  %v12373_v10 = vpack.c.bf16 %v11497_v44, %v11491_v12  ;;  %v12565_v14 = vpack.c.bf16 %v11689_v13, %v11683_v24  ;;  %v9207_v61 = vcombine.low %v9199_v27, %v9206_v46  ;;  %v18590_v29 = vld [vmem:[#allocation132_spill] sm:$0xff]  ;;  %v16144_v44 = vpop.permute.xlu1 %9951  ;;  %v18593_v46 = vld [vmem:[#allocation73_spill] sm:$0xff] }
 0x2ae   :  { %10272 = vperm.xlu0 %12770, %v8969_v39   ;;  %v8400_v31 = vrot.slane %v18589_v4, %v13061_v23  ;;  %v8407_v30 = vrot.slane %v18590_v29, %v13061_v23  ;;  %v12375_v51 = vpack.c.bf16 %v11510_v59, %v11504_v63  ;;  %v16136_v15 = vcombine.low %v5798_v19, %v5805_v55  ;;  %v18594_v13 = vld [vmem:[#allocation109_spill] sm:$0xff]  ;;  %v16157_v59 = vpop.permute.xlu0 %9984  ;;  %v11503_v39 = vld [vmem:[#allocation6 + $0x180] sm:$0xff] }
 0x2af   :  { %v5840_v49 = vrot.slane %v18591_v6, %v13047_v60  ;;  %v16140_v57 = vcombine.low %v5756_v21, %v5763_v2  ;;  %v12567_v17 = vpack.c.bf16 %v11702_v11, %v11696_v1  ;;  %v5847_v12 = vrot.slane %v18591_v6, %v13050_v26  ;;  %18592 = vst [vmem:[#allocation19_spill] sm:$0xff] %v16144_v44  ;;  %v11509_v11 = vld [vmem:[#allocation6 + $0x1b0] sm:$0xff] }
 0x2b0   :  { %10314 = vperm.xlu1 %12771, %v9207_v61   ;;  %v7626_v27 = vcombine.low %v7618_v40, %v7625_v45  ;;  %v8706_v24 = vrot.slane %v18593_v46, %v13061_v23  ;;  %v8713_v19 = vrot.slane %v18594_v13, %v13061_v23  ;;  %v5854_v55 = vrot.slane %v18591_v6, %v13055_v7  ;;  %v11695_v61 = vld [vmem:[#allocation6 + $0x780] sm:$0xff]  ;;  %v11708_v46 = vld [vmem:[#allocation6 + $0x7e8] sm:$0xff]  ;;  %v11714_v13 = vld [vmem:[#allocation6 + $0x818] sm:$0xff] }
 0x2b1   :  { %v5861_v21 = vrot.slane %v18591_v6, %v13058_v18  ;;  %v16154_v2 = vcombine.low %v5770_v25, %v5777_v41  ;;  %v10485_v63 = vadd.s32 4294967232, %v15537_v43  ;;  %18595 = vst [vmem:[#allocation91_spill] sm:$0xff] %v16157_v59  ;;  %12374 = vmatpush1.bf16.xpose.msra.mxu0 %v12373_v10  ;;  %12566 = vmatpush1.bf16.xpose.msra.mxu1 %v12565_v14  ;;  %v11701_v25 = vld [vmem:[#allocation6 + $0x7b0] sm:$0xff]  ;;  %v16173_v29 = vpop.permute.xlu1 %9957 }
 0x2b2   :  { %10035 = vperm.xlu0 %12770, %v7626_v27   ;;  %v8408_v40 = vcombine.low %v8400_v31, %v8407_v30  ;;  %v8944_v45 = vrot.slane %v15745_v42, %v13061_v23  ;;  %v8951_v1 = vrot.slane %v15747_v8, %v13061_v23  ;;  %12376 = vmatprep.subr.bf16.mxu0 %v12375_v51  ;;  %v18596_v41 = vld [vmem:[#allocation141_spill] sm:$0xff]  ;;  %v11522_v31 = vld [vmem:[#allocation6 + $0x218] sm:$0xff] }
 0x2b3   :  { %v5812_v4 = vrot.slane %v18596_v41, %v13047_v60  ;;  %v5819_v10 = vrot.slane %v18596_v41, %v13050_v26  ;;  %v5826_v14 = vrot.slane %v18596_v41, %v13055_v7  ;;  %v5833_v30 = vrot.slane %v18596_v41, %v13058_v18  ;;  %12568 = vmatprep.subr.bf16.mxu1 %v12567_v17  ;;  %v11516_v42 = vld [vmem:[#allocation6 + $0x1e8] sm:$0xff]  ;;  %v16184_v41 = vpop.permute.xlu0 %9990 }
 0x2b4   :  { %v16171_v8 = vcombine.low %v5840_v49, %v5847_v12  ;;  %18597 = vst [vmem:[#allocation128_spill] sm:$0xff] %v16173_v29  ;;  %10173 = vperm.xlu1 %12771, %v8408_v40   ;;  %v8714_v51 = vcombine.low %v8706_v24, %v8713_v19  ;;  %v9250_v6 = vrot.slane %v16021_v34, %v13061_v23  ;;  %18598 = vst [vmem:[#allocation132_spill] sm:$0xff] %v16184_v41  ;;  %v18599_v24 = vld [vmem:[#allocation142_spill] sm:$0xff]  ;;  %v18600_v34 = vld [vmem:[#allocation144_spill] sm:$0xff] }
 0x2b5   :  { %v9257_v27 = vrot.slane %v16023_v0, %v13061_v23  ;;  %v16179_v59 = vcombine.low %v5854_v55, %v5861_v21  ;;  %v16182_v17 = vsub.s32 %v10485_v63, %v18496_v58  ;;  %v12377_v49 = vpack.c.bf16 %v11509_v11, %v11503_v39  ;;  %v18601_v29 = vld [vmem:[#allocation49_spill] sm:$0xff] }
 0x2b6   :  { %v12569_v12 = vpack.c.bf16 %v11701_v25, %v11695_v61  ;;  %10227 = vperm.xlu0 %12770, %v8714_v51   ;;  %v8952_v40 = vcombine.low %v8944_v45, %v8951_v1  ;;  %v7601_v19 = vrot.slane %v18599_v24, %v13061_v23  ;;  %v7608_v56 = vrot.slane %v18600_v34, %v13061_v23  ;;  %v16198_v1 = vpop.permute.xlu1 %9963  ;;  %v18603_v61 = vld [vmem:[#allocation45_spill] sm:$0xff]  ;;  %v18605_v34 = vld [vmem:[#allocation171_spill] sm:$0xff] }
 0x2b7   :  { %v12379_v0 = vpack.c.bf16 %v11522_v31, %v11516_v42  ;;  %v5896_v55 = vrot.slane %v18601_v29, %v13047_v60  ;;  %v5903_v21 = vrot.slane %v18601_v29, %v13050_v26  ;;  %v5910_v63 = vrot.slane %v18601_v29, %v13055_v7  ;;  %18602 = vst [vmem:[#allocation170_spill] sm:$0xff] %v16198_v1  ;;  %v18604_v42 = vld [vmem:[#allocation47_spill] sm:$0xff]  ;;  %v18612_v41 = vld [vmem:[#allocation53_spill] sm:$0xff] }
 0x2b8   :  { %v12571_v39 = vpack.c.bf16 %v11714_v13, %v11708_v46  ;;  %v5917_v45 = vrot.slane %v18601_v29, %v13058_v18  ;;  %10269 = vperm.xlu1 %12771, %v8952_v40   ;;  %v9258_v11 = vcombine.low %v9250_v6, %v9257_v27  ;;  %v8451_v25 = vrot.slane %v18603_v61, %v13061_v23  ;;  %v16210_v13 = vpop.permute.xlu0 %9999  ;;  %v11515_v29 = vld [vmem:[#allocation6 + $0x1e0] sm:$0xff]  ;;  %v18607_v27 = vld [vmem:[#allocation129_spill] sm:$0xff]  ;;  %v18608_v61 = vld [vmem:[#allocation86_spill] sm:$0xff] }
 0x2b9   :  { %v8458_v31 = vrot.slane %v18604_v42, %v13061_v23  ;;  %v16204_v51 = vcombine.low %v5812_v4, %v5819_v10  ;;  %v16206_v24 = vcombine.low %v5826_v14, %v5833_v30  ;;  %18606 = vst [vmem:[#allocation73_spill] sm:$0xff] %v16210_v13  ;;  %12378 = vmatpush1.bf16.xpose.msra.mxu0 %v12377_v49  ;;  %v11521_v4 = vld [vmem:[#allocation6 + $0x210] sm:$0xff]  ;;  %v11707_v10 = vld [vmem:[#allocation6 + $0x7e0] sm:$0xff]  ;;  %v11726_v13 = vld [vmem:[#allocation6 + $0x878] sm:$0xff] }
 0x2ba   :  { %12570 = vmatpush1.bf16.xpose.msra.mxu1 %v12569_v12  ;;  %10323 = vperm.xlu0 %12770, %v9258_v11   ;;  %v7609_v6 = vcombine.low %v7601_v19, %v7608_v56  ;;  %v8689_v40 = vrot.slane %v18607_v27, %v13061_v23  ;;  %v8696_v42 = vrot.slane %v18608_v61, %v13061_v23  ;;  %v11713_v14 = vld [vmem:[#allocation6 + $0x810] sm:$0xff]  ;;  %v11528_v12 = vld [vmem:[#allocation6 + $0x248] sm:$0xff]  ;;  %v11534_v19 = vld [vmem:[#allocation6 + $0x278] sm:$0xff] }
 0x2bb   :  { %12380 = vmatprep.subr.bf16.mxu0 %v12379_v0  ;;  %v16216_v30 = vcombine.low %v5896_v55, %v5903_v21  ;;  %v5875_v46 = vrot.slane %v18605_v34, %v13050_v26  ;;  %v5882_v49 = vrot.slane %v18605_v34, %v13055_v7  ;;  %v5889_v56 = vrot.slane %v18605_v34, %v13058_v18  ;;  %v16226_v0 = vpop.permute.xlu1 %9969  ;;  %v11720_v61 = vld [vmem:[#allocation6 + $0x848] sm:$0xff] }
 0x2bc   :  { %12572 = vmatprep.subr.bf16.mxu1 %v12571_v39  ;;  %v16224_v11 = vcombine.low %v5910_v63, %v5917_v45  ;;  %18611 = vst [vmem:[#allocation142_spill] sm:$0xff] %v16226_v0  ;;  %10032 = vperm.xlu1 %12771, %v7609_v6   ;;  %v8459_v27 = vcombine.low %v8451_v25, %v8458_v31  ;;  %v10499_v39 = vadd.s32 4294967216, %v15537_v43 }
 0x2bd   :  { %18609 = vst [vmem:[#allocation109_spill] sm:$0xff] %v16216_v30  ;;  %v8995_v55 = vrot.slane %v15759_v35, %v13061_v23  ;;  %v9002_v21 = vrot.slane %v15761_v16, %v13061_v23  ;;  %v5952_v1 = vrot.slane %v18612_v41, %v13047_v60  ;;  %v16235_v30 = vpop.permute.xlu0 %10143  ;;  %v12381_v63 = vpack.c.bf16 %v11521_v4, %v11515_v29  ;;  %v18614_v4 = vld [vmem:[#allocation146_spill] sm:$0xff] }
 0x2be   :  { %18610 = vst [vmem:[#allocation141_spill] sm:$0xff] %v16224_v11  ;;  %18613 = vst [vmem:[#allocation144_spill] sm:$0xff] %v16235_v30  ;;  %v12573_v45 = vpack.c.bf16 %v11713_v14, %v11707_v10  ;;  %10182 = vperm.xlu0 %12770, %v8459_v27   ;;  %v8697_v6 = vcombine.low %v8689_v40, %v8696_v42  ;;  %v9233_v25 = vrot.slane %v15917_v32, %v13061_v23  ;;  %v18617_v14 = vld [vmem:[#allocation151_spill] sm:$0xff] }
 0x2bf   :  { %v9240_v35 = vrot.slane %v15919_v28, %v13061_v23  ;;  %v12383_v16 = vpack.c.bf16 %v11534_v19, %v11528_v12  ;;  %v5959_v31 = vrot.slane %v18612_v41, %v13050_v26  ;;  %v5966_v0 = vrot.slane %v18612_v41, %v13055_v7  ;;  %v16249_v42 = vpop.permute.xlu1 %9975  ;;  %v18616_v28 = vld [vmem:[#allocation150_spill] sm:$0xff]  ;;  %v11719_v11 = vld [vmem:[#allocation6 + $0x840] sm:$0xff] }
 0x2c0   :  { %v5973_v30 = vrot.slane %v18612_v41, %v13058_v18  ;;  %v12575_v29 = vpack.c.bf16 %v11726_v13, %v11720_v61  ;;  %v5924_v40 = vrot.slane %v18614_v4, %v13047_v60  ;;  %18615 = vst [vmem:[#allocation49_spill] sm:$0xff] %v16249_v42  ;;  %10224 = vperm.xlu1 %12771, %v8697_v6   ;;  %v18619_v61 = vld [vmem:[#allocation136_spill] sm:$0xff]  ;;  %v11533_v42 = vld [vmem:[#allocation6 + $0x270] sm:$0xff] }
 0x2c1   :  { %v9003_v32 = vcombine.low %v8995_v55, %v9002_v21  ;;  %v7652_v10 = vrot.slane %v18616_v28, %v13061_v23  ;;  %v7659_v12 = vrot.slane %v18617_v14, %v13061_v23  ;;  %v5931_v19 = vrot.slane %v18614_v4, %v13050_v26  ;;  %v16261_v27 = vpop.permute.xlu0 %10191  ;;  %12382 = vmatpush1.bf16.xpose.msra.mxu0 %v12381_v63  ;;  %v11527_v55 = vld [vmem:[#allocation6 + $0x240] sm:$0xff] }
 0x2c2   :  { %v5938_v41 = vrot.slane %v18614_v4, %v13055_v7  ;;  %v5945_v13 = vrot.slane %v18614_v4, %v13058_v18  ;;  %18618 = vst [vmem:[#allocation45_spill] sm:$0xff] %v16261_v27  ;;  %12574 = vmatpush1.bf16.xpose.msra.mxu1 %v12573_v45  ;;  %v9241_v21 = vcombine.low %v9233_v25, %v9240_v35  ;;  %v18620_v28 = vld [vmem:[#allocation68_spill] sm:$0xff] }
 0x2c3   :  { %10278 = vperm.xlu0 %12770, %v9003_v32   ;;  %v8434_v6 = vrot.slane %v18619_v61, %v13061_v23  ;;  %v8441_v14 = vrot.slane %v18620_v28, %v13061_v23  ;;  %12384 = vmatprep.subr.bf16.mxu0 %v12383_v16  ;;  %v16267_v44 = vcombine.low %v5952_v1, %v5959_v31  ;;  %v11540_v35 = vld [vmem:[#allocation6 + $0x2a8] sm:$0xff]  ;;  %v11546_v32 = vld [vmem:[#allocation6 + $0x2d8] sm:$0xff]  ;;  %v16281_v16 = vpop.permute.xlu1 %9981 }
 0x2c4   :  { %v16269_v4 = vcombine.low %v5966_v0, %v5973_v30  ;;  %v18623_v63 = vrot.slane %v18605_v34, %v13047_v60  ;;  %v16276_v25 = vcombine.low %v5882_v49, %v5889_v56  ;;  %12576 = vmatprep.subr.bf16.mxu1 %v12575_v29  ;;  %v16279_v61 = vsub.s32 %v10499_v39, %v18496_v58  ;;  %v18626_v30 = vld [vmem:[#allocation178_spill] sm:$0xff]  ;;  %v18627_v31 = vld [vmem:[#allocation179_spill] sm:$0xff] }
 0x2c5   :  { %18621 = vst [vmem:[#allocation47_spill] sm:$0xff] %v16267_v44  ;;  %18625 = vst [vmem:[#allocation86_spill] sm:$0xff] %v16281_v16  ;;  %10320 = vperm.xlu1 %12771, %v9241_v21   ;;  %v7660_v1 = vcombine.low %v7652_v10, %v7659_v12  ;;  %v8740_v0 = vrot.slane %v18626_v30, %v13061_v23  ;;  %v8747_v34 = vrot.slane %v18627_v31, %v13061_v23  ;;  %v11738_v28 = vld [vmem:[#allocation6 + $0x8d8] sm:$0xff]  ;;  %v16291_v29 = vpop.permute.xlu0 %10239 }
 0x2c6   :  { %18622 = vst [vmem:[#allocation171_spill] sm:$0xff] %v16269_v4  ;;  %v16274_v45 = vcombine.low %v18623_v63, %v5875_v46  ;;  %18624 = vst [vmem:[#allocation129_spill] sm:$0xff] %v16279_v61  ;;  %v11732_v46 = vld [vmem:[#allocation6 + $0x8a8] sm:$0xff]  ;;  %v16287_v49 = vcombine.low %v5924_v40, %v5931_v19  ;;  %v16289_v56 = vcombine.low %v5938_v41, %v5945_v13  ;;  %v18631_v30 = vld [vmem:[#allocation63_spill] sm:$0xff] }
 0x2c7   :  { %18630 = vst [vmem:[#allocation150_spill] sm:$0xff] %v16291_v29  ;;  %v12385_v39 = vpack.c.bf16 %v11533_v42, %v11527_v55  ;;  %v12577_v63 = vpack.c.bf16 %v11725_v54, %v11719_v11  ;;  %10041 = vperm.xlu0 %12770, %v7660_v1   ;;  %v8442_v27 = vcombine.low %v8434_v6, %v8441_v14  ;;  %v16305_v11 = vpop.permute.xlu1 %9987  ;;  %v18633_v13 = vld [vmem:[#allocation44_spill] sm:$0xff] }
 0x2c8   :  { %18628 = vst [vmem:[#allocation53_spill] sm:$0xff] %v16287_v49  ;;  %18629 = vst [vmem:[#allocation146_spill] sm:$0xff] %v16289_v56  ;;  %v8978_v10 = vrot.slane %v15767_v53, %v13061_v23  ;;  %v8985_v12 = vrot.slane %v15791_v20, %v13061_v23  ;;  %v12387_v21 = vpack.c.bf16 %v11546_v32, %v11540_v35  ;;  %v11744_v29 = vld [vmem:[#allocation6 + $0x908] sm:$0xff] }
 0x2c9   :  { %v6008_v31 = vrot.slane %v18631_v30, %v13047_v60  ;;  %v6015_v40 = vrot.slane %v18631_v30, %v13050_v26  ;;  %v6022_v19 = vrot.slane %v18631_v30, %v13055_v7  ;;  %v12579_v42 = vpack.c.bf16 %v11738_v28, %v11732_v46  ;;  %18632 = vst [vmem:[#allocation151_spill] sm:$0xff] %v16305_v11  ;;  %v16317_v35 = vpop.permute.xlu0 %10287  ;;  %v11731_v46 = vld [vmem:[#allocation6 + $0x8a0] sm:$0xff]  ;;  %v11737_v28 = vld [vmem:[#allocation6 + $0x8d0] sm:$0xff] }
 0x2ca   :  { %v6029_v54 = vrot.slane %v18631_v30, %v13058_v18  ;;  %10179 = vperm.xlu1 %12771, %v8442_v27   ;;  %v8748_v53 = vcombine.low %v8740_v0, %v8747_v34  ;;  %v9284_v20 = vrot.slane %v16035_v33, %v13061_v23  ;;  %v9291_v41 = vrot.slane %v16040_v37, %v13061_v23  ;;  %v11539_v27 = vld [vmem:[#allocation6 + $0x2a0] sm:$0xff]  ;;  %v18635_v33 = vld [vmem:[#allocation54_spill] sm:$0xff]  ;;  %v18636_v37 = vld [vmem:[#allocation77_spill] sm:$0xff] }
 0x2cb   :  { %v5980_v55 = vrot.slane %v18633_v13, %v13047_v60  ;;  %v5987_v6 = vrot.slane %v18633_v13, %v13050_v26  ;;  %v5994_v14 = vrot.slane %v18633_v13, %v13055_v7  ;;  %18634 = vst [vmem:[#allocation136_spill] sm:$0xff] %v16317_v35  ;;  %12386 = vmatpush1.bf16.xpose.msra.mxu0 %v12385_v39  ;;  %v11545_v34 = vld [vmem:[#allocation6 + $0x2d0] sm:$0xff]  ;;  %v18638_v11 = vld [vmem:[#allocation148_spill] sm:$0xff] }
 0x2cc   :  { %12578 = vmatpush1.bf16.xpose.msra.mxu1 %v12577_v63  ;;  %10233 = vperm.xlu0 %12770, %v8748_v53   ;;  %v8986_v32 = vcombine.low %v8978_v10, %v8985_v12  ;;  %v7635_v1 = vrot.slane %v18635_v33, %v13061_v23  ;;  %v7642_v0 = vrot.slane %v18636_v37, %v13061_v23  ;;  %v10513_v63 = vadd.s32 4294967200, %v15537_v43  ;;  %v11552_v10 = vld [vmem:[#allocation6 + $0x308] sm:$0xff]  ;;  %v11558_v12 = vld [vmem:[#allocation6 + $0x338] sm:$0xff] }
 0x2cd   :  { %12388 = vmatprep.subr.bf16.mxu0 %v12387_v21  ;;  %v16323_v30 = vcombine.low %v6008_v31, %v6015_v40  ;;  %v6064_v35 = vrot.slane %v18638_v11, %v13047_v60  ;;  %v6001_v39 = vrot.slane %v18633_v13, %v13058_v18  ;;  %12580 = vmatprep.subr.bf16.mxu1 %v12579_v42  ;;  %v16332_v21 = vpop.permute.xlu1 %9993  ;;  %v18640_v31 = vld [vmem:[#allocation56_spill] sm:$0xff]  ;;  %v18641_v37 = vld [vmem:[#allocation58_spill] sm:$0xff]  ;;  %v16342_v44 = vpop.permute.xlu0 %10005 }
 0x2ce   :  { %v6071_v53 = vrot.slane %v18638_v11, %v13050_v26  ;;  %18639 = vst [vmem:[#allocation178_spill] sm:$0xff] %v16332_v21  ;;  %10275 = vperm.xlu1 %12771, %v8986_v32   ;;  %v9292_v33 = vcombine.low %v9284_v20, %v9291_v41  ;;  %v7669_v40 = vrot.slane %v18640_v31, %v13061_v23  ;;  %v11750_v13 = vld [vmem:[#allocation6 + $0x938] sm:$0xff]  ;;  %18642 = vst [vmem:[#allocation179_spill] sm:$0xff] %v16342_v44  ;;  %v18645_v49 = vld [vmem:[#allocation76_spill] sm:$0xff] }
 0x2cf   :  { %18637 = vst [vmem:[#allocation68_spill] sm:$0xff] %v16323_v30  ;;  %v7676_v30 = vrot.slane %v18641_v37, %v13061_v23  ;;  %v6078_v42 = vrot.slane %v18638_v11, %v13055_v7  ;;  %v6085_v4 = vrot.slane %v18638_v11, %v13058_v18  ;;  %v12389_v16 = vpack.c.bf16 %v11545_v34, %v11539_v27  ;;  %v18643_v41 = vld [vmem:[#allocation159_spill] sm:$0xff]  ;;  %v18644_v31 = vld [vmem:[#allocation50_spill] sm:$0xff]  ;;  %v18682_v44 = vld [vmem:[#allocation153_spill] sm:$0xff] }
 0x2d0   :  { %v12581_v21 = vpack.c.bf16 %v11737_v28, %v11731_v46  ;;  %10329 = vperm.xlu0 %12770, %v9292_v33   ;;  %v7643_v20 = vcombine.low %v7635_v1, %v7642_v0  ;;  %v8723_v32 = vrot.slane %v18643_v41, %v13061_v23  ;;  %v8730_v37 = vrot.slane %v18644_v31, %v13061_v23  ;;  %v18647_v46 = vld [vmem:[#allocation17_spill] sm:$0xff] }
 0x2d1   :  { %v12391_v56 = vpack.c.bf16 %v11558_v12, %v11552_v10  ;;  %v6036_v50 = vrot.slane %v18645_v49, %v13047_v60  ;;  %v6043_v3 = vrot.slane %v18645_v49, %v13050_v26  ;;  %v6050_v11 = vrot.slane %v18645_v49, %v13055_v7  ;;  %v16356_v0 = vpop.permute.xlu1 %10002  ;;  %v18648_v10 = vld [vmem:[#allocation134_spill] sm:$0xff] }
 0x2d2   :  { %v12583_v27 = vpack.c.bf16 %v11750_v13, %v11744_v29  ;;  %v6057_v1 = vrot.slane %v18645_v49, %v13058_v18  ;;  %18646 = vst [vmem:[#allocation63_spill] sm:$0xff] %v16356_v0  ;;  %10038 = vperm.xlu1 %12771, %v7643_v20   ;;  %v7677_v34 = vcombine.low %v7669_v40, %v7676_v30  ;;  %v16368_v29 = vpop.permute.xlu0 %10197  ;;  %v11551_v49 = vld [vmem:[#allocation6 + $0x300] sm:$0xff]  ;;  %v18653_v40 = vld [vmem:[#allocation117_spill] sm:$0xff] }
 0x2d3   :  { %v8757_v28 = vrot.slane %v18647_v46, %v13061_v23  ;;  %v8764_v12 = vrot.slane %v18648_v10, %v13061_v23  ;;  %v16362_v33 = vcombine.low %v6022_v19, %v6029_v54  ;;  %v16364_v41 = vcombine.low %v5980_v55, %v5987_v6  ;;  %18652 = vst [vmem:[#allocation148_spill] sm:$0xff] %v16368_v29  ;;  %v11557_v19 = vld [vmem:[#allocation6 + $0x330] sm:$0xff]  ;;  %v11743_v54 = vld [vmem:[#allocation6 + $0x900] sm:$0xff]  ;;  %v11656_v0 = vld [vmem:[#allocation6 + $0x648] sm:$0xff] }
 0x2d4   :  { %v16366_v31 = vcombine.low %v5994_v14, %v6001_v39  ;;  %12390 = vmatpush1.bf16.xpose.msra.mxu0 %v12389_v16  ;;  %12582 = vmatpush1.bf16.xpose.msra.mxu1 %v12581_v21  ;;  %v8731_v13 = vcombine.low %v8723_v32, %v8730_v37  ;;  %v9267_v30 = vrot.slane %v15965_v36, %v13061_v23  ;;  %v11749_v55 = vld [vmem:[#allocation6 + $0x930] sm:$0xff]  ;;  %v11564_v21 = vld [vmem:[#allocation6 + $0x368] sm:$0xff]  ;;  %v11570_v32 = vld [vmem:[#allocation6 + $0x398] sm:$0xff] }
 0x2d5   :  { %18649 = vst [vmem:[#allocation44_spill] sm:$0xff] %v16362_v33  ;;  %18650 = vst [vmem:[#allocation54_spill] sm:$0xff] %v16364_v41  ;;  %10044 = vperm.xlu0 %12770, %v7677_v34   ;;  %v9274_v20 = vrot.slane %v18653_v40, %v13061_v23  ;;  %12392 = vmatprep.subr.bf16.mxu0 %v12391_v56  ;;  %v16374_v6 = vcombine.low %v6064_v35, %v6071_v53  ;;  %v16385_v37 = vpop.permute.xlu1 %10146  ;;  %v18662_v46 = vld [vmem:[#allocation172_spill] sm:$0xff]  ;;  %v18664_v40 = vld [vmem:[#allocation174_spill] sm:$0xff] }
 0x2d6   :  { %18651 = vst [vmem:[#allocation77_spill] sm:$0xff] %v16366_v31  ;;  %v16376_v14 = vcombine.low %v6078_v42, %v6085_v4  ;;  %v16378_v39 = vcombine.low %v6036_v50, %v6043_v3  ;;  %v16381_v16 = vsub.s32 %v10513_v63, %v18496_v58  ;;  %12584 = vmatprep.subr.bf16.mxu1 %v12583_v27  ;;  %18659 = vst [vmem:[#allocation17_spill] sm:$0xff] %v16385_v37  ;;  %v11756_v3 = vld [vmem:[#allocation6 + $0x968] sm:$0xff]  ;;  %v11762_v50 = vld [vmem:[#allocation6 + $0x998] sm:$0xff] }
 0x2d7   :  { %18654 = vst [vmem:[#allocation56_spill] sm:$0xff] %v16374_v6  ;;  %v16383_v36 = vcombine.low %v6050_v11, %v6057_v1  ;;  %10230 = vperm.xlu1 %12771, %v8731_v13   ;;  %v8765_v56 = vcombine.low %v8757_v28, %v8764_v12  ;;  %v9301_v35 = vrot.slane %v16031_v5, %v13061_v23  ;;  %v18660_v63 = vld [vmem:[#allocation55_spill] sm:$0xff]  ;;  %v16395_v11 = vpop.permute.xlu0 %10293  ;;  %v18663_v28 = vld [vmem:[#allocation173_spill] sm:$0xff]  ;;  %v18751_v31 = vld [vmem:[#allocation18_spill] sm:$0xff] }
 0x2d8   :  { %18655 = vst [vmem:[#allocation58_spill] sm:$0xff] %v16376_v14  ;;  %18656 = vst [vmem:[#allocation159_spill] sm:$0xff] %v16378_v39  ;;  %v9308_v4 = vrot.slane %v16033_v47, %v13061_v23  ;;  %v6120_v53 = vrot.slane %v18660_v63, %v13047_v60  ;;  %v6127_v42 = vrot.slane %v18660_v63, %v13050_v26  ;;  %v11650_v33 = vld [vmem:[#allocation6 + $0x618] sm:$0xff] }
 0x2d9   :  { %18657 = vst [vmem:[#allocation50_spill] sm:$0xff] %v16381_v16  ;;  %18658 = vst [vmem:[#allocation76_spill] sm:$0xff] %v16383_v36  ;;  %v12393_v27 = vpack.c.bf16 %v11557_v19, %v11551_v49  ;;  %v12585_v1 = vpack.c.bf16 %v11749_v55, %v11743_v54  ;;  %10236 = vperm.xlu0 %12770, %v8765_v56   ;;  %v9275_v34 = vcombine.low %v9267_v30, %v9274_v20  ;;  %v16409_v20 = vpop.permute.xlu1 %10194  ;;  %v18666_v54 = vld [vmem:[#allocation59_spill] sm:$0xff] }
 0x2da   :  { %18661 = vst [vmem:[#allocation134_spill] sm:$0xff] %v16395_v11  ;;  %v8468_v5 = vrot.slane %v18662_v46, %v13061_v23  ;;  %v8475_v47 = vrot.slane %v18663_v28, %v13061_v23  ;;  %v12395_v10 = vpack.c.bf16 %v11570_v32, %v11564_v21  ;;  %v6134_v12 = vrot.slane %v18660_v63, %v13055_v7  ;;  %v18667_v21 = vld [vmem:[#allocation152_spill] sm:$0xff]  ;;  %v11774_v11 = vld [vmem:[#allocation6 + $0x9f8] sm:$0xff] }
 0x2db   :  { %v6141_v13 = vrot.slane %v18660_v63, %v13058_v18  ;;  %v6092_v14 = vrot.slane %v18664_v40, %v13047_v60  ;;  %v12587_v49 = vpack.c.bf16 %v11762_v50, %v11756_v3  ;;  %v6099_v30 = vrot.slane %v18664_v40, %v13050_v26  ;;  %18665 = vst [vmem:[#allocation117_spill] sm:$0xff] %v16409_v20  ;;  %v16421_v50 = vpop.permute.xlu0 %10152  ;;  %v18671_v28 = vld [vmem:[#allocation52_spill] sm:$0xff] }
 0x2dc   :  { %10326 = vperm.xlu1 %12771, %v9275_v34   ;;  %v9309_v19 = vcombine.low %v9301_v35, %v9308_v4  ;;  %v7703_v55 = vrot.slane %v18666_v54, %v13061_v23  ;;  %v7710_v32 = vrot.slane %v18667_v21, %v13061_v23  ;;  %v16415_v56 = vcombine.low %v6120_v53, %v6127_v42  ;;  %v11563_v34 = vld [vmem:[#allocation6 + $0x360] sm:$0xff]  ;;  %v18670_v4 = vld [vmem:[#allocation33_spill] sm:$0xff] }
 0x2dd   :  { %v6106_v63 = vrot.slane %v18664_v40, %v13055_v7  ;;  %v6113_v3 = vrot.slane %v18664_v40, %v13058_v18  ;;  %18669 = vst [vmem:[#allocation172_spill] sm:$0xff] %v16421_v50  ;;  %12394 = vmatpush1.bf16.xpose.msra.mxu0 %v12393_v27  ;;  %12586 = vmatpush1.bf16.xpose.msra.mxu1 %v12585_v1  ;;  %v11569_v42 = vld [vmem:[#allocation6 + $0x390] sm:$0xff]  ;;  %v11755_v54 = vld [vmem:[#allocation6 + $0x960] sm:$0xff]  ;;  %v11768_v50 = vld [vmem:[#allocation6 + $0x9c8] sm:$0xff] }
 0x2de   :  { %18668 = vst [vmem:[#allocation55_spill] sm:$0xff] %v16415_v56  ;;  %10332 = vperm.xlu0 %12770, %v9309_v19   ;;  %v8476_v35 = vcombine.low %v8468_v5, %v8475_v47  ;;  %v9012_v46 = vrot.slane %v18670_v4, %v13061_v23  ;;  %v9019_v53 = vrot.slane %v18671_v28, %v13061_v23  ;;  %v11761_v21 = vld [vmem:[#allocation6 + $0x990] sm:$0xff]  ;;  %v11576_v5 = vld [vmem:[#allocation6 + $0x3c8] sm:$0xff]  ;;  %v11582_v47 = vld [vmem:[#allocation6 + $0x3f8] sm:$0xff]  ;;  %v16437_v19 = vpop.permute.xlu1 %10242 }
 0x2df   :  { %12396 = vmatprep.subr.bf16.mxu0 %v12395_v10  ;;  %v16427_v56 = vcombine.low %v6134_v12, %v6141_v13  ;;  %v18673_v40 = vld [vmem:[#allocation149_spill] sm:$0xff]  ;;  %12588 = vmatprep.subr.bf16.mxu1 %v12587_v49  ;;  %18674 = vst [vmem:[#allocation174_spill] sm:$0xff] %v16437_v19  ;;  %v7711_v12 = vcombine.low %v7703_v55, %v7710_v32  ;;  %v18675_v13 = vld [vmem:[#allocation107_spill] sm:$0xff]  ;;  %v16447_v36 = vpop.permute.xlu0 %10248 }
 0x2e0   :  { %v6176_v6 = vrot.slane %v18673_v40, %v13047_v60  ;;  %v6183_v27 = vrot.slane %v18673_v40, %v13050_v26  ;;  %v6190_v1 = vrot.slane %v18673_v40, %v13055_v7  ;;  %v6197_v10 = vrot.slane %v18673_v40, %v13058_v18  ;;  %10185 = vperm.xlu1 %12771, %v8476_v35   ;;  %v18676_v28 = vld [vmem:[#allocation87_spill] sm:$0xff]  ;;  %v18681_v35 = vld [vmem:[#allocation124_spill] sm:$0xff] }
 0x2e1   :  { %18672 = vst [vmem:[#allocation173_spill] sm:$0xff] %v16427_v56  ;;  %v7975_v4 = vrot.slane %v18675_v13, %v13061_v23  ;;  %v7982_v56 = vrot.slane %v18676_v28, %v13061_v23  ;;  %v16443_v29 = vcombine.low %v6092_v14, %v6099_v30  ;;  %v16445_v49 = vcombine.low %v6106_v63, %v6113_v3  ;;  %v18680_v55 = vld [vmem:[#allocation39_spill] sm:$0xff] }
 0x2e2   :  { %18679 = vst [vmem:[#allocation33_spill] sm:$0xff] %v16447_v36  ;;  %v12397_v39 = vpack.c.bf16 %v11569_v42, %v11563_v34  ;;  %v12589_v40 = vpack.c.bf16 %v11761_v21, %v11755_v54  ;;  %10050 = vperm.xlu0 %12770, %v7711_v12   ;;  %v9020_v19 = vcombine.low %v9012_v46, %v9019_v53  ;;  %v10527_v30 = vadd.s32 4294967184, %v15537_v43  ;;  %v16456_v36 = vpop.permute.xlu1 %10290  ;;  %v11588_v12 = vld [vmem:[#allocation6 + $0x428] sm:$0xff] }
 0x2e3   :  { %18677 = vst [vmem:[#allocation59_spill] sm:$0xff] %v16443_v29  ;;  %18678 = vst [vmem:[#allocation152_spill] sm:$0xff] %v16445_v49  ;;  %v7397_v32 = vrot.slane %v18680_v55, %v13061_v23  ;;  %v7404_v13 = vrot.slane %v18681_v35, %v13061_v23  ;;  %v12399_v20 = vpack.c.bf16 %v11582_v47, %v11576_v5  ;;  %v11773_v5 = vld [vmem:[#allocation6 + $0x9f0] sm:$0xff]  ;;  %v18687_v47 = vld [vmem:[#allocation175_spill] sm:$0xff] }
 0x2e4   :  { %v9599_v28 = vcombine.low %v6176_v6, %v6183_v27  ;;  %v6148_v14 = vrot.slane %v18682_v44, %v13047_v60  ;;  %v12591_v63 = vpack.c.bf16 %v11774_v11, %v11768_v50  ;;  %v9600_v3 = vcombine.low %v6190_v1, %v6197_v10  ;;  %18683 = vst [vmem:[#allocation52_spill] sm:$0xff] %v16456_v36  ;;  %v16468_v11 = vpop.permute.xlu0 %10011  ;;  %v11581_v27 = vld [vmem:[#allocation6 + $0x3f0] sm:$0xff]  ;;  %v11767_v1 = vld [vmem:[#allocation6 + $0x9c0] sm:$0xff] }
 0x2e5   :  { %10281 = vperm.xlu1 %12771, %v9020_v19   ;;  %v7983_v34 = vcombine.low %v7975_v4, %v7982_v56  ;;  %v9335_v46 = vrot.slane %v16079_v38, %v13061_v23  ;;  %v9342_v53 = vrot.slane %v16085_v9, %v13061_v23  ;;  %v6155_v6 = vrot.slane %v18682_v44, %v13050_v26  ;;  %v11575_v56 = vld [vmem:[#allocation6 + $0x3c0] sm:$0xff]  ;;  %v18685_v38 = vld [vmem:[#allocation138_spill] sm:$0xff] }
 0x2e6   :  { %v6162_v42 = vrot.slane %v18682_v44, %v13055_v7  ;;  %v6169_v43 = vrot.slane %v18682_v44, %v13058_v18  ;;  %18684 = vst [vmem:[#allocation149_spill] sm:$0xff] %v16468_v11  ;;  %12398 = vmatpush1.bf16.xpose.msra.mxu0 %v12397_v39  ;;  %12590 = vmatpush1.bf16.xpose.msra.mxu1 %v12589_v40  ;;  %v18686_v9 = vld [vmem:[#allocation139_spill] sm:$0xff]  ;;  %v16485_v40 = vpop.permute.xlu1 %10149 }
 0x2e7   :  { %10098 = vperm.xlu0 %12770, %v7983_v34   ;;  %v7405_v50 = vcombine.low %v7397_v32, %v7404_v13  ;;  %v8485_v54 = vrot.slane %v18685_v38, %v13061_v23  ;;  %v8492_v21 = vrot.slane %v18686_v9, %v13061_v23  ;;  %12400 = vmatprep.subr.bf16.mxu0 %v12399_v20  ;;  %v11594_v4 = vld [vmem:[#allocation6 + $0x458] sm:$0xff]  ;;  %v11780_v13 = vld [vmem:[#allocation6 + $0xa28] sm:$0xff] }
 0x2e8   :  { %v6204_v44 = vrot.slane %v18687_v47, %v13047_v60  ;;  %v6211_v39 = vrot.slane %v18687_v47, %v13050_v26  ;;  %v6218_v10 = vrot.slane %v18687_v47, %v13055_v7  ;;  %v16481_v19 = vsub.s32 %v10527_v30, %v18496_v58  ;;  %12592 = vmatprep.subr.bf16.mxu1 %v12591_v63  ;;  %v11786_v34 = vld [vmem:[#allocation6 + $0xa58] sm:$0xff]  ;;  %v18689_v38 = vld [vmem:[#allocation13_spill] sm:$0xff]  ;;  %v16493_v9 = vpop.permute.xlu0 %10203 }
 0x2e9   :  { %v6225_v20 = vrot.slane %v18687_v47, %v13058_v18  ;;  %18688 = vst [vmem:[#allocation107_spill] sm:$0xff] %v16485_v40  ;;  %9996 = vperm.xlu1 %12771, %v7405_v50   ;;  %v9343_v55 = vcombine.low %v9335_v46, %v9342_v53  ;;  %v9607_v32 = vrot.slane %v9599_v28, %v13061_v23  ;;  %18690 = vst [vmem:[#allocation87_spill] sm:$0xff] %v16493_v9  ;;  %v18691_v46 = vld [vmem:[#allocation183_spill] sm:$0xff]  ;;  %v18692_v28 = vld [vmem:[#allocation184_spill] sm:$0xff] }
 0x2ea   :  { %v9614_v35 = vrot.slane %v9600_v3, %v13061_v23  ;;  %v6232_v30 = vrot.slane %v18689_v38, %v13047_v60  ;;  %v6239_v63 = vrot.slane %v18689_v38, %v13050_v26  ;;  %v12401_v58 = vpack.c.bf16 %v11581_v27, %v11575_v56  ;;  %v16503_v56 = vpop.permute.xlu1 %10245 }
 0x2eb   :  { %v12593_v47 = vpack.c.bf16 %v11773_v5, %v11767_v1  ;;  %10338 = vperm.xlu0 %12770, %v9343_v55   ;;  %v8493_v11 = vcombine.low %v8485_v54, %v8492_v21  ;;  %v9029_v53 = vrot.slane %v18691_v46, %v13061_v23  ;;  %v9036_v3 = vrot.slane %v18692_v28, %v13061_v23  ;;  %v18694_v21 = vld [vmem:[#allocation20_spill] sm:$0xff]  ;;  %v18695_v1 = vld [vmem:[#allocation22_spill] sm:$0xff] }
 0x2ec   :  { %v12403_v50 = vpack.c.bf16 %v11594_v4, %v11588_v12  ;;  %v6246_v49 = vrot.slane %v18689_v38, %v13055_v7  ;;  %v6253_v29 = vrot.slane %v18689_v38, %v13058_v18  ;;  %v9616_v40 = vcombine.low %v6204_v44, %v6211_v39  ;;  %18693 = vst [vmem:[#allocation39_spill] sm:$0xff] %v16503_v56  ;;  %v16515_v38 = vpop.permute.xlu0 %10299  ;;  %v11587_v44 = vld [vmem:[#allocation6 + $0x420] sm:$0xff]  ;;  %v11792_v28 = vld [vmem:[#allocation6 + $0xa88] sm:$0xff] }
 0x2ed   :  { %v12595_v36 = vpack.c.bf16 %v11786_v34, %v11780_v13  ;;  %v9617_v9 = vcombine.low %v6218_v10, %v6225_v20  ;;  %10188 = vperm.xlu1 %12771, %v8493_v11   ;;  %v9615_v54 = vcombine.low %v9607_v32, %v9614_v35  ;;  %v7992_v27 = vrot.slane %v18694_v21, %v13061_v23  ;;  %v18697_v39 = vld [vmem:[#allocation84_spill] sm:$0xff]  ;;  %v18698_v20 = vld [vmem:[#allocation65_spill] sm:$0xff] }
 0x2ee   :  { %v7999_v5 = vrot.slane %v18695_v1, %v13061_v23  ;;  %v16509_v12 = vcombine.low %v6232_v30, %v6239_v63  ;;  %v16511_v4 = vcombine.low %v6148_v14, %v6155_v6  ;;  %v16513_v55 = vcombine.low %v6162_v42, %v6169_v43  ;;  %18696 = vst [vmem:[#allocation124_spill] sm:$0xff] %v16515_v38  ;;  %v11593_v35 = vld [vmem:[#allocation6 + $0x450] sm:$0xff]  ;;  %v11779_v13 = vld [vmem:[#allocation6 + $0xa20] sm:$0xff]  ;;  %v11600_v30 = vld [vmem:[#allocation6 + $0x488] sm:$0xff]  ;;  %v16531_v46 = vpop.permute.xlu1 %10008 }
 0x2ef   :  { %12402 = vmatpush1.bf16.xpose.msra.mxu0 %v12401_v58  ;;  %12594 = vmatpush1.bf16.xpose.msra.mxu1 %v12593_v47  ;;  %v9037_v11 = vcombine.low %v9029_v53, %v9036_v3  ;;  %v7686_v10 = vrot.slane %v18697_v39, %v13061_v23  ;;  %v7693_v32 = vrot.slane %v18698_v20, %v13061_v23  ;;  %v11785_v14 = vld [vmem:[#allocation6 + $0xa50] sm:$0xff]  ;;  %v11606_v63 = vld [vmem:[#allocation6 + $0x4b8] sm:$0xff] }
 0x2f0   :  { %10386 = vperm.xlu0 %12770, %v9615_v54   ;;  %12404 = vmatprep.subr.bf16.mxu0 %v12403_v50  ;;  %v16521_v6 = vcombine.low %v6246_v49, %v6253_v29  ;;  %v18699_v42 = vld [vmem:[#allocation81_spill] sm:$0xff]  ;;  %18700 = vst [vmem:[#allocation153_spill] sm:$0xff] %v16531_v46  ;;  %v8000_v29 = vcombine.low %v7992_v27, %v7999_v5  ;;  %v11798_v3 = vld [vmem:[#allocation6 + $0xab8] sm:$0xff]  ;;  %v16539_v21 = vpop.permute.xlu0 %10158 }
 0x2f1   :  { %v6288_v43 = vrot.slane %v18699_v42, %v13047_v60  ;;  %v6295_v58 = vrot.slane %v18699_v42, %v13050_v26  ;;  %v6302_v34 = vrot.slane %v18699_v42, %v13055_v7  ;;  %12596 = vmatprep.subr.bf16.mxu1 %v12595_v36  ;;  %v6309_v47 = vrot.slane %v18699_v42, %v13058_v18  ;;  %v18701_v50 = vld [vmem:[#allocation61_spill] sm:$0xff] }
 0x2f2   :  { %10284 = vperm.xlu1 %12771, %v9037_v11   ;;  %v9624_v49 = vrot.slane %v9616_v40, %v13061_v23  ;;  %v9631_v53 = vrot.slane %v9617_v9, %v13061_v23  ;;  %v6260_v54 = vrot.slane %v18701_v50, %v13047_v60  ;;  %v6267_v36 = vrot.slane %v18701_v50, %v13050_v26  ;;  %v18703_v27 = vld [vmem:[#allocation97_spill] sm:$0xff]  ;;  %v18704_v40 = vld [vmem:[#allocation95_spill] sm:$0xff] }
 0x2f3   :  { %18702 = vst [vmem:[#allocation138_spill] sm:$0xff] %v16539_v21  ;;  %v12405_v1 = vpack.c.bf16 %v11593_v35, %v11587_v44  ;;  %v12597_v39 = vpack.c.bf16 %v11785_v14, %v11779_v13  ;;  %v7694_v20 = vcombine.low %v7686_v10, %v7693_v32  ;;  %v7958_v5 = vrot.slane %v18703_v27, %v13061_v23  ;;  %v18705_v21 = vld [vmem:[#allocation164_spill] sm:$0xff]  ;;  %v16551_v35 = vpop.permute.xlu1 %10200  ;;  %v18708_v14 = vld [vmem:[#allocation111_spill] sm:$0xff] }
 0x2f4   :  { %10101 = vperm.xlu0 %12770, %v8000_v29   ;;  %v7965_v9 = vrot.slane %v18704_v40, %v13061_v23  ;;  %v12407_v11 = vpack.c.bf16 %v11606_v63, %v11600_v30  ;;  %v6274_v42 = vrot.slane %v18701_v50, %v13055_v7  ;;  %v6281_v38 = vrot.slane %v18701_v50, %v13058_v18  ;;  %v18707_v32 = vld [vmem:[#allocation92_spill] sm:$0xff]  ;;  %v16563_v50 = vpop.permute.xlu0 %10254  ;;  %v11605_v40 = vld [vmem:[#allocation6 + $0x4b0] sm:$0xff] }
 0x2f5   :  { %v12599_v46 = vpack.c.bf16 %v11798_v3, %v11792_v28  ;;  %v6344_v44 = vrot.slane %v18705_v21, %v13047_v60  ;;  %18706 = vst [vmem:[#allocation139_spill] sm:$0xff] %v16551_v35  ;;  %v9632_v10 = vcombine.low %v9624_v49, %v9631_v53  ;;  %v8009_v13 = vrot.slane %v18707_v32, %v13061_v23  ;;  %v11599_v49 = vld [vmem:[#allocation6 + $0x480] sm:$0xff] }
 0x2f6   :  { %10047 = vperm.xlu1 %12771, %v7694_v20   ;;  %v8016_v30 = vrot.slane %v18708_v14, %v13061_v23  ;;  %v12879_v63 = vmov 0.0   ;;  %v6351_v29 = vrot.slane %v18705_v21, %v13050_v26  ;;  %v6358_v28 = vrot.slane %v18705_v21, %v13055_v7  ;;  %18709 = vst [vmem:[#allocation175_spill] sm:$0xff] %v16563_v50  ;;  %v11791_v32 = vld [vmem:[#allocation6 + $0xa80] sm:$0xff]  ;;  %v11797_v14 = vld [vmem:[#allocation6 + $0xab0] sm:$0xff] }
 0x2f7   :  { %59 = vst [vmem:[#allocation2 + $0x8] sm:$0xf] %v12879_v63  ;;  %v6365_v3 = vrot.slane %v18705_v21, %v13058_v18  ;;  %12406 = vmatpush1.bf16.xpose.msra.mxu0 %v12405_v1  ;;  %12598 = vmatpush1.bf16.xpose.msra.mxu1 %v12597_v39  ;;  %v7966_v53 = vcombine.low %v7958_v5, %v7965_v9  ;;  %v18710_v63 = vld [vmem:[#allocation176_spill] sm:$0xff] }
 0x2f8   :  { %10389 = vperm.xlu0 %12770, %v9632_v10   ;;  %v9318_v20 = vrot.slane %v16087_v62, %v13061_v23  ;;  %v9325_v27 = vrot.slane %v16102_v48, %v13061_v23  ;;  %12408 = vmatprep.subr.bf16.mxu0 %v12407_v11  ;;  %v6316_v21 = vrot.slane %v18710_v63, %v13047_v60  ;;  %v16579_v48 = vpop.permute.xlu1 %10296  ;;  %v16589_v56 = vpop.permute.xlu0 %10017 }
 0x2f9   :  { %v6323_v1 = vrot.slane %v18710_v63, %v13050_v26  ;;  %v6330_v39 = vrot.slane %v18710_v63, %v13055_v7  ;;  %v6337_v5 = vrot.slane %v18710_v63, %v13058_v18  ;;  %12600 = vmatprep.subr.bf16.mxu1 %v12599_v46  ;;  %v16577_v62 = vcombine.low %v6288_v43, %v6295_v58 }
 0x2fa   :  { %18711 = vst [vmem:[#allocation13_spill] sm:$0xff] %v16579_v48  ;;  %10095 = vperm.xlu1 %12771, %v7966_v53   ;;  %v8017_v9 = vcombine.low %v8009_v13, %v8016_v30  ;;  %v9641_v11 = vrot.slane %v16509_v12, %v13061_v23  ;;  %v9648_v10 = vrot.slane %v16521_v6, %v13061_v23  ;;  %18712 = vst [vmem:[#allocation183_spill] sm:$0xff] %v16589_v56  ;;  %v11822_v56 = vld [vmem:[#allocation6 + $0xb78] sm:$0xff] }
 0x2fb   :  { %v16585_v50 = vcombine.low %v6302_v34, %v6309_v47  ;;  %v16587_v35 = vcombine.low %v6260_v54, %v6267_v36  ;;  %v12409_v63 = vpack.c.bf16 %v11605_v40, %v11599_v49  ;;  %v12601_v46 = vpack.c.bf16 %v11797_v14, %v11791_v32  ;;  %v18713_v54 = vld [vmem:[#allocation169_spill] sm:$0xff]  ;;  %v18718_v14 = vld [vmem:[#allocation66_spill] sm:$0xff] }
 0x2fc   :  { %v16591_v43 = vcombine.low %v6274_v42, %v6281_v38  ;;  %10104 = vperm.xlu0 %12770, %v8017_v9   ;;  %v9326_v58 = vcombine.low %v9318_v20, %v9325_v27  ;;  %v9590_v13 = vrot.slane %v16511_v4, %v13061_v23  ;;  %v9597_v12 = vrot.slane %v16513_v55, %v13061_v23  ;;  %v16607_v36 = vpop.permute.xlu1 %10155  ;;  %v18715_v4 = vld [vmem:[#allocation102_spill] sm:$0xff]  ;;  %v18716_v55 = vld [vmem:[#allocation23_spill] sm:$0xff]  ;;  %v16619_v53 = vpop.permute.xlu0 %10209  ;;  %v11612_v20 = vld [vmem:[#allocation6 + $0x4e8] sm:$0xff] }
 0x2fd   :  { %v16597_v30 = vcombine.low %v6344_v44, %v6351_v29  ;;  %v16599_v6 = vcombine.low %v6358_v28, %v6365_v3  ;;  %v16601_v34 = vcombine.low %v6316_v21, %v6323_v1  ;;  %v16603_v47 = vcombine.low %v6330_v39, %v6337_v5  ;;  %18714 = vst [vmem:[#allocation184_spill] sm:$0xff] %v16607_v36  ;;  %v11618_v27 = vld [vmem:[#allocation6 + $0x518] sm:$0xff]  ;;  %v11804_v40 = vld [vmem:[#allocation6 + $0xae8] sm:$0xff] }
 0x2fe   :  { %v6400_v38 = vrot.slane %v18713_v54, %v13047_v60  ;;  %10335 = vperm.xlu1 %12771, %v9326_v58   ;;  %v9649_v42 = vcombine.low %v9641_v11, %v9648_v10  ;;  %v8026_v49 = vrot.slane %v18715_v4, %v13061_v23  ;;  %v8033_v44 = vrot.slane %v18716_v55, %v13061_v23  ;;  %v18719_v1 = vld [vmem:[#allocation155_spill] sm:$0xff]  ;;  %v11617_v10 = vld [vmem:[#allocation6 + $0x510] sm:$0xff]  ;;  %v18720_v58 = vld [vmem:[#allocation156_spill] sm:$0xff] }
 0x2ff   :  { %v6407_v29 = vrot.slane %v18713_v54, %v13050_v26  ;;  %v6414_v28 = vrot.slane %v18713_v54, %v13055_v7  ;;  %v6421_v3 = vrot.slane %v18713_v54, %v13058_v18  ;;  %18717 = vst [vmem:[#allocation20_spill] sm:$0xff] %v16619_v53  ;;  %12410 = vmatpush1.bf16.xpose.msra.mxu0 %v12409_v63  ;;  %v11810_v9 = vld [vmem:[#allocation6 + $0xb18] sm:$0xff]  ;;  %v11611_v11 = vld [vmem:[#allocation6 + $0x4e0] sm:$0xff]  ;;  %v11624_v4 = vld [vmem:[#allocation6 + $0x548] sm:$0xff] }
 0x300   :  { %12602 = vmatpush1.bf16.xpose.msra.mxu1 %v12601_v46  ;;  %10392 = vperm.xlu0 %12770, %v9649_v42   ;;  %v9598_v32 = vcombine.low %v9590_v13, %v9597_v12  ;;  %v7720_v21 = vrot.slane %v18718_v14, %v13061_v23  ;;  %v7727_v39 = vrot.slane %v18719_v1, %v13061_v23  ;;  %v11803_v12 = vld [vmem:[#allocation6 + $0xae0] sm:$0xff]  ;;  %v11809_v42 = vld [vmem:[#allocation6 + $0xb10] sm:$0xff]  ;;  %v16631_v55 = vpop.permute.xlu1 %10251  ;;  %v11630_v1 = vld [vmem:[#allocation6 + $0x578] sm:$0xff] }
 0x301   :  { %v12411_v5 = vpack.c.bf16 %v11618_v27, %v11612_v20  ;;  %v6372_v54 = vrot.slane %v18720_v58, %v13047_v60  ;;  %v6379_v63 = vrot.slane %v18720_v58, %v13050_v26  ;;  %v6386_v46 = vrot.slane %v18720_v58, %v13055_v7  ;;  %18721 = vst [vmem:[#allocation22_spill] sm:$0xff] %v16631_v55  ;;  %v11816_v53 = vld [vmem:[#allocation6 + $0xb48] sm:$0xff] }
 0x302   :  { %v12603_v13 = vpack.c.bf16 %v11810_v9, %v11804_v40  ;;  %10383 = vperm.xlu1 %12771, %v9598_v32   ;;  %v8034_v20 = vcombine.low %v8026_v49, %v8033_v44  ;;  %v9658_v27 = vrot.slane %v16587_v35, %v13061_v23  ;;  %v9665_v14 = vrot.slane %v16591_v43, %v13061_v23  ;;  %v16641_v9 = vpop.permute.xlu0 %10305 }
 0x303   :  { %12412 = vmatprep.subr.bf16.mxu0 %v12411_v5  ;;  %v16637_v36 = vcombine.low %v6400_v38, %v6407_v29  ;;  %v6393_v40 = vrot.slane %v18720_v58, %v13058_v18  ;;  %18722 = vst [vmem:[#allocation84_spill] sm:$0xff] %v16641_v9  ;;  %v12413_v32 = vpack.c.bf16 %v11617_v10, %v11611_v11  ;;  %v18723_v38 = vld [vmem:[#allocation51_spill] sm:$0xff] }
 0x304   :  { %12604 = vmatprep.subr.bf16.mxu1 %v12603_v13  ;;  %v12605_v49 = vpack.c.bf16 %v11809_v42, %v11803_v12  ;;  %10107 = vperm.xlu0 %12770, %v8034_v20   ;;  %v7728_v44 = vcombine.low %v7720_v21, %v7727_v39  ;;  %v9352_v35 = vrot.slane %v16140_v57, %v13061_v23  ;;  %v16655_v21 = vpop.permute.xlu1 %10014  ;;  %v18725_v39 = vld [vmem:[#allocation103_spill] sm:$0xff]  ;;  %v18727_v12 = vld [vmem:[#allocation37_spill] sm:$0xff] }
 0x305   :  { %v9359_v43 = vrot.slane %v16154_v2, %v13061_v23  ;;  %v12415_v5 = vpack.c.bf16 %v11630_v1, %v11624_v4  ;;  %v16647_v55 = vcombine.low %v6414_v28, %v6421_v3  ;;  %v6456_v29 = vrot.slane %v18723_v38, %v13047_v60  ;;  %18724 = vst [vmem:[#allocation65_spill] sm:$0xff] %v16655_v21  ;;  %v18726_v28 = vld [vmem:[#allocation25_spill] sm:$0xff]  ;;  %v11623_v4 = vld [vmem:[#allocation6 + $0x540] sm:$0xff] }
 0x306   :  { %v6463_v58 = vrot.slane %v18723_v38, %v13050_v26  ;;  %v12607_v13 = vpack.c.bf16 %v11822_v56, %v11816_v53  ;;  %v6470_v11 = vrot.slane %v18723_v38, %v13055_v7  ;;  %10053 = vperm.xlu1 %12771, %v7728_v44   ;;  %v9666_v57 = vcombine.low %v9658_v27, %v9665_v14  ;;  %v16667_v53 = vpop.permute.xlu0 %10164  ;;  %v18729_v27 = vld [vmem:[#allocation62_spill] sm:$0xff]  ;;  %v18730_v1 = vld [vmem:[#allocation83_spill] sm:$0xff] }
 0x307   :  { %v8043_v2 = vrot.slane %v18725_v39, %v13061_v23  ;;  %v8050_v3 = vrot.slane %v18726_v28, %v13061_v23  ;;  %v6477_v10 = vrot.slane %v18723_v38, %v13058_v18  ;;  %v6428_v42 = vrot.slane %v18727_v12, %v13047_v60  ;;  %18728 = vst [vmem:[#allocation81_spill] sm:$0xff] %v16667_v53  ;;  %v11629_v38 = vld [vmem:[#allocation6 + $0x570] sm:$0xff]  ;;  %v11815_v39 = vld [vmem:[#allocation6 + $0xb40] sm:$0xff] }
 0x308   :  { %v6435_v56 = vrot.slane %v18727_v12, %v13050_v26  ;;  %12414 = vmatpush1.bf16.xpose.msra.mxu0 %v12413_v32  ;;  %12606 = vmatpush1.bf16.xpose.msra.mxu1 %v12605_v49  ;;  %v9360_v20 = vcombine.low %v9352_v35, %v9359_v43  ;;  %v7737_v14 = vrot.slane %v18729_v27, %v13061_v23  ;;  %v11821_v28 = vld [vmem:[#allocation6 + $0xb70] sm:$0xff]  ;;  %v11636_v35 = vld [vmem:[#allocation6 + $0x5a8] sm:$0xff]  ;;  %v11642_v43 = vld [vmem:[#allocation6 + $0x5d8] sm:$0xff]  ;;  %v16683_v27 = vpop.permute.xlu1 %10206 }
 0x309   :  { %10395 = vperm.xlu0 %12770, %v9666_v57   ;;  %v7744_v44 = vrot.slane %v18730_v1, %v13061_v23  ;;  %12416 = vmatprep.subr.bf16.mxu0 %v12415_v5  ;;  %v16673_v9 = vcombine.low %v6372_v54, %v6379_v63  ;;  %v16675_v21 = vcombine.low %v6386_v46, %v6393_v40  ;;  %v11828_v46 = vld [vmem:[#allocation6 + $0xba8] sm:$0xff]  ;;  %v11834_v40 = vld [vmem:[#allocation6 + $0xbd8] sm:$0xff]  ;;  %v11833_v53 = vld [vmem:[#allocation6 + $0xbd0] sm:$0xff] }
 0x30a   :  { %v6442_v32 = vrot.slane %v18727_v12, %v13055_v7  ;;  %v6449_v49 = vrot.slane %v18727_v12, %v13058_v18  ;;  %12608 = vmatprep.subr.bf16.mxu1 %v12607_v13  ;;  %v16681_v57 = vcombine.low %v6456_v29, %v6463_v58  ;;  %18732 = vst [vmem:[#allocation97_spill] sm:$0xff] %v16683_v27  ;;  %v16693_v13 = vpop.permute.xlu0 %10260 }
 0x30b   :  { %10341 = vperm.xlu1 %12771, %v9360_v20   ;;  %v8051_v5 = vcombine.low %v8043_v2, %v8050_v3  ;;  %v9675_v54 = vrot.slane %v16577_v62, %v13061_v23  ;;  %v9682_v63 = vrot.slane %v16585_v50, %v13061_v23  ;;  %v16689_v1 = vcombine.low %v6470_v11, %v6477_v10  ;;  %v18735_v11 = vld [vmem:[#allocation118_spill] sm:$0xff] }
 0x30c   :  { %18731 = vst [vmem:[#allocation61_spill] sm:$0xff] %v16681_v57  ;;  %v16691_v12 = vcombine.low %v6428_v42, %v6435_v56  ;;  %18734 = vst [vmem:[#allocation164_spill] sm:$0xff] %v16693_v13  ;;  %v12417_v29 = vpack.c.bf16 %v11629_v38, %v11623_v4  ;;  %v12609_v58 = vpack.c.bf16 %v11821_v28, %v11815_v39  ;;  %v18738_v38 = vld [vmem:[#allocation166_spill] sm:$0xff]  ;;  %v11827_v13 = vld [vmem:[#allocation6 + $0xba0] sm:$0xff] }
 0x30d   :  { %18733 = vst [vmem:[#allocation95_spill] sm:$0xff] %v16689_v1  ;;  %10110 = vperm.xlu0 %12770, %v8051_v5   ;;  %v7745_v2 = vcombine.low %v7737_v14, %v7744_v44  ;;  %v9369_v62 = vrot.slane %v16126_v52, %v13061_v23  ;;  %v9376_v50 = vrot.slane %v16136_v15, %v13061_v23  ;;  %v16707_v14 = vpop.permute.xlu1 %10302  ;;  %v18737_v44 = vld [vmem:[#allocation100_spill] sm:$0xff] }
 0x30e   :  { %v12419_v3 = vpack.c.bf16 %v11642_v43, %v11636_v35  ;;  %v6512_v10 = vrot.slane %v18735_v11, %v13047_v60  ;;  %v6519_v42 = vrot.slane %v18735_v11, %v13050_v26  ;;  %v16703_v56 = vcombine.low %v6442_v32, %v6449_v49  ;;  %18736 = vst [vmem:[#allocation92_spill] sm:$0xff] %v16707_v14  ;;  %v18739_v32 = vld [vmem:[#allocation60_spill] sm:$0xff]  ;;  %v18741_v43 = vld [vmem:[#allocation82_spill] sm:$0xff] }
 0x30f   :  { %v12611_v4 = vpack.c.bf16 %v11834_v40, %v11828_v46  ;;  %v6526_v20 = vrot.slane %v18735_v11, %v13055_v7  ;;  %10056 = vperm.xlu1 %12771, %v7745_v2   ;;  %v9683_v52 = vcombine.low %v9675_v54, %v9682_v63  ;;  %v8060_v15 = vrot.slane %v18737_v44, %v13061_v23  ;;  %v18740_v35 = vld [vmem:[#allocation32_spill] sm:$0xff]  ;;  %v16719_v46 = vpop.permute.xlu0 %10023  ;;  %v18743_v40 = vld [vmem:[#allocation157_spill] sm:$0xff] }
 0x310   :  { %v8067_v39 = vrot.slane %v18738_v38, %v13061_v23  ;;  %v6533_v28 = vrot.slane %v18735_v11, %v13058_v18  ;;  %v6484_v49 = vrot.slane %v18739_v32, %v13047_v60  ;;  %v10435_v5 = vrot.slane %v18741_v43, %v18740_v35  ;;  %18742 = vst [vmem:[#allocation111_spill] sm:$0xff] %v16719_v46  ;;  %v11635_v54 = vld [vmem:[#allocation6 + $0x5a0] sm:$0xff]  ;;  %v18744_v11 = vld [vmem:[#allocation158_spill] sm:$0xff]  ;;  %v11464_v46 = vld [vmem:[#allocation6 + $0x48] sm:$0xff] }
 0x311   :  { %12418 = vmatpush1.bf16.xpose.msra.mxu0 %v12417_v29  ;;  %12610 = vmatpush1.bf16.xpose.msra.mxu1 %v12609_v58  ;;  %v9377_v63 = vcombine.low %v9369_v62, %v9376_v50  ;;  %v7754_v2 = vrot.slane %v18743_v40, %v13061_v23  ;;  %v7761_v44 = vrot.slane %v18744_v11, %v13061_v23  ;;  %v11641_v38 = vld [vmem:[#allocation6 + $0x5d0] sm:$0xff]  ;;  %v11458_v40 = vld [vmem:[#allocation6 + $0x18] sm:$0xff]  ;;  %v16735_v27 = vpop.permute.xlu1 %10161 }
 0x312   :  { %10398 = vperm.xlu0 %12770, %v9683_v52   ;;  %12420 = vmatprep.subr.bf16.mxu0 %v12419_v3  ;;  %v6491_v43 = vrot.slane %v18739_v32, %v13050_v26  ;;  %v6498_v29 = vrot.slane %v18739_v32, %v13055_v7  ;;  %v6505_v58 = vrot.slane %v18739_v32, %v13058_v18  ;;  %v18745_v62 = vld [vmem:[#allocation29_spill] sm:$0xff]  ;;  %v18748_v3 = vld [vmem:[#allocation14_spill] sm:$0xff] }
 0x313   :  { %v18746_v50 = vld [vmem:[#allocation121_spill] sm:$0xff]  ;;  %12612 = vmatprep.subr.bf16.mxu1 %v12611_v4  ;;  %18749 = vst [vmem:[#allocation176_spill] sm:$0xff] %v16735_v27  ;;  %10344 = vperm.xlu1 %12771, %v9377_v63   ;;  %v8068_v48 = vcombine.low %v8060_v15, %v8067_v39  ;;  %v9692_v37 = vrot.slane %v16601_v34, %v13061_v23 }
 0x314   :  { %v10440_v52 = vrot.slane %v18746_v50, %v18745_v62  ;;  %v18747_v11 = vld [vmem:[#allocation125_spill] sm:$0xff]  ;;  %v9699_v32 = vrot.slane %v16603_v47, %v13061_v23  ;;  %v18750_v50 = vld [vmem:[#allocation120_spill] sm:$0xff]  ;;  %v12421_v1 = vpack.c.bf16 %v11641_v38, %v11635_v54  ;;  %v12613_v27 = vpack.c.bf16 %v11833_v53, %v11827_v13 }
 0x315   :  { %v10447_v14 = vrot.slane %v18748_v3, %v18747_v11  ;;  %v10454_v41 = vrot.slane %v18751_v31, %v18750_v50  ;;  %v16744_v3 = vpop.permute.xlu0 %10215  ;;  %v7762_v15 = vcombine.low %v7754_v2, %v7761_v44  ;;  %v9386_v34 = vrot.slane %v16204_v51, %v13061_v23  ;;  %v18753_v31 = vld [vmem:[#allocation143_spill] sm:$0xff]  ;;  %v16757_v13 = vpop.permute.xlu1 %10257  ;;  %v18755_v51 = vld [vmem:[#allocation101_spill] sm:$0xff]  ;;  %v18760_v44 = vld [vmem:[#allocation154_spill] sm:$0xff] }
 0x316   :  { %v10442_v4 = vsel %vm10441_vm0, %v10440_v52, %v10435_v5  ;;  %18752 = vst [vmem:[#allocation169_spill] sm:$0xff] %v16744_v3  ;;  %10113 = vperm.xlu0 %12770, %v8068_v48   ;;  %v9393_v47 = vrot.slane %v16206_v24, %v13061_v23  ;;  %v12423_v39 = vpack.c.bf16 %v11464_v46, %v11458_v40  ;;  %v18754_v52 = vld [vmem:[#allocation96_spill] sm:$0xff]  ;;  %v18756_v24 = vld [vmem:[#allocation26_spill] sm:$0xff] }
 0x317   :  { %v16750_v63 = vcombine.low %v6512_v10, %v6519_v42  ;;  %v16752_v5 = vcombine.low %v6526_v20, %v6533_v28  ;;  %v10461_v57 = vrot.slane %v18754_v52, %v18753_v31  ;;  %v12615_v3 = vpack.c.bf16 %v11656_v0, %v11650_v33  ;;  %10059 = vperm.xlu1 %12771, %v7762_v15   ;;  %v18757_v20 = vld [vmem:[#allocation116_spill] sm:$0xff]  ;;  %v18758_v28 = vld [vmem:[#allocation31_spill] sm:$0xff] }
 0x318   :  { %v10449_v53 = vsel %vm10448_vm1, %v10447_v14, %v10442_v4  ;;  %v9700_v48 = vcombine.low %v9692_v37, %v9699_v32  ;;  %v8077_v54 = vrot.slane %v18755_v51, %v13061_v23  ;;  %v8084_v46 = vrot.slane %v18756_v24, %v13061_v23  ;;  %v18759_v37 = vld [vmem:[#allocation69_spill] sm:$0xff]  ;;  %v18764_v4 = vld [vmem:[#allocation182_spill] sm:$0xff]  ;;  %v18765_v52 = vld [vmem:[#allocation24_spill] sm:$0xff] }
 0x319   :  { %v16763_v10 = vcombine.low %v6484_v49, %v6491_v43  ;;  %v10456_v42 = vsel %vm10455_vm2, %v10454_v41, %v10449_v53  ;;  %v10468_v2 = vrot.slane %v18758_v28, %v18757_v20  ;;  %v16768_v0 = vpop.permute.xlu0 %10311  ;;  %12422 = vmatpush1.bf16.xpose.msra.mxu0 %v12421_v1  ;;  %12614 = vmatpush1.bf16.xpose.msra.mxu1 %v12613_v27  ;;  %v18761_v41 = vld [vmem:[#allocation177_spill] sm:$0xff]  ;;  %v18763_v1 = vld [vmem:[#allocation94_spill] sm:$0xff]  ;;  %v18766_v51 = vld [vmem:[#allocation67_spill] sm:$0xff] }
 0x31a   :  { %10401 = vperm.xlu0 %12770, %v9700_v48   ;;  %v9394_v33 = vcombine.low %v9386_v34, %v9393_v47  ;;  %v7771_v14 = vrot.slane %v18759_v37, %v13061_v23  ;;  %v7778_v49 = vrot.slane %v18760_v44, %v13061_v23  ;;  %12424 = vmatprep.subr.bf16.mxu0 %v12423_v39  ;;  %v18762_v32 = vld [vmem:[#allocation145_spill] sm:$0xff]  ;;  %v16783_v34 = vpop.permute.xlu1 %10020  ;;  %v18767_v28 = vld [vmem:[#allocation99_spill] sm:$0xff] }
 0x31b   :  { %v6568_v38 = vrot.slane %v18761_v41, %v13047_v60  ;;  %v16776_v43 = vcombine.low %v6498_v29, %v6505_v58  ;;  %v10463_v40 = vsel %vm10462_vm3, %v10461_v57, %v10456_v42  ;;  %v10475_v27 = vrot.slane %v18763_v1, %v18762_v32  ;;  %12616 = vmatprep.subr.bf16.mxu1 %v12615_v3 }
 0x31c   :  { %v10482_v15 = vrot.slane %v18764_v4, %v16090_v22  ;;  %10347 = vperm.xlu1 %12771, %v9394_v33   ;;  %v8085_v47 = vcombine.low %v8077_v54, %v8084_v46  ;;  %v9709_v39 = vrot.slane %v16597_v30, %v13061_v23  ;;  %v9716_v29 = vrot.slane %v16599_v6, %v13061_v23  ;;  %v18768_v33 = vld [vmem:[#allocation41_spill] sm:$0xff] }
 0x31d   :  { %v6575_v57 = vrot.slane %v18761_v41, %v13050_v26  ;;  %v10470_v3 = vsel %vm10469_vm4, %v10468_v2, %v10463_v40  ;;  %v10489_v53 = vrot.slane %v18765_v52, %v16182_v17  ;;  %v16796_v48 = vpop.permute.xlu0 %10170  ;;  %v10544_v30 = vrot.slane %v18766_v51, %v18740_v35  ;;  %v18770_v40 = vld [vmem:[#allocation137_spill] sm:$0xff] }
 0x31e   :  { %10116 = vperm.xlu0 %12770, %v8085_v47   ;;  %v7779_v54 = vcombine.low %v7771_v14, %v7778_v49  ;;  %v9403_v6 = vrot.slane %v16171_v8, %v13061_v23  ;;  %v9410_v24 = vrot.slane %v16179_v59, %v13061_v23  ;;  %v6589_v46 = vrot.slane %v18761_v41, %v13058_v18  ;;  %v16812_v14 = vpop.permute.xlu1 %10212  ;;  %v18769_v59 = vld [vmem:[#allocation168_spill] sm:$0xff]  ;;  %v18772_v47 = vld [vmem:[#allocation181_spill] sm:$0xff] }
 0x31f   :  { %v10477_v42 = vsel %vm10476_vm5, %v10475_v27, %v10470_v3  ;;  %v10548_v2 = vrot.slane %v18767_v28, %v18745_v62  ;;  %v10553_v37 = vrot.slane %v18768_v33, %v18747_v11  ;;  %v9717_v8 = vcombine.low %v9709_v39, %v9716_v29  ;;  %v18771_v27 = vld [vmem:[#allocation135_spill] sm:$0xff]  ;;  %v18773_v3 = vld [vmem:[#allocation165_spill] sm:$0xff] }
 0x320   :  { %v10484_v44 = vsel %vm10483_vm6, %v10482_v15, %v10477_v42  ;;  %10062 = vperm.xlu1 %12771, %v7779_v54   ;;  %v8094_v49 = vrot.slane %v18769_v59, %v13061_v23  ;;  %v8101_v1 = vrot.slane %v18770_v40, %v13061_v23  ;;  %v6540_v4 = vrot.slane %v18771_v27, %v13047_v60  ;;  %v18774_v15 = vld [vmem:[#allocation130_spill] sm:$0xff]  ;;  %v18776_v54 = vld [vmem:[#allocation79_spill] sm:$0xff]  ;;  %v18777_v59 = vld [vmem:[#allocation89_spill] sm:$0xff] }
 0x321   :  { %v10496_v52 = vrot.slane %v18773_v3, %v18772_v47  ;;  %v10491_v51 = vsel %vm10490_vm7, %v10489_v53, %v10484_v44  ;;  %v10503_v42 = vrot.slane %v18774_v15, %v16279_v61  ;;  %v16825_v28 = vpop.permute.xlu0 %10266  ;;  %v10549_v39 = vsel %vm10441_vm0, %v10548_v2, %v10544_v30  ;;  %v18778_v53 = vld [vmem:[#allocation185_spill] sm:$0xff]  ;;  %v18779_v15 = vld [vmem:[#allocation147_spill] sm:$0xff] }
 0x322   :  { %18775 = vst [vmem:[#allocation102_spill] sm:$0xff] %v16825_v28  ;;  %10404 = vperm.xlu0 %12770, %v9717_v8   ;;  %v9411_v29 = vcombine.low %v9403_v6, %v9410_v24  ;;  %v7788_v33 = vrot.slane %v18776_v54, %v13061_v23  ;;  %v7795_v60 = vrot.slane %v18777_v59, %v13061_v23  ;;  %v16840_v6 = vpop.permute.xlu1 %10308  ;;  %v18784_v54 = vld [vmem:[#allocation123_spill] sm:$0xff] }
 0x323   :  { %v6547_v40 = vrot.slane %v18771_v27, %v13050_v26  ;;  %v10558_v44 = vrot.slane %v18778_v53, %v18750_v50  ;;  %v10554_v3 = vsel %vm10448_vm1, %v10553_v37, %v10549_v39  ;;  %v10563_v58 = vrot.slane %v18779_v15, %v18753_v31  ;;  %v18785_v53 = vld [vmem:[#allocation186_spill] sm:$0xff] }
 0x324   :  { %v10498_v30 = vsel %vm10497_vm8, %v10496_v52, %v10491_v51  ;;  %10350 = vperm.xlu1 %12771, %v9411_v29   ;;  %v8102_v24 = vcombine.low %v8094_v49, %v8101_v1  ;;  %v9726_v2 = vrot.slane %v16673_v9, %v13061_v23  ;;  %v9733_v26 = vrot.slane %v16675_v21, %v13061_v23  ;;  %v18782_v1 = vld [vmem:[#allocation88_spill] sm:$0xff] }
 0x325   :  { %v16846_v8 = vcombine.low %v6568_v38, %v6575_v57  ;;  %v6554_v37 = vrot.slane %v18771_v27, %v13055_v7  ;;  %v6561_v39 = vrot.slane %v18771_v27, %v13058_v18  ;;  %v10505_v52 = vsel %vm10504_vm9, %v10503_v42, %v10498_v30  ;;  %v16853_v51 = vpop.permute.xlu0 %10029  ;;  %v18781_v57 = vld [vmem:[#allocation122_spill] sm:$0xff]  ;;  %v18783_v18 = vld [vmem:[#allocation40_spill] sm:$0xff] }
 0x326   :  { %18780 = vst [vmem:[#allocation23_spill] sm:$0xff] %v16853_v51  ;;  %v10559_v49 = vsel %vm10455_vm2, %v10558_v44, %v10554_v3  ;;  %10119 = vperm.xlu0 %12770, %v8102_v24   ;;  %v7796_v9 = vcombine.low %v7788_v33, %v7795_v60  ;;  %v9420_v21 = vrot.slane %v16274_v45, %v13061_v23  ;;  %v16869_v60 = vpop.permute.xlu1 %10167  ;;  %v18787_v3 = vld [vmem:[#allocation167_spill] sm:$0xff] }
 0x327   :  { %v9427_v38 = vrot.slane %v16276_v25, %v13061_v23  ;;  %v10510_v29 = vrot.slane %v18782_v1, %v18781_v57  ;;  %v10517_v27 = vrot.slane %v18783_v18, %v16381_v16  ;;  %v10564_v42 = vsel %vm10462_vm3, %v10563_v58, %v10559_v49  ;;  %v18786_v25 = vld [vmem:[#allocation35_spill] sm:$0xff] }
 0x328   :  { %v10573_v59 = vrot.slane %v18784_v54, %v18762_v32  ;;  %v10568_v33 = vrot.slane %v18785_v53, %v18757_v20  ;;  %10065 = vperm.xlu1 %12771, %v7796_v9   ;;  %v9734_v45 = vcombine.low %v9726_v2, %v9733_v26  ;;  %v8111_v44 = vrot.slane %v18786_v25, %v13061_v23  ;;  %v18790_v9 = vld [vmem:[#allocation70_spill] sm:$0xff] }
 0x329   :  { %v8118_v15 = vrot.slane %v18787_v3, %v13061_v23  ;;  %v18788_v30 = vrot.slane %v18761_v41, %v13055_v7  ;;  %v16880_v24 = vcombine.low %v6540_v4, %v6547_v40  ;;  %v16882_v49 = vcombine.low %v6554_v37, %v6561_v39  ;;  %v16885_v18 = vpop.permute.xlu0 %10221  ;;  %v18791_v7 = vld [vmem:[#allocation74_spill] sm:$0xff] }
 0x32a   :  { %v10512_v1 = vsel %vm10511_vm10, %v10510_v29, %v10505_v52  ;;  %18789 = vst [vmem:[#allocation66_spill] sm:$0xff] %v16885_v18  ;;  %v10569_v2 = vsel %vm10469_vm4, %v10568_v33, %v10564_v42  ;;  %10407 = vperm.xlu0 %12770, %v9734_v45   ;;  %v9428_v26 = vcombine.low %v9420_v21, %v9427_v38  ;;  %v18792_v4 = vld [vmem:[#allocation114_spill] sm:$0xff]  ;;  %v18794_v29 = vld [vmem:[#allocation19_spill] sm:$0xff]  ;;  %v16900_v21 = vpop.permute.xlu1 %10263  ;;  %v18795_v33 = vld [vmem:[#allocation48_spill] sm:$0xff] }
 0x32b   :  { %v16878_v58 = vcombine.low %v18788_v30, %v6589_v46  ;;  %v7805_v54 = vrot.slane %v18790_v9, %v13061_v23  ;;  %v7812_v41 = vrot.slane %v18791_v7, %v13061_v23  ;;  %v10519_v46 = vsel %vm10518_vm11, %v10517_v27, %v10512_v1  ;;  %v18793_v39 = vld [vmem:[#allocation190_spill] sm:$0xff]  ;;  %v18796_v45 = vld [vmem:[#allocation180_spill] sm:$0xff]  ;;  %v18802_v7 = vld [vmem:[#allocation141_spill] sm:$0xff] }
 0x32c   :  { %v10578_v40 = vrot.slane %v18792_v4, %v16090_v22  ;;  %v10574_v37 = vsel %vm10476_vm5, %v10573_v59, %v10569_v2  ;;  %v10583_v52 = vrot.slane %v18793_v39, %v16182_v17  ;;  %v10623_v42 = vrot.slane %v18794_v29, %v18740_v35  ;;  %10353 = vperm.xlu1 %12771, %v9428_v26   ;;  %v18797_v59 = vld [vmem:[#allocation115_spill] sm:$0xff]  ;;  %v18798_v30 = vld [vmem:[#allocation188_spill] sm:$0xff] }
 0x32d   :  { %v8119_v38 = vcombine.low %v8111_v44, %v8118_v15  ;;  %v9743_v53 = vrot.slane %v16637_v36, %v13061_v23  ;;  %v9750_v27 = vrot.slane %v16647_v55, %v13061_v23  ;;  %v10524_v25 = vrot.slane %v18796_v45, %v18795_v33  ;;  %v18799_v2 = vld [vmem:[#allocation128_spill] sm:$0xff]  ;;  %v16914_v26 = vpop.permute.xlu0 %10317  ;;  %v18801_v55 = vld [vmem:[#allocation109_spill] sm:$0xff]  ;;  %v18803_v29 = vld [vmem:[#allocation187_spill] sm:$0xff] }
 0x32e   :  { %v10531_v3 = vrot.slane %v18797_v59, %v16481_v19  ;;  %v10627_v1 = vrot.slane %v18798_v30, %v18745_v62  ;;  %v10632_v9 = vrot.slane %v18799_v2, %v18747_v11  ;;  %18800 = vst [vmem:[#allocation155_spill] sm:$0xff] %v16914_v26  ;;  %v10579_v44 = vsel %vm10483_vm6, %v10578_v40, %v10574_v37  ;;  %v18804_v30 = vld [vmem:[#allocation71_spill] sm:$0xff]  ;;  %v16928_v37 = vpop.permute.xlu1 %10026 }
 0x32f   :  { %10122 = vperm.xlu0 %12770, %v8119_v38   ;;  %v7813_v36 = vcombine.low %v7805_v54, %v7812_v41  ;;  %v9437_v15 = vrot.slane %v18801_v55, %v13061_v23  ;;  %v9444_v4 = vrot.slane %v18802_v7, %v13061_v23  ;;  %v10526_v39 = vsel %vm10525_vm12, %v10524_v25, %v10519_v46  ;;  %v18805_v41 = vld [vmem:[#allocation104_spill] sm:$0xff]  ;;  %v18806_v55 = vld [vmem:[#allocation30_spill] sm:$0xff] }
 0x330   :  { %v10588_v45 = vrot.slane %v18803_v29, %v18772_v47  ;;  %v10584_v59 = vsel %vm10490_vm7, %v10583_v52, %v10579_v44  ;;  %v10593_v2 = vrot.slane %v18804_v30, %v16279_v61  ;;  %v10628_v40 = vsel %vm10441_vm0, %v10627_v1, %v10623_v42  ;;  %v18807_v7 = vld [vmem:[#allocation126_spill] sm:$0xff] }
 0x331   :  { %10068 = vperm.xlu1 %12771, %v7813_v36   ;;  %v9751_v54 = vcombine.low %v9743_v53, %v9750_v27  ;;  %v8128_v38 = vrot.slane %v18805_v41, %v13061_v23  ;;  %v8135_v46 = vrot.slane %v18806_v55, %v13061_v23  ;;  %v10533_v25 = vsel %vm10532_vm13, %v10531_v3, %v10526_v39  ;;  %v18808_v29 = vld [vmem:[#allocation170_spill] sm:$0xff]  ;;  %v16940_v1 = vpop.permute.xlu0 %10176  ;;  %v18810_v36 = vld [vmem:[#allocation57_spill] sm:$0xff] }
 0x332   :  { %v10637_v52 = vrot.slane %v18807_v7, %v18750_v50  ;;  %v10633_v44 = vsel %vm10448_vm1, %v10632_v9, %v10628_v40  ;;  %v10642_v42 = vrot.slane %v18808_v29, %v18753_v31  ;;  %18809 = vst [vmem:[#allocation156_spill] sm:$0xff] %v16940_v1  ;;  %v10589_v53 = vsel %vm10497_vm8, %v10588_v45, %v10584_v59  ;;  %v18811_v41 = vld [vmem:[#allocation161_spill] sm:$0xff]  ;;  %v18814_v9 = vld [vmem:[#allocation42_spill] sm:$0xff] }
 0x333   :  { %10410 = vperm.xlu0 %12770, %v9751_v54   ;;  %v9445_v27 = vcombine.low %v9437_v15, %v9444_v4  ;;  %v7822_v30 = vrot.slane %v18810_v36, %v13061_v23  ;;  %v7829_v3 = vrot.slane %v18811_v41, %v13061_v23  ;;  %v18812_v39 = vld [vmem:[#allocation189_spill] sm:$0xff]  ;;  %v10598_v40 = vrot.slane %v18814_v9, %v18781_v57  ;;  %v18815_v1 = vld [vmem:[#allocation46_spill] sm:$0xff]  ;;  %v16955_v15 = vpop.permute.xlu1 %10218 }
 0x334   :  { %v18813_v55 = vld [vmem:[#allocation105_spill] sm:$0xff]  ;;  %v10594_v29 = vsel %vm10504_vm9, %v10593_v2, %v10589_v53  ;;  %v10603_v26 = vrot.slane %v18815_v1, %v16381_v16  ;;  %v10638_v45 = vsel %vm10455_vm2, %v10637_v52, %v10633_v44  ;;  %v8136_v4 = vcombine.low %v8128_v38, %v8135_v46  ;;  %v18817_v2 = vld [vmem:[#allocation72_spill] sm:$0xff]  ;;  %v18818_v52 = vld [vmem:[#allocation142_spill] sm:$0xff] }
 0x335   :  { %v10538_v7 = vrot.slane %v18813_v55, %v18812_v39  ;;  %10356 = vperm.xlu1 %12771, %v9445_v27   ;;  %v9760_v59 = vrot.slane %v16691_v12, %v13061_v23  ;;  %v9767_v54 = vrot.slane %v16703_v56, %v13061_v23  ;;  %v10647_v53 = vrot.slane %v18817_v2, %v18757_v20  ;;  %v16969_v41 = vpop.permute.xlu0 %10272  ;;  %v18820_v46 = vld [vmem:[#allocation53_spill] sm:$0xff]  ;;  %v18822_v55 = vld [vmem:[#allocation36_spill] sm:$0xff] }
 0x336   :  { %v10643_v1 = vsel %vm10462_vm3, %v10642_v42, %v10638_v45  ;;  %v10652_v44 = vrot.slane %v18818_v52, %v18762_v32  ;;  %18819 = vst [vmem:[#allocation103_spill] sm:$0xff] %v16969_v41  ;;  %v10599_v38 = vsel %vm10511_vm10, %v10598_v40, %v10594_v29  ;;  %v7830_v12 = vcombine.low %v7822_v30, %v7829_v3  ;;  %v18824_v2 = vld [vmem:[#allocation133_spill] sm:$0xff]  ;;  %v18825_v29 = vld [vmem:[#allocation27_spill] sm:$0xff]  ;;  %v18849_v41 = vld [vmem:[#allocation140_spill] sm:$0xff] }
 0x337   :  { %v16962_v36 = vsel %vm10539_vm14, %v10538_v7, %v10533_v25  ;;  %10125 = vperm.xlu0 %12770, %v8136_v4   ;;  %v9454_v56 = vrot.slane %v18820_v46, %v13061_v23  ;;  %v18821_v25 = vld [vmem:[#allocation146_spill] sm:$0xff]  ;;  %v10608_v7 = vrot.slane %v18822_v55, %v18795_v33  ;;  %v10604_v45 = vsel %vm10518_vm11, %v10603_v26, %v10599_v38  ;;  %v16984_v30 = vpop.permute.xlu1 %10314  ;;  %v18826_v46 = vld [vmem:[#allocation28_spill] sm:$0xff]  ;;  %v18827_v9 = vld [vmem:[#allocation49_spill] sm:$0xff] }
 0x338   :  { %18816 = vst [vmem:[#allocation51_spill] sm:$0xff] %v16962_v36  ;;  %v9461_v27 = vrot.slane %v18821_v25, %v13061_v23  ;;  %v10613_v52 = vrot.slane %v18824_v2, %v16481_v19  ;;  %v10648_v40 = vsel %vm10469_vm4, %v10647_v53, %v10643_v1  ;;  %v9768_v3 = vcombine.low %v9760_v59, %v9767_v54  ;;  %v18829_v2 = vld [vmem:[#allocation90_spill] sm:$0xff]  ;;  %v18830_v1 = vld [vmem:[#allocation80_spill] sm:$0xff] }
 0x339   :  { %10071 = vperm.xlu1 %12771, %v7830_v12   ;;  %v8145_v4 = vrot.slane %v18825_v29, %v13061_v23  ;;  %v8152_v25 = vrot.slane %v18826_v46, %v13061_v23  ;;  %v10653_v55 = vsel %vm10476_vm5, %v10652_v44, %v10648_v40  ;;  %v10662_v26 = vrot.slane %v18827_v9, %v16182_v17  ;;  %v16993_v38 = vpop.permute.xlu0 %10035  ;;  %v18831_v59 = vld [vmem:[#allocation98_spill] sm:$0xff]  ;;  %v18832_v46 = vld [vmem:[#allocation127_spill] sm:$0xff] }
 0x33a   :  { %18828 = vst [vmem:[#allocation25_spill] sm:$0xff] %v16993_v38  ;;  %v7839_v53 = vrot.slane %v18829_v2, %v13061_v23  ;;  %v7846_v12 = vrot.slane %v18830_v1, %v13061_v23  ;;  %v10657_v54 = vrot.slane %v18831_v59, %v16090_v22  ;;  %v10609_v29 = vsel %vm10525_vm12, %v10608_v7, %v10604_v45  ;;  %v18834_v40 = vld [vmem:[#allocation91_spill] sm:$0xff]  ;;  %v18835_v2 = vld [vmem:[#allocation61_spill] sm:$0xff]  ;;  %v18856_v59 = vld [vmem:[#allocation34_spill] sm:$0xff] }
 0x33b   :  { %v10667_v36 = vrot.slane %v18832_v46, %v18772_v47  ;;  %10413 = vperm.xlu0 %12770, %v9768_v3   ;;  %v9462_v44 = vcombine.low %v9454_v56, %v9461_v27  ;;  %v17005_v9 = vsel %vm10532_vm13, %v10613_v52, %v10609_v29  ;;  %v10677_v42 = vrot.slane %v18834_v40, %v18781_v57  ;;  %v18836_v1 = vld [vmem:[#allocation95_spill] sm:$0xff]  ;;  %v17016_v46 = vpop.permute.xlu1 %10173  ;;  %v18839_v27 = vld [vmem:[#allocation110_spill] sm:$0xff] }
 0x33c   :  { %18833 = vst [vmem:[#allocation37_spill] sm:$0xff] %v17005_v9  ;;  %v9777_v39 = vrot.slane %v18835_v2, %v13061_v23  ;;  %v9784_v38 = vrot.slane %v18836_v1, %v13061_v23  ;;  %v10658_v45 = vsel %vm10483_vm6, %v10657_v54, %v10653_v55  ;;  %18838 = vst [vmem:[#allocation62_spill] sm:$0xff] %v17016_v46  ;;  %v18841_v2 = vld [vmem:[#allocation108_spill] sm:$0xff]  ;;  %v18842_v9 = vld [vmem:[#allocation163_spill] sm:$0xff] }
 0x33d   :  { %10359 = vperm.xlu1 %12771, %v9462_v44   ;;  %v8153_v56 = vcombine.low %v8145_v4, %v8152_v25  ;;  %v8162_v52 = vrot.slane %v18839_v27, %v13061_v23  ;;  %v10663_v3 = vsel %vm10490_vm7, %v10662_v26, %v10658_v45  ;;  %v17021_v29 = vpop.permute.xlu0 %10227  ;;  %v7847_v40 = vcombine.low %v7839_v53, %v7846_v12  ;;  %v18843_v55 = vld [vmem:[#allocation86_spill] sm:$0xff]  ;;  %v18844_v4 = vld [vmem:[#allocation47_spill] sm:$0xff]  ;;  %v18846_v26 = vld [vmem:[#allocation93_spill] sm:$0xff] }
 0x33e   :  { %18840 = vst [vmem:[#allocation83_spill] sm:$0xff] %v17021_v29  ;;  %v8169_v1 = vrot.slane %v18841_v2, %v13061_v23  ;;  %v7856_v7 = vrot.slane %v18842_v9, %v13061_v23  ;;  %v10672_v54 = vrot.slane %v18843_v55, %v16279_v61  ;;  %v9471_v25 = vrot.slane %v18844_v4, %v13061_v23  ;;  %v18845_v44 = vld [vmem:[#allocation171_spill] sm:$0xff]  ;;  %v18847_v53 = vld [vmem:[#allocation73_spill] sm:$0xff]  ;;  %v18848_v2 = vld [vmem:[#allocation144_spill] sm:$0xff] }
 0x33f   :  { %10128 = vperm.xlu0 %12770, %v8153_v56   ;;  %v9478_v27 = vrot.slane %v18845_v44, %v13061_v23  ;;  %v7863_v45 = vrot.slane %v18846_v26, %v13061_v23  ;;  %v10702_v12 = vrot.slane %v18847_v53, %v18740_v35  ;;  %v9785_v9 = vcombine.low %v9777_v39, %v9784_v38  ;;  %v17042_v29 = vpop.permute.xlu1 %10269  ;;  %v18851_v26 = vld [vmem:[#allocation119_spill] sm:$0xff]  ;;  %v18853_v39 = vld [vmem:[#allocation160_spill] sm:$0xff] }
 0x340   :  { %v8179_v55 = vrot.slane %v18849_v41, %v13061_v23  ;;  %v10668_v56 = vsel %vm10497_vm8, %v10667_v36, %v10663_v3  ;;  %18850 = vst [vmem:[#allocation118_spill] sm:$0xff] %v17042_v29  ;;  %v9794_v4 = vrot.slane %v16763_v10, %v13061_v23  ;;  %v9801_v44 = vrot.slane %v16776_v43, %v13061_v23  ;;  %v18854_v41 = vld [vmem:[#allocation162_spill] sm:$0xff]  ;;  %v18855_v3 = vld [vmem:[#allocation113_spill] sm:$0xff] }
 0x341   :  { %10074 = vperm.xlu1 %12771, %v7847_v40   ;;  %v8186_v53 = vrot.slane %v18851_v26, %v13061_v23  ;;  %v17050_v33 = vpop.permute.xlu0 %10323  ;;  %v7873_v38 = vrot.slane %v18853_v39, %v13061_v23  ;;  %v7880_v36 = vrot.slane %v18854_v41, %v13061_v23  ;;  %v8196_v40 = vrot.slane %v18855_v3, %v13061_v23  ;;  %v18858_v39 = vld [vmem:[#allocation77_spill] sm:$0xff]  ;;  %v18859_v41 = vld [vmem:[#allocation15_spill] sm:$0xff] }
 0x342   :  { %18852 = vst [vmem:[#allocation100_spill] sm:$0xff] %v17050_v33  ;;  %v8203_v10 = vrot.slane %v18856_v59, %v13061_v23  ;;  %v10673_v29 = vsel %vm10504_vm9, %v10672_v54, %v10668_v56  ;;  %v9479_v43 = vcombine.low %v9471_v25, %v9478_v27  ;;  %v8170_v51 = vcombine.low %v8162_v52, %v8169_v1  ;;  %v18857_v33 = vld [vmem:[#allocation54_spill] sm:$0xff]  ;;  %v18860_v3 = vld [vmem:[#allocation75_spill] sm:$0xff]  ;;  %v18861_v59 = vld [vmem:[#allocation45_spill] sm:$0xff] }
 0x343   :  { %10416 = vperm.xlu0 %12770, %v9785_v9   ;;  %v7864_v26 = vcombine.low %v7856_v7, %v7863_v45  ;;  %v9488_v46 = vrot.slane %v18857_v33, %v13061_v23  ;;  %v9495_v18 = vrot.slane %v18858_v39, %v13061_v23  ;;  %v7890_v61 = vrot.slane %v18859_v41, %v13061_v23  ;;  %v18862_v54 = vld [vmem:[#allocation150_spill] sm:$0xff]  ;;  %v17073_v52 = vpop.permute.xlu1 %10032  ;;  %v18865_v56 = vld [vmem:[#allocation112_spill] sm:$0xff]  ;;  %v18866_v41 = vld [vmem:[#allocation151_spill] sm:$0xff] }
 0x344   :  { %v7897_v57 = vrot.slane %v18860_v3, %v13061_v23  ;;  %v11018_v28 = vrot.slane %v18861_v59, %v18740_v35  ;;  %18863 = vst [vmem:[#allocation166_spill] sm:$0xff] %v17073_v52  ;;  %v9802_v7 = vcombine.low %v9794_v4, %v9801_v44  ;;  %v8187_v33 = vcombine.low %v8179_v55, %v8186_v53  ;;  %v18868_v4 = vld [vmem:[#allocation136_spill] sm:$0xff]  ;;  %v18869_v53 = vld [vmem:[#allocation63_spill] sm:$0xff] }
 0x345   :  { %10362 = vperm.xlu1 %12771, %v9479_v43   ;;  %v10678_v1 = vsel %vm10511_vm10, %v10677_v42, %v10673_v29  ;;  %v17076_v27 = vpop.permute.xlu0 %10182  ;;  %v7881_v45 = vcombine.low %v7873_v38, %v7880_v36  ;;  %v17078_v9 = vcombine.low %v8196_v40, %v8203_v10  ;;  %v8213_v39 = vrot.slane %v18865_v56, %v13061_v23  ;;  %v18867_v42 = vld [vmem:[#allocation131_spill] sm:$0xff]  ;;  %v18872_v56 = vld [vmem:[#allocation85_spill] sm:$0xff] }
 0x346   :  { %18864 = vst [vmem:[#allocation60_spill] sm:$0xff] %v17076_v27  ;;  %v10682_v3 = vrot.slane %v18866_v41, %v16381_v16  ;;  %v9811_v59 = vrot.slane %v16750_v63, %v13061_v23  ;;  %v9818_v55 = vrot.slane %v16752_v5, %v13061_v23  ;;  %v8220_v29 = vrot.slane %v18867_v42, %v13061_v23  ;;  %v18870_v63 = vld [vmem:[#allocation64_spill] sm:$0xff]  ;;  %v18871_v5 = vld [vmem:[#allocation21_spill] sm:$0xff]  ;;  %v18873_v42 = vld [vmem:[#allocation106_spill] sm:$0xff] }
 0x347   :  { %10131 = vperm.xlu0 %12770, %v8170_v51   ;;  %v11176_v44 = vrot.slane %v18868_v4, %v18740_v35  ;;  %v10706_v38 = vrot.slane %v18869_v53, %v18745_v62  ;;  %v9496_v36 = vcombine.low %v9488_v46, %v9495_v18  ;;  %v17094_v40 = vcombine.low %v7890_v61, %v7897_v57  ;;  %v17096_v10 = vpop.permute.xlu1 %10224  ;;  %v18875_v61 = vld [vmem:[#allocation68_spill] sm:$0xff] }
 0x348   :  { %v7907_v51 = vrot.slane %v18870_v63, %v13061_v23  ;;  %v7914_v43 = vrot.slane %v18871_v5, %v13061_v23  ;;  %v7924_v41 = vrot.slane %v18872_v56, %v13061_v23  ;;  %v7931_v4 = vrot.slane %v18873_v42, %v13061_v23  ;;  %v18876_v18 = vld [vmem:[#allocation44_spill] sm:$0xff]  ;;  %v18878_v63 = vld [vmem:[#allocation78_spill] sm:$0xff]  ;;  %v18883_v42 = vld [vmem:[#allocation117_spill] sm:$0xff] }
 0x349   :  { %10077 = vperm.xlu1 %12771, %v7864_v26   ;;  %v17106_v25 = vpop.permute.xlu0 %10278  ;;  %v9505_v57 = vrot.slane %v18875_v61, %v13061_v23  ;;  %v9512_v46 = vrot.slane %v18876_v18, %v13061_v23  ;;  %v18877_v26 = vld [vmem:[#allocation16_spill] sm:$0xff]  ;;  %v7948_v5 = vrot.slane %v18878_v63, %v13061_v23  ;;  %v17117_v27 = vsel %vm10518_vm11, %v10682_v3, %v10678_v1  ;;  %v18881_v18 = vld [vmem:[#allocation17_spill] sm:$0xff]  ;;  %v18882_v1 = vld [vmem:[#allocation179_spill] sm:$0xff] }
 0x34a   :  { %18874 = vst [vmem:[#allocation32_spill] sm:$0xff] %v17106_v25  ;;  %v7941_v53 = vrot.slane %v18877_v26, %v13061_v23  ;;  %18879 = vst [vmem:[#allocation82_spill] sm:$0xff] %v17117_v27  ;;  %v9819_v25 = vcombine.low %v9811_v59, %v9818_v55  ;;  %v17121_v16 = vcombine.low %v8213_v39, %v8220_v29  ;;  %v18893_v27 = vld [vmem:[#allocation39_spill] sm:$0xff] }
 0x34b   :  { %10419 = vperm.xlu0 %12770, %v9802_v7   ;;  %v10707_v61 = vsel %vm10441_vm0, %v10706_v38, %v10702_v12  ;;  %v10943_v52 = vrot.slane %v18881_v18, %v18745_v62  ;;  %v9828_v26 = vrot.slane %v16880_v24, %v13061_v23  ;;  %v9835_v63 = vrot.slane %v16882_v49, %v13061_v23  ;;  %v17134_v59 = vpop.permute.xlu1 %10320  ;;  %v18884_v24 = vld [vmem:[#allocation159_spill] sm:$0xff]  ;;  %v18885_v49 = vld [vmem:[#allocation76_spill] sm:$0xff] }
 0x34c   :  { %v10711_v3 = vrot.slane %v18882_v1, %v18747_v11  ;;  %v11022_v7 = vrot.slane %v18883_v42, %v18745_v62  ;;  %v17136_v39 = vcombine.low %v7907_v51, %v7914_v43  ;;  %v17138_v12 = vcombine.low %v7924_v41, %v7931_v4  ;;  %v18887_v42 = vld [vmem:[#allocation148_spill] sm:$0xff] }
 0x34d   :  { %10365 = vperm.xlu1 %12771, %v9496_v36   ;;  %v17140_v55 = vpop.permute.xlu0 %10041  ;;  %v9513_v29 = vcombine.low %v9505_v57, %v9512_v46  ;;  %v9522_v38 = vrot.slane %v18884_v24, %v13061_v23  ;;  %v9529_v18 = vrot.slane %v18885_v49, %v13061_v23  ;;  %v17146_v1 = vcombine.low %v7941_v53, %v7948_v5  ;;  %v18888_v36 = vld [vmem:[#allocation134_spill] sm:$0xff]  ;;  %v18889_v43 = vld [vmem:[#allocation52_spill] sm:$0xff]  ;;  %v18892_v24 = vld [vmem:[#allocation107_spill] sm:$0xff] }
 0x34e   :  { %v11027_v56 = vrot.slane %v18887_v42, %v18747_v11  ;;  %v11185_v51 = vrot.slane %v18888_v36, %v18747_v11  ;;  %v11180_v41 = vrot.slane %v18889_v43, %v18745_v62  ;;  %v10712_v4 = vsel %vm10448_vm1, %v10711_v3, %v10707_v61  ;;  %v18891_v53 = vld [vmem:[#allocation174_spill] sm:$0xff] }
 0x34f   :  { %18886 = vst [vmem:[#allocation157_spill] sm:$0xff] %v17146_v1  ;;  %10134 = vperm.xlu0 %12770, %v8187_v33   ;;  %v18890_v57 = vrot.slane %v18848_v2, %v18740_v35  ;;  %v11101_v5 = vrot.slane %v18891_v53, %v18745_v62  ;;  %v10948_v49 = vrot.slane %v18892_v24, %v18747_v11  ;;  %v17166_v1 = vpop.permute.xlu1 %10179  ;;  %v18894_v33 = vld [vmem:[#allocation172_spill] sm:$0xff] }
 0x350   :  { %v9836_v42 = vcombine.low %v9828_v26, %v9835_v63  ;;  %v11023_v36 = vsel %vm10441_vm0, %v11022_v7, %v11018_v28  ;;  %v11106_v43 = vrot.slane %v18893_v27, %v18747_v11  ;;  %v9845_v2 = vrot.slane %v16846_v8, %v13061_v23  ;;  %v18895_v28 = vld [vmem:[#allocation56_spill] sm:$0xff]  ;;  %v18896_v27 = vld [vmem:[#allocation58_spill] sm:$0xff]  ;;  %v18903_v11 = vld [vmem:[#allocation13_spill] sm:$0xff] }
 0x351   :  { %v10944_v46 = vsel %vm10441_vm0, %v10943_v52, %v18890_v57  ;;  %10080 = vperm.xlu1 %12771, %v7881_v45   ;;  %v9852_v52 = vrot.slane %v16878_v58, %v13061_v23  ;;  %v10953_v61 = vrot.slane %v18894_v33, %v18750_v50  ;;  %v17174_v3 = vpop.permute.xlu0 %10233  ;;  %v9530_v26 = vcombine.low %v9522_v38, %v9529_v18  ;;  %v18897_v57 = vld [vmem:[#allocation153_spill] sm:$0xff]  ;;  %v18898_v58 = vld [vmem:[#allocation59_spill] sm:$0xff]  ;;  %v18899_v24 = vld [vmem:[#allocation152_spill] sm:$0xff] }
 0x352   :  { %v9539_v63 = vrot.slane %v18895_v28, %v13061_v23  ;;  %v9546_v7 = vrot.slane %v18896_v27, %v13061_v23  ;;  %v11181_v45 = vsel %vm10441_vm0, %v11180_v41, %v11176_v44  ;;  %v10716_v8 = vrot.slane %v18897_v57, %v18750_v50  ;;  %v18901_v44 = vld [vmem:[#allocation139_spill] sm:$0xff] }
 0x353   :  { %10422 = vperm.xlu0 %12770, %v9819_v25   ;;  %v9556_v53 = vrot.slane %v18898_v58, %v13061_v23  ;;  %v9563_v33 = vrot.slane %v18899_v24, %v13061_v23  ;;  %v18900_v38 = vrot.slane %v18862_v54, %v18740_v35  ;;  %v10949_v28 = vsel %vm10448_vm1, %v10948_v49, %v10944_v46  ;;  %v18902_v25 = vld [vmem:[#allocation33_spill] sm:$0xff]  ;;  %v17200_v62 = vpop.permute.xlu1 %10275 }
 0x354   :  { %v11028_v27 = vsel %vm10448_vm1, %v11027_v56, %v11023_v36  ;;  %v11032_v41 = vrot.slane %v18901_v44, %v18750_v50  ;;  %v11111_v57 = vrot.slane %v18902_v25, %v18750_v50  ;;  %v11190_v24 = vrot.slane %v18903_v11, %v18750_v50  ;;  %v18904_v46 = vld [vmem:[#allocation149_spill] sm:$0xff]  ;;  %v18905_v56 = vld [vmem:[#allocation87_spill] sm:$0xff] }
 0x355   :  { %v11102_v18 = vsel %vm10441_vm0, %v11101_v5, %v18900_v38  ;;  %10368 = vperm.xlu1 %12771, %v9513_v29   ;;  %v17202_v54 = vcombine.low %v9845_v2, %v9852_v52  ;;  %v10721_v5 = vrot.slane %v18904_v46, %v18753_v31  ;;  %v11037_v49 = vrot.slane %v18905_v56, %v18753_v31  ;;  %v17209_v38 = vpop.permute.xlu0 %10329  ;;  %v18906_v29 = vld [vmem:[#allocation184_spill] sm:$0xff]  ;;  %v18913_v56 = vld [vmem:[#allocation55_spill] sm:$0xff] }
 0x356   :  { %v11107_v58 = vsel %vm10448_vm1, %v11106_v43, %v11102_v18  ;;  %v11186_v36 = vsel %vm10448_vm1, %v11185_v51, %v11181_v45  ;;  %v17211_v44 = vcombine.low %v9539_v63, %v9546_v7  ;;  %v10717_v43 = vsel %vm10455_vm2, %v10716_v8, %v10712_v4  ;;  %v18907_v18 = vld [vmem:[#allocation124_spill] sm:$0xff]  ;;  %v18908_v63 = vld [vmem:[#allocation22_spill] sm:$0xff] }
 0x357   :  { %v10954_v11 = vsel %vm10455_vm2, %v10953_v61, %v10949_v28  ;;  %v10958_v2 = vrot.slane %v18906_v29, %v18753_v31  ;;  %10137 = vperm.xlu0 %12770, %v17078_v9   ;;  %v17218_v52 = vcombine.low %v9556_v53, %v9563_v33  ;;  %v11195_v25 = vrot.slane %v18907_v18, %v18753_v31  ;;  %v18909_v4 = vld [vmem:[#allocation138_spill] sm:$0xff]  ;;  %v18910_v28 = vld [vmem:[#allocation65_spill] sm:$0xff]  ;;  %v17233_v46 = vpop.permute.xlu1 %10038  ;;  %v18915_v18 = vld [vmem:[#allocation183_spill] sm:$0xff] }
 0x358   :  { %v11033_v51 = vsel %vm10455_vm2, %v11032_v41, %v11028_v27  ;;  %v11112_v45 = vsel %vm10455_vm2, %v11111_v57, %v11107_v58  ;;  %v11116_v7 = vrot.slane %v18908_v63, %v18753_v31  ;;  %v10963_v61 = vrot.slane %v18909_v4, %v18757_v20  ;;  %v18911_v53 = vld [vmem:[#allocation97_spill] sm:$0xff]  ;;  %v18912_v27 = vld [vmem:[#allocation175_spill] sm:$0xff] }
 0x359   :  { %v11191_v8 = vsel %vm10455_vm2, %v11190_v24, %v11186_v36  ;;  %v10726_v9 = vrot.slane %v18910_v28, %v18757_v20  ;;  %v11042_v33 = vrot.slane %v18911_v53, %v18757_v20  ;;  %10083 = vperm.xlu1 %12771, %v17094_v40   ;;  %v11121_v41 = vrot.slane %v18912_v27, %v18757_v20  ;;  %v17239_v58 = vpop.permute.xlu0 %10044  ;;  %v18914_v36 = vld [vmem:[#allocation173_spill] sm:$0xff]  ;;  %v18916_v28 = vld [vmem:[#allocation92_spill] sm:$0xff] }
 0x35a   :  { %v10722_v57 = vsel %vm10462_vm3, %v10721_v5, %v10717_v43  ;;  %v9573_v24 = vrot.slane %v18913_v56, %v13061_v23  ;;  %v9580_v29 = vrot.slane %v18914_v36, %v13061_v23  ;;  %v10731_v63 = vrot.slane %v18915_v18, %v18762_v32  ;;  %v18917_v5 = vld [vmem:[#allocation20_spill] sm:$0xff] }
 0x35b   :  { %v10959_v4 = vsel %vm10462_vm3, %v10958_v2, %v10954_v11  ;;  %v11038_v40 = vsel %vm10462_vm3, %v11037_v49, %v11033_v51  ;;  %v11200_v53 = vrot.slane %v18916_v28, %v18757_v20  ;;  %10425 = vperm.xlu0 %12770, %v9836_v42   ;;  %v11047_v43 = vrot.slane %v18917_v5, %v18762_v32  ;;  %v18918_v36 = vld [vmem:[#allocation176_spill] sm:$0xff]  ;;  %v17263_v2 = vpop.permute.xlu1 %10230 }
 0x35c   :  { %v11117_v27 = vsel %vm10462_vm3, %v11116_v7, %v11112_v45  ;;  %v11196_v56 = vsel %vm10462_vm3, %v11195_v25, %v11191_v8  ;;  %v10968_v31 = vrot.slane %v18918_v36, %v18762_v32  ;;  %v10727_v18 = vsel %vm10469_vm4, %v10726_v9, %v10722_v57  ;;  %v18919_v51 = vld [vmem:[#allocation84_spill] sm:$0xff] }
 0x35d   :  { %v11043_v11 = vsel %vm10469_vm4, %v11042_v33, %v11038_v40  ;;  %v11126_v49 = vrot.slane %v16757_v13, %v18762_v32  ;;  %v10736_v42 = vrot.slane %v16783_v34, %v16090_v22  ;;  %10371 = vperm.xlu1 %12771, %v9530_v26   ;;  %v11205_v45 = vrot.slane %v18919_v51, %v18762_v32  ;;  %v17270_v8 = vpop.permute.xlu0 %10236  ;;  %v18920_v13 = vld [vmem:[#allocation81_spill] sm:$0xff] }
 0x35e   :  { %v10964_v25 = vsel %vm10469_vm4, %v10963_v61, %v10959_v4  ;;  %v11052_v7 = vrot.slane %v16812_v14, %v16090_v22  ;;  %v17272_v9 = vcombine.low %v9573_v24, %v9580_v29  ;;  %v10973_v33 = vrot.slane %v18920_v13, %v16090_v22  ;;  %v18921_v61 = vld [vmem:[#allocation164_spill] sm:$0xff]  ;;  %v18925_v13 = vld [vmem:[#allocation122_spill] sm:$0xff] }
 0x35f   :  { %v11201_v34 = vsel %vm10469_vm4, %v11200_v53, %v11196_v56  ;;  %v11122_v57 = vsel %vm10469_vm4, %v11121_v41, %v11117_v27  ;;  %v11210_v26 = vrot.slane %v16840_v6, %v16090_v22  ;;  %10140 = vperm.xlu0 %12770, %v17121_v16   ;;  %v11131_v4 = vrot.slane %v18921_v61, %v16090_v22  ;;  %v17292_v16 = vpop.permute.xlu1 %10326 }
 0x360   :  { %v10969_v14 = vsel %vm10476_vm5, %v10968_v31, %v10964_v25  ;;  %v10732_v24 = vsel %vm10476_vm5, %v10731_v63, %v10727_v18  ;;  %v11048_v29 = vsel %vm10476_vm5, %v11047_v43, %v11043_v11  ;;  %v11127_v40 = vsel %vm10476_vm5, %v11126_v49, %v11122_v57  ;;  %v18922_v31 = vld [vmem:[#allocation111_spill] sm:$0xff]  ;;  %v18926_v57 = vld [vmem:[#allocation129_spill] sm:$0xff] }
 0x361   :  { %v10737_v28 = vsel %vm10483_vm6, %v10736_v42, %v10732_v24  ;;  %v10978_v41 = vrot.slane %v16869_v60, %v16182_v17  ;;  %v11136_v6 = vrot.slane %v16900_v21, %v16182_v17  ;;  %10086 = vperm.xlu1 %12771, %v17136_v39   ;;  %v10741_v53 = vrot.slane %v18922_v31, %v16182_v17  ;;  %v17301_v27 = vpop.permute.xlu0 %10332  ;;  %v18923_v60 = vld [vmem:[#allocation169_spill] sm:$0xff]  ;;  %v18929_v24 = vld [vmem:[#allocation23_spill] sm:$0xff]  ;;  %v18931_v31 = vld [vmem:[#allocation118_spill] sm:$0xff] }
 0x362   :  { %v11053_v63 = vsel %vm10483_vm6, %v11052_v7, %v11048_v29  ;;  %v11206_v5 = vsel %vm10476_vm5, %v11205_v45, %v11201_v34  ;;  %v11062_v43 = vrot.slane %v16955_v15, %v18772_v47  ;;  %v11057_v56 = vrot.slane %v18923_v60, %v16182_v17  ;;  %v18933_v60 = vld [vmem:[#allocation156_spill] sm:$0xff] }
 0x363   :  { %v11211_v21 = vsel %vm10483_vm6, %v11210_v26, %v11206_v5  ;;  %v10974_v36 = vsel %vm10483_vm6, %v10973_v33, %v10969_v14  ;;  %v11220_v39 = vrot.slane %v16984_v30, %v18772_v47  ;;  %10428 = vperm.xlu0 %12770, %v17202_v54   ;;  %v11215_v18 = vrot.slane %v16768_v0, %v16182_v17  ;;  %v17321_v54 = vpop.permute.xlu1 %10185  ;;  %v18924_v0 = vld [vmem:[#allocation102_spill] sm:$0xff] }
 0x364   :  { %v10983_v15 = vrot.slane %v16796_v48, %v18772_v47  ;;  %v11132_v11 = vsel %vm10483_vm6, %v11131_v4, %v11127_v40  ;;  %v10742_v49 = vsel %vm10490_vm7, %v10741_v53, %v10737_v28  ;;  %v10979_v42 = vsel %vm10490_vm7, %v10978_v41, %v10974_v36  ;;  %v18928_v4 = vld [vmem:[#allocation62_spill] sm:$0xff]  ;;  %v18930_v40 = vld [vmem:[#allocation155_spill] sm:$0xff] }
 0x365   :  { %v11137_v51 = vsel %vm10490_vm7, %v11136_v6, %v11132_v11  ;;  %v10746_v45 = vrot.slane %v16928_v37, %v18772_v47  ;;  %v11058_v30 = vsel %vm10490_vm7, %v11057_v56, %v11053_v63  ;;  %10374 = vperm.xlu1 %12771, %v17211_v44   ;;  %v11141_v48 = vrot.slane %v18924_v0, %v18772_v47  ;;  %v17330_v34 = vpop.permute.xlu0 %10050  ;;  %v18927_v37 = vld [vmem:[#allocation66_spill] sm:$0xff] }
 0x366   :  { %v11063_v25 = vsel %vm10497_vm8, %v11062_v43, %v11058_v30  ;;  %v11216_v7 = vsel %vm10490_vm7, %v11215_v18, %v11211_v21  ;;  %v11072_v33 = vrot.slane %v17096_v10, %v18925_v13  ;;  %v11067_v26 = vrot.slane %v18927_v37, %v18926_v57  ;;  %v18932_v63 = vld [vmem:[#allocation166_spill] sm:$0xff]  ;;  %v18937_v30 = vld [vmem:[#allocation103_spill] sm:$0xff] }
 0x367   :  { %v11221_v61 = vsel %vm10497_vm8, %v11220_v39, %v11216_v7  ;;  %v10988_v44 = vrot.slane %v18928_v4, %v18926_v57  ;;  %v11230_v14 = vrot.slane %v17134_v59, %v18925_v13  ;;  %v10751_v29 = vrot.slane %v18929_v24, %v18926_v57  ;;  %v17351_v43 = vpop.permute.xlu1 %10281  ;;  %v18934_v39 = vld [vmem:[#allocation48_spill] sm:$0xff] }
 0x368   :  { %v11225_v28 = vrot.slane %v18930_v40, %v18926_v57  ;;  %v10984_v10 = vsel %vm10497_vm8, %v10983_v15, %v10979_v42  ;;  %v11142_v41 = vsel %vm10497_vm8, %v11141_v48, %v11137_v51  ;;  %v10747_v6 = vsel %vm10497_vm8, %v10746_v45, %v10742_v49  ;;  %v18935_v49 = vld [vmem:[#allocation50_spill] sm:$0xff]  ;;  %v18936_v42 = vld [vmem:[#allocation83_spill] sm:$0xff]  ;;  %v18938_v48 = vld [vmem:[#allocation100_spill] sm:$0xff] }
 0x369   :  { %v11146_v53 = vrot.slane %v18931_v31, %v18926_v57  ;;  %v10756_v5 = vrot.slane %v18932_v63, %v18925_v13  ;;  %v11068_v59 = vsel %vm10504_vm9, %v11067_v26, %v11063_v25  ;;  %10089 = vperm.xlu1 %12771, %v17138_v12   ;;  %v10993_v56 = vrot.slane %v18933_v60, %v18925_v13  ;;  %v17360_v15 = vpop.permute.xlu0 %10098  ;;  %v18941_v63 = vld [vmem:[#allocation32_spill] sm:$0xff]  ;;  %v18942_v60 = vld [vmem:[#allocation157_spill] sm:$0xff] }
 0x36a   :  { %v11073_v21 = vsel %vm10511_vm10, %v11072_v33, %v11068_v59  ;;  %v11226_v36 = vsel %vm10504_vm9, %v11225_v28, %v11221_v61  ;;  %v11082_v18 = vrot.slane %v17263_v2, %v18934_v39  ;;  %v10989_v11 = vsel %vm10504_vm9, %v10988_v44, %v10984_v10  ;;  %v18939_v33 = vld [vmem:[#allocation25_spill] sm:$0xff] }
 0x36b   :  { %v11077_v51 = vrot.slane %v18936_v42, %v18935_v49  ;;  %v11231_v45 = vsel %vm10511_vm10, %v11230_v14, %v11226_v36  ;;  %v10998_v12 = vrot.slane %v17166_v1, %v18935_v49  ;;  %v11151_v0 = vrot.slane %v18937_v30, %v18925_v13  ;;  %v9997_v4 = vpop.permute.xlu1 %9996 }
 0x36c   :  { %v11235_v25 = vrot.slane %v18938_v48, %v18935_v49  ;;  %v10752_v2 = vsel %vm10504_vm9, %v10751_v29, %v10747_v6  ;;  %v11240_v7 = vrot.slane %v17292_v16, %v18934_v39  ;;  %v10761_v37 = vrot.slane %v18939_v33, %v18935_v49  ;;  %v18944_v48 = vld [vmem:[#allocation37_spill] sm:$0xff]  ;;  %v18947_v33 = vld [vmem:[#allocation82_spill] sm:$0xff] }
 0x36d   :  { %v11147_v26 = vsel %vm10504_vm9, %v11146_v53, %v11142_v41  ;;  %v10757_v61 = vsel %vm10511_vm10, %v10756_v5, %v10752_v2  ;;  %v11078_v1 = vsel %vm10518_vm11, %v11077_v51, %v11073_v21  ;;  %10377 = vperm.xlu1 %12771, %v17218_v52   ;;  %v10994_v44 = vsel %vm10511_vm10, %v10993_v56, %v10989_v11  ;;  %v17386_v29 = vpop.permute.xlu0 %10338  ;;  %v18940_v41 = vld [vmem:[#allocation60_spill] sm:$0xff]  ;;  %v18943_v21 = vld [vmem:[#allocation189_spill] sm:$0xff] }
 0x36e   :  { %v10766_v14 = vrot.slane %v17233_v46, %v18934_v39  ;;  %v11083_v24 = vsel %vm10525_vm12, %v11082_v18, %v11078_v1  ;;  %v11236_v16 = vsel %vm10518_vm11, %v11235_v25, %v11231_v45  ;;  %v10999_v40 = vsel %vm10518_vm11, %v10998_v12, %v10994_v44  ;;  %v18945_v25 = vld [vmem:[#allocation38_spill] sm:$0xff]  ;;  %v18950_v1 = vld [vmem:[#allocation51_spill] sm:$0xff] }
 0x36f   :  { %v11087_v28 = vrot.slane %v17174_v3, %v16481_v19  ;;  %v11156_v10 = vrot.slane %v17200_v62, %v18935_v49  ;;  %v11008_v52 = vrot.slane %v17321_v54, %v16481_v19  ;;  %v11003_v46 = vrot.slane %v18940_v41, %v18934_v39  ;;  %v10189_v59 = vpop.permute.xlu1 %10188 }
 0x370   :  { %v11152_v6 = vsel %vm10511_vm10, %v11151_v0, %v11147_v26  ;;  %v10762_v31 = vsel %vm10518_vm11, %v10761_v37, %v10757_v61  ;;  %v11241_v53 = vsel %vm10525_vm12, %v11240_v7, %v11236_v16  ;;  %v11161_v5 = vrot.slane %v18941_v63, %v18934_v39  ;;  %v18948_v37 = vld [vmem:[#allocation132_spill] sm:$0xff] }
 0x371   :  { %v10771_v3 = vrot.slane %v17140_v55, %v16481_v19  ;;  %v11245_v62 = vrot.slane %v17209_v38, %v16481_v19  ;;  %v11088_v54 = vsel %vm10532_vm13, %v11087_v28, %v11083_v24  ;;  %10092 = vperm.xlu1 %12771, %v18942_v60   ;;  %v10767_v56 = vsel %vm10525_vm12, %v10766_v14, %v10762_v31  ;;  %v17413_v42 = vpop.permute.xlu0 %10386  ;;  %v18951_v28 = vld [vmem:[#allocation178_spill] sm:$0xff] }
 0x372   :  { %v11092_v36 = vrot.slane %v17270_v8, %v18943_v21  ;;  %v11004_v18 = vsel %vm10525_vm12, %v11003_v46, %v10999_v40  ;;  %v11013_v11 = vrot.slane %v10189_v59, %v18943_v21  ;;  %v11157_v55 = vsel %vm10518_vm11, %v11156_v10, %v11152_v6 }
 0x373   :  { %v11246_v38 = vsel %vm10532_vm13, %v11245_v62, %v11241_v53  ;;  %v11009_v51 = vsel %vm10532_vm13, %v11008_v52, %v11004_v18  ;;  %v11166_v45 = vrot.slane %v17351_v43, %v16481_v19  ;;  %v11250_v8 = vrot.slane %v17301_v27, %v18943_v21 }
 0x374   :  { %v11093_v12 = vsel %vm10539_vm14, %v11092_v36, %v11088_v54  ;;  %v10697_v30 = vrot.slane %v9997_v4, %v18943_v21  ;;  %v11014_v0 = vsel %vm10539_vm14, %v11013_v11, %v11009_v51  ;;  %v18946_v2 = vrot.slane %v18945_v25, %v18943_v21  ;;  %v10285_v4 = vpop.permute.xlu1 %10284  ;;  %v11457_v25 = vld [vmem:[#allocation6 + $0x10] sm:$0xff] }
 0x375   :  { %v18949_v26 = vrot.slane %v18948_v37, %v18934_v39  ;;  %v10772_v61 = vsel %vm10532_vm13, %v10771_v3, %v10767_v56  ;;  %v11411_v27 = vsel %vm11410_vm15, %v11014_v0, %v18950_v1  ;;  %10380 = vperm.xlu1 %12771, %v17272_v9   ;;  %v10776_v44 = vrot.slane %v17239_v58, %v18943_v21  ;;  %v10102_v40 = vpop.permute.xlu0 %10101  ;;  %v18953_v3 = vld [vmem:[#allocation29_spill] sm:$0xff]  ;;  %v11470_v1 = vld [vmem:[#allocation6 + $0x78] sm:$0xff] }
 0x376   :  { %v10619_v7 = vsel %vm10539_vm14, %v18946_v2, %v18944_v48  ;;  %v11251_v14 = vsel %vm10539_vm14, %v11250_v8, %v11246_v38  ;;  %v11162_v24 = vsel %vm10525_vm12, %v11161_v5, %v11157_v55  ;;  %v11171_v16 = vrot.slane %v10285_v4, %v18943_v21 }
 0x377   :  { %v10688_v43 = vsel %vm10525_vm12, %v18949_v26, %v18947_v33  ;;  %v18952_v10 = vrot.slane %v18951_v28, %v16481_v19  ;;  %v11412_v41 = vsel %vm11410_vm15, %v11093_v12, %v10619_v7  ;;  %v11167_v46 = vsel %vm10532_vm13, %v11166_v45, %v11162_v24  ;;  %v11463_v26 = vld [vmem:[#allocation6 + $0x40] sm:$0xff]  ;;  %v11662_v24 = vld [vmem:[#allocation6 + $0x678] sm:$0xff] }
 0x378   :  { %v10777_v9 = vsel %vm10539_vm14, %v10776_v44, %v10772_v61  ;;  %v11417_v6 = vcombine.low %v11411_v27, %v11412_v41  ;;  %v11172_v31 = vsel %vm10539_vm14, %v11171_v16, %v11167_v46  ;;  %v10048_v5 = vpop.permute.xlu1 %10047  ;;  %v10785_v62 = vrot.slane %v17330_v34, %v18953_v3  ;;  %v18954_v34 = vld [vmem:[#allocation125_spill] sm:$0xff]  ;;  %v11655_v61 = vld [vmem:[#allocation6 + $0x640] sm:$0xff] }
 0x379   :  { %v10693_v52 = vsel %vm10532_vm13, %v18952_v10, %v10688_v43  ;;  %v11414_v53 = vsel %vm11410_vm15, %v11251_v14, %v10777_v9  ;;  %v10781_v59 = vrot.slane %v10048_v5, %v18740_v35  ;;  %v10390_v60 = vpop.permute.xlu0 %10389  ;;  %v10864_v55 = vrot.slane %v17360_v15, %v18953_v3  ;;  %v11649_v43 = vld [vmem:[#allocation6 + $0x610] sm:$0xff]  ;;  %v11476_v14 = vld [vmem:[#allocation6 + $0xa8] sm:$0xff] }
 0x37a   :  { %v10698_v58 = vsel %vm10539_vm14, %v10697_v30, %v10693_v52  ;;  %v11425_v56 = vrot.slane %v11417_v6, %v13061_v23  ;;  %v10869_v12 = vrot.slane %v10102_v40, %v18954_v34  ;;  %v11259_v2 = vrot.slane %v17386_v29, %v18953_v3  ;;  %v11668_v16 = vld [vmem:[#allocation6 + $0x6a8] sm:$0xff]  ;;  %v18956_v6 = vld [vmem:[#allocation143_spill] sm:$0xff] }
 0x37b   :  { %v11413_v63 = vsel %vm11410_vm15, %v11172_v31, %v10698_v58  ;;  %v17461_v18 = vsel %vm10441_vm0, %v10785_v62, %v10781_v59  ;;  %v12425_v29 = vpack.c.bf16 %v11463_v26, %v11457_v25  ;;  %v12617_v28 = vpack.c.bf16 %v11655_v61, %v11649_v43 }
 0x37c   :  { %v11418_v54 = vcombine.low %v11413_v63, %v11414_v53  ;;  %v10096_v11 = vpop.permute.xlu1 %10095  ;;  %v11338_v10 = vrot.slane %v17413_v42, %v18953_v3  ;;  %v11343_v58 = vrot.slane %v10390_v60, %v18954_v34  ;;  %v12427_v53 = vpack.c.bf16 %v11476_v14, %v11470_v1  ;;  %v11481_v14 = vld [vmem:[#allocation6 + $0xd0] sm:$0xff] }
 0x37d   :  { %v10860_v51 = vrot.slane %v10096_v11, %v18740_v35  ;;  %v10105_v45 = vpop.permute.xlu0 %10104  ;;  %v12619_v63 = vpack.c.bf16 %v11668_v16, %v11662_v24  ;;  %v11475_v11 = vld [vmem:[#allocation6 + $0xa0] sm:$0xff]  ;;  %v11673_v16 = vld [vmem:[#allocation6 + $0x6d0] sm:$0xff] }
 0x37e   :  { %v11432_v36 = vrot.slane %v11418_v54, %v13061_v23  ;;  %v10874_v30 = vrot.slane %v10105_v45, %v18750_v50  ;;  %v11482_v45 = vld [vmem:[#allocation6 + $0xd8] sm:$0xff]  ;;  %v11487_v24 = vld [vmem:[#allocation6 + $0x100] sm:$0xff] }
 0x37f   :  { %v10865_v8 = vsel %vm10441_vm0, %v10864_v55, %v10860_v51  ;;  %v11667_v51 = vld [vmem:[#allocation6 + $0x6a0] sm:$0xff] }
 0x380   :  { %v11433_v38 = vcombine.low %v11425_v56, %v11432_v36  ;;  %v10870_v0 = vsel %vm10448_vm1, %v10869_v12, %v10865_v8  ;;  %v10336_v48 = vpop.permute.xlu1 %10335  ;;  %v11469_v36 = vld [vmem:[#allocation6 + $0x70] sm:$0xff]  ;;  %v11488_v8 = vld [vmem:[#allocation6 + $0x108] sm:$0xff] }
 0x381   :  { %v10875_v7 = vsel %vm10455_vm2, %v10874_v30, %v10870_v0  ;;  %v11255_v15 = vrot.slane %v10336_v48, %v18740_v35  ;;  %v10393_v33 = vpop.permute.xlu0 %10392  ;;  %v11674_v30 = vld [vmem:[#allocation6 + $0x6d8] sm:$0xff]  ;;  %v11680_v0 = vld [vmem:[#allocation6 + $0x708] sm:$0xff]  ;;  %v12431_v26 = vpack.c.bf16 %v11488_v8, %v11482_v45 }
 0x382   :  { %v11453_v37 = vmul.f32 0.00390625, %v11433_v38  ;;  %v11348_v5 = vrot.slane %v10393_v33, %v18750_v50  ;;  %v11661_v38 = vld [vmem:[#allocation6 + $0x670] sm:$0xff]  ;;  %v12623_v43 = vpack.c.bf16 %v11680_v0, %v11674_v30  ;;  %v11698_v45 = vld [vmem:[#allocation6 + $0x798] sm:$0xff] }
 0x383   :  { %v11260_v27 = vsel %vm10441_vm0, %v11259_v2, %v11255_v15  ;;  %v12429_v15 = vpack.c.bf16 %v11475_v11, %v11469_v36  ;;  %v12621_v33 = vpack.c.bf16 %v11667_v51, %v11661_v38  ;;  %v11685_v36 = vld [vmem:[#allocation6 + $0x730] sm:$0xff]  ;;  %v11691_v11 = vld [vmem:[#allocation6 + $0x760] sm:$0xff]  ;;  %v11512_v51 = vld [vmem:[#allocation6 + $0x1c8] sm:$0xff] }
 0x384   :  { %v11863_v4 = vcombine.high %v11453_v37, %v11453_v37  ;;  %v11870_v44 = vrot.slane %v11453_v37, %v13061_v23  ;;  %v10384_v40 = vpop.permute.xlu1 %10383 }
 0x385   :  { %v11334_v52 = vrot.slane %v10384_v40, %v18740_v35  ;;  %v10108_v41 = vpop.permute.xlu0 %10107  ;;  %v11679_v40 = vld [vmem:[#allocation6 + $0x700] sm:$0xff] }
 0x386   :  { %v11878_v46 = vcombine.high %v11870_v44, %v11870_v44  ;;  %v17480_v9 = vrot.slane %v11863_v4, %v13061_v23  ;;  %v10879_v31 = vrot.slane %v10108_v41, %v18956_v6 }
 0x387   :  { %v11339_v62 = vsel %vm10441_vm0, %v11338_v10, %v11334_v52  ;;  %v11686_v10 = vld [vmem:[#allocation6 + $0x738] sm:$0xff]  ;;  %v11692_v52 = vld [vmem:[#allocation6 + $0x768] sm:$0xff] }
 0x388   :  { %18955 = vst [vmem:[#allocation158_spill] sm:$0xff] %v17480_v9  ;;  %11958 = vmatprep.mubr.f32.mxu0 %v11878_v46  ;;  %12171 = vmatprep.mubr.f32.mxu1 %v11878_v46  ;;  %v11879_v35 = vcombine.high %v17480_v9, %v17480_v9  ;;  %v11344_v42 = vsel %vm10448_vm1, %v11343_v58, %v11339_v62  ;;  %v10054_v54 = vpop.permute.xlu1 %10053 }
 0x389   :  { %v10880_v3 = vsel %vm10462_vm3, %v10879_v31, %v10875_v7  ;;  %11959 = vmatmul.mubr.f32.vlgmr.msra.gmra.mrb[0].mxu0 %v11870_v44  ;;  %12172 = vmatmul.mubr.f32.vlgmr.msra.gmra.mrb[0].mxu1 %v11870_v44  ;;  %v10790_v59 = vrot.slane %v10054_v54, %v18954_v34  ;;  %v11349_v60 = vsel %vm10455_vm2, %v11348_v5, %v11344_v42  ;;  %v10396_v56 = vpop.permute.xlu0 %10395 }
 0x38a   :  { %12426 = vmatpush1.bf16.xpose.msra.mxu0 %v12425_v29  ;;  %12618 = vmatpush1.bf16.xpose.msra.mxu1 %v12617_v28  ;;  %v11353_v55 = vrot.slane %v10396_v56, %v18956_v6  ;;  %v11494_v29 = vld [vmem:[#allocation6 + $0x138] sm:$0xff]  ;;  %v11499_v56 = vld [vmem:[#allocation6 + $0x160] sm:$0xff] }
 0x38b   :  { %12029 = vmatprep.mubr.f32.mxu0 %v11879_v35  ;;  %12242 = vmatprep.mubr.f32.mxu1 %v11879_v35  ;;  %v10791_v12 = vsel %vm10448_vm1, %v10790_v59, %v17461_v18  ;;  %v12627_v35 = vpack.c.bf16 %v11692_v52, %v11686_v10 }
 0x38c   :  { %12428 = vmatprep.subr.bf16.mxu0 %v12427_v53  ;;  %12620 = vmatprep.subr.bf16.mxu1 %v12619_v63  ;;  %v11354_v48 = vsel %vm10462_vm3, %v11353_v55, %v11349_v60  ;;  %v10342_v25 = vpop.permute.xlu1 %10341  ;;  %v12433_v53 = vpack.c.bf16 %v11487_v24, %v11481_v14  ;;  %v12625_v63 = vpack.c.bf16 %v11679_v40, %v11673_v16  ;;  %v11506_v55 = vld [vmem:[#allocation6 + $0x198] sm:$0xff]  ;;  %v11716_v24 = vld [vmem:[#allocation6 + $0x828] sm:$0xff] }
 0x38d   :  { %v11264_v2 = vrot.slane %v10342_v25, %v18954_v34  ;;  %v10111_v7 = vpop.permute.xlu0 %10110  ;;  %v12629_v25 = vpack.c.bf16 %v11691_v11, %v11685_v36  ;;  %v11710_v14 = vld [vmem:[#allocation6 + $0x7f8] sm:$0xff] }
 0x38e   :  { %v10884_v37 = vrot.slane %v10111_v7, %v18757_v20  ;;  %v12635_v10 = vpack.c.bf16 %v11716_v24, %v11710_v14  ;;  %v11547_v14 = vld [vmem:[#allocation6 + $0x2e0] sm:$0xff]  ;;  %v11733_v24 = vld [vmem:[#allocation6 + $0x8b0] sm:$0xff] }
 0x38f   :  { %v11265_v61 = vsel %vm10448_vm1, %v11264_v2, %v11260_v27  ;;  %v11500_v27 = vld [vmem:[#allocation6 + $0x168] sm:$0xff]  ;;  %v12439_v2 = vpack.c.bf16 %v11512_v51, %v11506_v55 }
 0x390   :  { %v10885_v18 = vsel %vm10469_vm4, %v10884_v37, %v10880_v3  ;;  %v10057_v1 = vpop.permute.xlu1 %10056  ;;  %v12435_v62 = vpack.c.bf16 %v11500_v27, %v11494_v29 }
 0x391   :  { %v10795_v4 = vrot.slane %v10057_v1, %v18750_v50  ;;  %v10399_v44 = vpop.permute.xlu0 %10398  ;;  %v11518_v1 = vld [vmem:[#allocation6 + $0x1f8] sm:$0xff] }
 0x392   :  { %12430 = vmatpush1.bf16.xpose.msra.mxu0 %v12429_v15  ;;  %12622 = vmatpush1.bf16.xpose.msra.mxu1 %v12621_v33  ;;  %v11358_v34 = vrot.slane %v10399_v44, %v18757_v20  ;;  %v11524_v44 = vld [vmem:[#allocation6 + $0x228] sm:$0xff] }
 0x393   :  { %12432 = vmatprep.subr.bf16.mxu0 %v12431_v26  ;;  %12624 = vmatprep.subr.bf16.mxu1 %v12623_v43  ;;  %v10796_v28 = vsel %vm10455_vm2, %v10795_v4, %v10791_v12  ;;  %v11704_v12 = vld [vmem:[#allocation6 + $0x7c8] sm:$0xff]  ;;  %v11505_v43 = vld [vmem:[#allocation6 + $0x190] sm:$0xff]  ;;  %v12443_v27 = vpack.c.bf16 %v11524_v44, %v11518_v1 }
 0x394   :  { %v17504_v41 = vsel %vm10469_vm4, %v11358_v34, %v11354_v48  ;;  %v10345_v46 = vpop.permute.xlu1 %10344  ;;  %v12631_v7 = vpack.c.bf16 %v11704_v12, %v11698_v45  ;;  %v11529_v12 = vld [vmem:[#allocation6 + $0x250] sm:$0xff] }
 0x395   :  { %v11269_v58 = vrot.slane %v10345_v46, %v18750_v50  ;;  %v10114_v31 = vpop.permute.xlu0 %10113  ;;  %v11493_v50 = vld [vmem:[#allocation6 + $0x130] sm:$0xff] }
 0x396   :  { %v10889_v5 = vrot.slane %v10114_v31, %v18762_v32  ;;  %v12437_v48 = vpack.c.bf16 %v11499_v56, %v11493_v50  ;;  %v11541_v44 = vld [vmem:[#allocation6 + $0x2b0] sm:$0xff] }
 0x397   :  { %v11270_v42 = vsel %vm10455_vm2, %v11269_v58, %v11265_v61  ;;  %v11511_v61 = vld [vmem:[#allocation6 + $0x1c0] sm:$0xff] }
 0x398   :  { %v17510_v3 = vsel %vm10476_vm5, %v10889_v5, %v10885_v18  ;;  %v10060_v54 = vpop.permute.xlu1 %10059  ;;  %v11703_v18 = vld [vmem:[#allocation6 + $0x7c0] sm:$0xff]  ;;  %v12441_v29 = vpack.c.bf16 %v11511_v61, %v11505_v43 }
 0x399   :  { %v10800_v59 = vrot.slane %v10060_v54, %v18956_v6  ;;  %v17513_v60 = vpop.permute.xlu0 %10401  ;;  %v11715_v5 = vld [vmem:[#allocation6 + $0x820] sm:$0xff]  ;;  %v11722_v54 = vld [vmem:[#allocation6 + $0x858] sm:$0xff] }
 0x39a   :  { %12434 = vmatpush1.bf16.xpose.msra.mxu0 %v12433_v53  ;;  %12626 = vmatpush1.bf16.xpose.msra.mxu1 %v12625_v63  ;;  %v11517_v53 = vld [vmem:[#allocation6 + $0x1f0] sm:$0xff]  ;;  %v11523_v63 = vld [vmem:[#allocation6 + $0x220] sm:$0xff] }
 0x39b   :  { %12436 = vmatprep.subr.bf16.mxu0 %v12435_v62  ;;  %12628 = vmatprep.subr.bf16.mxu1 %v12627_v35  ;;  %v10801_v38 = vsel %vm10462_vm3, %v10800_v59, %v10796_v28  ;;  %v11530_v62 = vld [vmem:[#allocation6 + $0x258] sm:$0xff]  ;;  %v11728_v59 = vld [vmem:[#allocation6 + $0x888] sm:$0xff]  ;;  %v12445_v36 = vpack.c.bf16 %v11523_v63, %v11517_v53 }
 0x39c   :  { %v10348_v8 = vpop.permute.xlu1 %10347 }
 0x39d   :  { %v11274_v30 = vrot.slane %v10348_v8, %v18956_v6  ;;  %v17517_v0 = vpop.permute.xlu0 %10116  ;;  %v11697_v6 = vld [vmem:[#allocation6 + $0x790] sm:$0xff]  ;;  %v11535_v8 = vld [vmem:[#allocation6 + $0x280] sm:$0xff] }
 0x39e   :  { %v12633_v28 = vpack.c.bf16 %v11703_v18, %v11697_v6  ;;  %v12449_v43 = vpack.c.bf16 %v11535_v8, %v11529_v12  ;;  %v11764_v12 = vld [vmem:[#allocation6 + $0x9a8] sm:$0xff] }
 0x39f   :  { %v11275_v15 = vsel %vm10462_vm3, %v11274_v30, %v11270_v42  ;;  %v11536_v42 = vld [vmem:[#allocation6 + $0x288] sm:$0xff]  ;;  %v11721_v30 = vld [vmem:[#allocation6 + $0x850] sm:$0xff] }
 0x3a0   :  { %v10063_v33 = vpop.permute.xlu1 %10062  ;;  %v12447_v55 = vpack.c.bf16 %v11536_v42, %v11530_v62  ;;  %v11553_v42 = vld [vmem:[#allocation6 + $0x310] sm:$0xff] }
 0x3a1   :  { %v10805_v37 = vrot.slane %v10063_v33, %v18757_v20  ;;  %v17521_v26 = vpop.permute.xlu0 %10404 }
 0x3a2   :  { %12438 = vmatpush1.bf16.xpose.msra.mxu0 %v12437_v48  ;;  %12630 = vmatpush1.bf16.xpose.msra.mxu1 %v12629_v25  ;;  %v11727_v48 = vld [vmem:[#allocation6 + $0x880] sm:$0xff]  ;;  %v11542_v25 = vld [vmem:[#allocation6 + $0x2b8] sm:$0xff] }
 0x3a3   :  { %12440 = vmatprep.subr.bf16.mxu0 %v12439_v2  ;;  %12632 = vmatprep.subr.bf16.mxu1 %v12631_v7  ;;  %v10806_v4 = vsel %vm10469_vm4, %v10805_v37, %v10801_v38  ;;  %v12639_v38 = vpack.c.bf16 %v11728_v59, %v11722_v54  ;;  %v11548_v2 = vld [vmem:[#allocation6 + $0x2e8] sm:$0xff]  ;;  %v11734_v7 = vld [vmem:[#allocation6 + $0x8b8] sm:$0xff]  ;;  %v12641_v61 = vpack.c.bf16 %v11727_v48, %v11721_v30  ;;  %v11559_v54 = vld [vmem:[#allocation6 + $0x340] sm:$0xff] }
 0x3a4   :  { %v10351_v34 = vpop.permute.xlu1 %10350  ;;  %v12451_v6 = vpack.c.bf16 %v11548_v2, %v11542_v25  ;;  %v11745_v59 = vld [vmem:[#allocation6 + $0x910] sm:$0xff]  ;;  %v12457_v48 = vpack.c.bf16 %v11559_v54, %v11553_v42 }
 0x3a5   :  { %v11279_v16 = vrot.slane %v10351_v34, %v18757_v20  ;;  %v17525_v40 = vpop.permute.xlu0 %10119  ;;  %v11709_v20 = vld [vmem:[#allocation6 + $0x7f0] sm:$0xff]  ;;  %v11739_v34 = vld [vmem:[#allocation6 + $0x8e0] sm:$0xff] }
 0x3a6   :  { %v12637_v11 = vpack.c.bf16 %v11715_v5, %v11709_v20  ;;  %v12645_v53 = vpack.c.bf16 %v11739_v34, %v11733_v24  ;;  %v11584_v24 = vld [vmem:[#allocation6 + $0x408] sm:$0xff]  ;;  %v11770_v34 = vld [vmem:[#allocation6 + $0x9d8] sm:$0xff]  ;;  %v11577_v54 = vld [vmem:[#allocation6 + $0x3d0] sm:$0xff] }
 0x3a7   :  { %v17528_v52 = vsel %vm10469_vm4, %v11279_v16, %v11275_v15  ;;  %v11740_v15 = vld [vmem:[#allocation6 + $0x8e8] sm:$0xff]  ;;  %v11554_v16 = vld [vmem:[#allocation6 + $0x318] sm:$0xff] }
 0x3a8   :  { %v10066_v46 = vpop.permute.xlu1 %10065  ;;  %v12643_v18 = vpack.c.bf16 %v11740_v15, %v11734_v7 }
 0x3a9   :  { %v10810_v58 = vrot.slane %v10066_v46, %v18762_v32  ;;  %v17531_v31 = vpop.permute.xlu0 %10407 }
 0x3aa   :  { %12442 = vmatpush1.bf16.xpose.msra.mxu0 %v12441_v29  ;;  %12634 = vmatpush1.bf16.xpose.msra.mxu1 %v12633_v28  ;;  %v11560_v29 = vld [vmem:[#allocation6 + $0x348] sm:$0xff]  ;;  %v11746_v28 = vld [vmem:[#allocation6 + $0x918] sm:$0xff] }
 0x3ab   :  { %12444 = vmatprep.subr.bf16.mxu0 %v12443_v27  ;;  %12636 = vmatprep.subr.bf16.mxu1 %v12635_v10  ;;  %v17534_v35 = vsel %vm10476_vm5, %v10810_v58, %v10806_v4  ;;  %v11752_v27 = vld [vmem:[#allocation6 + $0x948] sm:$0xff]  ;;  %v12453_v58 = vpack.c.bf16 %v11547_v14, %v11541_v44  ;;  %v12455_v63 = vpack.c.bf16 %v11560_v29, %v11554_v16  ;;  %v11763_v44 = vld [vmem:[#allocation6 + $0x9a0] sm:$0xff]  ;;  %v11578_v14 = vld [vmem:[#allocation6 + $0x3d8] sm:$0xff] }
 0x3ac   :  { %v17536_v50 = vpop.permute.xlu1 %10353  ;;  %v12647_v20 = vpack.c.bf16 %v11752_v27, %v11746_v28  ;;  %v11776_v16 = vld [vmem:[#allocation6 + $0xa08] sm:$0xff] }
 0x3ae   :  { %v17538_v56 = vpop.permute.xlu0 %10122 }
 0x3b0   :  { %v17540_v51 = vpop.permute.xlu1 %10068 }
 0x3b2   :  { %v17542_v45 = vpop.permute.xlu0 %10410  ;;  %12446 = vmatpush1.bf16.xpose.msra.mxu0 %v12445_v36  ;;  %12638 = vmatpush1.bf16.xpose.msra.mxu1 %v12637_v11  ;;  %v11751_v36 = vld [vmem:[#allocation6 + $0x940] sm:$0xff]  ;;  %v11566_v11 = vld [vmem:[#allocation6 + $0x378] sm:$0xff] }
 0x3b3   :  { %12448 = vmatprep.subr.bf16.mxu0 %v12447_v55  ;;  %12640 = vmatprep.subr.bf16.mxu1 %v12639_v38  ;;  %v11572_v55 = vld [vmem:[#allocation6 + $0x3a8] sm:$0xff]  ;;  %v11758_v38 = vld [vmem:[#allocation6 + $0x978] sm:$0xff]  ;;  %v12649_v25 = vpack.c.bf16 %v11751_v36, %v11745_v59  ;;  %v11583_v59 = vld [vmem:[#allocation6 + $0x400] sm:$0xff] }
 0x3b4   :  { %v17544_v33 = vpop.permute.xlu1 %10356  ;;  %v12459_v2 = vpack.c.bf16 %v11572_v55, %v11566_v11  ;;  %v12651_v7 = vpack.c.bf16 %v11764_v12, %v11758_v38  ;;  %v11769_v36 = vld [vmem:[#allocation6 + $0x9d0] sm:$0xff]  ;;  %v11775_v11 = vld [vmem:[#allocation6 + $0xa00] sm:$0xff]  ;;  %v11590_v55 = vld [vmem:[#allocation6 + $0x438] sm:$0xff] }
 0x3b5   :  { %v11596_v38 = vld [vmem:[#allocation6 + $0x468] sm:$0xff]  ;;  %v11782_v12 = vld [vmem:[#allocation6 + $0xa38] sm:$0xff] }
 0x3b6   :  { %v17546_v37 = vpop.permute.xlu0 %10125 }
 0x3b8   :  { %v17548_v1 = vpop.permute.xlu1 %10071 }
 0x3ba   :  { %v17550_v4 = vpop.permute.xlu0 %10413  ;;  %12450 = vmatpush1.bf16.xpose.msra.mxu0 %v12449_v43  ;;  %12642 = vmatpush1.bf16.xpose.msra.mxu1 %v12641_v61  ;;  %v11565_v61 = vld [vmem:[#allocation6 + $0x370] sm:$0xff] }
 0x3bb   :  { %12452 = vmatprep.subr.bf16.mxu0 %v12451_v6  ;;  %12644 = vmatprep.subr.bf16.mxu1 %v12643_v18  ;;  %v11571_v6 = vld [vmem:[#allocation6 + $0x3a0] sm:$0xff]  ;;  %v11757_v18 = vld [vmem:[#allocation6 + $0x970] sm:$0xff] }
 0x3bc   :  { %v17552_v10 = vpop.permute.xlu1 %10359  ;;  %v12461_v27 = vpack.c.bf16 %v11571_v6, %v11565_v61  ;;  %v12657_v61 = vpack.c.bf16 %v11775_v11, %v11769_v36  ;;  %v11589_v6 = vld [vmem:[#allocation6 + $0x430] sm:$0xff]  ;;  %v11800_v36 = vld [vmem:[#allocation6 + $0xac8] sm:$0xff]  ;;  %v10899_v11 = vrot.slane %v17525_v40, %v16182_v17  ;;  %v10909_v40 = vrot.slane %v17546_v37, %v18926_v57 }
 0x3be   :  { %v17554_v46 = vpop.permute.xlu0 %10128 }
 0x3c0   :  { %v17556_v5 = vpop.permute.xlu1 %10074 }
 0x3c2   :  { %v17558_v62 = vpop.permute.xlu0 %10416  ;;  %12454 = vmatpush1.bf16.xpose.msra.mxu0 %v12453_v58  ;;  %12646 = vmatpush1.bf16.xpose.msra.mxu1 %v12645_v53  ;;  %v12653_v58 = vpack.c.bf16 %v11763_v44, %v11757_v18  ;;  %v12463_v53 = vpack.c.bf16 %v11584_v24, %v11578_v14  ;;  %v11595_v18 = vld [vmem:[#allocation6 + $0x460] sm:$0xff]  ;;  %v12467_v44 = vpack.c.bf16 %v11596_v38, %v11590_v55  ;;  %v11781_v24 = vld [vmem:[#allocation6 + $0xa30] sm:$0xff] }
 0x3c3   :  { %12456 = vmatprep.subr.bf16.mxu0 %v12455_v63  ;;  %12648 = vmatprep.subr.bf16.mxu1 %v12647_v20  ;;  %v12655_v63 = vpack.c.bf16 %v11776_v16, %v11770_v34  ;;  %v11787_v34 = vld [vmem:[#allocation6 + $0xa60] sm:$0xff]  ;;  %v11363_v16 = vrot.slane %v17513_v60, %v18762_v32  ;;  %v11373_v55 = vrot.slane %v17531_v31, %v16182_v17 }
 0x3c4   :  { %v17560_v8 = vpop.permute.xlu1 %10362  ;;  %v12661_v38 = vpack.c.bf16 %v11787_v34, %v11781_v24  ;;  %v11383_v31 = vrot.slane %v17550_v4, %v18926_v57 }
 0x3c6   :  { %v17562_v30 = vpop.permute.xlu0 %10131 }
 0x3c7   :  { %v10919_v4 = vrot.slane %v17562_v30, %v18935_v49 }
 0x3c8   :  { %v17564_v15 = vpop.permute.xlu1 %10077 }
 0x3ca   :  { %v17566_v43 = vpop.permute.xlu0 %10419  ;;  %12458 = vmatpush1.bf16.xpose.msra.mxu0 %v12457_v48  ;;  %12650 = vmatpush1.bf16.xpose.msra.mxu1 %v12649_v25  ;;  %v11788_v48 = vld [vmem:[#allocation6 + $0xa68] sm:$0xff] }
 0x3cb   :  { %12460 = vmatprep.subr.bf16.mxu0 %v12459_v2  ;;  %12652 = vmatprep.subr.bf16.mxu1 %v12651_v7  ;;  %v12465_v7 = vpack.c.bf16 %v11583_v59, %v11577_v54  ;;  %v12659_v14 = vpack.c.bf16 %v11788_v48, %v11782_v12  ;;  %v12469_v54 = vpack.c.bf16 %v11595_v18, %v11589_v6  ;;  %v11794_v59 = vld [vmem:[#allocation6 + $0xa98] sm:$0xff] }
 0x3cc   :  { %v17568_v29 = vpop.permute.xlu1 %10365  ;;  %v11364_v48 = vsel %vm10476_vm5, %v11363_v16, %v17504_v41  ;;  %v11388_v6 = vrot.slane %v17558_v62, %v18925_v13 }
 0x3ce   :  { %v17570_v28 = vpop.permute.xlu0 %10134 }
 0x3cf   :  { %v10924_v62 = vrot.slane %v17570_v28, %v18934_v39 }
 0x3d0   :  { %v17572_v20 = vpop.permute.xlu1 %10080 }
 0x3d2   :  { %v17574_v42 = vpop.permute.xlu0 %10422  ;;  %12462 = vmatpush1.bf16.xpose.msra.mxu0 %v12461_v27  ;;  %12654 = vmatpush1.bf16.xpose.msra.mxu1 %v12653_v58  ;;  %v11602_v27 = vld [vmem:[#allocation6 + $0x498] sm:$0xff]  ;;  %v11608_v58 = vld [vmem:[#allocation6 + $0x4c8] sm:$0xff] }
 0x3d3   :  { %12464 = vmatprep.subr.bf16.mxu0 %v12463_v53  ;;  %12656 = vmatprep.subr.bf16.mxu1 %v12655_v63  ;;  %v10894_v53 = vrot.slane %v17517_v0, %v16090_v22  ;;  %v11368_v63 = vrot.slane %v17521_v26, %v16090_v22  ;;  %v10904_v0 = vrot.slane %v17538_v56, %v18772_v47 }
 0x3d4   :  { %v17576_v25 = vpop.permute.xlu1 %10368  ;;  %v11378_v26 = vrot.slane %v17542_v45, %v18772_v47  ;;  %v12471_v12 = vpack.c.bf16 %v11608_v58, %v11602_v27  ;;  %v10914_v45 = vrot.slane %v17554_v46, %v18925_v13  ;;  %v11398_v24 = vrot.slane %v17574_v42, %v18934_v39 }
 0x3d5   :  { %v11369_v56 = vsel %vm10483_vm6, %v11368_v63, %v11364_v48  ;;  %v11614_v48 = vld [vmem:[#allocation6 + $0x4f8] sm:$0xff] }
 0x3d6   :  { %v17578_v2 = vpop.permute.xlu0 %10137  ;;  %v11374_v37 = vsel %vm10490_vm7, %v11373_v55, %v11369_v56 }
 0x3d7   :  { %v11379_v46 = vsel %vm10497_vm8, %v11378_v26, %v11374_v37  ;;  %v10929_v30 = vrot.slane %v17578_v2, %v16481_v19  ;;  %v11799_v26 = vld [vmem:[#allocation6 + $0xac0] sm:$0xff] }
 0x3d8   :  { %v17586_v9 = vpop.permute.xlu1 %10083  ;;  %v11384_v16 = vsel %vm10504_vm9, %v11383_v31, %v11379_v46  ;;  %v11619_v46 = vld [vmem:[#allocation6 + $0x520] sm:$0xff] }
 0x3d9   :  { %v11389_v58 = vsel %vm10511_vm10, %v11388_v6, %v11384_v16  ;;  %v11811_v16 = vld [vmem:[#allocation6 + $0xb20] sm:$0xff] }
 0x3da   :  { %v10426_v60 = vpop.permute.xlu0 %10425  ;;  %12466 = vmatpush1.bf16.xpose.msra.mxu0 %v12465_v7  ;;  %12658 = vmatpush1.bf16.xpose.msra.mxu1 %v12657_v61  ;;  %v12663_v7 = vpack.c.bf16 %v11800_v36, %v11794_v59  ;;  %v10895_v61 = vsel %vm10483_vm6, %v10894_v53, %v17510_v3  ;;  %v11393_v3 = vrot.slane %v17566_v43, %v18935_v49  ;;  %v11601_v36 = vld [vmem:[#allocation6 + $0x490] sm:$0xff] }
 0x3db   :  { %12468 = vmatprep.subr.bf16.mxu0 %v12467_v44  ;;  %12660 = vmatprep.subr.bf16.mxu1 %v12659_v14  ;;  %v10900_v41 = vsel %vm10490_vm7, %v10899_v11, %v10895_v61  ;;  %v11403_v43 = vrot.slane %v10426_v60, %v16481_v19  ;;  %v11607_v11 = vld [vmem:[#allocation6 + $0x4c0] sm:$0xff]  ;;  %v11620_v61 = vld [vmem:[#allocation6 + $0x528] sm:$0xff] }
 0x3dc   :  { %v17609_v18 = vpop.permute.xlu1 %10371  ;;  %v10905_v14 = vsel %vm10497_vm8, %v10904_v0, %v10900_v41  ;;  %v11394_v42 = vsel %vm10518_vm11, %v11393_v3, %v11389_v58  ;;  %v11793_v0 = vld [vmem:[#allocation6 + $0xa90] sm:$0xff]  ;;  %v12475_v37 = vpack.c.bf16 %v11620_v61, %v11614_v48  ;;  %v11824_v58 = vld [vmem:[#allocation6 + $0xb88] sm:$0xff]  ;;  %v11638_v48 = vld [vmem:[#allocation6 + $0x5b8] sm:$0xff] }
 0x3dd   :  { %v10910_v34 = vsel %vm10504_vm9, %v10909_v40, %v10905_v14  ;;  %v11399_v55 = vsel %vm10525_vm12, %v11398_v24, %v11394_v42  ;;  %v11613_v14 = vld [vmem:[#allocation6 + $0x4f0] sm:$0xff]  ;;  %v10815_v24 = vrot.slane %v17540_v51, %v16090_v22  ;;  %v11299_v51 = vrot.slane %v17560_v8, %v18772_v47  ;;  %v11830_v61 = vld [vmem:[#allocation6 + $0xbb8] sm:$0xff] }
 0x3de   :  { %v10141_v44 = vpop.permute.xlu0 %10140  ;;  %v10915_v27 = vsel %vm10511_vm10, %v10914_v45, %v10910_v34  ;;  %v11404_v31 = vsel %vm10532_vm13, %v11403_v43, %v11399_v55  ;;  %v11289_v34 = vrot.slane %v17544_v33, %v16090_v22  ;;  %v11632_v43 = vld [vmem:[#allocation6 + $0x588] sm:$0xff]  ;;  %v12477_v33 = vpack.c.bf16 %v11619_v46, %v11613_v14 }
 0x3df   :  { %v10934_v53 = vrot.slane %v10141_v44, %v18943_v21  ;;  %v10920_v28 = vsel %vm10518_vm11, %v10919_v4, %v10915_v27  ;;  %v11284_v44 = vrot.slane %v17536_v50, %v18762_v32  ;;  %v10820_v27 = vrot.slane %v17548_v1, %v16182_v17  ;;  %v11818_v50 = vld [vmem:[#allocation6 + $0xb58] sm:$0xff] }
 0x3e0   :  { %v17631_v63 = vpop.permute.xlu1 %10086  ;;  %v10925_v2 = vsel %vm10525_vm12, %v10924_v62, %v10920_v28  ;;  %v11805_v62 = vld [vmem:[#allocation6 + $0xaf0] sm:$0xff]  ;;  %v11294_v32 = vrot.slane %v17552_v10, %v16182_v17  ;;  %v10830_v42 = vrot.slane %v17564_v15, %v18926_v57  ;;  %v10816_v17 = vsel %vm10483_vm6, %v10815_v24, %v17534_v35 }
 0x3e1   :  { %v10930_v40 = vsel %vm10532_vm13, %v10929_v30, %v10925_v2  ;;  %v11626_v30 = vld [vmem:[#allocation6 + $0x558] sm:$0xff]  ;;  %v11285_v28 = vsel %vm10476_vm5, %v11284_v44, %v17528_v52  ;;  %v12669_v1 = vpack.c.bf16 %v11811_v16, %v11805_v62  ;;  %v10835_v52 = vrot.slane %v17572_v20, %v18925_v13 }
 0x3e2   :  { %v10429_v59 = vpop.permute.xlu0 %10428  ;;  %12470 = vmatpush1.bf16.xpose.msra.mxu0 %v12469_v54  ;;  %12662 = vmatpush1.bf16.xpose.msra.mxu1 %v12661_v38  ;;  %v11806_v54 = vld [vmem:[#allocation6 + $0xaf8] sm:$0xff]  ;;  %v11812_v38 = vld [vmem:[#allocation6 + $0xb28] sm:$0xff]  ;;  %v10935_v56 = vsel %vm10539_vm14, %v10934_v53, %v10930_v40  ;;  %v10825_v53 = vrot.slane %v17556_v5, %v18772_v47  ;;  %v11290_v10 = vsel %vm10483_vm6, %v11289_v34, %v11285_v28 }
 0x3e3   :  { %v11408_v60 = vrot.slane %v10429_v59, %v18943_v21  ;;  %12472 = vmatprep.subr.bf16.mxu0 %v12471_v12  ;;  %12664 = vmatprep.subr.bf16.mxu1 %v12663_v7  ;;  %v12473_v12 = vpack.c.bf16 %v11607_v11, %v11601_v36  ;;  %v12665_v7 = vpack.c.bf16 %v11799_v26, %v11793_v0  ;;  %v11823_v26 = vld [vmem:[#allocation6 + $0xb80] sm:$0xff]  ;;  %v61_v34 = vld [vmem:[#allocation2 + $0x8] sm:$0xf] }
 0x3e4   :  { %v17642_v6 = vpop.permute.xlu1 %10374  ;;  %v12667_v4 = vpack.c.bf16 %v11812_v38, %v11806_v54  ;;  %v12479_v59 = vpack.c.bf16 %v11632_v43, %v11626_v30  ;;  %v11304_v5 = vrot.slane %v17568_v29, %v18926_v57  ;;  %v12671_v36 = vpack.c.bf16 %v11824_v58, %v11818_v50  ;;  %v11836_v54 = vld [vmem:[#allocation6 + $0xbe8] sm:$0xff]  ;;  %v11637_v30 = vld [vmem:[#allocation6 + $0x5b0] sm:$0xff]  ;;  %v11466_v58 = vld [vmem:[#allocation6 + $0x58] sm:$0xff] }
 0x3e5   :  { %v11409_v45 = vsel %vm10539_vm14, %v11408_v60, %v11404_v31  ;;  %v10821_v47 = vsel %vm10490_vm7, %v10820_v27, %v10816_v17  ;;  %v11295_v8 = vsel %vm10490_vm7, %v11294_v32, %v11290_v10  ;;  %v11309_v15 = vrot.slane %v17576_v25, %v18925_v13  ;;  %v11625_v13 = vld [vmem:[#allocation6 + $0x550] sm:$0xff]  ;;  %v11631_v25 = vld [vmem:[#allocation6 + $0x580] sm:$0xff]  ;;  %v11644_v31 = vld [vmem:[#allocation6 + $0x5e8] sm:$0xff] }
 0x3e6   :  { %v17645_v41 = vsel %vm11410_vm15, %v11409_v45, %v10935_v56  ;;  %v10826_v11 = vsel %vm10497_vm8, %v10825_v53, %v10821_v47  ;;  %v11300_v35 = vsel %vm10497_vm8, %v11299_v51, %v11295_v8  ;;  %v10840_v2 = vrot.slane %v17586_v9, %v18935_v49  ;;  %v11829_v43 = vld [vmem:[#allocation6 + $0xbb0] sm:$0xff]  ;;  %v11835_v27 = vld [vmem:[#allocation6 + $0xbe0] sm:$0xff]  ;;  %v11460_v32 = vld [vmem:[#allocation6 + $0x28] sm:$0xff] }
 0x3e7   :  { %v11314_v57 = vrot.slane %v17609_v18, %v18935_v49  ;;  %v10831_v55 = vsel %vm10504_vm9, %v10830_v42, %v10826_v11  ;;  %v10845_v60 = vrot.slane %v17631_v63, %v18934_v39  ;;  %v11319_v20 = vrot.slane %v17642_v6, %v18934_v39  ;;  %v11817_v18 = vld [vmem:[#allocation6 + $0xb50] sm:$0xff]  ;;  %v11652_v53 = vld [vmem:[#allocation6 + $0x628] sm:$0xff]  ;;  %v11658_v51 = vld [vmem:[#allocation6 + $0x658] sm:$0xff] }
 0x3e8   :  { %v17647_v3 = vpop.permute.xlu1 %10089  ;;  %v11305_v0 = vsel %vm10504_vm9, %v11304_v5, %v11300_v35  ;;  %v10836_v63 = vsel %vm10511_vm10, %v10835_v52, %v10831_v55  ;;  %v12483_v44 = vpack.c.bf16 %v11644_v31, %v11638_v48  ;;  %v12675_v14 = vpack.c.bf16 %v11836_v54, %v11830_v61  ;;  %v11651_v17 = vld [vmem:[#allocation6 + $0x620] sm:$0xff]  ;;  %v11657_v10 = vld [vmem:[#allocation6 + $0x650] sm:$0xff]  ;;  %v11472_v5 = vld [vmem:[#allocation6 + $0x88] sm:$0xff] }
 0x3e9   :  { %v10850_v9 = vrot.slane %v17647_v3, %v16481_v19  ;;  %v11310_v39 = vsel %vm10511_vm10, %v11309_v15, %v11305_v0  ;;  %v10841_v38 = vsel %vm10518_vm11, %v10840_v2, %v10836_v63  ;;  %v12677_v28 = vpack.c.bf16 %v11835_v27, %v11829_v43  ;;  %v11664_v47 = vld [vmem:[#allocation6 + $0x688] sm:$0xff]  ;;  %v11670_v8 = vld [vmem:[#allocation6 + $0x6b8] sm:$0xff]  ;;  %v11483_v31 = vld [vmem:[#allocation6 + $0xe0] sm:$0xff] }
 0x3ea   :  { %12474 = vmatpush1.bf16.xpose.msra.mxu0 %v12473_v12  ;;  %12666 = vmatpush1.bf16.xpose.msra.mxu1 %v12665_v7  ;;  %v11315_v56 = vsel %vm10518_vm11, %v11314_v57, %v11310_v39  ;;  %v10846_v6 = vsel %vm10525_vm12, %v10845_v60, %v10841_v38  ;;  %v12487_v42 = vpack.c.bf16 %v11466_v58, %v11460_v32  ;;  %v11471_v60 = vld [vmem:[#allocation6 + $0x80] sm:$0xff]  ;;  %v11484_v0 = vld [vmem:[#allocation6 + $0xe8] sm:$0xff]  ;;  %v11489_v61 = vld [vmem:[#allocation6 + $0x110] sm:$0xff] }
 0x3eb   :  { %12476 = vmatprep.subr.bf16.mxu0 %v12475_v37  ;;  %12668 = vmatprep.subr.bf16.mxu1 %v12667_v4  ;;  %v11320_v12 = vsel %vm10525_vm12, %v11319_v20, %v11315_v56  ;;  %v12673_v37 = vpack.c.bf16 %v11823_v26, %v11817_v18  ;;  %v10851_v4 = vsel %vm10532_vm13, %v10850_v9, %v10846_v6  ;;  %v11477_v20 = vld [vmem:[#allocation6 + $0xb0] sm:$0xff]  ;;  %v11676_v18 = vld [vmem:[#allocation6 + $0x6e8] sm:$0xff]  ;;  %v11682_v26 = vld [vmem:[#allocation6 + $0x718] sm:$0xff] }
 0x3ec   :  { %v10378_v22 = vpop.permute.xlu1 %10377  ;;  %v12681_v15 = vpack.c.bf16 %v11657_v10, %v11651_v17  ;;  %v12683_v2 = vpack.c.bf16 %v11670_v8, %v11664_v47  ;;  %v12493_v48 = vpack.c.bf16 %v11477_v20, %v11471_v60  ;;  %v11675_v54 = vld [vmem:[#allocation6 + $0x6e0] sm:$0xff]  ;;  %v11681_v38 = vld [vmem:[#allocation6 + $0x710] sm:$0xff]  ;;  %v11496_v56 = vld [vmem:[#allocation6 + $0x148] sm:$0xff] }
 0x3ed   :  { %v11324_v49 = vrot.slane %v10378_v22, %v16481_v19  ;;  %v12481_v19 = vpack.c.bf16 %v11631_v25, %v11625_v13  ;;  %v11663_v13 = vld [vmem:[#allocation6 + $0x680] sm:$0xff]  ;;  %v11669_v25 = vld [vmem:[#allocation6 + $0x6b0] sm:$0xff]  ;;  %v11694_v6 = vld [vmem:[#allocation6 + $0x778] sm:$0xff] }
 0x3ee   :  { %v12685_v63 = vpack.c.bf16 %v11669_v25, %v11663_v13  ;;  %v11507_v32 = vld [vmem:[#allocation6 + $0x1a0] sm:$0xff]  ;;  %v11525_v10 = vld [vmem:[#allocation6 + $0x230] sm:$0xff]  ;;  %v11532_v47 = vld [vmem:[#allocation6 + $0x268] sm:$0xff] }
 0x3ef   :  { %v11325_v3 = vsel %vm10532_vm13, %v11324_v49, %v11320_v12  ;;  %v11490_v49 = vld [vmem:[#allocation6 + $0x118] sm:$0xff]  ;;  %v12497_v12 = vpack.c.bf16 %v11489_v61, %v11483_v31  ;;  %v11699_v58 = vld [vmem:[#allocation6 + $0x7a0] sm:$0xff]  ;;  %v11537_v60 = vld [vmem:[#allocation6 + $0x290] sm:$0xff] }
 0x3f0   :  { %v10093_v29 = vpop.permute.xlu1 %10092  ;;  %v12495_v39 = vpack.c.bf16 %v11490_v49, %v11484_v0  ;;  %v11519_v17 = vld [vmem:[#allocation6 + $0x200] sm:$0xff]  ;;  %v11538_v8 = vld [vmem:[#allocation6 + $0x298] sm:$0xff]  ;;  %v11729_v13 = vld [vmem:[#allocation6 + $0x890] sm:$0xff] }
 0x3f1   :  { %v10855_v40 = vrot.slane %v10093_v29, %v18943_v21  ;;  %v18957_v29 = vld [vmem:[#allocation158_spill] sm:$0xff]  ;;  %v11723_v20 = vld [vmem:[#allocation6 + $0x860] sm:$0xff]  ;;  %v11544_v25 = vld [vmem:[#allocation6 + $0x2c8] sm:$0xff] }
 0x3f2   :  { %12478 = vmatpush1.bf16.xpose.msra.mxu0 %v12477_v33  ;;  %12670 = vmatpush1.bf16.xpose.msra.mxu1 %v12669_v1  ;;  %v12679_v1 = vpack.c.bf16 %v11658_v51, %v11652_v53  ;;  %v11705_v53 = vld [vmem:[#allocation6 + $0x7d0] sm:$0xff]  ;;  %v11520_v51 = vld [vmem:[#allocation6 + $0x208] sm:$0xff]  ;;  %v11550_v0 = vld [vmem:[#allocation6 + $0x2f8] sm:$0xff] }
 0x3f3   :  { %12480 = vmatprep.subr.bf16.mxu0 %v12479_v59  ;;  %12672 = vmatprep.subr.bf16.mxu1 %v12671_v36  ;;  %v10856_v46 = vsel %vm10539_vm14, %v10855_v40, %v10851_v4  ;;  %v11465_v59 = vld [vmem:[#allocation6 + $0x50] sm:$0xff]  ;;  %v11478_v36 = vld [vmem:[#allocation6 + $0xb8] sm:$0xff]  ;;  %v12687_v40 = vpack.c.bf16 %v11682_v26, %v11676_v18  ;;  %v12705_v26 = vpack.c.bf16 %v11729_v13, %v11723_v20  ;;  %v11735_v31 = vld [vmem:[#allocation6 + $0x8c0] sm:$0xff] }
 0x3f4   :  { %v10381_v45 = vpop.permute.xlu1 %10380  ;;  %v12491_v35 = vpack.c.bf16 %v11478_v36, %v11472_v5  ;;  %v11711_v5 = vld [vmem:[#allocation6 + $0x800] sm:$0xff]  ;;  %v11717_v36 = vld [vmem:[#allocation6 + $0x830] sm:$0xff]  ;;  %v11742_v49 = vld [vmem:[#allocation6 + $0x8f8] sm:$0xff] }
 0x3f5   :  { %v11329_v7 = vrot.slane %v10381_v45, %v18943_v21  ;;  %v11643_v21 = vld [vmem:[#allocation6 + $0x5e0] sm:$0xff]  ;;  %v11502_v45 = vld [vmem:[#allocation6 + $0x178] sm:$0xff]  ;;  %v11741_v61 = vld [vmem:[#allocation6 + $0x8f0] sm:$0xff] }
 0x3f6   :  { %v12485_v33 = vpack.c.bf16 %v11643_v21, %v11637_v30  ;;  %v11604_v20 = vld [vmem:[#allocation6 + $0x4a8] sm:$0xff]  ;;  %v11610_v13 = vld [vmem:[#allocation6 + $0x4d8] sm:$0xff] }
 0x3f7   :  { %v11330_v62 = vsel %vm10539_vm14, %v11329_v7, %v11325_v3  ;;  %v12689_v7 = vpack.c.bf16 %v11681_v38, %v11675_v54  ;;  %v11495_v3 = vld [vmem:[#allocation6 + $0x140] sm:$0xff]  ;;  %v11556_v54 = vld [vmem:[#allocation6 + $0x328] sm:$0xff]  ;;  %v11562_v38 = vld [vmem:[#allocation6 + $0x358] sm:$0xff] }
 0x3f8   :  { %v11415_v24 = vsel %vm11410_vm15, %v11330_v62, %v10856_v46  ;;  %v11693_v46 = vld [vmem:[#allocation6 + $0x770] sm:$0xff]  ;;  %v11508_v62 = vld [vmem:[#allocation6 + $0x1a8] sm:$0xff] }
 0x3f9   :  { %v11434_v16 = vcombine.low %v11415_v24, %v17645_v41  ;;  %v11459_v41 = vld [vmem:[#allocation6 + $0x20] sm:$0xff]  ;;  %v11514_v24 = vld [vmem:[#allocation6 + $0x1d8] sm:$0xff] }
 0x3fa   :  { %12482 = vmatpush1.bf16.xpose.msra.mxu0 %v12481_v19  ;;  %12674 = vmatpush1.bf16.xpose.msra.mxu1 %v12673_v37  ;;  %v12489_v52 = vpack.c.bf16 %v11465_v59, %v11459_v41  ;;  %v11688_v19 = vld [vmem:[#allocation6 + $0x748] sm:$0xff]  ;;  %v12499_v37 = vpack.c.bf16 %v11502_v45, %v11496_v56  ;;  %v12503_v43 = vpack.c.bf16 %v11514_v24, %v11508_v62  ;;  %v11754_v45 = vld [vmem:[#allocation6 + $0x958] sm:$0xff] }
 0x3fb   :  { %12484 = vmatprep.subr.bf16.mxu0 %v12483_v44  ;;  %12676 = vmatprep.subr.bf16.mxu1 %v12675_v14  ;;  %v11441_v50 = vrot.slane %v11434_v16, %v13061_v23  ;;  %v12691_v4 = vpack.c.bf16 %v11694_v6, %v11688_v19  ;;  %v11501_v44 = vld [vmem:[#allocation6 + $0x170] sm:$0xff]  ;;  %v11687_v14 = vld [vmem:[#allocation6 + $0x740] sm:$0xff]  ;;  %v11706_v16 = vld [vmem:[#allocation6 + $0x7d8] sm:$0xff]  ;;  %v12709_v6 = vpack.c.bf16 %v11741_v61, %v11735_v31 }
 0x3fc   :  { %v12501_v30 = vpack.c.bf16 %v11501_v44, %v11495_v3  ;;  %v12693_v21 = vpack.c.bf16 %v11693_v46, %v11687_v14  ;;  %v11748_v56 = vld [vmem:[#allocation6 + $0x928] sm:$0xff]  ;;  %v11747_v3 = vld [vmem:[#allocation6 + $0x920] sm:$0xff]  ;;  %v11753_v44 = vld [vmem:[#allocation6 + $0x950] sm:$0xff] }
 0x3fd   :  { %v11445_v22 = vadd.f32 %v11441_v50, %v61_v34  ;;  %v11700_v34 = vld [vmem:[#allocation6 + $0x7a8] sm:$0xff]  ;;  %v11513_v50 = vld [vmem:[#allocation6 + $0x1d0] sm:$0xff]  ;;  %v11574_v46 = vld [vmem:[#allocation6 + $0x3b8] sm:$0xff] }
 0x3fe   :  { %v12695_v27 = vpack.c.bf16 %v11706_v16, %v11700_v34  ;;  %v11568_v14 = vld [vmem:[#allocation6 + $0x388] sm:$0xff]  ;;  %v11766_v24 = vld [vmem:[#allocation6 + $0x9b8] sm:$0xff]  ;;  %v12713_v16 = vpack.c.bf16 %v11753_v44, %v11747_v3 }
 0x3ff   :  { %11447 = vst [vmem:[#allocation2 + $0x8] sm:$0xf] %v11445_v22  ;;  %v11526_v22 = vld [vmem:[#allocation6 + $0x238] sm:$0xff]  ;;  %v11760_v62 = vld [vmem:[#allocation6 + $0x988] sm:$0xff] }
 0x400   :  { %v12507_v41 = vpack.c.bf16 %v11526_v22, %v11520_v51  ;;  %v11772_v51 = vld [vmem:[#allocation6 + $0x9e8] sm:$0xff]  ;;  %v11778_v22 = vld [vmem:[#allocation6 + $0xa18] sm:$0xff] }
 0x401   :  { %v11616_v31 = vld [vmem:[#allocation6 + $0x508] sm:$0xff]  ;;  %v11622_v61 = vld [vmem:[#allocation6 + $0x538] sm:$0xff] }
 0x402   :  { %12486 = vmatpush1.bf16.xpose.msra.mxu0 %v12485_v33  ;;  %12678 = vmatpush1.bf16.xpose.msra.mxu1 %v12677_v28  ;;  %v11712_v33 = vld [vmem:[#allocation6 + $0x808] sm:$0xff]  ;;  %v11718_v28 = vld [vmem:[#allocation6 + $0x838] sm:$0xff] }
 0x403   :  { %12488 = vmatprep.subr.bf16.mxu0 %v12487_v42  ;;  %12680 = vmatprep.subr.bf16.mxu1 %v12679_v1  ;;  %v12505_v42 = vpack.c.bf16 %v11513_v50, %v11507_v32  ;;  %v12697_v1 = vpack.c.bf16 %v11705_v53, %v11699_v58  ;;  %v12699_v59 = vpack.c.bf16 %v11718_v28, %v11712_v33  ;;  %v11759_v32 = vld [vmem:[#allocation6 + $0x980] sm:$0xff]  ;;  %v11765_v50 = vld [vmem:[#allocation6 + $0x9b0] sm:$0xff]  ;;  %v11580_v58 = vld [vmem:[#allocation6 + $0x3e8] sm:$0xff] }
 0x404   :  { %v11586_v53 = vld [vmem:[#allocation6 + $0x418] sm:$0xff]  ;;  %v12717_v28 = vpack.c.bf16 %v11765_v50, %v11759_v32  ;;  %v11628_v3 = vld [vmem:[#allocation6 + $0x568] sm:$0xff] }
 0x405   :  { %v11634_v44 = vld [vmem:[#allocation6 + $0x598] sm:$0xff]  ;;  %v11640_v32 = vld [vmem:[#allocation6 + $0x5c8] sm:$0xff] }
 0x406   :  { %v11452_v11 = vld [vmem:[#allocation2 + $0x8] sm:$0xf] }
 0x407   :  { %v11454_v57 = vmul.f32 0.00390625, %v11452_v11  ;;  %v12509_v11 = vpack.c.bf16 %v11525_v10, %v11519_v17  ;;  %v11771_v17 = vld [vmem:[#allocation6 + $0x9e0] sm:$0xff]  ;;  %v11777_v10 = vld [vmem:[#allocation6 + $0xa10] sm:$0xff]  ;;  %v11646_v50 = vld [vmem:[#allocation6 + $0x5f8] sm:$0xff] }
 0x409   :  { %12030 = vmatmul.mubr.f32.vlgmr.msra.gmra.mrb[0].mxu0 %v18957_v29  ;;  %12243 = vmatmul.mubr.f32.vlgmr.msra.gmra.mrb[0].mxu1 %v18957_v29  ;;  %v17711_v55 = vrot.slane %v11454_v57, %v13061_v23  ;;  %v11531_v29 = vld [vmem:[#allocation6 + $0x260] sm:$0xff] }
 0x40a   :  { %12490 = vmatpush1.bf16.xpose.msra.mxu0 %v12489_v52  ;;  %12682 = vmatpush1.bf16.xpose.msra.mxu1 %v12681_v15  ;;  %v11724_v52 = vld [vmem:[#allocation6 + $0x868] sm:$0xff]  ;;  %v11730_v15 = vld [vmem:[#allocation6 + $0x898] sm:$0xff]  ;;  %v12513_v18 = vpack.c.bf16 %v11537_v60, %v11531_v29  ;;  %v11783_v29 = vld [vmem:[#allocation6 + $0xa40] sm:$0xff] }
 0x40b   :  { %12492 = vmatprep.subr.bf16.mxu0 %v12491_v35  ;;  %12684 = vmatprep.subr.bf16.mxu1 %v12683_v2  ;;  %v11887_v9 = vcombine.high %v17711_v55, %v17711_v55  ;;  %v12701_v35 = vpack.c.bf16 %v11717_v36, %v11711_v5  ;;  %v12511_v2 = vpack.c.bf16 %v11538_v8, %v11532_v47  ;;  %v11592_v5 = vld [vmem:[#allocation6 + $0x448] sm:$0xff]  ;;  %v11598_v36 = vld [vmem:[#allocation6 + $0x478] sm:$0xff]  ;;  %v11789_v60 = vld [vmem:[#allocation6 + $0xa70] sm:$0xff] }
 0x40c   :  { %v12703_v57 = vpack.c.bf16 %v11730_v15, %v11724_v52  ;;  %v11784_v47 = vld [vmem:[#allocation6 + $0xa48] sm:$0xff]  ;;  %v11790_v8 = vld [vmem:[#allocation6 + $0xa78] sm:$0xff]  ;;  %v12721_v15 = vpack.c.bf16 %v11777_v10, %v11771_v17 }
 0x40d   :  { %12100 = vmatprep.mubr.f32.mxu0 %v11887_v9  ;;  %12313 = vmatprep.mubr.f32.mxu1 %v11887_v9  ;;  %v11736_v9 = vld [vmem:[#allocation6 + $0x8c8] sm:$0xff] }
 0x412   :  { %12494 = vmatpush1.bf16.xpose.msra.mxu0 %v12493_v48  ;;  %12686 = vmatpush1.bf16.xpose.msra.mxu1 %v12685_v63  ;;  %v12515_v48 = vpack.c.bf16 %v11550_v0, %v11544_v25  ;;  %v12707_v63 = vpack.c.bf16 %v11742_v49, %v11736_v9  ;;  %v11796_v25 = vld [vmem:[#allocation6 + $0xaa8] sm:$0xff]  ;;  %v11802_v0 = vld [vmem:[#allocation6 + $0xad8] sm:$0xff]  ;;  %v12725_v49 = vpack.c.bf16 %v11789_v60, %v11783_v29 }
 0x413   :  { %12496 = vmatprep.subr.bf16.mxu0 %v12495_v39  ;;  %12688 = vmatprep.subr.bf16.mxu1 %v12687_v40  ;;  %v11543_v39 = vld [vmem:[#allocation6 + $0x2c0] sm:$0xff]  ;;  %v11549_v40 = vld [vmem:[#allocation6 + $0x2f0] sm:$0xff] }
 0x414   :  { %v12517_v19 = vpack.c.bf16 %v11549_v40, %v11543_v39  ;;  %v11795_v39 = vld [vmem:[#allocation6 + $0xaa0] sm:$0xff]  ;;  %v11801_v40 = vld [vmem:[#allocation6 + $0xad0] sm:$0xff] }
 0x41a   :  { %12498 = vmatpush1.bf16.xpose.msra.mxu0 %v12497_v12  ;;  %12690 = vmatpush1.bf16.xpose.msra.mxu1 %v12689_v7  ;;  %v12519_v12 = vpack.c.bf16 %v11562_v38, %v11556_v54  ;;  %v12711_v7 = vpack.c.bf16 %v11754_v45, %v11748_v56  ;;  %v11808_v54 = vld [vmem:[#allocation6 + $0xb08] sm:$0xff]  ;;  %v11814_v38 = vld [vmem:[#allocation6 + $0xb38] sm:$0xff]  ;;  %v12729_v45 = vpack.c.bf16 %v11801_v40, %v11795_v39 }
 0x41b   :  { %12500 = vmatprep.subr.bf16.mxu0 %v12499_v37  ;;  %12692 = vmatprep.subr.bf16.mxu1 %v12691_v4  ;;  %v11555_v37 = vld [vmem:[#allocation6 + $0x320] sm:$0xff]  ;;  %v11561_v4 = vld [vmem:[#allocation6 + $0x350] sm:$0xff] }
 0x41c   :  { %v12521_v34 = vpack.c.bf16 %v11561_v4, %v11555_v37  ;;  %v11807_v37 = vld [vmem:[#allocation6 + $0xb00] sm:$0xff]  ;;  %v11813_v4 = vld [vmem:[#allocation6 + $0xb30] sm:$0xff] }
 0x422   :  { %12502 = vmatpush1.bf16.xpose.msra.mxu0 %v12501_v30  ;;  %12694 = vmatpush1.bf16.xpose.msra.mxu1 %v12693_v21  ;;  %v12523_v30 = vpack.c.bf16 %v11574_v46, %v11568_v14  ;;  %v12715_v21 = vpack.c.bf16 %v11766_v24, %v11760_v62  ;;  %v11820_v14 = vld [vmem:[#allocation6 + $0xb68] sm:$0xff]  ;;  %v11826_v46 = vld [vmem:[#allocation6 + $0xb98] sm:$0xff]  ;;  %v12733_v24 = vpack.c.bf16 %v11813_v4, %v11807_v37 }
 0x423   :  { %12504 = vmatprep.subr.bf16.mxu0 %v12503_v43  ;;  %12696 = vmatprep.subr.bf16.mxu1 %v12695_v27  ;;  %v11567_v43 = vld [vmem:[#allocation6 + $0x380] sm:$0xff]  ;;  %v11573_v27 = vld [vmem:[#allocation6 + $0x3b0] sm:$0xff] }
 0x424   :  { %v12525_v33 = vpack.c.bf16 %v11573_v27, %v11567_v43  ;;  %v11819_v43 = vld [vmem:[#allocation6 + $0xb60] sm:$0xff]  ;;  %v11825_v27 = vld [vmem:[#allocation6 + $0xb90] sm:$0xff] }
 0x42a   :  { %12506 = vmatpush1.bf16.xpose.msra.mxu0 %v12505_v42  ;;  %12698 = vmatpush1.bf16.xpose.msra.mxu1 %v12697_v1  ;;  %v12527_v42 = vpack.c.bf16 %v11586_v53, %v11580_v58  ;;  %v12719_v1 = vpack.c.bf16 %v11778_v22, %v11772_v51  ;;  %v11832_v58 = vld [vmem:[#allocation6 + $0xbc8] sm:$0xff]  ;;  %v11838_v53 = vld [vmem:[#allocation6 + $0xbf8] sm:$0xff]  ;;  %v12737_v22 = vpack.c.bf16 %v11825_v27, %v11819_v43 }
 0x42b   :  { %12508 = vmatprep.subr.bf16.mxu0 %v12507_v41  ;;  %12700 = vmatprep.subr.bf16.mxu1 %v12699_v59  ;;  %v11579_v41 = vld [vmem:[#allocation6 + $0x3e0] sm:$0xff]  ;;  %v11585_v59 = vld [vmem:[#allocation6 + $0x410] sm:$0xff] }
 0x42c   :  { %v12529_v52 = vpack.c.bf16 %v11585_v59, %v11579_v41  ;;  %v11831_v41 = vld [vmem:[#allocation6 + $0xbc0] sm:$0xff]  ;;  %v11837_v59 = vld [vmem:[#allocation6 + $0xbf0] sm:$0xff] }
 0x42d   :  { %v12741_v10 = vpack.c.bf16 %v11837_v59, %v11831_v41 }
 0x432   :  { %12510 = vmatpush1.bf16.xpose.msra.mxu0 %v12509_v11  ;;  %12702 = vmatpush1.bf16.xpose.msra.mxu1 %v12701_v35  ;;  %v12531_v11 = vpack.c.bf16 %v11598_v36, %v11592_v5  ;;  %v12723_v35 = vpack.c.bf16 %v11790_v8, %v11784_v47  ;;  %v18958_v5 = vld [vmem:[#allocation43_spill] sm:$0xff] }
 0x433   :  { %12512 = vmatprep.subr.bf16.mxu0 %v12511_v2  ;;  %12704 = vmatprep.subr.bf16.mxu1 %v12703_v57  ;;  %v11591_v2 = vld [vmem:[#allocation6 + $0x440] sm:$0xff]  ;;  %v11597_v57 = vld [vmem:[#allocation6 + $0x470] sm:$0xff]  ;;  %v11843_v36 = vsub.s32 0, %v18958_v5  ;;  %v11851_v47 = vsub.s32 2, %v18958_v5 }
 0x434   :  { %v12533_v9 = vpack.c.bf16 %v11597_v57, %v11591_v2  ;;  %v11839_v8 = vld [vmem:[#allocation8] sm:$0xf] }
 0x43a   :  { %12514 = vmatpush1.bf16.xpose.msra.mxu0 %v12513_v18  ;;  %12706 = vmatpush1.bf16.xpose.msra.mxu1 %v12705_v26  ;;  %v12535_v18 = vpack.c.bf16 %v11610_v13, %v11604_v20  ;;  %v12727_v26 = vpack.c.bf16 %v11802_v0, %v11796_v25 }
 0x43b   :  { %12516 = vmatprep.subr.bf16.mxu0 %v12515_v48  ;;  %12708 = vmatprep.subr.bf16.mxu1 %v12707_v63  ;;  %v11603_v48 = vld [vmem:[#allocation6 + $0x4a0] sm:$0xff]  ;;  %v11609_v63 = vld [vmem:[#allocation6 + $0x4d0] sm:$0xff] }
 0x43c   :  { %v12537_v56 = vpack.c.bf16 %v11609_v63, %v11603_v48 }
 0x442   :  { %12518 = vmatpush1.bf16.xpose.msra.mxu0 %v12517_v19  ;;  %12710 = vmatpush1.bf16.xpose.msra.mxu1 %v12709_v6  ;;  %v12539_v19 = vpack.c.bf16 %v11622_v61, %v11616_v31  ;;  %v12731_v6 = vpack.c.bf16 %v11814_v38, %v11808_v54 }
 0x443   :  { %12520 = vmatprep.subr.bf16.mxu0 %v12519_v12  ;;  %12712 = vmatprep.subr.bf16.mxu1 %v12711_v7  ;;  %v11615_v12 = vld [vmem:[#allocation6 + $0x500] sm:$0xff]  ;;  %v11621_v7 = vld [vmem:[#allocation6 + $0x530] sm:$0xff] }
 0x444   :  { %v12541_v62 = vpack.c.bf16 %v11621_v7, %v11615_v12 }
 0x44a   :  { %12522 = vmatpush1.bf16.xpose.msra.mxu0 %v12521_v34  ;;  %12714 = vmatpush1.bf16.xpose.msra.mxu1 %v12713_v16  ;;  %v12543_v34 = vpack.c.bf16 %v11634_v44, %v11628_v3  ;;  %v12735_v16 = vpack.c.bf16 %v11826_v46, %v11820_v14 }
 0x44b   :  { %12524 = vmatprep.subr.bf16.mxu0 %v12523_v30  ;;  %12716 = vmatprep.subr.bf16.mxu1 %v12715_v21  ;;  %v11627_v30 = vld [vmem:[#allocation6 + $0x560] sm:$0xff]  ;;  %v11633_v21 = vld [vmem:[#allocation6 + $0x590] sm:$0xff] }
 0x44c   :  { %v12545_v51 = vpack.c.bf16 %v11633_v21, %v11627_v30 }
 0x452   :  { %12526 = vmatpush1.bf16.xpose.msra.mxu0 %v12525_v33  ;;  %12718 = vmatpush1.bf16.xpose.msra.mxu1 %v12717_v28  ;;  %v12547_v33 = vpack.c.bf16 %v11646_v50, %v11640_v32  ;;  %v12739_v28 = vpack.c.bf16 %v11838_v53, %v11832_v58 }
 0x453   :  { %12528 = vmatprep.subr.bf16.mxu0 %v12527_v42  ;;  %12720 = vmatprep.subr.bf16.mxu1 %v12719_v1  ;;  %v11639_v42 = vld [vmem:[#allocation6 + $0x5c0] sm:$0xff]  ;;  %v11645_v1 = vld [vmem:[#allocation6 + $0x5f0] sm:$0xff] }
 0x454   :  { %v12549_v17 = vpack.c.bf16 %v11645_v1, %v11639_v42 }
 0x45a   :  { %12530 = vmatpush1.bf16.xpose.msra.mxu0 %v12529_v52  ;;  %12722 = vmatpush1.bf16.xpose.msra.mxu1 %v12721_v15  ;;  %v11847_v52 = vsub.s32 1, %v18958_v5  ;;  %v11855_v15 = vsub.s32 3, %v18958_v5 }
 0x45b   :  { %12532 = vmatprep.subr.bf16.mxu0 %v12531_v11  ;;  %12724 = vmatprep.subr.bf16.mxu1 %v12723_v35  ;;  %v11844_v11 = vrot.slane %v11839_v8, %v11843_v36  ;;  %v11852_v35 = vrot.slane %v11839_v8, %v11851_v47 }
 0x45c   :  { %v11848_v2 = vrot.slane %v11839_v8, %v11847_v52  ;;  %v11856_v57 = vrot.slane %v11839_v8, %v11855_v15 }
 0x462   :  { %12534 = vmatpush1.bf16.xpose.msra.mxu0 %v12533_v9  ;;  %12726 = vmatpush1.bf16.xpose.msra.mxu1 %v12725_v49 }
 0x463   :  { %12536 = vmatprep.subr.bf16.mxu0 %v12535_v18  ;;  %12728 = vmatprep.subr.bf16.mxu1 %v12727_v26 }
 0x46a   :  { %12538 = vmatpush1.bf16.xpose.msra.mxu0 %v12537_v56  ;;  %12730 = vmatpush1.bf16.xpose.msra.mxu1 %v12729_v45 }
 0x46b   :  { %12540 = vmatprep.subr.bf16.mxu0 %v12539_v19  ;;  %12732 = vmatprep.subr.bf16.mxu1 %v12731_v6 }
 0x472   :  { %12542 = vmatpush1.bf16.xpose.msra.mxu0 %v12541_v62  ;;  %12734 = vmatpush1.bf16.xpose.msra.mxu1 %v12733_v24 }
 0x473   :  { %12544 = vmatprep.subr.bf16.mxu0 %v12543_v34  ;;  %12736 = vmatprep.subr.bf16.mxu1 %v12735_v16 }
 0x47a   :  { %12546 = vmatpush1.bf16.xpose.msra.mxu0 %v12545_v51  ;;  %12738 = vmatpush1.bf16.xpose.msra.mxu1 %v12737_v22 }
 0x47b   :  { %12548 = vmatprep.subr.bf16.mxu0 %v12547_v33  ;;  %12740 = vmatprep.subr.bf16.mxu1 %v12739_v28 }
 0x482   :  { %12550 = vmatpush1.bf16.xpose.msra.mxu0 %v12549_v17  ;;  %12742 = vmatpush1.bf16.xpose.msra.mxu1 %v12741_v10 }
 0x489   :  { %12101 = vmatmul.mubr.f32.vlgmr.msra.gmra.mrb[0].mxu0 %v17711_v55  ;;  %12314 = vmatmul.mubr.f32.vlgmr.msra.gmra.mrb[0].mxu1 %v17711_v55 }
 0x55c   :  { %v12102_v29 = vpop.f32.mrb[0].mxu0  ;;  %v12315_v60 = vpop.f32.mrb[0].mxu1 }
 0x55d   :  { %v12743_v20 = vadd.f32 %v12102_v29, %v11844_v11  ;;  %v12745_v13 = vadd.f32 %v12315_v60, %v11852_v35  ;;  %v12104_v25 = vpop.f32.mrb[1].mxu0  ;;  %v12317_v0 = vpop.f32.mrb[1].mxu1 }
 0x55e   :  { %v12744_v55 = vadd.f32 %v12104_v25, %v11848_v2  ;;  %v12746_v9 = vadd.f32 %v12317_v0, %v11856_v57 }
 0x560   :  { %v12324_v49 = vcombine.low %v12743_v20, %v12744_v55  ;;  %v12325_v18 = vcombine.low %v12745_v13, %v12746_v9 }
 0x562   :  { %v12332_v26 = vrot.slane %v12324_v49, %v13061_v23  ;;  %v12339_v48 = vrot.slane %v12325_v18, %v13061_v23 }
 0x564   :  { %v12340_v63 = vcombine.low %v12332_v26, %v12339_v48 }
 0x566   :  { %12342 = vst [vmem:[#allocation9] sm:$0xff] %v12340_v63 }
 0x567   :  { %12849 = shalt.err (!%p12846_p0)
}
 0x568   :  { %s12850_s27 = scalar_lea.hbm %s17738_s3, 128 }
 0x569   :  { %p12851_p1 = scmp.ne.s32.totalorder %s17738_s3, %s12850_s27  ;;  %p12854_p2 = scmp.lt.u32.totalorder %s12850_s27, %s17738_s3 }
 0x56b   :  { %p12856_p3 = pnand %p12854_p2, %p12851_p1 }
 0x56d   :  { %12859 = shalt.err (!%p12856_p3)
}
 0x56e   :  { %12352 = dma.vmem_to_hbm [thread:$0]  %s12350_s23, 128, %s17738_s3, [#allocation5]  }
 0x56f   :  { %12864 = dma.done.wait [#allocation5], 128  }
 0x570   :  { %12865 = vsyncadd [#allocation5], 4294967168 }
 0x571   :  { %12356 = vsyncpa [#allocation4], 1 }
 0x572   :  { %12357 = vsyncpa [#allocation7], 1 }
 0x573   :  { %12358 = vsyncpa [#allocation5], 1 }

</bundles_post_ra>
